<compile_context>
chip_gen: v7x
topology: tpu7x:2x2x1
jax: 0.10.0
libtpu: 0.0.40
codegen_flags: <defaults>
</compile_context>

<pallas_src>
import numpy as np
import jax
import jax.numpy as jnp
from jax import lax
from jax.experimental import pallas as pl
from jax.experimental.pallas import tpu as pltpu

BN_EPS = 1e-5


# ----------------------------------------------------------------------------
# Kernel
# ----------------------------------------------------------------------------
def _make_rfb_kernel(H, W, C1, C2, scale, dils):
    d0, d1, d2 = dils  # dilation (== padding) of the last conv of branch 0/1/2

    def conv1x1(lhs_bf16, w_ref, b_ref, relu):
        y = jnp.dot(lhs_bf16, w_ref[...], preferred_element_type=jnp.float32)
        y = y + b_ref[...]
        return jnp.maximum(y, 0.0) if relu else y

    def conv3x3(t_flat, w_ref, b_ref, d, pad_ref, relu):
        """3x3 conv, stride 1, zero padding == dilation == d.

        t_flat: (H*W, Cin) f32.  w_ref: (9, Cin, Cout) bf16.  b_ref: (1, Cout) f32.
        """
        cin = t_flat.shape[-1]
        # interior write; border of pad_ref is already zero
        pad_ref[d:d + H, d:d + W, 0:cin] = t_flat.reshape(H, W, cin)
        acc = None
        for k in range(9):
            kh, kw = k // 3, k % 3
            win = pad_ref[kh * d:kh * d + H, kw * d:kw * d + W, 0:cin]
            lhs = win.reshape(H * W, cin).astype(jnp.bfloat16)
            part = jnp.dot(lhs, w_ref[k], preferred_element_type=jnp.float32)
            acc = part if acc is None else acc + part
        y = acc + b_ref[...]
        return jnp.maximum(y, 0.0) if relu else y

    def zero_border(ref, d):
        hp, wp, cm = ref.shape
        zr = jnp.zeros((d, wp, cm), ref.dtype)
        ref[0:d, :, :] = zr
        ref[hp - d:hp, :, :] = zr
        zc = jnp.zeros((hp, d, cm), ref.dtype)
        ref[:, 0:d, :] = zc
        ref[:, wp - d:wp, :] = zc

    def kernel(x_ref,
               b0w1, b0b1, b0w2, b0b2, b0w3, b0b3,
               b1w1, b1b1, b1w2, b1b2, b1w3, b1b3,
               b2w1, b2b1, b2w2, b2b2, b2w3, b2b3, b2w4, b2b4,
               wl_ref, bl_ref, ws_ref, bs_ref,
               o_ref,
               s1, sA, sB, sC):
        # Border stripes only (interior is overwritten for every conv call).
        zero_border(s1, 1)
        zero_border(sA, d0)
        zero_border(sB, d1)
        zero_border(sC, d2)

        xf = x_ref[0].reshape(H * W, C1).astype(jnp.bfloat16)

        # ---- branch 0: 1x1 -> 3x3(p1) ReLU -> 3x3(dil d0) ------------------
        t = conv1x1(xf, b0w1, b0b1, relu=False)
        t = conv3x3(t, b0w2, b0b2, 1, s1, relu=True)
        x0 = conv3x3(t, b0w3, b0b3, d0, sA, relu=False)

        # ---- branch 1: 1x1 -> 3x3(p1) ReLU -> 3x3(dil d1) ------------------
        t = conv1x1(xf, b1w1, b1b1, relu=False)
        t = conv3x3(t, b1w2, b1b2, 1, s1, relu=True)
        x1 = conv3x3(t, b1w3, b1b3, d1, sB, relu=False)

        # ---- branch 2: 1x1 -> 3x3(p1) ReLU -> 3x3(p1) ReLU -> 3x3(dil d2) --
        t = conv1x1(xf, b2w1, b2b1, relu=False)
        t = conv3x3(t, b2w2, b2b2, 1, s1, relu=True)
        t = conv3x3(t, b2w3, b2b3, 1, s1, relu=True)
        x2 = conv3x3(t, b2w4, b2b4, d2, sC, relu=False)

        # ---- ConvLinear on concat([x0, x1, x2], C): 3 channel-block matmuls -
        z = jnp.dot(x0.astype(jnp.bfloat16), wl_ref[0],
                    preferred_element_type=jnp.float32)
        z = z + jnp.dot(x1.astype(jnp.bfloat16), wl_ref[1],
                        preferred_element_type=jnp.float32)
        z = z + jnp.dot(x2.astype(jnp.bfloat16), wl_ref[2],
                        preferred_element_type=jnp.float32)
        z = z + bl_ref[...]

        # ---- shortcut (1x1 + BN), residual, ReLU ----------------------------
        short = conv1x1(xf, ws_ref, bs_ref, relu=False)
        out = jnp.maximum(z * scale + short, 0.0)
        o_ref[0] = out.reshape(H, W, C2).astype(o_ref.dtype)

    return kernel


def rfb_pallas(x_nhwc, kparams, *, P, C2, scale=0.1, dils=(2, 3, 5)):
    N, H, W, C1 = x_nhwc.shape
    kernel = _make_rfb_kernel(H, W, C1, C2, scale, dils)

    in_specs = [pl.BlockSpec((1, H, W, C1), lambda n: (n, 0, 0, 0))]
    for a in kparams:
        zeros = (0,) * a.ndim
        in_specs.append(pl.BlockSpec(a.shape, lambda n, _z=zeros: _z))

    d0, d1, d2 = dils
    cs = 2 * P  # >= every channel count fed to a 3x3 conv (P, P//2*3, 2P)
    scratch_shapes = [
        pltpu.VMEM((H + 2, W + 2, cs), jnp.float32),
        pltpu.VMEM((H + 2 * d0, W + 2 * d0, cs), jnp.float32),
        pltpu.VMEM((H + 2 * d1, W + 2 * d1, cs), jnp.float32),
        pltpu.VMEM((H + 2 * d2, W + 2 * d2, cs), jnp.float32),
    ]

    return pl.pallas_call(
        kernel,
        out_shape=jax.ShapeDtypeStruct((N, H, W, C2), jnp.float32),
        grid_spec=pltpu.PrefetchScalarGridSpec(
            num_scalar_prefetch=0,
            grid=(N,),
            in_specs=in_specs,
            out_specs=pl.BlockSpec((1, H, W, C2), lambda n: (n, 0, 0, 0)),
            scratch_shapes=scratch_shapes,
        ),
        compiler_params=pltpu.CompilerParams(
            dimension_semantics=("parallel",),
            vmem_limit_bytes=32 * 1024 * 1024),
    )(x_nhwc, *kparams)


# ----------------------------------------------------------------------------
# Parameters (BN folded, weights rounded to bf16-representable values so the
# kernel and the f32 reference share identical weights)
# ----------------------------------------------------------------------------
def _fold_bn(w_oihw, gamma, beta, mean, var):
    s = gamma / jnp.sqrt(var + BN_EPS)
    w = w_oihw * s[:, None, None, None]
    b = beta - mean * s
    w = w.astype(jnp.bfloat16).astype(jnp.float32)
    return w, b


def _make_conv(key, cin, cout, ksz):
    k1, k2, k3, k4, k5 = jax.random.split(key, 5)
    fan_in = cin * ksz * ksz
    w = jax.random.normal(k1, (cout, cin, ksz, ksz), jnp.float32) / np.sqrt(fan_in)
    gamma = 1.0 + 0.1 * jax.random.normal(k2, (cout,), jnp.float32)
    beta = 0.1 * jax.random.normal(k3, (cout,), jnp.float32)
    mean = 0.1 * jax.random.normal(k4, (cout,), jnp.float32)
    var = 0.5 + jax.random.uniform(k5, (cout,), jnp.float32)
    return _fold_bn(w, gamma, beta, mean, var)


def init_rfb_params(key, c1, c2, *, map_reduce=8, vision=1):
    P = c1 // map_reduce
    P2 = 2 * P
    Q = P // 2 * 3
    d0, d1, d2 = vision + 1, vision + 2, vision + 4  # see TODO(synk) at top

    # (name, cin, cout, ksz, pad, dil, relu) in kernel-argument order
    cfg = [
        ("b0c1", c1, P, 1, 0, 1, False),
        ("b0c2", P, P2, 3, 1, 1, True),
        ("b0c3", P2, P2, 3, d0, d0, False),
        ("b1c1", c1, P, 1, 0, 1, False),
        ("b1c2", P, P2, 3, 1, 1, True),
        ("b1c3", P2, P2, 3, d1, d1, False),
        ("b2c1", c1, P, 1, 0, 1, False),
        ("b2c2", P, Q, 3, 1, 1, True),
        ("b2c3", Q, P2, 3, 1, 1, True),
        ("b2c4", P2, P2, 3, d2, d2, False),
        ("lin", 6 * P, c2, 1, 0, 1, False),
        ("sc", c1, c2, 1, 0, 1, False),
    ]
    keys = jax.random.split(key, len(cfg))

    kparams = []    # flat [w, b, w, b, ...] in kernel order (bf16 weights)
    ref_specs = {}  # name -> (w_hwio f32, b f32, pad, dil, relu)
    for (name, cin, cout, ksz, pad, dil, relu), k in zip(cfg, keys):
        w_oihw, b = _make_conv(k, cin, cout, ksz)
        w_hwio = jnp.transpose(w_oihw, (2, 3, 1, 0))       # (kh, kw, Cin, Cout)
        ref_specs[name] = (w_hwio, b, pad, dil, relu)
        if ksz == 1:
            w_k = w_hwio.reshape(cin, cout)                # (Cin, Cout)
            if name == "lin":
                w_k = w_k.reshape(3, P2, cout)             # per-branch blocks
        else:
            w_k = w_hwio.reshape(9, cin, cout)             # per-tap blocks
        kparams.append(w_k.astype(jnp.bfloat16))
        kparams.append(b[None, :].astype(jnp.float32))
    dims = dict(P=P, Q=Q, C2=c2, dils=(d0, d1, d2))
    return kparams, ref_specs, dims


# ----------------------------------------------------------------------------
# Pure-JAX reference (f32, folded-BN, same weights)
# ----------------------------------------------------------------------------
def rfb_reference(x_nhwc, ref_specs, *, scale=0.1):
    def conv(x, spec):
        w_hwio, b, pad, dil, relu = spec
        y = lax.conv_general_dilated(
            x, w_hwio, window_strides=(1, 1),
            padding=[(pad, pad), (pad, pad)],
            rhs_dilation=(dil, dil),
            dimension_numbers=("NHWC", "HWIO", "NHWC"),
            precision=lax.Precision.HIGHEST)
        y = y + b
        return jnp.maximum(y, 0.0) if relu else y

    def seq(x, names):
        for n in names:
            x = conv(x, ref_specs[n])
        return x

    x0 = seq(x_nhwc, ["b0c1", "b0c2", "b0c3"])
    x1 = seq(x_nhwc, ["b1c1", "b1c2", "b1c3"])
    x2 = seq(x_nhwc, ["b2c1", "b2c2", "b2c3", "b2c4"])
    cat = jnp.concatenate([x0, x1, x2], axis=-1)
    out = conv(cat, ref_specs["lin"])
    short = conv(x_nhwc, ref_specs["sc"])
    return jnp.maximum(out * scale + short, 0.0)


if __name__ == "__main__":
    N, C1, H, W = 2, 32, 16, 16      # RFB(in_planes=32, out_planes=32)
    C2 = 32
    key = jax.random.PRNGKey(0)
    k_x, k_p = jax.random.split(key)

    kparams, ref_specs, dims = init_rfb_params(k_p, C1, C2)

    # PyTorch-convention NCHW input, permuted to NHWC for the kernel.
    x_nchw = jax.random.normal(k_x, (N, C1, H, W), jnp.float32)
    x_nhwc = jnp.transpose(x_nchw, (0, 2, 3, 1))

    out_nhwc = jax.block_until_ready(
        rfb_pallas(x_nhwc, kparams, P=dims["P"], C2=dims["C2"],
                   scale=0.1, dils=dims["dils"]))
    ref_nhwc = rfb_reference(x_nhwc, ref_specs, scale=0.1)
    np.testing.assert_allclose(np.asarray(out_nhwc), np.asarray(ref_nhwc),
                               rtol=2e-2, atol=2e-2)

    out_nchw = jnp.transpose(out_nhwc, (0, 3, 1, 2))   # back to NCHW
    assert out_nchw.shape == (N, C2, H, W)
    print("KERNEL_OK")
</pallas_src>

<mosaic_0001>
module attributes {stable_mosaic.version = 11 : i64} {
  func.func @kernel(%arg0: i32, %arg1: memref<1x16x16x32xf32, #tpu.memory_space<vmem>>, %arg2: memref<32x4xbf16, #tpu.memory_space<vmem>>, %arg3: memref<1x4xf32, #tpu.memory_space<vmem>>, %arg4: memref<9x4x8xbf16, #tpu.memory_space<vmem>>, %arg5: memref<1x8xf32, #tpu.memory_space<vmem>>, %arg6: memref<9x8x8xbf16, #tpu.memory_space<vmem>>, %arg7: memref<1x8xf32, #tpu.memory_space<vmem>>, %arg8: memref<32x4xbf16, #tpu.memory_space<vmem>>, %arg9: memref<1x4xf32, #tpu.memory_space<vmem>>, %arg10: memref<9x4x8xbf16, #tpu.memory_space<vmem>>, %arg11: memref<1x8xf32, #tpu.memory_space<vmem>>, %arg12: memref<9x8x8xbf16, #tpu.memory_space<vmem>>, %arg13: memref<1x8xf32, #tpu.memory_space<vmem>>, %arg14: memref<32x4xbf16, #tpu.memory_space<vmem>>, %arg15: memref<1x4xf32, #tpu.memory_space<vmem>>, %arg16: memref<9x4x6xbf16, #tpu.memory_space<vmem>>, %arg17: memref<1x6xf32, #tpu.memory_space<vmem>>, %arg18: memref<9x6x8xbf16, #tpu.memory_space<vmem>>, %arg19: memref<1x8xf32, #tpu.memory_space<vmem>>, %arg20: memref<9x8x8xbf16, #tpu.memory_space<vmem>>, %arg21: memref<1x8xf32, #tpu.memory_space<vmem>>, %arg22: memref<3x8x32xbf16, #tpu.memory_space<vmem>>, %arg23: memref<1x32xf32, #tpu.memory_space<vmem>>, %arg24: memref<32x32xbf16, #tpu.memory_space<vmem>>, %arg25: memref<1x32xf32, #tpu.memory_space<vmem>>, %arg26: memref<1x16x16x32xf32, #tpu.memory_space<vmem>>, %arg27: memref<18x18x8xf32, #tpu.memory_space<vmem>>, %arg28: memref<20x20x8xf32, #tpu.memory_space<vmem>>, %arg29: memref<22x22x8xf32, #tpu.memory_space<vmem>>, %arg30: memref<26x26x8xf32, #tpu.memory_space<vmem>>) attributes {dimension_semantics = [#tpu.dimension_semantics<parallel>], iteration_bounds = array<i64: 2>, scalar_prefetch = 0 : i64, scratch_operands = 4 : i64, tpu.core_type = #tpu.core_type<tc>, window_params = [{transform_indices = @transform_0, window_bounds = array<i64: 1, 16, 16, 32>}, {pipeline_mode = #tpu.pipeline_mode<synchronous>, transform_indices = @transform_1, window_bounds = array<i64: 32, 4>}, {pipeline_mode = #tpu.pipeline_mode<synchronous>, transform_indices = @transform_2, window_bounds = array<i64: 1, 4>}, {pipeline_mode = #tpu.pipeline_mode<synchronous>, transform_indices = @transform_3, window_bounds = array<i64: 9, 4, 8>}, {pipeline_mode = #tpu.pipeline_mode<synchronous>, transform_indices = @transform_4, window_bounds = array<i64: 1, 8>}, {pipeline_mode = #tpu.pipeline_mode<synchronous>, transform_indices = @transform_5, window_bounds = array<i64: 9, 8, 8>}, {pipeline_mode = #tpu.pipeline_mode<synchronous>, transform_indices = @transform_6, window_bounds = array<i64: 1, 8>}, {pipeline_mode = #tpu.pipeline_mode<synchronous>, transform_indices = @transform_7, window_bounds = array<i64: 32, 4>}, {pipeline_mode = #tpu.pipeline_mode<synchronous>, transform_indices = @transform_8, window_bounds = array<i64: 1, 4>}, {pipeline_mode = #tpu.pipeline_mode<synchronous>, transform_indices = @transform_9, window_bounds = array<i64: 9, 4, 8>}, {pipeline_mode = #tpu.pipeline_mode<synchronous>, transform_indices = @transform_10, window_bounds = array<i64: 1, 8>}, {pipeline_mode = #tpu.pipeline_mode<synchronous>, transform_indices = @transform_11, window_bounds = array<i64: 9, 8, 8>}, {pipeline_mode = #tpu.pipeline_mode<synchronous>, transform_indices = @transform_12, window_bounds = array<i64: 1, 8>}, {pipeline_mode = #tpu.pipeline_mode<synchronous>, transform_indices = @transform_13, window_bounds = array<i64: 32, 4>}, {pipeline_mode = #tpu.pipeline_mode<synchronous>, transform_indices = @transform_14, window_bounds = array<i64: 1, 4>}, {pipeline_mode = #tpu.pipeline_mode<synchronous>, transform_indices = @transform_15, window_bounds = array<i64: 9, 4, 6>}, {pipeline_mode = #tpu.pipeline_mode<synchronous>, transform_indices = @transform_16, window_bounds = array<i64: 1, 6>}, {pipeline_mode = #tpu.pipeline_mode<synchronous>, transform_indices = @transform_17, window_bounds = array<i64: 9, 6, 8>}, {pipeline_mode = #tpu.pipeline_mode<synchronous>, transform_indices = @transform_18, window_bounds = array<i64: 1, 8>}, {pipeline_mode = #tpu.pipeline_mode<synchronous>, transform_indices = @transform_19, window_bounds = array<i64: 9, 8, 8>}, {pipeline_mode = #tpu.pipeline_mode<synchronous>, transform_indices = @transform_20, window_bounds = array<i64: 1, 8>}, {pipeline_mode = #tpu.pipeline_mode<synchronous>, transform_indices = @transform_21, window_bounds = array<i64: 3, 8, 32>}, {pipeline_mode = #tpu.pipeline_mode<synchronous>, transform_indices = @transform_22, window_bounds = array<i64: 1, 32>}, {pipeline_mode = #tpu.pipeline_mode<synchronous>, transform_indices = @transform_23, window_bounds = array<i64: 32, 32>}, {pipeline_mode = #tpu.pipeline_mode<synchronous>, transform_indices = @transform_24, window_bounds = array<i64: 1, 32>}, {transform_indices = @transform_25, window_bounds = array<i64: 1, 16, 16, 32>}]} {
    %cst = arith.constant 0.000000e+00 : f32
    %0 = vector.broadcast %cst : f32 to vector<1x18x8xf32>
    %c0 = arith.constant 0 : index
    %c0_0 = arith.constant 0 : index
    %c0_1 = arith.constant 0 : index
    %1 = vector.load %arg27[%c0, %c0_0, %c0_1] : memref<18x18x8xf32, #tpu.memory_space<vmem>>, vector<1x18x8xf32>
    tpu.vector_store %arg27[%c0, %c0_0, %c0_1], %0 {strides = array<i32>} : memref<18x18x8xf32, #tpu.memory_space<vmem>>, vector<1x18x8xf32>,
    %c17 = arith.constant 17 : index
    %c0_2 = arith.constant 0 : index
    %c0_3 = arith.constant 0 : index
    %2 = vector.load %arg27[%c17, %c0_2, %c0_3] : memref<18x18x8xf32, #tpu.memory_space<vmem>>, vector<1x18x8xf32>
    tpu.vector_store %arg27[%c17, %c0_2, %c0_3], %0 {strides = array<i32>} : memref<18x18x8xf32, #tpu.memory_space<vmem>>, vector<1x18x8xf32>,
    %cst_4 = arith.constant 0.000000e+00 : f32
    %3 = vector.broadcast %cst_4 : f32 to vector<18x1x8xf32>
    %c0_5 = arith.constant 0 : index
    %c0_6 = arith.constant 0 : index
    %c0_7 = arith.constant 0 : index
    %4 = vector.load %arg27[%c0_5, %c0_6, %c0_7] : memref<18x18x8xf32, #tpu.memory_space<vmem>>, vector<18x1x8xf32>
    tpu.vector_store %arg27[%c0_5, %c0_6, %c0_7], %3 {strides = array<i32>} : memref<18x18x8xf32, #tpu.memory_space<vmem>>, vector<18x1x8xf32>,
    %c0_8 = arith.constant 0 : index
    %c17_9 = arith.constant 17 : index
    %c0_10 = arith.constant 0 : index
    %5 = vector.load %arg27[%c0_8, %c17_9, %c0_10] : memref<18x18x8xf32, #tpu.memory_space<vmem>>, vector<18x1x8xf32>
    tpu.vector_store %arg27[%c0_8, %c17_9, %c0_10], %3 {strides = array<i32>} : memref<18x18x8xf32, #tpu.memory_space<vmem>>, vector<18x1x8xf32>,
    %cst_11 = arith.constant 0.000000e+00 : f32
    %6 = vector.broadcast %cst_11 : f32 to vector<2x20x8xf32>
    %c0_12 = arith.constant 0 : index
    %c0_13 = arith.constant 0 : index
    %c0_14 = arith.constant 0 : index
    %7 = vector.load %arg28[%c0_12, %c0_13, %c0_14] : memref<20x20x8xf32, #tpu.memory_space<vmem>>, vector<2x20x8xf32>
    tpu.vector_store %arg28[%c0_12, %c0_13, %c0_14], %6 {strides = array<i32>} : memref<20x20x8xf32, #tpu.memory_space<vmem>>, vector<2x20x8xf32>,
    %c18 = arith.constant 18 : index
    %c0_15 = arith.constant 0 : index
    %c0_16 = arith.constant 0 : index
    %8 = vector.load %arg28[%c18, %c0_15, %c0_16] : memref<20x20x8xf32, #tpu.memory_space<vmem>>, vector<2x20x8xf32>
    tpu.vector_store %arg28[%c18, %c0_15, %c0_16], %6 {strides = array<i32>} : memref<20x20x8xf32, #tpu.memory_space<vmem>>, vector<2x20x8xf32>,
    %cst_17 = arith.constant 0.000000e+00 : f32
    %9 = vector.broadcast %cst_17 : f32 to vector<20x2x8xf32>
    %c0_18 = arith.constant 0 : index
    %c0_19 = arith.constant 0 : index
    %c0_20 = arith.constant 0 : index
    %10 = vector.load %arg28[%c0_18, %c0_19, %c0_20] : memref<20x20x8xf32, #tpu.memory_space<vmem>>, vector<20x2x8xf32>
    tpu.vector_store %arg28[%c0_18, %c0_19, %c0_20], %9 {strides = array<i32>} : memref<20x20x8xf32, #tpu.memory_space<vmem>>, vector<20x2x8xf32>,
    %c0_21 = arith.constant 0 : index
    %c18_22 = arith.constant 18 : index
    %c0_23 = arith.constant 0 : index
    %11 = vector.load %arg28[%c0_21, %c18_22, %c0_23] : memref<20x20x8xf32, #tpu.memory_space<vmem>>, vector<20x2x8xf32>
    tpu.vector_store %arg28[%c0_21, %c18_22, %c0_23], %9 {strides = array<i32>} : memref<20x20x8xf32, #tpu.memory_space<vmem>>, vector<20x2x8xf32>,
    %cst_24 = arith.constant 0.000000e+00 : f32
    %12 = vector.broadcast %cst_24 : f32 to vector<3x22x8xf32>
    %c0_25 = arith.constant 0 : index
    %c0_26 = arith.constant 0 : index
    %c0_27 = arith.constant 0 : index
    %13 = vector.load %arg29[%c0_25, %c0_26, %c0_27] : memref<22x22x8xf32, #tpu.memory_space<vmem>>, vector<3x22x8xf32>
    tpu.vector_store %arg29[%c0_25, %c0_26, %c0_27], %12 {strides = array<i32>} : memref<22x22x8xf32, #tpu.memory_space<vmem>>, vector<3x22x8xf32>,
    %c19 = arith.constant 19 : index
    %c0_28 = arith.constant 0 : index
    %c0_29 = arith.constant 0 : index
    %14 = vector.load %arg29[%c19, %c0_28, %c0_29] : memref<22x22x8xf32, #tpu.memory_space<vmem>>, vector<3x22x8xf32>
    tpu.vector_store %arg29[%c19, %c0_28, %c0_29], %12 {strides = array<i32>} : memref<22x22x8xf32, #tpu.memory_space<vmem>>, vector<3x22x8xf32>,
    %cst_30 = arith.constant 0.000000e+00 : f32
    %15 = vector.broadcast %cst_30 : f32 to vector<22x3x8xf32>
    %c0_31 = arith.constant 0 : index
    %c0_32 = arith.constant 0 : index
    %c0_33 = arith.constant 0 : index
    %16 = vector.load %arg29[%c0_31, %c0_32, %c0_33] : memref<22x22x8xf32, #tpu.memory_space<vmem>>, vector<22x3x8xf32>
    tpu.vector_store %arg29[%c0_31, %c0_32, %c0_33], %15 {strides = array<i32>} : memref<22x22x8xf32, #tpu.memory_space<vmem>>, vector<22x3x8xf32>,
    %c0_34 = arith.constant 0 : index
    %c19_35 = arith.constant 19 : index
    %c0_36 = arith.constant 0 : index
    %17 = vector.load %arg29[%c0_34, %c19_35, %c0_36] : memref<22x22x8xf32, #tpu.memory_space<vmem>>, vector<22x3x8xf32>
    tpu.vector_store %arg29[%c0_34, %c19_35, %c0_36], %15 {strides = array<i32>} : memref<22x22x8xf32, #tpu.memory_space<vmem>>, vector<22x3x8xf32>,
    %cst_37 = arith.constant 0.000000e+00 : f32
    %18 = vector.broadcast %cst_37 : f32 to vector<5x26x8xf32>
    %c0_38 = arith.constant 0 : index
    %c0_39 = arith.constant 0 : index
    %c0_40 = arith.constant 0 : index
    %19 = vector.load %arg30[%c0_38, %c0_39, %c0_40] : memref<26x26x8xf32, #tpu.memory_space<vmem>>, vector<5x26x8xf32>
    tpu.vector_store %arg30[%c0_38, %c0_39, %c0_40], %18 {strides = array<i32>} : memref<26x26x8xf32, #tpu.memory_space<vmem>>, vector<5x26x8xf32>,
    %c21 = arith.constant 21 : index
    %c0_41 = arith.constant 0 : index
    %c0_42 = arith.constant 0 : index
    %20 = vector.load %arg30[%c21, %c0_41, %c0_42] : memref<26x26x8xf32, #tpu.memory_space<vmem>>, vector<5x26x8xf32>
    tpu.vector_store %arg30[%c21, %c0_41, %c0_42], %18 {strides = array<i32>} : memref<26x26x8xf32, #tpu.memory_space<vmem>>, vector<5x26x8xf32>,
    %cst_43 = arith.constant 0.000000e+00 : f32
    %21 = vector.broadcast %cst_43 : f32 to vector<26x5x8xf32>
    %c0_44 = arith.constant 0 : index
    %c0_45 = arith.constant 0 : index
    %c0_46 = arith.constant 0 : index
    %22 = vector.load %arg30[%c0_44, %c0_45, %c0_46] : memref<26x26x8xf32, #tpu.memory_space<vmem>>, vector<26x5x8xf32>
    tpu.vector_store %arg30[%c0_44, %c0_45, %c0_46], %21 {strides = array<i32>} : memref<26x26x8xf32, #tpu.memory_space<vmem>>, vector<26x5x8xf32>,
    %c0_47 = arith.constant 0 : index
    %c21_48 = arith.constant 21 : index
    %c0_49 = arith.constant 0 : index
    %23 = vector.load %arg30[%c0_47, %c21_48, %c0_49] : memref<26x26x8xf32, #tpu.memory_space<vmem>>, vector<26x5x8xf32>
    tpu.vector_store %arg30[%c0_47, %c21_48, %c0_49], %21 {strides = array<i32>} : memref<26x26x8xf32, #tpu.memory_space<vmem>>, vector<26x5x8xf32>,
    %c0_50 = arith.constant 0 : index
    %c0_51 = arith.constant 0 : index
    %c0_52 = arith.constant 0 : index
    %c0_53 = arith.constant 0 : index
    %24 = vector.load %arg1[%c0_50, %c0_51, %c0_52, %c0_53] : memref<1x16x16x32xf32, #tpu.memory_space<vmem>>, vector<1x16x16x32xf32>
    %25 = vector.shape_cast %24 : vector<1x16x16x32xf32> to vector<16x16x32xf32>
    %26 = vector.shape_cast %25 : vector<16x16x32xf32> to vector<256x32xf32>
    %27 = arith.truncf %26 : vector<256x32xf32> to vector<256x32xbf16>
    %c0_54 = arith.constant 0 : index
    %c0_55 = arith.constant 0 : index
    %28 = vector.load %arg2[%c0_54, %c0_55] : memref<32x4xbf16, #tpu.memory_space<vmem>>, vector<32x4xbf16>
    %cst_56 = arith.constant dense<0.000000e+00> : vector<256x4xf32>
    %29 = tpu.matmul %27, %28, %cst_56 {dimension_numbers = #tpu.dot_dimension_numbers<[1], [0], [0], [1], [0, 0, 1, 1], [], []>} : vector<256x32xbf16>, vector<32x4xbf16>, vector<256x4xf32> -> vector<256x4xf32>
    %c0_57 = arith.constant 0 : index
    %c0_58 = arith.constant 0 : index
    %30 = vector.load %arg3[%c0_57, %c0_58] : memref<1x4xf32, #tpu.memory_space<vmem>>, vector<1x4xf32>
    %31 = vector.broadcast %30 : vector<1x4xf32> to vector<256x4xf32>
    %32 = arith.addf %29, %31 : vector<256x4xf32>
    %33 = vector.shape_cast %32 : vector<256x4xf32> to vector<16x16x4xf32>
    %c1 = arith.constant 1 : index
    %c1_59 = arith.constant 1 : index
    %c0_60 = arith.constant 0 : index
    %34 = vector.load %arg27[%c1, %c1_59, %c0_60] : memref<18x18x8xf32, #tpu.memory_space<vmem>>, vector<16x16x4xf32>
    tpu.vector_store %arg27[%c1, %c1_59, %c0_60], %33 {strides = array<i32>} : memref<18x18x8xf32, #tpu.memory_space<vmem>>, vector<16x16x4xf32>,
    %c0_61 = arith.constant 0 : index
    %c0_62 = arith.constant 0 : index
    %c0_63 = arith.constant 0 : index
    %35 = vector.load %arg27[%c0_61, %c0_62, %c0_63] : memref<18x18x8xf32, #tpu.memory_space<vmem>>, vector<16x16x4xf32>
    %36 = vector.shape_cast %35 : vector<16x16x4xf32> to vector<256x4xf32>
    %37 = arith.truncf %36 : vector<256x4xf32> to vector<256x4xbf16>
    %c0_64 = arith.constant 0 : index
    %c0_65 = arith.constant 0 : index
    %c0_66 = arith.constant 0 : index
    %38 = vector.load %arg4[%c0_64, %c0_65, %c0_66] : memref<9x4x8xbf16, #tpu.memory_space<vmem>>, vector<1x4x8xbf16>
    %39 = vector.shape_cast %38 : vector<1x4x8xbf16> to vector<4x8xbf16>
    %cst_67 = arith.constant dense<0.000000e+00> : vector<256x8xf32>
    %40 = tpu.matmul %37, %39, %cst_67 {dimension_numbers = #tpu.dot_dimension_numbers<[1], [0], [0], [1], [0, 0, 1, 1], [], []>} : vector<256x4xbf16>, vector<4x8xbf16>, vector<256x8xf32> -> vector<256x8xf32>
    %c0_68 = arith.constant 0 : index
    %c1_69 = arith.constant 1 : index
    %c0_70 = arith.constant 0 : index
    %41 = vector.load %arg27[%c0_68, %c1_69, %c0_70] : memref<18x18x8xf32, #tpu.memory_space<vmem>>, vector<16x16x4xf32>
    %42 = vector.shape_cast %41 : vector<16x16x4xf32> to vector<256x4xf32>
    %43 = arith.truncf %42 : vector<256x4xf32> to vector<256x4xbf16>
    %c1_71 = arith.constant 1 : index
    %c0_72 = arith.constant 0 : index
    %c0_73 = arith.constant 0 : index
    %44 = vector.load %arg4[%c1_71, %c0_72, %c0_73] : memref<9x4x8xbf16, #tpu.memory_space<vmem>>, vector<1x4x8xbf16>
    %45 = vector.shape_cast %44 : vector<1x4x8xbf16> to vector<4x8xbf16>
    %cst_74 = arith.constant dense<0.000000e+00> : vector<256x8xf32>
    %46 = tpu.matmul %43, %45, %cst_74 {dimension_numbers = #tpu.dot_dimension_numbers<[1], [0], [0], [1], [0, 0, 1, 1], [], []>} : vector<256x4xbf16>, vector<4x8xbf16>, vector<256x8xf32> -> vector<256x8xf32>
    %47 = arith.addf %40, %46 : vector<256x8xf32>
    %c0_75 = arith.constant 0 : index
    %c2 = arith.constant 2 : index
    %c0_76 = arith.constant 0 : index
    %48 = vector.load %arg27[%c0_75, %c2, %c0_76] : memref<18x18x8xf32, #tpu.memory_space<vmem>>, vector<16x16x4xf32>
    %49 = vector.shape_cast %48 : vector<16x16x4xf32> to vector<256x4xf32>
    %50 = arith.truncf %49 : vector<256x4xf32> to vector<256x4xbf16>
    %c2_77 = arith.constant 2 : index
    %c0_78 = arith.constant 0 : index
    %c0_79 = arith.constant 0 : index
    %51 = vector.load %arg4[%c2_77, %c0_78, %c0_79] : memref<9x4x8xbf16, #tpu.memory_space<vmem>>, vector<1x4x8xbf16>
    %52 = vector.shape_cast %51 : vector<1x4x8xbf16> to vector<4x8xbf16>
    %cst_80 = arith.constant dense<0.000000e+00> : vector<256x8xf32>
    %53 = tpu.matmul %50, %52, %cst_80 {dimension_numbers = #tpu.dot_dimension_numbers<[1], [0], [0], [1], [0, 0, 1, 1], [], []>} : vector<256x4xbf16>, vector<4x8xbf16>, vector<256x8xf32> -> vector<256x8xf32>
    %54 = arith.addf %47, %53 : vector<256x8xf32>
    %c1_81 = arith.constant 1 : index
    %c0_82 = arith.constant 0 : index
    %c0_83 = arith.constant 0 : index
    %55 = vector.load %arg27[%c1_81, %c0_82, %c0_83] : memref<18x18x8xf32, #tpu.memory_space<vmem>>, vector<16x16x4xf32>
    %56 = vector.shape_cast %55 : vector<16x16x4xf32> to vector<256x4xf32>
    %57 = arith.truncf %56 : vector<256x4xf32> to vector<256x4xbf16>
    %c3 = arith.constant 3 : index
    %c0_84 = arith.constant 0 : index
    %c0_85 = arith.constant 0 : index
    %58 = vector.load %arg4[%c3, %c0_84, %c0_85] : memref<9x4x8xbf16, #tpu.memory_space<vmem>>, vector<1x4x8xbf16>
    %59 = vector.shape_cast %58 : vector<1x4x8xbf16> to vector<4x8xbf16>
    %cst_86 = arith.constant dense<0.000000e+00> : vector<256x8xf32>
    %60 = tpu.matmul %57, %59, %cst_86 {dimension_numbers = #tpu.dot_dimension_numbers<[1], [0], [0], [1], [0, 0, 1, 1], [], []>} : vector<256x4xbf16>, vector<4x8xbf16>, vector<256x8xf32> -> vector<256x8xf32>
    %61 = arith.addf %54, %60 : vector<256x8xf32>
    %c1_87 = arith.constant 1 : index
    %c1_88 = arith.constant 1 : index
    %c0_89 = arith.constant 0 : index
    %62 = vector.load %arg27[%c1_87, %c1_88, %c0_89] : memref<18x18x8xf32, #tpu.memory_space<vmem>>, vector<16x16x4xf32>
    %63 = vector.shape_cast %62 : vector<16x16x4xf32> to vector<256x4xf32>
    %64 = arith.truncf %63 : vector<256x4xf32> to vector<256x4xbf16>
    %c4 = arith.constant 4 : index
    %c0_90 = arith.constant 0 : index
    %c0_91 = arith.constant 0 : index
    %65 = vector.load %arg4[%c4, %c0_90, %c0_91] : memref<9x4x8xbf16, #tpu.memory_space<vmem>>, vector<1x4x8xbf16>
    %66 = vector.shape_cast %65 : vector<1x4x8xbf16> to vector<4x8xbf16>
    %cst_92 = arith.constant dense<0.000000e+00> : vector<256x8xf32>
    %67 = tpu.matmul %64, %66, %cst_92 {dimension_numbers = #tpu.dot_dimension_numbers<[1], [0], [0], [1], [0, 0, 1, 1], [], []>} : vector<256x4xbf16>, vector<4x8xbf16>, vector<256x8xf32> -> vector<256x8xf32>
    %68 = arith.addf %61, %67 : vector<256x8xf32>
    %c1_93 = arith.constant 1 : index
    %c2_94 = arith.constant 2 : index
    %c0_95 = arith.constant 0 : index
    %69 = vector.load %arg27[%c1_93, %c2_94, %c0_95] : memref<18x18x8xf32, #tpu.memory_space<vmem>>, vector<16x16x4xf32>
    %70 = vector.shape_cast %69 : vector<16x16x4xf32> to vector<256x4xf32>
    %71 = arith.truncf %70 : vector<256x4xf32> to vector<256x4xbf16>
    %c5 = arith.constant 5 : index
    %c0_96 = arith.constant 0 : index
    %c0_97 = arith.constant 0 : index
    %72 = vector.load %arg4[%c5, %c0_96, %c0_97] : memref<9x4x8xbf16, #tpu.memory_space<vmem>>, vector<1x4x8xbf16>
    %73 = vector.shape_cast %72 : vector<1x4x8xbf16> to vector<4x8xbf16>
    %cst_98 = arith.constant dense<0.000000e+00> : vector<256x8xf32>
    %74 = tpu.matmul %71, %73, %cst_98 {dimension_numbers = #tpu.dot_dimension_numbers<[1], [0], [0], [1], [0, 0, 1, 1], [], []>} : vector<256x4xbf16>, vector<4x8xbf16>, vector<256x8xf32> -> vector<256x8xf32>
    %75 = arith.addf %68, %74 : vector<256x8xf32>
    %c2_99 = arith.constant 2 : index
    %c0_100 = arith.constant 0 : index
    %c0_101 = arith.constant 0 : index
    %76 = vector.load %arg27[%c2_99, %c0_100, %c0_101] : memref<18x18x8xf32, #tpu.memory_space<vmem>>, vector<16x16x4xf32>
    %77 = vector.shape_cast %76 : vector<16x16x4xf32> to vector<256x4xf32>
    %78 = arith.truncf %77 : vector<256x4xf32> to vector<256x4xbf16>
    %c6 = arith.constant 6 : index
    %c0_102 = arith.constant 0 : index
    %c0_103 = arith.constant 0 : index
    %79 = vector.load %arg4[%c6, %c0_102, %c0_103] : memref<9x4x8xbf16, #tpu.memory_space<vmem>>, vector<1x4x8xbf16>
    %80 = vector.shape_cast %79 : vector<1x4x8xbf16> to vector<4x8xbf16>
    %cst_104 = arith.constant dense<0.000000e+00> : vector<256x8xf32>
    %81 = tpu.matmul %78, %80, %cst_104 {dimension_numbers = #tpu.dot_dimension_numbers<[1], [0], [0], [1], [0, 0, 1, 1], [], []>} : vector<256x4xbf16>, vector<4x8xbf16>, vector<256x8xf32> -> vector<256x8xf32>
    %82 = arith.addf %75, %81 : vector<256x8xf32>
    %c2_105 = arith.constant 2 : index
    %c1_106 = arith.constant 1 : index
    %c0_107 = arith.constant 0 : index
    %83 = vector.load %arg27[%c2_105, %c1_106, %c0_107] : memref<18x18x8xf32, #tpu.memory_space<vmem>>, vector<16x16x4xf32>
    %84 = vector.shape_cast %83 : vector<16x16x4xf32> to vector<256x4xf32>
    %85 = arith.truncf %84 : vector<256x4xf32> to vector<256x4xbf16>
    %c7 = arith.constant 7 : index
    %c0_108 = arith.constant 0 : index
    %c0_109 = arith.constant 0 : index
    %86 = vector.load %arg4[%c7, %c0_108, %c0_109] : memref<9x4x8xbf16, #tpu.memory_space<vmem>>, vector<1x4x8xbf16>
    %87 = vector.shape_cast %86 : vector<1x4x8xbf16> to vector<4x8xbf16>
    %cst_110 = arith.constant dense<0.000000e+00> : vector<256x8xf32>
    %88 = tpu.matmul %85, %87, %cst_110 {dimension_numbers = #tpu.dot_dimension_numbers<[1], [0], [0], [1], [0, 0, 1, 1], [], []>} : vector<256x4xbf16>, vector<4x8xbf16>, vector<256x8xf32> -> vector<256x8xf32>
    %89 = arith.addf %82, %88 : vector<256x8xf32>
    %c2_111 = arith.constant 2 : index
    %c2_112 = arith.constant 2 : index
    %c0_113 = arith.constant 0 : index
    %90 = vector.load %arg27[%c2_111, %c2_112, %c0_113] : memref<18x18x8xf32, #tpu.memory_space<vmem>>, vector<16x16x4xf32>
    %91 = vector.shape_cast %90 : vector<16x16x4xf32> to vector<256x4xf32>
    %92 = arith.truncf %91 : vector<256x4xf32> to vector<256x4xbf16>
    %c8 = arith.constant 8 : index
    %c0_114 = arith.constant 0 : index
    %c0_115 = arith.constant 0 : index
    %93 = vector.load %arg4[%c8, %c0_114, %c0_115] : memref<9x4x8xbf16, #tpu.memory_space<vmem>>, vector<1x4x8xbf16>
    %94 = vector.shape_cast %93 : vector<1x4x8xbf16> to vector<4x8xbf16>
    %cst_116 = arith.constant dense<0.000000e+00> : vector<256x8xf32>
    %95 = tpu.matmul %92, %94, %cst_116 {dimension_numbers = #tpu.dot_dimension_numbers<[1], [0], [0], [1], [0, 0, 1, 1], [], []>} : vector<256x4xbf16>, vector<4x8xbf16>, vector<256x8xf32> -> vector<256x8xf32>
    %96 = arith.addf %89, %95 : vector<256x8xf32>
    %c0_117 = arith.constant 0 : index
    %c0_118 = arith.constant 0 : index
    %97 = vector.load %arg5[%c0_117, %c0_118] : memref<1x8xf32, #tpu.memory_space<vmem>>, vector<1x8xf32>
    %98 = vector.broadcast %97 : vector<1x8xf32> to vector<256x8xf32>
    %99 = arith.addf %96, %98 : vector<256x8xf32>
    %cst_119 = arith.constant 0.000000e+00 : f32
    %100 = vector.broadcast %cst_119 : f32 to vector<256x8xf32>
    %101 = arith.maximumf %99, %100 : vector<256x8xf32>
    %102 = vector.shape_cast %101 : vector<256x8xf32> to vector<16x16x8xf32>
    %c2_120 = arith.constant 2 : index
    %c2_121 = arith.constant 2 : index
    %c0_122 = arith.constant 0 : index
    %103 = vector.load %arg28[%c2_120, %c2_121, %c0_122] : memref<20x20x8xf32, #tpu.memory_space<vmem>>, vector<16x16x8xf32>
    tpu.vector_store %arg28[%c2_120, %c2_121, %c0_122], %102 {strides = array<i32>} : memref<20x20x8xf32, #tpu.memory_space<vmem>>, vector<16x16x8xf32>,
    %c0_123 = arith.constant 0 : index
    %c0_124 = arith.constant 0 : index
    %c0_125 = arith.constant 0 : index
    %104 = vector.load %arg28[%c0_123, %c0_124, %c0_125] : memref<20x20x8xf32, #tpu.memory_space<vmem>>, vector<16x16x8xf32>
    %105 = vector.shape_cast %104 : vector<16x16x8xf32> to vector<256x8xf32>
    %106 = arith.truncf %105 : vector<256x8xf32> to vector<256x8xbf16>
    %c0_126 = arith.constant 0 : index
    %c0_127 = arith.constant 0 : index
    %c0_128 = arith.constant 0 : index
    %107 = vector.load %arg6[%c0_126, %c0_127, %c0_128] : memref<9x8x8xbf16, #tpu.memory_space<vmem>>, vector<1x8x8xbf16>
    %108 = vector.shape_cast %107 : vector<1x8x8xbf16> to vector<8x8xbf16>
    %cst_129 = arith.constant dense<0.000000e+00> : vector<256x8xf32>
    %109 = tpu.matmul %106, %108, %cst_129 {dimension_numbers = #tpu.dot_dimension_numbers<[1], [0], [0], [1], [0, 0, 1, 1], [], []>} : vector<256x8xbf16>, vector<8x8xbf16>, vector<256x8xf32> -> vector<256x8xf32>
    %c0_130 = arith.constant 0 : index
    %c2_131 = arith.constant 2 : index
    %c0_132 = arith.constant 0 : index
    %110 = vector.load %arg28[%c0_130, %c2_131, %c0_132] : memref<20x20x8xf32, #tpu.memory_space<vmem>>, vector<16x16x8xf32>
    %111 = vector.shape_cast %110 : vector<16x16x8xf32> to vector<256x8xf32>
    %112 = arith.truncf %111 : vector<256x8xf32> to vector<256x8xbf16>
    %c1_133 = arith.constant 1 : index
    %c0_134 = arith.constant 0 : index
    %c0_135 = arith.constant 0 : index
    %113 = vector.load %arg6[%c1_133, %c0_134, %c0_135] : memref<9x8x8xbf16, #tpu.memory_space<vmem>>, vector<1x8x8xbf16>
    %114 = vector.shape_cast %113 : vector<1x8x8xbf16> to vector<8x8xbf16>
    %cst_136 = arith.constant dense<0.000000e+00> : vector<256x8xf32>
    %115 = tpu.matmul %112, %114, %cst_136 {dimension_numbers = #tpu.dot_dimension_numbers<[1], [0], [0], [1], [0, 0, 1, 1], [], []>} : vector<256x8xbf16>, vector<8x8xbf16>, vector<256x8xf32> -> vector<256x8xf32>
    %116 = arith.addf %109, %115 : vector<256x8xf32>
    %c0_137 = arith.constant 0 : index
    %c4_138 = arith.constant 4 : index
    %c0_139 = arith.constant 0 : index
    %117 = vector.load %arg28[%c0_137, %c4_138, %c0_139] : memref<20x20x8xf32, #tpu.memory_space<vmem>>, vector<16x16x8xf32>
    %118 = vector.shape_cast %117 : vector<16x16x8xf32> to vector<256x8xf32>
    %119 = arith.truncf %118 : vector<256x8xf32> to vector<256x8xbf16>
    %c2_140 = arith.constant 2 : index
    %c0_141 = arith.constant 0 : index
    %c0_142 = arith.constant 0 : index
    %120 = vector.load %arg6[%c2_140, %c0_141, %c0_142] : memref<9x8x8xbf16, #tpu.memory_space<vmem>>, vector<1x8x8xbf16>
    %121 = vector.shape_cast %120 : vector<1x8x8xbf16> to vector<8x8xbf16>
    %cst_143 = arith.constant dense<0.000000e+00> : vector<256x8xf32>
    %122 = tpu.matmul %119, %121, %cst_143 {dimension_numbers = #tpu.dot_dimension_numbers<[1], [0], [0], [1], [0, 0, 1, 1], [], []>} : vector<256x8xbf16>, vector<8x8xbf16>, vector<256x8xf32> -> vector<256x8xf32>
    %123 = arith.addf %116, %122 : vector<256x8xf32>
    %c2_144 = arith.constant 2 : index
    %c0_145 = arith.constant 0 : index
    %c0_146 = arith.constant 0 : index
    %124 = vector.load %arg28[%c2_144, %c0_145, %c0_146] : memref<20x20x8xf32, #tpu.memory_space<vmem>>, vector<16x16x8xf32>
    %125 = vector.shape_cast %124 : vector<16x16x8xf32> to vector<256x8xf32>
    %126 = arith.truncf %125 : vector<256x8xf32> to vector<256x8xbf16>
    %c3_147 = arith.constant 3 : index
    %c0_148 = arith.constant 0 : index
    %c0_149 = arith.constant 0 : index
    %127 = vector.load %arg6[%c3_147, %c0_148, %c0_149] : memref<9x8x8xbf16, #tpu.memory_space<vmem>>, vector<1x8x8xbf16>
    %128 = vector.shape_cast %127 : vector<1x8x8xbf16> to vector<8x8xbf16>
    %cst_150 = arith.constant dense<0.000000e+00> : vector<256x8xf32>
    %129 = tpu.matmul %126, %128, %cst_150 {dimension_numbers = #tpu.dot_dimension_numbers<[1], [0], [0], [1], [0, 0, 1, 1], [], []>} : vector<256x8xbf16>, vector<8x8xbf16>, vector<256x8xf32> -> vector<256x8xf32>
    %130 = arith.addf %123, %129 : vector<256x8xf32>
    %c2_151 = arith.constant 2 : index
    %c2_152 = arith.constant 2 : index
    %c0_153 = arith.constant 0 : index
    %131 = vector.load %arg28[%c2_151, %c2_152, %c0_153] : memref<20x20x8xf32, #tpu.memory_space<vmem>>, vector<16x16x8xf32>
    %132 = vector.shape_cast %131 : vector<16x16x8xf32> to vector<256x8xf32>
    %133 = arith.truncf %132 : vector<256x8xf32> to vector<256x8xbf16>
    %c4_154 = arith.constant 4 : index
    %c0_155 = arith.constant 0 : index
    %c0_156 = arith.constant 0 : index
    %134 = vector.load %arg6[%c4_154, %c0_155, %c0_156] : memref<9x8x8xbf16, #tpu.memory_space<vmem>>, vector<1x8x8xbf16>
    %135 = vector.shape_cast %134 : vector<1x8x8xbf16> to vector<8x8xbf16>
    %cst_157 = arith.constant dense<0.000000e+00> : vector<256x8xf32>
    %136 = tpu.matmul %133, %135, %cst_157 {dimension_numbers = #tpu.dot_dimension_numbers<[1], [0], [0], [1], [0, 0, 1, 1], [], []>} : vector<256x8xbf16>, vector<8x8xbf16>, vector<256x8xf32> -> vector<256x8xf32>
    %137 = arith.addf %130, %136 : vector<256x8xf32>
    %c2_158 = arith.constant 2 : index
    %c4_159 = arith.constant 4 : index
    %c0_160 = arith.constant 0 : index
    %138 = vector.load %arg28[%c2_158, %c4_159, %c0_160] : memref<20x20x8xf32, #tpu.memory_space<vmem>>, vector<16x16x8xf32>
    %139 = vector.shape_cast %138 : vector<16x16x8xf32> to vector<256x8xf32>
    %140 = arith.truncf %139 : vector<256x8xf32> to vector<256x8xbf16>
    %c5_161 = arith.constant 5 : index
    %c0_162 = arith.constant 0 : index
    %c0_163 = arith.constant 0 : index
    %141 = vector.load %arg6[%c5_161, %c0_162, %c0_163] : memref<9x8x8xbf16, #tpu.memory_space<vmem>>, vector<1x8x8xbf16>
    %142 = vector.shape_cast %141 : vector<1x8x8xbf16> to vector<8x8xbf16>
    %cst_164 = arith.constant dense<0.000000e+00> : vector<256x8xf32>
    %143 = tpu.matmul %140, %142, %cst_164 {dimension_numbers = #tpu.dot_dimension_numbers<[1], [0], [0], [1], [0, 0, 1, 1], [], []>} : vector<256x8xbf16>, vector<8x8xbf16>, vector<256x8xf32> -> vector<256x8xf32>
    %144 = arith.addf %137, %143 : vector<256x8xf32>
    %c4_165 = arith.constant 4 : index
    %c0_166 = arith.constant 0 : index
    %c0_167 = arith.constant 0 : index
    %145 = vector.load %arg28[%c4_165, %c0_166, %c0_167] : memref<20x20x8xf32, #tpu.memory_space<vmem>>, vector<16x16x8xf32>
    %146 = vector.shape_cast %145 : vector<16x16x8xf32> to vector<256x8xf32>
    %147 = arith.truncf %146 : vector<256x8xf32> to vector<256x8xbf16>
    %c6_168 = arith.constant 6 : index
    %c0_169 = arith.constant 0 : index
    %c0_170 = arith.constant 0 : index
    %148 = vector.load %arg6[%c6_168, %c0_169, %c0_170] : memref<9x8x8xbf16, #tpu.memory_space<vmem>>, vector<1x8x8xbf16>
    %149 = vector.shape_cast %148 : vector<1x8x8xbf16> to vector<8x8xbf16>
    %cst_171 = arith.constant dense<0.000000e+00> : vector<256x8xf32>
    %150 = tpu.matmul %147, %149, %cst_171 {dimension_numbers = #tpu.dot_dimension_numbers<[1], [0], [0], [1], [0, 0, 1, 1], [], []>} : vector<256x8xbf16>, vector<8x8xbf16>, vector<256x8xf32> -> vector<256x8xf32>
    %151 = arith.addf %144, %150 : vector<256x8xf32>
    %c4_172 = arith.constant 4 : index
    %c2_173 = arith.constant 2 : index
    %c0_174 = arith.constant 0 : index
    %152 = vector.load %arg28[%c4_172, %c2_173, %c0_174] : memref<20x20x8xf32, #tpu.memory_space<vmem>>, vector<16x16x8xf32>
    %153 = vector.shape_cast %152 : vector<16x16x8xf32> to vector<256x8xf32>
    %154 = arith.truncf %153 : vector<256x8xf32> to vector<256x8xbf16>
    %c7_175 = arith.constant 7 : index
    %c0_176 = arith.constant 0 : index
    %c0_177 = arith.constant 0 : index
    %155 = vector.load %arg6[%c7_175, %c0_176, %c0_177] : memref<9x8x8xbf16, #tpu.memory_space<vmem>>, vector<1x8x8xbf16>
    %156 = vector.shape_cast %155 : vector<1x8x8xbf16> to vector<8x8xbf16>
    %cst_178 = arith.constant dense<0.000000e+00> : vector<256x8xf32>
    %157 = tpu.matmul %154, %156, %cst_178 {dimension_numbers = #tpu.dot_dimension_numbers<[1], [0], [0], [1], [0, 0, 1, 1], [], []>} : vector<256x8xbf16>, vector<8x8xbf16>, vector<256x8xf32> -> vector<256x8xf32>
    %158 = arith.addf %151, %157 : vector<256x8xf32>
    %c4_179 = arith.constant 4 : index
    %c4_180 = arith.constant 4 : index
    %c0_181 = arith.constant 0 : index
    %159 = vector.load %arg28[%c4_179, %c4_180, %c0_181] : memref<20x20x8xf32, #tpu.memory_space<vmem>>, vector<16x16x8xf32>
    %160 = vector.shape_cast %159 : vector<16x16x8xf32> to vector<256x8xf32>
    %161 = arith.truncf %160 : vector<256x8xf32> to vector<256x8xbf16>
    %c8_182 = arith.constant 8 : index
    %c0_183 = arith.constant 0 : index
    %c0_184 = arith.constant 0 : index
    %162 = vector.load %arg6[%c8_182, %c0_183, %c0_184] : memref<9x8x8xbf16, #tpu.memory_space<vmem>>, vector<1x8x8xbf16>
    %163 = vector.shape_cast %162 : vector<1x8x8xbf16> to vector<8x8xbf16>
    %cst_185 = arith.constant dense<0.000000e+00> : vector<256x8xf32>
    %164 = tpu.matmul %161, %163, %cst_185 {dimension_numbers = #tpu.dot_dimension_numbers<[1], [0], [0], [1], [0, 0, 1, 1], [], []>} : vector<256x8xbf16>, vector<8x8xbf16>, vector<256x8xf32> -> vector<256x8xf32>
    %165 = arith.addf %158, %164 : vector<256x8xf32>
    %c0_186 = arith.constant 0 : index
    %c0_187 = arith.constant 0 : index
    %166 = vector.load %arg7[%c0_186, %c0_187] : memref<1x8xf32, #tpu.memory_space<vmem>>, vector<1x8xf32>
    %167 = vector.broadcast %166 : vector<1x8xf32> to vector<256x8xf32>
    %168 = arith.addf %165, %167 : vector<256x8xf32>
    %c0_188 = arith.constant 0 : index
    %c0_189 = arith.constant 0 : index
    %169 = vector.load %arg8[%c0_188, %c0_189] : memref<32x4xbf16, #tpu.memory_space<vmem>>, vector<32x4xbf16>
    %cst_190 = arith.constant dense<0.000000e+00> : vector<256x4xf32>
    %170 = tpu.matmul %27, %169, %cst_190 {dimension_numbers = #tpu.dot_dimension_numbers<[1], [0], [0], [1], [0, 0, 1, 1], [], []>} : vector<256x32xbf16>, vector<32x4xbf16>, vector<256x4xf32> -> vector<256x4xf32>
    %c0_191 = arith.constant 0 : index
    %c0_192 = arith.constant 0 : index
    %171 = vector.load %arg9[%c0_191, %c0_192] : memref<1x4xf32, #tpu.memory_space<vmem>>, vector<1x4xf32>
    %172 = vector.broadcast %171 : vector<1x4xf32> to vector<256x4xf32>
    %173 = arith.addf %170, %172 : vector<256x4xf32>
    %174 = vector.shape_cast %173 : vector<256x4xf32> to vector<16x16x4xf32>
    %c1_193 = arith.constant 1 : index
    %c1_194 = arith.constant 1 : index
    %c0_195 = arith.constant 0 : index
    %175 = vector.load %arg27[%c1_193, %c1_194, %c0_195] : memref<18x18x8xf32, #tpu.memory_space<vmem>>, vector<16x16x4xf32>
    tpu.vector_store %arg27[%c1_193, %c1_194, %c0_195], %174 {strides = array<i32>} : memref<18x18x8xf32, #tpu.memory_space<vmem>>, vector<16x16x4xf32>,
    %c0_196 = arith.constant 0 : index
    %c0_197 = arith.constant 0 : index
    %c0_198 = arith.constant 0 : index
    %176 = vector.load %arg27[%c0_196, %c0_197, %c0_198] : memref<18x18x8xf32, #tpu.memory_space<vmem>>, vector<16x16x4xf32>
    %177 = vector.shape_cast %176 : vector<16x16x4xf32> to vector<256x4xf32>
    %178 = arith.truncf %177 : vector<256x4xf32> to vector<256x4xbf16>
    %c0_199 = arith.constant 0 : index
    %c0_200 = arith.constant 0 : index
    %c0_201 = arith.constant 0 : index
    %179 = vector.load %arg10[%c0_199, %c0_200, %c0_201] : memref<9x4x8xbf16, #tpu.memory_space<vmem>>, vector<1x4x8xbf16>
    %180 = vector.shape_cast %179 : vector<1x4x8xbf16> to vector<4x8xbf16>
    %cst_202 = arith.constant dense<0.000000e+00> : vector<256x8xf32>
    %181 = tpu.matmul %178, %180, %cst_202 {dimension_numbers = #tpu.dot_dimension_numbers<[1], [0], [0], [1], [0, 0, 1, 1], [], []>} : vector<256x4xbf16>, vector<4x8xbf16>, vector<256x8xf32> -> vector<256x8xf32>
    %c0_203 = arith.constant 0 : index
    %c1_204 = arith.constant 1 : index
    %c0_205 = arith.constant 0 : index
    %182 = vector.load %arg27[%c0_203, %c1_204, %c0_205] : memref<18x18x8xf32, #tpu.memory_space<vmem>>, vector<16x16x4xf32>
    %183 = vector.shape_cast %182 : vector<16x16x4xf32> to vector<256x4xf32>
    %184 = arith.truncf %183 : vector<256x4xf32> to vector<256x4xbf16>
    %c1_206 = arith.constant 1 : index
    %c0_207 = arith.constant 0 : index
    %c0_208 = arith.constant 0 : index
    %185 = vector.load %arg10[%c1_206, %c0_207, %c0_208] : memref<9x4x8xbf16, #tpu.memory_space<vmem>>, vector<1x4x8xbf16>
    %186 = vector.shape_cast %185 : vector<1x4x8xbf16> to vector<4x8xbf16>
    %cst_209 = arith.constant dense<0.000000e+00> : vector<256x8xf32>
    %187 = tpu.matmul %184, %186, %cst_209 {dimension_numbers = #tpu.dot_dimension_numbers<[1], [0], [0], [1], [0, 0, 1, 1], [], []>} : vector<256x4xbf16>, vector<4x8xbf16>, vector<256x8xf32> -> vector<256x8xf32>
    %188 = arith.addf %181, %187 : vector<256x8xf32>
    %c0_210 = arith.constant 0 : index
    %c2_211 = arith.constant 2 : index
    %c0_212 = arith.constant 0 : index
    %189 = vector.load %arg27[%c0_210, %c2_211, %c0_212] : memref<18x18x8xf32, #tpu.memory_space<vmem>>, vector<16x16x4xf32>
    %190 = vector.shape_cast %189 : vector<16x16x4xf32> to vector<256x4xf32>
    %191 = arith.truncf %190 : vector<256x4xf32> to vector<256x4xbf16>
    %c2_213 = arith.constant 2 : index
    %c0_214 = arith.constant 0 : index
    %c0_215 = arith.constant 0 : index
    %192 = vector.load %arg10[%c2_213, %c0_214, %c0_215] : memref<9x4x8xbf16, #tpu.memory_space<vmem>>, vector<1x4x8xbf16>
    %193 = vector.shape_cast %192 : vector<1x4x8xbf16> to vector<4x8xbf16>
    %cst_216 = arith.constant dense<0.000000e+00> : vector<256x8xf32>
    %194 = tpu.matmul %191, %193, %cst_216 {dimension_numbers = #tpu.dot_dimension_numbers<[1], [0], [0], [1], [0, 0, 1, 1], [], []>} : vector<256x4xbf16>, vector<4x8xbf16>, vector<256x8xf32> -> vector<256x8xf32>
    %195 = arith.addf %188, %194 : vector<256x8xf32>
    %c1_217 = arith.constant 1 : index
    %c0_218 = arith.constant 0 : index
    %c0_219 = arith.constant 0 : index
    %196 = vector.load %arg27[%c1_217, %c0_218, %c0_219] : memref<18x18x8xf32, #tpu.memory_space<vmem>>, vector<16x16x4xf32>
    %197 = vector.shape_cast %196 : vector<16x16x4xf32> to vector<256x4xf32>
    %198 = arith.truncf %197 : vector<256x4xf32> to vector<256x4xbf16>
    %c3_220 = arith.constant 3 : index
    %c0_221 = arith.constant 0 : index
    %c0_222 = arith.constant 0 : index
    %199 = vector.load %arg10[%c3_220, %c0_221, %c0_222] : memref<9x4x8xbf16, #tpu.memory_space<vmem>>, vector<1x4x8xbf16>
    %200 = vector.shape_cast %199 : vector<1x4x8xbf16> to vector<4x8xbf16>
    %cst_223 = arith.constant dense<0.000000e+00> : vector<256x8xf32>
    %201 = tpu.matmul %198, %200, %cst_223 {dimension_numbers = #tpu.dot_dimension_numbers<[1], [0], [0], [1], [0, 0, 1, 1], [], []>} : vector<256x4xbf16>, vector<4x8xbf16>, vector<256x8xf32> -> vector<256x8xf32>
    %202 = arith.addf %195, %201 : vector<256x8xf32>
    %c1_224 = arith.constant 1 : index
    %c1_225 = arith.constant 1 : index
    %c0_226 = arith.constant 0 : index
    %203 = vector.load %arg27[%c1_224, %c1_225, %c0_226] : memref<18x18x8xf32, #tpu.memory_space<vmem>>, vector<16x16x4xf32>
    %204 = vector.shape_cast %203 : vector<16x16x4xf32> to vector<256x4xf32>
    %205 = arith.truncf %204 : vector<256x4xf32> to vector<256x4xbf16>
    %c4_227 = arith.constant 4 : index
    %c0_228 = arith.constant 0 : index
    %c0_229 = arith.constant 0 : index
    %206 = vector.load %arg10[%c4_227, %c0_228, %c0_229] : memref<9x4x8xbf16, #tpu.memory_space<vmem>>, vector<1x4x8xbf16>
    %207 = vector.shape_cast %206 : vector<1x4x8xbf16> to vector<4x8xbf16>
    %cst_230 = arith.constant dense<0.000000e+00> : vector<256x8xf32>
    %208 = tpu.matmul %205, %207, %cst_230 {dimension_numbers = #tpu.dot_dimension_numbers<[1], [0], [0], [1], [0, 0, 1, 1], [], []>} : vector<256x4xbf16>, vector<4x8xbf16>, vector<256x8xf32> -> vector<256x8xf32>
    %209 = arith.addf %202, %208 : vector<256x8xf32>
    %c1_231 = arith.constant 1 : index
    %c2_232 = arith.constant 2 : index
    %c0_233 = arith.constant 0 : index
    %210 = vector.load %arg27[%c1_231, %c2_232, %c0_233] : memref<18x18x8xf32, #tpu.memory_space<vmem>>, vector<16x16x4xf32>
    %211 = vector.shape_cast %210 : vector<16x16x4xf32> to vector<256x4xf32>
    %212 = arith.truncf %211 : vector<256x4xf32> to vector<256x4xbf16>
    %c5_234 = arith.constant 5 : index
    %c0_235 = arith.constant 0 : index
    %c0_236 = arith.constant 0 : index
    %213 = vector.load %arg10[%c5_234, %c0_235, %c0_236] : memref<9x4x8xbf16, #tpu.memory_space<vmem>>, vector<1x4x8xbf16>
    %214 = vector.shape_cast %213 : vector<1x4x8xbf16> to vector<4x8xbf16>
    %cst_237 = arith.constant dense<0.000000e+00> : vector<256x8xf32>
    %215 = tpu.matmul %212, %214, %cst_237 {dimension_numbers = #tpu.dot_dimension_numbers<[1], [0], [0], [1], [0, 0, 1, 1], [], []>} : vector<256x4xbf16>, vector<4x8xbf16>, vector<256x8xf32> -> vector<256x8xf32>
    %216 = arith.addf %209, %215 : vector<256x8xf32>
    %c2_238 = arith.constant 2 : index
    %c0_239 = arith.constant 0 : index
    %c0_240 = arith.constant 0 : index
    %217 = vector.load %arg27[%c2_238, %c0_239, %c0_240] : memref<18x18x8xf32, #tpu.memory_space<vmem>>, vector<16x16x4xf32>
    %218 = vector.shape_cast %217 : vector<16x16x4xf32> to vector<256x4xf32>
    %219 = arith.truncf %218 : vector<256x4xf32> to vector<256x4xbf16>
    %c6_241 = arith.constant 6 : index
    %c0_242 = arith.constant 0 : index
    %c0_243 = arith.constant 0 : index
    %220 = vector.load %arg10[%c6_241, %c0_242, %c0_243] : memref<9x4x8xbf16, #tpu.memory_space<vmem>>, vector<1x4x8xbf16>
    %221 = vector.shape_cast %220 : vector<1x4x8xbf16> to vector<4x8xbf16>
    %cst_244 = arith.constant dense<0.000000e+00> : vector<256x8xf32>
    %222 = tpu.matmul %219, %221, %cst_244 {dimension_numbers = #tpu.dot_dimension_numbers<[1], [0], [0], [1], [0, 0, 1, 1], [], []>} : vector<256x4xbf16>, vector<4x8xbf16>, vector<256x8xf32> -> vector<256x8xf32>
    %223 = arith.addf %216, %222 : vector<256x8xf32>
    %c2_245 = arith.constant 2 : index
    %c1_246 = arith.constant 1 : index
    %c0_247 = arith.constant 0 : index
    %224 = vector.load %arg27[%c2_245, %c1_246, %c0_247] : memref<18x18x8xf32, #tpu.memory_space<vmem>>, vector<16x16x4xf32>
    %225 = vector.shape_cast %224 : vector<16x16x4xf32> to vector<256x4xf32>
    %226 = arith.truncf %225 : vector<256x4xf32> to vector<256x4xbf16>
    %c7_248 = arith.constant 7 : index
    %c0_249 = arith.constant 0 : index
    %c0_250 = arith.constant 0 : index
    %227 = vector.load %arg10[%c7_248, %c0_249, %c0_250] : memref<9x4x8xbf16, #tpu.memory_space<vmem>>, vector<1x4x8xbf16>
    %228 = vector.shape_cast %227 : vector<1x4x8xbf16> to vector<4x8xbf16>
    %cst_251 = arith.constant dense<0.000000e+00> : vector<256x8xf32>
    %229 = tpu.matmul %226, %228, %cst_251 {dimension_numbers = #tpu.dot_dimension_numbers<[1], [0], [0], [1], [0, 0, 1, 1], [], []>} : vector<256x4xbf16>, vector<4x8xbf16>, vector<256x8xf32> -> vector<256x8xf32>
    %230 = arith.addf %223, %229 : vector<256x8xf32>
    %c2_252 = arith.constant 2 : index
    %c2_253 = arith.constant 2 : index
    %c0_254 = arith.constant 0 : index
    %231 = vector.load %arg27[%c2_252, %c2_253, %c0_254] : memref<18x18x8xf32, #tpu.memory_space<vmem>>, vector<16x16x4xf32>
    %232 = vector.shape_cast %231 : vector<16x16x4xf32> to vector<256x4xf32>
    %233 = arith.truncf %232 : vector<256x4xf32> to vector<256x4xbf16>
    %c8_255 = arith.constant 8 : index
    %c0_256 = arith.constant 0 : index
    %c0_257 = arith.constant 0 : index
    %234 = vector.load %arg10[%c8_255, %c0_256, %c0_257] : memref<9x4x8xbf16, #tpu.memory_space<vmem>>, vector<1x4x8xbf16>
    %235 = vector.shape_cast %234 : vector<1x4x8xbf16> to vector<4x8xbf16>
    %cst_258 = arith.constant dense<0.000000e+00> : vector<256x8xf32>
    %236 = tpu.matmul %233, %235, %cst_258 {dimension_numbers = #tpu.dot_dimension_numbers<[1], [0], [0], [1], [0, 0, 1, 1], [], []>} : vector<256x4xbf16>, vector<4x8xbf16>, vector<256x8xf32> -> vector<256x8xf32>
    %237 = arith.addf %230, %236 : vector<256x8xf32>
    %c0_259 = arith.constant 0 : index
    %c0_260 = arith.constant 0 : index
    %238 = vector.load %arg11[%c0_259, %c0_260] : memref<1x8xf32, #tpu.memory_space<vmem>>, vector<1x8xf32>
    %239 = vector.broadcast %238 : vector<1x8xf32> to vector<256x8xf32>
    %240 = arith.addf %237, %239 : vector<256x8xf32>
    %cst_261 = arith.constant 0.000000e+00 : f32
    %241 = vector.broadcast %cst_261 : f32 to vector<256x8xf32>
    %242 = arith.maximumf %240, %241 : vector<256x8xf32>
    %243 = vector.shape_cast %242 : vector<256x8xf32> to vector<16x16x8xf32>
    %c3_262 = arith.constant 3 : index
    %c3_263 = arith.constant 3 : index
    %c0_264 = arith.constant 0 : index
    %244 = vector.load %arg29[%c3_262, %c3_263, %c0_264] : memref<22x22x8xf32, #tpu.memory_space<vmem>>, vector<16x16x8xf32>
    tpu.vector_store %arg29[%c3_262, %c3_263, %c0_264], %243 {strides = array<i32>} : memref<22x22x8xf32, #tpu.memory_space<vmem>>, vector<16x16x8xf32>,
    %c0_265 = arith.constant 0 : index
    %c0_266 = arith.constant 0 : index
    %c0_267 = arith.constant 0 : index
    %245 = vector.load %arg29[%c0_265, %c0_266, %c0_267] : memref<22x22x8xf32, #tpu.memory_space<vmem>>, vector<16x16x8xf32>
    %246 = vector.shape_cast %245 : vector<16x16x8xf32> to vector<256x8xf32>
    %247 = arith.truncf %246 : vector<256x8xf32> to vector<256x8xbf16>
    %c0_268 = arith.constant 0 : index
    %c0_269 = arith.constant 0 : index
    %c0_270 = arith.constant 0 : index
    %248 = vector.load %arg12[%c0_268, %c0_269, %c0_270] : memref<9x8x8xbf16, #tpu.memory_space<vmem>>, vector<1x8x8xbf16>
    %249 = vector.shape_cast %248 : vector<1x8x8xbf16> to vector<8x8xbf16>
    %cst_271 = arith.constant dense<0.000000e+00> : vector<256x8xf32>
    %250 = tpu.matmul %247, %249, %cst_271 {dimension_numbers = #tpu.dot_dimension_numbers<[1], [0], [0], [1], [0, 0, 1, 1], [], []>} : vector<256x8xbf16>, vector<8x8xbf16>, vector<256x8xf32> -> vector<256x8xf32>
    %c0_272 = arith.constant 0 : index
    %c3_273 = arith.constant 3 : index
    %c0_274 = arith.constant 0 : index
    %251 = vector.load %arg29[%c0_272, %c3_273, %c0_274] : memref<22x22x8xf32, #tpu.memory_space<vmem>>, vector<16x16x8xf32>
    %252 = vector.shape_cast %251 : vector<16x16x8xf32> to vector<256x8xf32>
    %253 = arith.truncf %252 : vector<256x8xf32> to vector<256x8xbf16>
    %c1_275 = arith.constant 1 : index
    %c0_276 = arith.constant 0 : index
    %c0_277 = arith.constant 0 : index
    %254 = vector.load %arg12[%c1_275, %c0_276, %c0_277] : memref<9x8x8xbf16, #tpu.memory_space<vmem>>, vector<1x8x8xbf16>
    %255 = vector.shape_cast %254 : vector<1x8x8xbf16> to vector<8x8xbf16>
    %cst_278 = arith.constant dense<0.000000e+00> : vector<256x8xf32>
    %256 = tpu.matmul %253, %255, %cst_278 {dimension_numbers = #tpu.dot_dimension_numbers<[1], [0], [0], [1], [0, 0, 1, 1], [], []>} : vector<256x8xbf16>, vector<8x8xbf16>, vector<256x8xf32> -> vector<256x8xf32>
    %257 = arith.addf %250, %256 : vector<256x8xf32>
    %c0_279 = arith.constant 0 : index
    %c6_280 = arith.constant 6 : index
    %c0_281 = arith.constant 0 : index
    %258 = vector.load %arg29[%c0_279, %c6_280, %c0_281] : memref<22x22x8xf32, #tpu.memory_space<vmem>>, vector<16x16x8xf32>
    %259 = vector.shape_cast %258 : vector<16x16x8xf32> to vector<256x8xf32>
    %260 = arith.truncf %259 : vector<256x8xf32> to vector<256x8xbf16>
    %c2_282 = arith.constant 2 : index
    %c0_283 = arith.constant 0 : index
    %c0_284 = arith.constant 0 : index
    %261 = vector.load %arg12[%c2_282, %c0_283, %c0_284] : memref<9x8x8xbf16, #tpu.memory_space<vmem>>, vector<1x8x8xbf16>
    %262 = vector.shape_cast %261 : vector<1x8x8xbf16> to vector<8x8xbf16>
    %cst_285 = arith.constant dense<0.000000e+00> : vector<256x8xf32>
    %263 = tpu.matmul %260, %262, %cst_285 {dimension_numbers = #tpu.dot_dimension_numbers<[1], [0], [0], [1], [0, 0, 1, 1], [], []>} : vector<256x8xbf16>, vector<8x8xbf16>, vector<256x8xf32> -> vector<256x8xf32>
    %264 = arith.addf %257, %263 : vector<256x8xf32>
    %c3_286 = arith.constant 3 : index
    %c0_287 = arith.constant 0 : index
    %c0_288 = arith.constant 0 : index
    %265 = vector.load %arg29[%c3_286, %c0_287, %c0_288] : memref<22x22x8xf32, #tpu.memory_space<vmem>>, vector<16x16x8xf32>
    %266 = vector.shape_cast %265 : vector<16x16x8xf32> to vector<256x8xf32>
    %267 = arith.truncf %266 : vector<256x8xf32> to vector<256x8xbf16>
    %c3_289 = arith.constant 3 : index
    %c0_290 = arith.constant 0 : index
    %c0_291 = arith.constant 0 : index
    %268 = vector.load %arg12[%c3_289, %c0_290, %c0_291] : memref<9x8x8xbf16, #tpu.memory_space<vmem>>, vector<1x8x8xbf16>
    %269 = vector.shape_cast %268 : vector<1x8x8xbf16> to vector<8x8xbf16>
    %cst_292 = arith.constant dense<0.000000e+00> : vector<256x8xf32>
    %270 = tpu.matmul %267, %269, %cst_292 {dimension_numbers = #tpu.dot_dimension_numbers<[1], [0], [0], [1], [0, 0, 1, 1], [], []>} : vector<256x8xbf16>, vector<8x8xbf16>, vector<256x8xf32> -> vector<256x8xf32>
    %271 = arith.addf %264, %270 : vector<256x8xf32>
    %c3_293 = arith.constant 3 : index
    %c3_294 = arith.constant 3 : index
    %c0_295 = arith.constant 0 : index
    %272 = vector.load %arg29[%c3_293, %c3_294, %c0_295] : memref<22x22x8xf32, #tpu.memory_space<vmem>>, vector<16x16x8xf32>
    %273 = vector.shape_cast %272 : vector<16x16x8xf32> to vector<256x8xf32>
    %274 = arith.truncf %273 : vector<256x8xf32> to vector<256x8xbf16>
    %c4_296 = arith.constant 4 : index
    %c0_297 = arith.constant 0 : index
    %c0_298 = arith.constant 0 : index
    %275 = vector.load %arg12[%c4_296, %c0_297, %c0_298] : memref<9x8x8xbf16, #tpu.memory_space<vmem>>, vector<1x8x8xbf16>
    %276 = vector.shape_cast %275 : vector<1x8x8xbf16> to vector<8x8xbf16>
    %cst_299 = arith.constant dense<0.000000e+00> : vector<256x8xf32>
    %277 = tpu.matmul %274, %276, %cst_299 {dimension_numbers = #tpu.dot_dimension_numbers<[1], [0], [0], [1], [0, 0, 1, 1], [], []>} : vector<256x8xbf16>, vector<8x8xbf16>, vector<256x8xf32> -> vector<256x8xf32>
    %278 = arith.addf %271, %277 : vector<256x8xf32>
    %c3_300 = arith.constant 3 : index
    %c6_301 = arith.constant 6 : index
    %c0_302 = arith.constant 0 : index
    %279 = vector.load %arg29[%c3_300, %c6_301, %c0_302] : memref<22x22x8xf32, #tpu.memory_space<vmem>>, vector<16x16x8xf32>
    %280 = vector.shape_cast %279 : vector<16x16x8xf32> to vector<256x8xf32>
    %281 = arith.truncf %280 : vector<256x8xf32> to vector<256x8xbf16>
    %c5_303 = arith.constant 5 : index
    %c0_304 = arith.constant 0 : index
    %c0_305 = arith.constant 0 : index
    %282 = vector.load %arg12[%c5_303, %c0_304, %c0_305] : memref<9x8x8xbf16, #tpu.memory_space<vmem>>, vector<1x8x8xbf16>
    %283 = vector.shape_cast %282 : vector<1x8x8xbf16> to vector<8x8xbf16>
    %cst_306 = arith.constant dense<0.000000e+00> : vector<256x8xf32>
    %284 = tpu.matmul %281, %283, %cst_306 {dimension_numbers = #tpu.dot_dimension_numbers<[1], [0], [0], [1], [0, 0, 1, 1], [], []>} : vector<256x8xbf16>, vector<8x8xbf16>, vector<256x8xf32> -> vector<256x8xf32>
    %285 = arith.addf %278, %284 : vector<256x8xf32>
    %c6_307 = arith.constant 6 : index
    %c0_308 = arith.constant 0 : index
    %c0_309 = arith.constant 0 : index
    %286 = vector.load %arg29[%c6_307, %c0_308, %c0_309] : memref<22x22x8xf32, #tpu.memory_space<vmem>>, vector<16x16x8xf32>
    %287 = vector.shape_cast %286 : vector<16x16x8xf32> to vector<256x8xf32>
    %288 = arith.truncf %287 : vector<256x8xf32> to vector<256x8xbf16>
    %c6_310 = arith.constant 6 : index
    %c0_311 = arith.constant 0 : index
    %c0_312 = arith.constant 0 : index
    %289 = vector.load %arg12[%c6_310, %c0_311, %c0_312] : memref<9x8x8xbf16, #tpu.memory_space<vmem>>, vector<1x8x8xbf16>
    %290 = vector.shape_cast %289 : vector<1x8x8xbf16> to vector<8x8xbf16>
    %cst_313 = arith.constant dense<0.000000e+00> : vector<256x8xf32>
    %291 = tpu.matmul %288, %290, %cst_313 {dimension_numbers = #tpu.dot_dimension_numbers<[1], [0], [0], [1], [0, 0, 1, 1], [], []>} : vector<256x8xbf16>, vector<8x8xbf16>, vector<256x8xf32> -> vector<256x8xf32>
    %292 = arith.addf %285, %291 : vector<256x8xf32>
    %c6_314 = arith.constant 6 : index
    %c3_315 = arith.constant 3 : index
    %c0_316 = arith.constant 0 : index
    %293 = vector.load %arg29[%c6_314, %c3_315, %c0_316] : memref<22x22x8xf32, #tpu.memory_space<vmem>>, vector<16x16x8xf32>
    %294 = vector.shape_cast %293 : vector<16x16x8xf32> to vector<256x8xf32>
    %295 = arith.truncf %294 : vector<256x8xf32> to vector<256x8xbf16>
    %c7_317 = arith.constant 7 : index
    %c0_318 = arith.constant 0 : index
    %c0_319 = arith.constant 0 : index
    %296 = vector.load %arg12[%c7_317, %c0_318, %c0_319] : memref<9x8x8xbf16, #tpu.memory_space<vmem>>, vector<1x8x8xbf16>
    %297 = vector.shape_cast %296 : vector<1x8x8xbf16> to vector<8x8xbf16>
    %cst_320 = arith.constant dense<0.000000e+00> : vector<256x8xf32>
    %298 = tpu.matmul %295, %297, %cst_320 {dimension_numbers = #tpu.dot_dimension_numbers<[1], [0], [0], [1], [0, 0, 1, 1], [], []>} : vector<256x8xbf16>, vector<8x8xbf16>, vector<256x8xf32> -> vector<256x8xf32>
    %299 = arith.addf %292, %298 : vector<256x8xf32>
    %c6_321 = arith.constant 6 : index
    %c6_322 = arith.constant 6 : index
    %c0_323 = arith.constant 0 : index
    %300 = vector.load %arg29[%c6_321, %c6_322, %c0_323] : memref<22x22x8xf32, #tpu.memory_space<vmem>>, vector<16x16x8xf32>
    %301 = vector.shape_cast %300 : vector<16x16x8xf32> to vector<256x8xf32>
    %302 = arith.truncf %301 : vector<256x8xf32> to vector<256x8xbf16>
    %c8_324 = arith.constant 8 : index
    %c0_325 = arith.constant 0 : index
    %c0_326 = arith.constant 0 : index
    %303 = vector.load %arg12[%c8_324, %c0_325, %c0_326] : memref<9x8x8xbf16, #tpu.memory_space<vmem>>, vector<1x8x8xbf16>
    %304 = vector.shape_cast %303 : vector<1x8x8xbf16> to vector<8x8xbf16>
    %cst_327 = arith.constant dense<0.000000e+00> : vector<256x8xf32>
    %305 = tpu.matmul %302, %304, %cst_327 {dimension_numbers = #tpu.dot_dimension_numbers<[1], [0], [0], [1], [0, 0, 1, 1], [], []>} : vector<256x8xbf16>, vector<8x8xbf16>, vector<256x8xf32> -> vector<256x8xf32>
    %306 = arith.addf %299, %305 : vector<256x8xf32>
    %c0_328 = arith.constant 0 : index
    %c0_329 = arith.constant 0 : index
    %307 = vector.load %arg13[%c0_328, %c0_329] : memref<1x8xf32, #tpu.memory_space<vmem>>, vector<1x8xf32>
    %308 = vector.broadcast %307 : vector<1x8xf32> to vector<256x8xf32>
    %309 = arith.addf %306, %308 : vector<256x8xf32>
    %c0_330 = arith.constant 0 : index
    %c0_331 = arith.constant 0 : index
    %310 = vector.load %arg14[%c0_330, %c0_331] : memref<32x4xbf16, #tpu.memory_space<vmem>>, vector<32x4xbf16>
    %cst_332 = arith.constant dense<0.000000e+00> : vector<256x4xf32>
    %311 = tpu.matmul %27, %310, %cst_332 {dimension_numbers = #tpu.dot_dimension_numbers<[1], [0], [0], [1], [0, 0, 1, 1], [], []>} : vector<256x32xbf16>, vector<32x4xbf16>, vector<256x4xf32> -> vector<256x4xf32>
    %c0_333 = arith.constant 0 : index
    %c0_334 = arith.constant 0 : index
    %312 = vector.load %arg15[%c0_333, %c0_334] : memref<1x4xf32, #tpu.memory_space<vmem>>, vector<1x4xf32>
    %313 = vector.broadcast %312 : vector<1x4xf32> to vector<256x4xf32>
    %314 = arith.addf %311, %313 : vector<256x4xf32>
    %315 = vector.shape_cast %314 : vector<256x4xf32> to vector<16x16x4xf32>
    %c1_335 = arith.constant 1 : index
    %c1_336 = arith.constant 1 : index
    %c0_337 = arith.constant 0 : index
    %316 = vector.load %arg27[%c1_335, %c1_336, %c0_337] : memref<18x18x8xf32, #tpu.memory_space<vmem>>, vector<16x16x4xf32>
    tpu.vector_store %arg27[%c1_335, %c1_336, %c0_337], %315 {strides = array<i32>} : memref<18x18x8xf32, #tpu.memory_space<vmem>>, vector<16x16x4xf32>,
    %c0_338 = arith.constant 0 : index
    %c0_339 = arith.constant 0 : index
    %c0_340 = arith.constant 0 : index
    %317 = vector.load %arg27[%c0_338, %c0_339, %c0_340] : memref<18x18x8xf32, #tpu.memory_space<vmem>>, vector<16x16x4xf32>
    %318 = vector.shape_cast %317 : vector<16x16x4xf32> to vector<256x4xf32>
    %319 = arith.truncf %318 : vector<256x4xf32> to vector<256x4xbf16>
    %c0_341 = arith.constant 0 : index
    %c0_342 = arith.constant 0 : index
    %c0_343 = arith.constant 0 : index
    %320 = vector.load %arg16[%c0_341, %c0_342, %c0_343] : memref<9x4x6xbf16, #tpu.memory_space<vmem>>, vector<1x4x6xbf16>
    %321 = vector.shape_cast %320 : vector<1x4x6xbf16> to vector<4x6xbf16>
    %cst_344 = arith.constant dense<0.000000e+00> : vector<256x6xf32>
    %322 = tpu.matmul %319, %321, %cst_344 {dimension_numbers = #tpu.dot_dimension_numbers<[1], [0], [0], [1], [0, 0, 1, 1], [], []>} : vector<256x4xbf16>, vector<4x6xbf16>, vector<256x6xf32> -> vector<256x6xf32>
    %c0_345 = arith.constant 0 : index
    %c1_346 = arith.constant 1 : index
    %c0_347 = arith.constant 0 : index
    %323 = vector.load %arg27[%c0_345, %c1_346, %c0_347] : memref<18x18x8xf32, #tpu.memory_space<vmem>>, vector<16x16x4xf32>
    %324 = vector.shape_cast %323 : vector<16x16x4xf32> to vector<256x4xf32>
    %325 = arith.truncf %324 : vector<256x4xf32> to vector<256x4xbf16>
    %c1_348 = arith.constant 1 : index
    %c0_349 = arith.constant 0 : index
    %c0_350 = arith.constant 0 : index
    %326 = vector.load %arg16[%c1_348, %c0_349, %c0_350] : memref<9x4x6xbf16, #tpu.memory_space<vmem>>, vector<1x4x6xbf16>
    %327 = vector.shape_cast %326 : vector<1x4x6xbf16> to vector<4x6xbf16>
    %cst_351 = arith.constant dense<0.000000e+00> : vector<256x6xf32>
    %328 = tpu.matmul %325, %327, %cst_351 {dimension_numbers = #tpu.dot_dimension_numbers<[1], [0], [0], [1], [0, 0, 1, 1], [], []>} : vector<256x4xbf16>, vector<4x6xbf16>, vector<256x6xf32> -> vector<256x6xf32>
    %329 = arith.addf %322, %328 : vector<256x6xf32>
    %c0_352 = arith.constant 0 : index
    %c2_353 = arith.constant 2 : index
    %c0_354 = arith.constant 0 : index
    %330 = vector.load %arg27[%c0_352, %c2_353, %c0_354] : memref<18x18x8xf32, #tpu.memory_space<vmem>>, vector<16x16x4xf32>
    %331 = vector.shape_cast %330 : vector<16x16x4xf32> to vector<256x4xf32>
    %332 = arith.truncf %331 : vector<256x4xf32> to vector<256x4xbf16>
    %c2_355 = arith.constant 2 : index
    %c0_356 = arith.constant 0 : index
    %c0_357 = arith.constant 0 : index
    %333 = vector.load %arg16[%c2_355, %c0_356, %c0_357] : memref<9x4x6xbf16, #tpu.memory_space<vmem>>, vector<1x4x6xbf16>
    %334 = vector.shape_cast %333 : vector<1x4x6xbf16> to vector<4x6xbf16>
    %cst_358 = arith.constant dense<0.000000e+00> : vector<256x6xf32>
    %335 = tpu.matmul %332, %334, %cst_358 {dimension_numbers = #tpu.dot_dimension_numbers<[1], [0], [0], [1], [0, 0, 1, 1], [], []>} : vector<256x4xbf16>, vector<4x6xbf16>, vector<256x6xf32> -> vector<256x6xf32>
    %336 = arith.addf %329, %335 : vector<256x6xf32>
    %c1_359 = arith.constant 1 : index
    %c0_360 = arith.constant 0 : index
    %c0_361 = arith.constant 0 : index
    %337 = vector.load %arg27[%c1_359, %c0_360, %c0_361] : memref<18x18x8xf32, #tpu.memory_space<vmem>>, vector<16x16x4xf32>
    %338 = vector.shape_cast %337 : vector<16x16x4xf32> to vector<256x4xf32>
    %339 = arith.truncf %338 : vector<256x4xf32> to vector<256x4xbf16>
    %c3_362 = arith.constant 3 : index
    %c0_363 = arith.constant 0 : index
    %c0_364 = arith.constant 0 : index
    %340 = vector.load %arg16[%c3_362, %c0_363, %c0_364] : memref<9x4x6xbf16, #tpu.memory_space<vmem>>, vector<1x4x6xbf16>
    %341 = vector.shape_cast %340 : vector<1x4x6xbf16> to vector<4x6xbf16>
    %cst_365 = arith.constant dense<0.000000e+00> : vector<256x6xf32>
    %342 = tpu.matmul %339, %341, %cst_365 {dimension_numbers = #tpu.dot_dimension_numbers<[1], [0], [0], [1], [0, 0, 1, 1], [], []>} : vector<256x4xbf16>, vector<4x6xbf16>, vector<256x6xf32> -> vector<256x6xf32>
    %343 = arith.addf %336, %342 : vector<256x6xf32>
    %c1_366 = arith.constant 1 : index
    %c1_367 = arith.constant 1 : index
    %c0_368 = arith.constant 0 : index
    %344 = vector.load %arg27[%c1_366, %c1_367, %c0_368] : memref<18x18x8xf32, #tpu.memory_space<vmem>>, vector<16x16x4xf32>
    %345 = vector.shape_cast %344 : vector<16x16x4xf32> to vector<256x4xf32>
    %346 = arith.truncf %345 : vector<256x4xf32> to vector<256x4xbf16>
    %c4_369 = arith.constant 4 : index
    %c0_370 = arith.constant 0 : index
    %c0_371 = arith.constant 0 : index
    %347 = vector.load %arg16[%c4_369, %c0_370, %c0_371] : memref<9x4x6xbf16, #tpu.memory_space<vmem>>, vector<1x4x6xbf16>
    %348 = vector.shape_cast %347 : vector<1x4x6xbf16> to vector<4x6xbf16>
    %cst_372 = arith.constant dense<0.000000e+00> : vector<256x6xf32>
    %349 = tpu.matmul %346, %348, %cst_372 {dimension_numbers = #tpu.dot_dimension_numbers<[1], [0], [0], [1], [0, 0, 1, 1], [], []>} : vector<256x4xbf16>, vector<4x6xbf16>, vector<256x6xf32> -> vector<256x6xf32>
    %350 = arith.addf %343, %349 : vector<256x6xf32>
    %c1_373 = arith.constant 1 : index
    %c2_374 = arith.constant 2 : index
    %c0_375 = arith.constant 0 : index
    %351 = vector.load %arg27[%c1_373, %c2_374, %c0_375] : memref<18x18x8xf32, #tpu.memory_space<vmem>>, vector<16x16x4xf32>
    %352 = vector.shape_cast %351 : vector<16x16x4xf32> to vector<256x4xf32>
    %353 = arith.truncf %352 : vector<256x4xf32> to vector<256x4xbf16>
    %c5_376 = arith.constant 5 : index
    %c0_377 = arith.constant 0 : index
    %c0_378 = arith.constant 0 : index
    %354 = vector.load %arg16[%c5_376, %c0_377, %c0_378] : memref<9x4x6xbf16, #tpu.memory_space<vmem>>, vector<1x4x6xbf16>
    %355 = vector.shape_cast %354 : vector<1x4x6xbf16> to vector<4x6xbf16>
    %cst_379 = arith.constant dense<0.000000e+00> : vector<256x6xf32>
    %356 = tpu.matmul %353, %355, %cst_379 {dimension_numbers = #tpu.dot_dimension_numbers<[1], [0], [0], [1], [0, 0, 1, 1], [], []>} : vector<256x4xbf16>, vector<4x6xbf16>, vector<256x6xf32> -> vector<256x6xf32>
    %357 = arith.addf %350, %356 : vector<256x6xf32>
    %c2_380 = arith.constant 2 : index
    %c0_381 = arith.constant 0 : index
    %c0_382 = arith.constant 0 : index
    %358 = vector.load %arg27[%c2_380, %c0_381, %c0_382] : memref<18x18x8xf32, #tpu.memory_space<vmem>>, vector<16x16x4xf32>
    %359 = vector.shape_cast %358 : vector<16x16x4xf32> to vector<256x4xf32>
    %360 = arith.truncf %359 : vector<256x4xf32> to vector<256x4xbf16>
    %c6_383 = arith.constant 6 : index
    %c0_384 = arith.constant 0 : index
    %c0_385 = arith.constant 0 : index
    %361 = vector.load %arg16[%c6_383, %c0_384, %c0_385] : memref<9x4x6xbf16, #tpu.memory_space<vmem>>, vector<1x4x6xbf16>
    %362 = vector.shape_cast %361 : vector<1x4x6xbf16> to vector<4x6xbf16>
    %cst_386 = arith.constant dense<0.000000e+00> : vector<256x6xf32>
    %363 = tpu.matmul %360, %362, %cst_386 {dimension_numbers = #tpu.dot_dimension_numbers<[1], [0], [0], [1], [0, 0, 1, 1], [], []>} : vector<256x4xbf16>, vector<4x6xbf16>, vector<256x6xf32> -> vector<256x6xf32>
    %364 = arith.addf %357, %363 : vector<256x6xf32>
    %c2_387 = arith.constant 2 : index
    %c1_388 = arith.constant 1 : index
    %c0_389 = arith.constant 0 : index
    %365 = vector.load %arg27[%c2_387, %c1_388, %c0_389] : memref<18x18x8xf32, #tpu.memory_space<vmem>>, vector<16x16x4xf32>
    %366 = vector.shape_cast %365 : vector<16x16x4xf32> to vector<256x4xf32>
    %367 = arith.truncf %366 : vector<256x4xf32> to vector<256x4xbf16>
    %c7_390 = arith.constant 7 : index
    %c0_391 = arith.constant 0 : index
    %c0_392 = arith.constant 0 : index
    %368 = vector.load %arg16[%c7_390, %c0_391, %c0_392] : memref<9x4x6xbf16, #tpu.memory_space<vmem>>, vector<1x4x6xbf16>
    %369 = vector.shape_cast %368 : vector<1x4x6xbf16> to vector<4x6xbf16>
    %cst_393 = arith.constant dense<0.000000e+00> : vector<256x6xf32>
    %370 = tpu.matmul %367, %369, %cst_393 {dimension_numbers = #tpu.dot_dimension_numbers<[1], [0], [0], [1], [0, 0, 1, 1], [], []>} : vector<256x4xbf16>, vector<4x6xbf16>, vector<256x6xf32> -> vector<256x6xf32>
    %371 = arith.addf %364, %370 : vector<256x6xf32>
    %c2_394 = arith.constant 2 : index
    %c2_395 = arith.constant 2 : index
    %c0_396 = arith.constant 0 : index
    %372 = vector.load %arg27[%c2_394, %c2_395, %c0_396] : memref<18x18x8xf32, #tpu.memory_space<vmem>>, vector<16x16x4xf32>
    %373 = vector.shape_cast %372 : vector<16x16x4xf32> to vector<256x4xf32>
    %374 = arith.truncf %373 : vector<256x4xf32> to vector<256x4xbf16>
    %c8_397 = arith.constant 8 : index
    %c0_398 = arith.constant 0 : index
    %c0_399 = arith.constant 0 : index
    %375 = vector.load %arg16[%c8_397, %c0_398, %c0_399] : memref<9x4x6xbf16, #tpu.memory_space<vmem>>, vector<1x4x6xbf16>
    %376 = vector.shape_cast %375 : vector<1x4x6xbf16> to vector<4x6xbf16>
    %cst_400 = arith.constant dense<0.000000e+00> : vector<256x6xf32>
    %377 = tpu.matmul %374, %376, %cst_400 {dimension_numbers = #tpu.dot_dimension_numbers<[1], [0], [0], [1], [0, 0, 1, 1], [], []>} : vector<256x4xbf16>, vector<4x6xbf16>, vector<256x6xf32> -> vector<256x6xf32>
    %378 = arith.addf %371, %377 : vector<256x6xf32>
    %c0_401 = arith.constant 0 : index
    %c0_402 = arith.constant 0 : index
    %379 = vector.load %arg17[%c0_401, %c0_402] : memref<1x6xf32, #tpu.memory_space<vmem>>, vector<1x6xf32>
    %380 = vector.broadcast %379 : vector<1x6xf32> to vector<256x6xf32>
    %381 = arith.addf %378, %380 : vector<256x6xf32>
    %cst_403 = arith.constant 0.000000e+00 : f32
    %382 = vector.broadcast %cst_403 : f32 to vector<256x6xf32>
    %383 = arith.maximumf %381, %382 : vector<256x6xf32>
    %384 = vector.shape_cast %383 : vector<256x6xf32> to vector<16x16x6xf32>
    %c1_404 = arith.constant 1 : index
    %c1_405 = arith.constant 1 : index
    %c0_406 = arith.constant 0 : index
    %385 = vector.load %arg27[%c1_404, %c1_405, %c0_406] : memref<18x18x8xf32, #tpu.memory_space<vmem>>, vector<16x16x6xf32>
    tpu.vector_store %arg27[%c1_404, %c1_405, %c0_406], %384 {strides = array<i32>} : memref<18x18x8xf32, #tpu.memory_space<vmem>>, vector<16x16x6xf32>,
    %c0_407 = arith.constant 0 : index
    %c0_408 = arith.constant 0 : index
    %c0_409 = arith.constant 0 : index
    %386 = vector.load %arg27[%c0_407, %c0_408, %c0_409] : memref<18x18x8xf32, #tpu.memory_space<vmem>>, vector<16x16x6xf32>
    %387 = vector.shape_cast %386 : vector<16x16x6xf32> to vector<256x6xf32>
    %388 = arith.truncf %387 : vector<256x6xf32> to vector<256x6xbf16>
    %c0_410 = arith.constant 0 : index
    %c0_411 = arith.constant 0 : index
    %c0_412 = arith.constant 0 : index
    %389 = vector.load %arg18[%c0_410, %c0_411, %c0_412] : memref<9x6x8xbf16, #tpu.memory_space<vmem>>, vector<1x6x8xbf16>
    %390 = vector.shape_cast %389 : vector<1x6x8xbf16> to vector<6x8xbf16>
    %cst_413 = arith.constant dense<0.000000e+00> : vector<256x8xf32>
    %391 = tpu.matmul %388, %390, %cst_413 {dimension_numbers = #tpu.dot_dimension_numbers<[1], [0], [0], [1], [0, 0, 1, 1], [], []>} : vector<256x6xbf16>, vector<6x8xbf16>, vector<256x8xf32> -> vector<256x8xf32>
    %c0_414 = arith.constant 0 : index
    %c1_415 = arith.constant 1 : index
    %c0_416 = arith.constant 0 : index
    %392 = vector.load %arg27[%c0_414, %c1_415, %c0_416] : memref<18x18x8xf32, #tpu.memory_space<vmem>>, vector<16x16x6xf32>
    %393 = vector.shape_cast %392 : vector<16x16x6xf32> to vector<256x6xf32>
    %394 = arith.truncf %393 : vector<256x6xf32> to vector<256x6xbf16>
    %c1_417 = arith.constant 1 : index
    %c0_418 = arith.constant 0 : index
    %c0_419 = arith.constant 0 : index
    %395 = vector.load %arg18[%c1_417, %c0_418, %c0_419] : memref<9x6x8xbf16, #tpu.memory_space<vmem>>, vector<1x6x8xbf16>
    %396 = vector.shape_cast %395 : vector<1x6x8xbf16> to vector<6x8xbf16>
    %cst_420 = arith.constant dense<0.000000e+00> : vector<256x8xf32>
    %397 = tpu.matmul %394, %396, %cst_420 {dimension_numbers = #tpu.dot_dimension_numbers<[1], [0], [0], [1], [0, 0, 1, 1], [], []>} : vector<256x6xbf16>, vector<6x8xbf16>, vector<256x8xf32> -> vector<256x8xf32>
    %398 = arith.addf %391, %397 : vector<256x8xf32>
    %c0_421 = arith.constant 0 : index
    %c2_422 = arith.constant 2 : index
    %c0_423 = arith.constant 0 : index
    %399 = vector.load %arg27[%c0_421, %c2_422, %c0_423] : memref<18x18x8xf32, #tpu.memory_space<vmem>>, vector<16x16x6xf32>
    %400 = vector.shape_cast %399 : vector<16x16x6xf32> to vector<256x6xf32>
    %401 = arith.truncf %400 : vector<256x6xf32> to vector<256x6xbf16>
    %c2_424 = arith.constant 2 : index
    %c0_425 = arith.constant 0 : index
    %c0_426 = arith.constant 0 : index
    %402 = vector.load %arg18[%c2_424, %c0_425, %c0_426] : memref<9x6x8xbf16, #tpu.memory_space<vmem>>, vector<1x6x8xbf16>
    %403 = vector.shape_cast %402 : vector<1x6x8xbf16> to vector<6x8xbf16>
    %cst_427 = arith.constant dense<0.000000e+00> : vector<256x8xf32>
    %404 = tpu.matmul %401, %403, %cst_427 {dimension_numbers = #tpu.dot_dimension_numbers<[1], [0], [0], [1], [0, 0, 1, 1], [], []>} : vector<256x6xbf16>, vector<6x8xbf16>, vector<256x8xf32> -> vector<256x8xf32>
    %405 = arith.addf %398, %404 : vector<256x8xf32>
    %c1_428 = arith.constant 1 : index
    %c0_429 = arith.constant 0 : index
    %c0_430 = arith.constant 0 : index
    %406 = vector.load %arg27[%c1_428, %c0_429, %c0_430] : memref<18x18x8xf32, #tpu.memory_space<vmem>>, vector<16x16x6xf32>
    %407 = vector.shape_cast %406 : vector<16x16x6xf32> to vector<256x6xf32>
    %408 = arith.truncf %407 : vector<256x6xf32> to vector<256x6xbf16>
    %c3_431 = arith.constant 3 : index
    %c0_432 = arith.constant 0 : index
    %c0_433 = arith.constant 0 : index
    %409 = vector.load %arg18[%c3_431, %c0_432, %c0_433] : memref<9x6x8xbf16, #tpu.memory_space<vmem>>, vector<1x6x8xbf16>
    %410 = vector.shape_cast %409 : vector<1x6x8xbf16> to vector<6x8xbf16>
    %cst_434 = arith.constant dense<0.000000e+00> : vector<256x8xf32>
    %411 = tpu.matmul %408, %410, %cst_434 {dimension_numbers = #tpu.dot_dimension_numbers<[1], [0], [0], [1], [0, 0, 1, 1], [], []>} : vector<256x6xbf16>, vector<6x8xbf16>, vector<256x8xf32> -> vector<256x8xf32>
    %412 = arith.addf %405, %411 : vector<256x8xf32>
    %c1_435 = arith.constant 1 : index
    %c1_436 = arith.constant 1 : index
    %c0_437 = arith.constant 0 : index
    %413 = vector.load %arg27[%c1_435, %c1_436, %c0_437] : memref<18x18x8xf32, #tpu.memory_space<vmem>>, vector<16x16x6xf32>
    %414 = vector.shape_cast %413 : vector<16x16x6xf32> to vector<256x6xf32>
    %415 = arith.truncf %414 : vector<256x6xf32> to vector<256x6xbf16>
    %c4_438 = arith.constant 4 : index
    %c0_439 = arith.constant 0 : index
    %c0_440 = arith.constant 0 : index
    %416 = vector.load %arg18[%c4_438, %c0_439, %c0_440] : memref<9x6x8xbf16, #tpu.memory_space<vmem>>, vector<1x6x8xbf16>
    %417 = vector.shape_cast %416 : vector<1x6x8xbf16> to vector<6x8xbf16>
    %cst_441 = arith.constant dense<0.000000e+00> : vector<256x8xf32>
    %418 = tpu.matmul %415, %417, %cst_441 {dimension_numbers = #tpu.dot_dimension_numbers<[1], [0], [0], [1], [0, 0, 1, 1], [], []>} : vector<256x6xbf16>, vector<6x8xbf16>, vector<256x8xf32> -> vector<256x8xf32>
    %419 = arith.addf %412, %418 : vector<256x8xf32>
    %c1_442 = arith.constant 1 : index
    %c2_443 = arith.constant 2 : index
    %c0_444 = arith.constant 0 : index
    %420 = vector.load %arg27[%c1_442, %c2_443, %c0_444] : memref<18x18x8xf32, #tpu.memory_space<vmem>>, vector<16x16x6xf32>
    %421 = vector.shape_cast %420 : vector<16x16x6xf32> to vector<256x6xf32>
    %422 = arith.truncf %421 : vector<256x6xf32> to vector<256x6xbf16>
    %c5_445 = arith.constant 5 : index
    %c0_446 = arith.constant 0 : index
    %c0_447 = arith.constant 0 : index
    %423 = vector.load %arg18[%c5_445, %c0_446, %c0_447] : memref<9x6x8xbf16, #tpu.memory_space<vmem>>, vector<1x6x8xbf16>
    %424 = vector.shape_cast %423 : vector<1x6x8xbf16> to vector<6x8xbf16>
    %cst_448 = arith.constant dense<0.000000e+00> : vector<256x8xf32>
    %425 = tpu.matmul %422, %424, %cst_448 {dimension_numbers = #tpu.dot_dimension_numbers<[1], [0], [0], [1], [0, 0, 1, 1], [], []>} : vector<256x6xbf16>, vector<6x8xbf16>, vector<256x8xf32> -> vector<256x8xf32>
    %426 = arith.addf %419, %425 : vector<256x8xf32>
    %c2_449 = arith.constant 2 : index
    %c0_450 = arith.constant 0 : index
    %c0_451 = arith.constant 0 : index
    %427 = vector.load %arg27[%c2_449, %c0_450, %c0_451] : memref<18x18x8xf32, #tpu.memory_space<vmem>>, vector<16x16x6xf32>
    %428 = vector.shape_cast %427 : vector<16x16x6xf32> to vector<256x6xf32>
    %429 = arith.truncf %428 : vector<256x6xf32> to vector<256x6xbf16>
    %c6_452 = arith.constant 6 : index
    %c0_453 = arith.constant 0 : index
    %c0_454 = arith.constant 0 : index
    %430 = vector.load %arg18[%c6_452, %c0_453, %c0_454] : memref<9x6x8xbf16, #tpu.memory_space<vmem>>, vector<1x6x8xbf16>
    %431 = vector.shape_cast %430 : vector<1x6x8xbf16> to vector<6x8xbf16>
    %cst_455 = arith.constant dense<0.000000e+00> : vector<256x8xf32>
    %432 = tpu.matmul %429, %431, %cst_455 {dimension_numbers = #tpu.dot_dimension_numbers<[1], [0], [0], [1], [0, 0, 1, 1], [], []>} : vector<256x6xbf16>, vector<6x8xbf16>, vector<256x8xf32> -> vector<256x8xf32>
    %433 = arith.addf %426, %432 : vector<256x8xf32>
    %c2_456 = arith.constant 2 : index
    %c1_457 = arith.constant 1 : index
    %c0_458 = arith.constant 0 : index
    %434 = vector.load %arg27[%c2_456, %c1_457, %c0_458] : memref<18x18x8xf32, #tpu.memory_space<vmem>>, vector<16x16x6xf32>
    %435 = vector.shape_cast %434 : vector<16x16x6xf32> to vector<256x6xf32>
    %436 = arith.truncf %435 : vector<256x6xf32> to vector<256x6xbf16>
    %c7_459 = arith.constant 7 : index
    %c0_460 = arith.constant 0 : index
    %c0_461 = arith.constant 0 : index
    %437 = vector.load %arg18[%c7_459, %c0_460, %c0_461] : memref<9x6x8xbf16, #tpu.memory_space<vmem>>, vector<1x6x8xbf16>
    %438 = vector.shape_cast %437 : vector<1x6x8xbf16> to vector<6x8xbf16>
    %cst_462 = arith.constant dense<0.000000e+00> : vector<256x8xf32>
    %439 = tpu.matmul %436, %438, %cst_462 {dimension_numbers = #tpu.dot_dimension_numbers<[1], [0], [0], [1], [0, 0, 1, 1], [], []>} : vector<256x6xbf16>, vector<6x8xbf16>, vector<256x8xf32> -> vector<256x8xf32>
    %440 = arith.addf %433, %439 : vector<256x8xf32>
    %c2_463 = arith.constant 2 : index
    %c2_464 = arith.constant 2 : index
    %c0_465 = arith.constant 0 : index
    %441 = vector.load %arg27[%c2_463, %c2_464, %c0_465] : memref<18x18x8xf32, #tpu.memory_space<vmem>>, vector<16x16x6xf32>
    %442 = vector.shape_cast %441 : vector<16x16x6xf32> to vector<256x6xf32>
    %443 = arith.truncf %442 : vector<256x6xf32> to vector<256x6xbf16>
    %c8_466 = arith.constant 8 : index
    %c0_467 = arith.constant 0 : index
    %c0_468 = arith.constant 0 : index
    %444 = vector.load %arg18[%c8_466, %c0_467, %c0_468] : memref<9x6x8xbf16, #tpu.memory_space<vmem>>, vector<1x6x8xbf16>
    %445 = vector.shape_cast %444 : vector<1x6x8xbf16> to vector<6x8xbf16>
    %cst_469 = arith.constant dense<0.000000e+00> : vector<256x8xf32>
    %446 = tpu.matmul %443, %445, %cst_469 {dimension_numbers = #tpu.dot_dimension_numbers<[1], [0], [0], [1], [0, 0, 1, 1], [], []>} : vector<256x6xbf16>, vector<6x8xbf16>, vector<256x8xf32> -> vector<256x8xf32>
    %447 = arith.addf %440, %446 : vector<256x8xf32>
    %c0_470 = arith.constant 0 : index
    %c0_471 = arith.constant 0 : index
    %448 = vector.load %arg19[%c0_470, %c0_471] : memref<1x8xf32, #tpu.memory_space<vmem>>, vector<1x8xf32>
    %449 = vector.broadcast %448 : vector<1x8xf32> to vector<256x8xf32>
    %450 = arith.addf %447, %449 : vector<256x8xf32>
    %cst_472 = arith.constant 0.000000e+00 : f32
    %451 = vector.broadcast %cst_472 : f32 to vector<256x8xf32>
    %452 = arith.maximumf %450, %451 : vector<256x8xf32>
    %453 = vector.shape_cast %452 : vector<256x8xf32> to vector<16x16x8xf32>
    %c5_473 = arith.constant 5 : index
    %c5_474 = arith.constant 5 : index
    %c0_475 = arith.constant 0 : index
    %454 = vector.load %arg30[%c5_473, %c5_474, %c0_475] : memref<26x26x8xf32, #tpu.memory_space<vmem>>, vector<16x16x8xf32>
    tpu.vector_store %arg30[%c5_473, %c5_474, %c0_475], %453 {strides = array<i32>} : memref<26x26x8xf32, #tpu.memory_space<vmem>>, vector<16x16x8xf32>,
    %c0_476 = arith.constant 0 : index
    %c0_477 = arith.constant 0 : index
    %c0_478 = arith.constant 0 : index
    %455 = vector.load %arg30[%c0_476, %c0_477, %c0_478] : memref<26x26x8xf32, #tpu.memory_space<vmem>>, vector<16x16x8xf32>
    %456 = vector.shape_cast %455 : vector<16x16x8xf32> to vector<256x8xf32>
    %457 = arith.truncf %456 : vector<256x8xf32> to vector<256x8xbf16>
    %c0_479 = arith.constant 0 : index
    %c0_480 = arith.constant 0 : index
    %c0_481 = arith.constant 0 : index
    %458 = vector.load %arg20[%c0_479, %c0_480, %c0_481] : memref<9x8x8xbf16, #tpu.memory_space<vmem>>, vector<1x8x8xbf16>
    %459 = vector.shape_cast %458 : vector<1x8x8xbf16> to vector<8x8xbf16>
    %cst_482 = arith.constant dense<0.000000e+00> : vector<256x8xf32>
    %460 = tpu.matmul %457, %459, %cst_482 {dimension_numbers = #tpu.dot_dimension_numbers<[1], [0], [0], [1], [0, 0, 1, 1], [], []>} : vector<256x8xbf16>, vector<8x8xbf16>, vector<256x8xf32> -> vector<256x8xf32>
    %c0_483 = arith.constant 0 : index
    %c5_484 = arith.constant 5 : index
    %c0_485 = arith.constant 0 : index
    %461 = vector.load %arg30[%c0_483, %c5_484, %c0_485] : memref<26x26x8xf32, #tpu.memory_space<vmem>>, vector<16x16x8xf32>
    %462 = vector.shape_cast %461 : vector<16x16x8xf32> to vector<256x8xf32>
    %463 = arith.truncf %462 : vector<256x8xf32> to vector<256x8xbf16>
    %c1_486 = arith.constant 1 : index
    %c0_487 = arith.constant 0 : index
    %c0_488 = arith.constant 0 : index
    %464 = vector.load %arg20[%c1_486, %c0_487, %c0_488] : memref<9x8x8xbf16, #tpu.memory_space<vmem>>, vector<1x8x8xbf16>
    %465 = vector.shape_cast %464 : vector<1x8x8xbf16> to vector<8x8xbf16>
    %cst_489 = arith.constant dense<0.000000e+00> : vector<256x8xf32>
    %466 = tpu.matmul %463, %465, %cst_489 {dimension_numbers = #tpu.dot_dimension_numbers<[1], [0], [0], [1], [0, 0, 1, 1], [], []>} : vector<256x8xbf16>, vector<8x8xbf16>, vector<256x8xf32> -> vector<256x8xf32>
    %467 = arith.addf %460, %466 : vector<256x8xf32>
    %c0_490 = arith.constant 0 : index
    %c10 = arith.constant 10 : index
    %c0_491 = arith.constant 0 : index
    %468 = vector.load %arg30[%c0_490, %c10, %c0_491] : memref<26x26x8xf32, #tpu.memory_space<vmem>>, vector<16x16x8xf32>
    %469 = vector.shape_cast %468 : vector<16x16x8xf32> to vector<256x8xf32>
    %470 = arith.truncf %469 : vector<256x8xf32> to vector<256x8xbf16>
    %c2_492 = arith.constant 2 : index
    %c0_493 = arith.constant 0 : index
    %c0_494 = arith.constant 0 : index
    %471 = vector.load %arg20[%c2_492, %c0_493, %c0_494] : memref<9x8x8xbf16, #tpu.memory_space<vmem>>, vector<1x8x8xbf16>
    %472 = vector.shape_cast %471 : vector<1x8x8xbf16> to vector<8x8xbf16>
    %cst_495 = arith.constant dense<0.000000e+00> : vector<256x8xf32>
    %473 = tpu.matmul %470, %472, %cst_495 {dimension_numbers = #tpu.dot_dimension_numbers<[1], [0], [0], [1], [0, 0, 1, 1], [], []>} : vector<256x8xbf16>, vector<8x8xbf16>, vector<256x8xf32> -> vector<256x8xf32>
    %474 = arith.addf %467, %473 : vector<256x8xf32>
    %c5_496 = arith.constant 5 : index
    %c0_497 = arith.constant 0 : index
    %c0_498 = arith.constant 0 : index
    %475 = vector.load %arg30[%c5_496, %c0_497, %c0_498] : memref<26x26x8xf32, #tpu.memory_space<vmem>>, vector<16x16x8xf32>
    %476 = vector.shape_cast %475 : vector<16x16x8xf32> to vector<256x8xf32>
    %477 = arith.truncf %476 : vector<256x8xf32> to vector<256x8xbf16>
    %c3_499 = arith.constant 3 : index
    %c0_500 = arith.constant 0 : index
    %c0_501 = arith.constant 0 : index
    %478 = vector.load %arg20[%c3_499, %c0_500, %c0_501] : memref<9x8x8xbf16, #tpu.memory_space<vmem>>, vector<1x8x8xbf16>
    %479 = vector.shape_cast %478 : vector<1x8x8xbf16> to vector<8x8xbf16>
    %cst_502 = arith.constant dense<0.000000e+00> : vector<256x8xf32>
    %480 = tpu.matmul %477, %479, %cst_502 {dimension_numbers = #tpu.dot_dimension_numbers<[1], [0], [0], [1], [0, 0, 1, 1], [], []>} : vector<256x8xbf16>, vector<8x8xbf16>, vector<256x8xf32> -> vector<256x8xf32>
    %481 = arith.addf %474, %480 : vector<256x8xf32>
    %c5_503 = arith.constant 5 : index
    %c5_504 = arith.constant 5 : index
    %c0_505 = arith.constant 0 : index
    %482 = vector.load %arg30[%c5_503, %c5_504, %c0_505] : memref<26x26x8xf32, #tpu.memory_space<vmem>>, vector<16x16x8xf32>
    %483 = vector.shape_cast %482 : vector<16x16x8xf32> to vector<256x8xf32>
    %484 = arith.truncf %483 : vector<256x8xf32> to vector<256x8xbf16>
    %c4_506 = arith.constant 4 : index
    %c0_507 = arith.constant 0 : index
    %c0_508 = arith.constant 0 : index
    %485 = vector.load %arg20[%c4_506, %c0_507, %c0_508] : memref<9x8x8xbf16, #tpu.memory_space<vmem>>, vector<1x8x8xbf16>
    %486 = vector.shape_cast %485 : vector<1x8x8xbf16> to vector<8x8xbf16>
    %cst_509 = arith.constant dense<0.000000e+00> : vector<256x8xf32>
    %487 = tpu.matmul %484, %486, %cst_509 {dimension_numbers = #tpu.dot_dimension_numbers<[1], [0], [0], [1], [0, 0, 1, 1], [], []>} : vector<256x8xbf16>, vector<8x8xbf16>, vector<256x8xf32> -> vector<256x8xf32>
    %488 = arith.addf %481, %487 : vector<256x8xf32>
    %c5_510 = arith.constant 5 : index
    %c10_511 = arith.constant 10 : index
    %c0_512 = arith.constant 0 : index
    %489 = vector.load %arg30[%c5_510, %c10_511, %c0_512] : memref<26x26x8xf32, #tpu.memory_space<vmem>>, vector<16x16x8xf32>
    %490 = vector.shape_cast %489 : vector<16x16x8xf32> to vector<256x8xf32>
    %491 = arith.truncf %490 : vector<256x8xf32> to vector<256x8xbf16>
    %c5_513 = arith.constant 5 : index
    %c0_514 = arith.constant 0 : index
    %c0_515 = arith.constant 0 : index
    %492 = vector.load %arg20[%c5_513, %c0_514, %c0_515] : memref<9x8x8xbf16, #tpu.memory_space<vmem>>, vector<1x8x8xbf16>
    %493 = vector.shape_cast %492 : vector<1x8x8xbf16> to vector<8x8xbf16>
    %cst_516 = arith.constant dense<0.000000e+00> : vector<256x8xf32>
    %494 = tpu.matmul %491, %493, %cst_516 {dimension_numbers = #tpu.dot_dimension_numbers<[1], [0], [0], [1], [0, 0, 1, 1], [], []>} : vector<256x8xbf16>, vector<8x8xbf16>, vector<256x8xf32> -> vector<256x8xf32>
    %495 = arith.addf %488, %494 : vector<256x8xf32>
    %c10_517 = arith.constant 10 : index
    %c0_518 = arith.constant 0 : index
    %c0_519 = arith.constant 0 : index
    %496 = vector.load %arg30[%c10_517, %c0_518, %c0_519] : memref<26x26x8xf32, #tpu.memory_space<vmem>>, vector<16x16x8xf32>
    %497 = vector.shape_cast %496 : vector<16x16x8xf32> to vector<256x8xf32>
    %498 = arith.truncf %497 : vector<256x8xf32> to vector<256x8xbf16>
    %c6_520 = arith.constant 6 : index
    %c0_521 = arith.constant 0 : index
    %c0_522 = arith.constant 0 : index
    %499 = vector.load %arg20[%c6_520, %c0_521, %c0_522] : memref<9x8x8xbf16, #tpu.memory_space<vmem>>, vector<1x8x8xbf16>
    %500 = vector.shape_cast %499 : vector<1x8x8xbf16> to vector<8x8xbf16>
    %cst_523 = arith.constant dense<0.000000e+00> : vector<256x8xf32>
    %501 = tpu.matmul %498, %500, %cst_523 {dimension_numbers = #tpu.dot_dimension_numbers<[1], [0], [0], [1], [0, 0, 1, 1], [], []>} : vector<256x8xbf16>, vector<8x8xbf16>, vector<256x8xf32> -> vector<256x8xf32>
    %502 = arith.addf %495, %501 : vector<256x8xf32>
    %c10_524 = arith.constant 10 : index
    %c5_525 = arith.constant 5 : index
    %c0_526 = arith.constant 0 : index
    %503 = vector.load %arg30[%c10_524, %c5_525, %c0_526] : memref<26x26x8xf32, #tpu.memory_space<vmem>>, vector<16x16x8xf32>
    %504 = vector.shape_cast %503 : vector<16x16x8xf32> to vector<256x8xf32>
    %505 = arith.truncf %504 : vector<256x8xf32> to vector<256x8xbf16>
    %c7_527 = arith.constant 7 : index
    %c0_528 = arith.constant 0 : index
    %c0_529 = arith.constant 0 : index
    %506 = vector.load %arg20[%c7_527, %c0_528, %c0_529] : memref<9x8x8xbf16, #tpu.memory_space<vmem>>, vector<1x8x8xbf16>
    %507 = vector.shape_cast %506 : vector<1x8x8xbf16> to vector<8x8xbf16>
    %cst_530 = arith.constant dense<0.000000e+00> : vector<256x8xf32>
    %508 = tpu.matmul %505, %507, %cst_530 {dimension_numbers = #tpu.dot_dimension_numbers<[1], [0], [0], [1], [0, 0, 1, 1], [], []>} : vector<256x8xbf16>, vector<8x8xbf16>, vector<256x8xf32> -> vector<256x8xf32>
    %509 = arith.addf %502, %508 : vector<256x8xf32>
    %c10_531 = arith.constant 10 : index
    %c10_532 = arith.constant 10 : index
    %c0_533 = arith.constant 0 : index
    %510 = vector.load %arg30[%c10_531, %c10_532, %c0_533] : memref<26x26x8xf32, #tpu.memory_space<vmem>>, vector<16x16x8xf32>
    %511 = vector.shape_cast %510 : vector<16x16x8xf32> to vector<256x8xf32>
    %512 = arith.truncf %511 : vector<256x8xf32> to vector<256x8xbf16>
    %c8_534 = arith.constant 8 : index
    %c0_535 = arith.constant 0 : index
    %c0_536 = arith.constant 0 : index
    %513 = vector.load %arg20[%c8_534, %c0_535, %c0_536] : memref<9x8x8xbf16, #tpu.memory_space<vmem>>, vector<1x8x8xbf16>
    %514 = vector.shape_cast %513 : vector<1x8x8xbf16> to vector<8x8xbf16>
    %cst_537 = arith.constant dense<0.000000e+00> : vector<256x8xf32>
    %515 = tpu.matmul %512, %514, %cst_537 {dimension_numbers = #tpu.dot_dimension_numbers<[1], [0], [0], [1], [0, 0, 1, 1], [], []>} : vector<256x8xbf16>, vector<8x8xbf16>, vector<256x8xf32> -> vector<256x8xf32>
    %516 = arith.addf %509, %515 : vector<256x8xf32>
    %c0_538 = arith.constant 0 : index
    %c0_539 = arith.constant 0 : index
    %517 = vector.load %arg21[%c0_538, %c0_539] : memref<1x8xf32, #tpu.memory_space<vmem>>, vector<1x8xf32>
    %518 = vector.broadcast %517 : vector<1x8xf32> to vector<256x8xf32>
    %519 = arith.addf %516, %518 : vector<256x8xf32>
    %520 = arith.truncf %168 : vector<256x8xf32> to vector<256x8xbf16>
    %c0_540 = arith.constant 0 : index
    %c0_541 = arith.constant 0 : index
    %c0_542 = arith.constant 0 : index
    %521 = vector.load %arg22[%c0_540, %c0_541, %c0_542] : memref<3x8x32xbf16, #tpu.memory_space<vmem>>, vector<1x8x32xbf16>
    %522 = vector.shape_cast %521 : vector<1x8x32xbf16> to vector<8x32xbf16>
    %cst_543 = arith.constant dense<0.000000e+00> : vector<256x32xf32>
    %523 = tpu.matmul %520, %522, %cst_543 {dimension_numbers = #tpu.dot_dimension_numbers<[1], [0], [0], [1], [0, 0, 1, 1], [], []>} : vector<256x8xbf16>, vector<8x32xbf16>, vector<256x32xf32> -> vector<256x32xf32>
    %524 = arith.truncf %309 : vector<256x8xf32> to vector<256x8xbf16>
    %c1_544 = arith.constant 1 : index
    %c0_545 = arith.constant 0 : index
    %c0_546 = arith.constant 0 : index
    %525 = vector.load %arg22[%c1_544, %c0_545, %c0_546] : memref<3x8x32xbf16, #tpu.memory_space<vmem>>, vector<1x8x32xbf16>
    %526 = vector.shape_cast %525 : vector<1x8x32xbf16> to vector<8x32xbf16>
    %cst_547 = arith.constant dense<0.000000e+00> : vector<256x32xf32>
    %527 = tpu.matmul %524, %526, %cst_547 {dimension_numbers = #tpu.dot_dimension_numbers<[1], [0], [0], [1], [0, 0, 1, 1], [], []>} : vector<256x8xbf16>, vector<8x32xbf16>, vector<256x32xf32> -> vector<256x32xf32>
    %528 = arith.addf %523, %527 : vector<256x32xf32>
    %529 = arith.truncf %519 : vector<256x8xf32> to vector<256x8xbf16>
    %c2_548 = arith.constant 2 : index
    %c0_549 = arith.constant 0 : index
    %c0_550 = arith.constant 0 : index
    %530 = vector.load %arg22[%c2_548, %c0_549, %c0_550] : memref<3x8x32xbf16, #tpu.memory_space<vmem>>, vector<1x8x32xbf16>
    %531 = vector.shape_cast %530 : vector<1x8x32xbf16> to vector<8x32xbf16>
    %cst_551 = arith.constant dense<0.000000e+00> : vector<256x32xf32>
    %532 = tpu.matmul %529, %531, %cst_551 {dimension_numbers = #tpu.dot_dimension_numbers<[1], [0], [0], [1], [0, 0, 1, 1], [], []>} : vector<256x8xbf16>, vector<8x32xbf16>, vector<256x32xf32> -> vector<256x32xf32>
    %533 = arith.addf %528, %532 : vector<256x32xf32>
    %c0_552 = arith.constant 0 : index
    %c0_553 = arith.constant 0 : index
    %534 = vector.load %arg23[%c0_552, %c0_553] : memref<1x32xf32, #tpu.memory_space<vmem>>, vector<1x32xf32>
    %535 = vector.broadcast %534 : vector<1x32xf32> to vector<256x32xf32>
    %536 = arith.addf %533, %535 : vector<256x32xf32>
    %c0_554 = arith.constant 0 : index
    %c0_555 = arith.constant 0 : index
    %537 = vector.load %arg24[%c0_554, %c0_555] : memref<32x32xbf16, #tpu.memory_space<vmem>>, vector<32x32xbf16>
    %cst_556 = arith.constant dense<0.000000e+00> : vector<256x32xf32>
    %538 = tpu.matmul %27, %537, %cst_556 {dimension_numbers = #tpu.dot_dimension_numbers<[1], [0], [0], [1], [0, 0, 1, 1], [], []>} : vector<256x32xbf16>, vector<32x32xbf16>, vector<256x32xf32> -> vector<256x32xf32>
    %c0_557 = arith.constant 0 : index
    %c0_558 = arith.constant 0 : index
    %539 = vector.load %arg25[%c0_557, %c0_558] : memref<1x32xf32, #tpu.memory_space<vmem>>, vector<1x32xf32>
    %540 = vector.broadcast %539 : vector<1x32xf32> to vector<256x32xf32>
    %541 = arith.addf %538, %540 : vector<256x32xf32>
    %cst_559 = arith.constant 1.000000e-01 : f32
    %542 = vector.broadcast %cst_559 : f32 to vector<256x32xf32>
    %543 = arith.mulf %536, %542 : vector<256x32xf32>
    %544 = arith.addf %543, %541 : vector<256x32xf32>
    %cst_560 = arith.constant 0.000000e+00 : f32
    %545 = vector.broadcast %cst_560 : f32 to vector<256x32xf32>
    %546 = arith.maximumf %544, %545 : vector<256x32xf32>
    %547 = vector.shape_cast %546 : vector<256x32xf32> to vector<16x16x32xf32>
    %c0_561 = arith.constant 0 : index
    %c0_562 = arith.constant 0 : index
    %c0_563 = arith.constant 0 : index
    %c0_564 = arith.constant 0 : index
    %548 = vector.load %arg26[%c0_561, %c0_562, %c0_563, %c0_564] : memref<1x16x16x32xf32, #tpu.memory_space<vmem>>, vector<1x16x16x32xf32>
    %549 = vector.shape_cast %548 : vector<1x16x16x32xf32> to vector<16x16x32xf32>
    %550 = vector.shape_cast %547 : vector<16x16x32xf32> to vector<1x16x16x32xf32>
    tpu.vector_store %arg26[%c0_561, %c0_562, %c0_563, %c0_564], %550 {strides = array<i32>} : memref<1x16x16x32xf32, #tpu.memory_space<vmem>>, vector<1x16x16x32xf32>,
    return
  }
  func.func @transform_0(%arg0: i32) -> (i32, i32, i32, i32) {
    %c0_i32 = arith.constant 0 : i32
    %c0_i32_0 = arith.constant 0 : i32
    %c0_i32_1 = arith.constant 0 : i32
    %c0_i32_2 = arith.constant 0 : i32
    return %arg0, %c0_i32, %c0_i32_0, %c0_i32_1 : i32, i32, i32, i32
  }
  func.func @transform_1(%arg0: i32) -> (i32, i32) {
    %c0_i32 = arith.constant 0 : i32
    %c0_i32_0 = arith.constant 0 : i32
    %c0_i32_1 = arith.constant 0 : i32
    return %c0_i32, %c0_i32_0 : i32, i32
  }
  func.func @transform_2(%arg0: i32) -> (i32, i32) {
    %c0_i32 = arith.constant 0 : i32
    %c0_i32_0 = arith.constant 0 : i32
    %c0_i32_1 = arith.constant 0 : i32
    return %c0_i32, %c0_i32_0 : i32, i32
  }
  func.func @transform_3(%arg0: i32) -> (i32, i32, i32) {
    %c0_i32 = arith.constant 0 : i32
    %c0_i32_0 = arith.constant 0 : i32
    %c0_i32_1 = arith.constant 0 : i32
    %c0_i32_2 = arith.constant 0 : i32
    return %c0_i32, %c0_i32_0, %c0_i32_1 : i32, i32, i32
  }
  func.func @transform_4(%arg0: i32) -> (i32, i32) {
    %c0_i32 = arith.constant 0 : i32
    %c0_i32_0 = arith.constant 0 : i32
    %c0_i32_1 = arith.constant 0 : i32
    return %c0_i32, %c0_i32_0 : i32, i32
  }
  func.func @transform_5(%arg0: i32) -> (i32, i32, i32) {
    %c0_i32 = arith.constant 0 : i32
    %c0_i32_0 = arith.constant 0 : i32
    %c0_i32_1 = arith.constant 0 : i32
    %c0_i32_2 = arith.constant 0 : i32
    return %c0_i32, %c0_i32_0, %c0_i32_1 : i32, i32, i32
  }
  func.func @transform_6(%arg0: i32) -> (i32, i32) {
    %c0_i32 = arith.constant 0 : i32
    %c0_i32_0 = arith.constant 0 : i32
    %c0_i32_1 = arith.constant 0 : i32
    return %c0_i32, %c0_i32_0 : i32, i32
  }
  func.func @transform_7(%arg0: i32) -> (i32, i32) {
    %c0_i32 = arith.constant 0 : i32
    %c0_i32_0 = arith.constant 0 : i32
    %c0_i32_1 = arith.constant 0 : i32
    return %c0_i32, %c0_i32_0 : i32, i32
  }
  func.func @transform_8(%arg0: i32) -> (i32, i32) {
    %c0_i32 = arith.constant 0 : i32
    %c0_i32_0 = arith.constant 0 : i32
    %c0_i32_1 = arith.constant 0 : i32
    return %c0_i32, %c0_i32_0 : i32, i32
  }
  func.func @transform_9(%arg0: i32) -> (i32, i32, i32) {
    %c0_i32 = arith.constant 0 : i32
    %c0_i32_0 = arith.constant 0 : i32
    %c0_i32_1 = arith.constant 0 : i32
    %c0_i32_2 = arith.constant 0 : i32
    return %c0_i32, %c0_i32_0, %c0_i32_1 : i32, i32, i32
  }
  func.func @transform_10(%arg0: i32) -> (i32, i32) {
    %c0_i32 = arith.constant 0 : i32
    %c0_i32_0 = arith.constant 0 : i32
    %c0_i32_1 = arith.constant 0 : i32
    return %c0_i32, %c0_i32_0 : i32, i32
  }
  func.func @transform_11(%arg0: i32) -> (i32, i32, i32) {
    %c0_i32 = arith.constant 0 : i32
    %c0_i32_0 = arith.constant 0 : i32
    %c0_i32_1 = arith.constant 0 : i32
    %c0_i32_2 = arith.constant 0 : i32
    return %c0_i32, %c0_i32_0, %c0_i32_1 : i32, i32, i32
  }
  func.func @transform_12(%arg0: i32) -> (i32, i32) {
    %c0_i32 = arith.constant 0 : i32
    %c0_i32_0 = arith.constant 0 : i32
    %c0_i32_1 = arith.constant 0 : i32
    return %c0_i32, %c0_i32_0 : i32, i32
  }
  func.func @transform_13(%arg0: i32) -> (i32, i32) {
    %c0_i32 = arith.constant 0 : i32
    %c0_i32_0 = arith.constant 0 : i32
    %c0_i32_1 = arith.constant 0 : i32
    return %c0_i32, %c0_i32_0 : i32, i32
  }
  func.func @transform_14(%arg0: i32) -> (i32, i32) {
    %c0_i32 = arith.constant 0 : i32
    %c0_i32_0 = arith.constant 0 : i32
    %c0_i32_1 = arith.constant 0 : i32
    return %c0_i32, %c0_i32_0 : i32, i32
  }
  func.func @transform_15(%arg0: i32) -> (i32, i32, i32) {
    %c0_i32 = arith.constant 0 : i32
    %c0_i32_0 = arith.constant 0 : i32
    %c0_i32_1 = arith.constant 0 : i32
    %c0_i32_2 = arith.constant 0 : i32
    return %c0_i32, %c0_i32_0, %c0_i32_1 : i32, i32, i32
  }
  func.func @transform_16(%arg0: i32) -> (i32, i32) {
    %c0_i32 = arith.constant 0 : i32
    %c0_i32_0 = arith.constant 0 : i32
    %c0_i32_1 = arith.constant 0 : i32
    return %c0_i32, %c0_i32_0 : i32, i32
  }
  func.func @transform_17(%arg0: i32) -> (i32, i32, i32) {
    %c0_i32 = arith.constant 0 : i32
    %c0_i32_0 = arith.constant 0 : i32
    %c0_i32_1 = arith.constant 0 : i32
    %c0_i32_2 = arith.constant 0 : i32
    return %c0_i32, %c0_i32_0, %c0_i32_1 : i32, i32, i32
  }
  func.func @transform_18(%arg0: i32) -> (i32, i32) {
    %c0_i32 = arith.constant 0 : i32
    %c0_i32_0 = arith.constant 0 : i32
    %c0_i32_1 = arith.constant 0 : i32
    return %c0_i32, %c0_i32_0 : i32, i32
  }
  func.func @transform_19(%arg0: i32) -> (i32, i32, i32) {
    %c0_i32 = arith.constant 0 : i32
    %c0_i32_0 = arith.constant 0 : i32
    %c0_i32_1 = arith.constant 0 : i32
    %c0_i32_2 = arith.constant 0 : i32
    return %c0_i32, %c0_i32_0, %c0_i32_1 : i32, i32, i32
  }
  func.func @transform_20(%arg0: i32) -> (i32, i32) {
    %c0_i32 = arith.constant 0 : i32
    %c0_i32_0 = arith.constant 0 : i32
    %c0_i32_1 = arith.constant 0 : i32
    return %c0_i32, %c0_i32_0 : i32, i32
  }
  func.func @transform_21(%arg0: i32) -> (i32, i32, i32) {
    %c0_i32 = arith.constant 0 : i32
    %c0_i32_0 = arith.constant 0 : i32
    %c0_i32_1 = arith.constant 0 : i32
    %c0_i32_2 = arith.constant 0 : i32
    return %c0_i32, %c0_i32_0, %c0_i32_1 : i32, i32, i32
  }
  func.func @transform_22(%arg0: i32) -> (i32, i32) {
    %c0_i32 = arith.constant 0 : i32
    %c0_i32_0 = arith.constant 0 : i32
    %c0_i32_1 = arith.constant 0 : i32
    return %c0_i32, %c0_i32_0 : i32, i32
  }
  func.func @transform_23(%arg0: i32) -> (i32, i32) {
    %c0_i32 = arith.constant 0 : i32
    %c0_i32_0 = arith.constant 0 : i32
    %c0_i32_1 = arith.constant 0 : i32
    return %c0_i32, %c0_i32_0 : i32, i32
  }
  func.func @transform_24(%arg0: i32) -> (i32, i32) {
    %c0_i32 = arith.constant 0 : i32
    %c0_i32_0 = arith.constant 0 : i32
    %c0_i32_1 = arith.constant 0 : i32
    return %c0_i32, %c0_i32_0 : i32, i32
  }
  func.func @transform_25(%arg0: i32) -> (i32, i32, i32, i32) {
    %c0_i32 = arith.constant 0 : i32
    %c0_i32_0 = arith.constant 0 : i32
    %c0_i32_1 = arith.constant 0 : i32
    %c0_i32_2 = arith.constant 0 : i32
    return %arg0, %c0_i32, %c0_i32_0, %c0_i32_1 : i32, i32, i32, i32
  }
}

</mosaic_0001>

<bundles_post_ra>
// kernel: tpu_custom_call.1
= control target key start
LH: loop header
LB: loop body
LE: loop exit
PB: predicated region body
PF: predicated region fallthrough
CT: control target
= control target key end

     0   :  { %s33581_s0 = inlined_call_operand.hbm [shape: f32[2,16,16,32], index: 0, kind: input, shape index: {}]   ;;  %s33582_s1 = inlined_call_operand.vmem [shape: bf16[32,4], index: 1, kind: input, shape index: {}]   ;;  %s33583_s2 = inlined_call_operand.vmem [shape: f32[1,4], index: 2, kind: input, shape index: {}]   ;;  %s33584_s3 = inlined_call_operand.vmem [shape: bf16[9,4,8], index: 3, kind: input, shape index: {}]   ;;  %s33585_s4 = inlined_call_operand.vmem [shape: f32[1,8], index: 4, kind: input, shape index: {}]   ;;  %s33586_s5 = inlined_call_operand.vmem [shape: bf16[9,8,8], index: 5, kind: input, shape index: {}]   ;;  %s33587_s6 = inlined_call_operand.vmem [shape: f32[1,8], index: 6, kind: input, shape index: {}]   ;;  %s33588_s7 = inlined_call_operand.vmem [shape: bf16[32,4], index: 7, kind: input, shape index: {}]   ;;  %s33589_s8 = inlined_call_operand.vmem [shape: f32[1,4], index: 8, kind: input, shape index: {}]   ;;  %s33590_s9 = inlined_call_operand.vmem [shape: bf16[9,4,8], index: 9, kind: input, shape index: {}]   ;;  %s33591_s10 = inlined_call_operand.vmem [shape: f32[1,8], index: 10, kind: input, shape index: {}]   ;;  %s33592_s11 = inlined_call_operand.vmem [shape: bf16[9,8,8], index: 11, kind: input, shape index: {}]   ;;  %s33593_s12 = inlined_call_operand.vmem [shape: f32[1,8], index: 12, kind: input, shape index: {}]   ;;  %s33594_s13 = inlined_call_operand.vmem [shape: bf16[32,4], index: 13, kind: input, shape index: {}]   ;;  %s33595_s14 = inlined_call_operand.vmem [shape: f32[1,4], index: 14, kind: input, shape index: {}]   ;;  %s33596_s15 = inlined_call_operand.vmem [shape: bf16[9,4,6], index: 15, kind: input, shape index: {}]   ;;  %s33597_s16 = inlined_call_operand.vmem [shape: f32[1,6], index: 16, kind: input, shape index: {}]   ;;  %s33598_s17 = inlined_call_operand.vmem [shape: bf16[9,6,8], index: 17, kind: input, shape index: {}]   ;;  %s33599_s18 = inlined_call_operand.vmem [shape: f32[1,8], index: 18, kind: input, shape index: {}]   ;;  %s33600_s19 = inlined_call_operand.vmem [shape: bf16[9,8,8], index: 19, kind: input, shape index: {}]   ;;  %s33601_s20 = inlined_call_operand.vmem [shape: f32[1,8], index: 20, kind: input, shape index: {}]   ;;  %s33602_s21 = inlined_call_operand.vmem [shape: bf16[3,8,32], index: 21, kind: input, shape index: {}]   ;;  %s33603_s22 = inlined_call_operand.vmem [shape: f32[1,32], index: 22, kind: input, shape index: {}]   ;;  %s33604_s23 = inlined_call_operand.vmem [shape: bf16[32,32], index: 23, kind: input, shape index: {}]   ;;  %s33605_s24 = inlined_call_operand.vmem [shape: f32[1,32], index: 24, kind: input, shape index: {}]   ;;  %s33606_s25 = inlined_call_operand.hbm [shape: f32[2,16,16,32], index: 25, kind: output, shape index: {}]  }
   0x1   :  { %33712 = sst [smem:[#allocation87_spill]] %s33581_s0 }
   0x2   :  { %33713 = sst [smem:[#allocation88_spill]] %s33582_s1 }
   0x3   :  { %33714 = sst [smem:[#allocation89_spill]] %s33583_s2 }
   0x4   :  { %33715 = sst [smem:[#allocation90_spill]] %s33584_s3 }
   0x5   :  { %33716 = sst [smem:[#allocation91_spill]] %s33585_s4 }
   0x6   :  { %33717 = sst [smem:[#allocation92_spill]] %s33586_s5 }
   0x7   :  { %33718 = sst [smem:[#allocation93_spill]] %s33587_s6 }
   0x8   :  { %33719 = sst [smem:[#allocation94_spill]] %s33588_s7 }
   0x9   :  { %33720 = sst [smem:[#allocation95_spill]] %s33589_s8 }
   0xa   :  { %33721 = sst [smem:[#allocation96_spill]] %s33590_s9 }
   0xb   :  { %33722 = sst [smem:[#allocation97_spill]] %s33591_s10 }
   0xc   :  { %33723 = sst [smem:[#allocation98_spill]] %s33592_s11 }
   0xd   :  { %33724 = sst [smem:[#allocation99_spill]] %s33593_s12 }
   0xe   :  { %33725 = sst [smem:[#allocation100_spill]] %s33594_s13 }
   0xf   :  { %33726 = sst [smem:[#allocation101_spill]] %s33595_s14 }
  0x10   :  { %33727 = sst [smem:[#allocation102_spill]] %s33605_s24 }
  0x11   :  { %33728 = sst [smem:[#allocation103_spill]] %s33606_s25 }
  0x12   :  { %30 = vsyncpa [#allocation7], 0 }
  0x13   :  { %32 = vsyncpa [#allocation7 + $0x1], 0 }
  0x14   :  { %33 = vsyncpa [#allocation8], 0 }
  0x15   :  { %35 = vsyncpa [#allocation8 + $0x1], 0  ;;  %s28568_s29 = smov 0   ;;  %s28570_s2 = smov 0  }
  0x16   :  { %s28572_s6 = smov 0   ;;  %s28574_s30 = smov 0  }
  0x17 LB: > { %33729 = sst [smem:[#allocation12_spill]] %s28417_s29  ;;  %s28589_s7 = sadd.s32 4294967295, %s28429_s30   ;;  %s28429_s30 = sphi %s28574_s30, %s34003_s30   ;;  %s28425_s6 = sphi %s28572_s6, %s34005_s6   ;;  %s28421_s2 = sphi %s28570_s2, %s34007_s2   ;;  %s28417_s29 = sphi %s28568_s29, %s34006_s29  }
  0x18   : > { %33730 = sst [smem:[#allocation13_spill]] %s28425_s6  ;;  %s21556_s3 = sadd.s32 4294967294, %s28429_s30  }
  0x19   : > { %33731 = sst [smem:[#allocation14_spill]] %s28589_s7  ;;  %s28593_s26 = sadd.s32 1, %s28429_s30  }
  0x1a   : > { %33732 = sst [smem:[#allocation15_spill]] %s28593_s26  ;;  %s48_s1 = sadd.s32 1, %s28425_s6 }
  0x1b   : > { %s45_s8 = ssub.s32 %s28429_s30, %s28593_s26  ;;  %p55_p0 = scmp.ne.s32.totalorder %s28425_s6, %s28421_s2 }
  0x1c   : > { %p46_p1 = scmp.eq.s32.totalorder %s45_s8, 0  ;;  %p56_p2 = scmp.eq.s32.totalorder %s28429_s30, 0 }
  0x1d   : > { %p61_p3 = scmp.ne.s32.totalorder %s28421_s2, %s28417_s29  ;;  %p62_p4 = scmp.eq.s32.totalorder %s28589_s7, 0 }
  0x1e   : > { %s28605_s27 = scalar_select %p46_p1, %s28425_s6, %s48_s1  }
  0x1f   : > { %p28607_p5 = por %p56_p2, %p55_p0  ;;  %p28611_p6 = por %p62_p4, %p61_p3 }
  0x20   : > { %33733 = sst [smem:[#allocation16_spill]] %s28605_s27  ;;  %p589_p7 = scmp.eq.s32.totalorder %s28589_s7, 1 }
  0x21   : > { %p595_p8 = scmp.eq.s32.totalorder %s21556_s3, 1  ;;  %p28286_p10 = scmp.lt.s32.totalorder %s28429_s30, 2 }
  0x22   : > { %p28618_p11 = por %p589_p7, %p55_p0  ;;  %s687_s0 = sand.u32 1, %s28425_s6  }
  0x23   : > { %p28622_p12 = por %p595_p8, %p61_p3  ;;  %s22768_s1 = sshll.u32 %s28429_s30, 12 }
  0x24   : > { %s33736_s9 = scalar_select %p28618_p11, 1, 0 }
  0x25   : > { %s33738_s5 = scalar_select %p28622_p12, 1, 0 }
  0x26   : > { %33737 = sst [smem:[#allocation17_spill]] %s33736_s9  ;;  %s21559_s8 = sshll.u32 %s687_s0, 8 }
  0x27   : > { %s33739_s29 = sld [smem:[#allocation87_spill]]  ;;  %s691_s3 = scalar_lea.vmem [#allocation6], %s21559_s8 }
  0x28   : > { %s698_s7 = sshll.u32 %s691_s3, 4  ;;  %p28635_p13 = pnand %p28286_p10, %p28607_p5  ;;  %s28639_s7 = int_to_ptr.vmem [resolvable:$true] %s698_s7 }
  0x29   : > { %s28641_s6 = scalar_lea.sflag [#allocation7], %s687_s0 }
  0x2a   : > { %p28335_p1 = pneg %p28635_p13 }
  0x2d   : > { %s33740_s25 = smov %s33739_s29  ;;  %s28631_s24 = scalar_lea.hbm %s33739_s29, %s22768_s1 }
  0x2e   : > { %s28333_s26 = scalar_lea.hbm %s28631_s24, 4096  ;;  %s28338_s4 = scalar_lea.hbm %s33740_s25, 8192 }
  0x2f   : > { %p28334_p0 = scmp.ne.s32.totalorder %s28631_s24, %s28333_s26  ;;  %p28339_p4 = scmp.lt.u32.totalorder %s28631_s24, %s33740_s25 }
  0x30   : > { %p28340_p5 = scmp.lt.u32.totalorder %s28338_s4, %s28333_s26  ;;  %p28342_p8 = scmp.lt.u32.totalorder %s28333_s26, %s28631_s24 }
  0x31   : > { %p28336_p2 = pnand %p28335_p1, %p28334_p0 }
  0x32   : > { %p28341_p7 = por %p28340_p5, %p28339_p4 }
  0x33   : > { %p28337_p3 = pneg %p28336_p2 }
  0x34   : > { %p28343_p10 = por %p28342_p8, %p28341_p7 }
  0x36   : > { %p28344_p9 = pnand %p28343_p10, %p28337_p3 }
  0x38   : > { %28347 = shalt.err (!%p28344_p9)
}
  0x39   : > { %s28348_s0 = scalar_lea.vmem %s28639_s7, 4096  ;;  %s28431_s3 = smov [#allocation6]  }
  0x3a   : > { %p28349_p0 = scmp.ne.s32.totalorder %s28639_s7, %s28348_s0  ;;  %s28353_s29 = sshll.u32 %s28431_s3, 4  ;;  %s28354_s29 = int_to_ptr.vmem [resolvable:$false] %s28353_s29 }
  0x3b   : > { %s28355_s27 = scalar_lea.vmem %s28354_s29, 8192  ;;  %p28356_p11 = scmp.lt.s32.totalorder %s28639_s7, %s28354_s29 }
  0x3c   : > { %p28351_p2 = pnand %p28349_p0, %p28335_p1  ;;  %p28357_p4 = scmp.lt.s32.totalorder %s28355_s27, %s28348_s0 }
  0x3e   : > { %p28352_p12 = pneg %p28351_p2  ;;  %p28358_p5 = por %p28357_p4, %p28356_p11 }
  0x40   : > { %p28359_p7 = pnand %p28358_p5, %p28352_p12 }
  0x42   : > { %28362 = shalt.err (!%p28359_p7)
}
  0x43   : > { %s28432_s26 = smov 128   ;;  %s28433_s4 = smov 8  }
  0x44   : > { %28281 = dma.hbm_to_vmem [thread:$0]  (!%p28635_p13), %s28631_s24, 4096, %s28639_s7, %s28641_s6, %s28432_s26, %s28432_s26, %s28433_s4  }
  0x45   : > { %p21562_p9 = scmp.ge.s32.totalorder %s28429_s30, 1  ;;  %p706_p1 = scmp.lt.s32.totalorder %s28429_s30, 3 }
  0x47   : > { %p707_p3 = pnand %p21562_p9, %p706_p1 }
  0x49   : > { %710 = sbr.rel (%p707_p3) target bundleno = 5215 (0x145f), region = 120 }
  0x50   : > { %s28672_s1 = sand.u32 1, %s28421_s2  }
  0x51   : > { %s21563_s8 = sshll.u32 %s28672_s1, 8  ;;  %s713_s0 = scalar_lea.sflag [#allocation7], %s28672_s1 }
  0x52   : > { %s28678_s3 = scalar_lea.vmem [#allocation6], %s21563_s8 }
  0x53   : > { %28408 = dma.done.wait (%p28611_p6), %s713_s0, 4096  }
  0x54   : > { %28410 = vsyncadd (%p28611_p6), %s713_s0, 4294963200  ;;  %s33742_s7 = sld [smem:[#allocation88_spill]]  ;;  %v1043_v2 = vld [vmem:[%s28678_s3] sm:$0xff]  ;;  %v1044_v3 = vld [vmem:[%s28678_s3 + $0x8] sm:$0xff]  ;;  %vm1114_vm0 = vcmask 261120   ;;  %vm1505_vm1 = vcmask 1041408  }
  0x55   : > { %v28692_v4 = vpack.c.bf16 %v1044_v3, %v1043_v2  ;;  %v1045_v5 = vld [vmem:[%s28678_s3 + $0x10] sm:$0xff]  ;;  %v1046_v6 = vld [vmem:[%s28678_s3 + $0x18] sm:$0xff]  ;;  %v1047_v7 = vld [vmem:[%s28678_s3 + $0x20] sm:$0xff]  ;;  %s33746_s26 = sld [smem:[#allocation90_spill]]  ;;  %vm793_vm2 = vcmask 57344   ;;  %v33622_v52 = vmov 0.0  }
  0x56   : > { %v1048_v8 = vld [vmem:[%s28678_s3 + $0x28] sm:$0xff]  ;;  %v28700_v9 = vpack.c.bf16 %v1046_v6, %v1045_v5  ;;  %v1049_v11 = vld [vmem:[%s28678_s3 + $0x30] sm:$0xff]  ;;  %v1050_v12 = vld [vmem:[%s28678_s3 + $0x38] sm:$0xff]  ;;  %795 = vst.msk [vmem:[#allocation2 + $0x18] sm:$0x1] %vm793_vm2, %v33622_v52  ;;  %vm784_vm3 = vcmask 64512  }
  0x57   : > { %33743 = vst [vmem:[#allocation18_spill] sm:$0xff] %v28692_v4  ;;  %23968 = vmatprep.mubr.msk.bf16.mxu1 %vm1114_vm0, %v28692_v4  ;;  %v28702_v10 = vpack.c.bf16 %v1048_v8, %v1047_v7  ;;  %v1051_v13 = vld [vmem:[%s28678_s3 + $0x40] sm:$0xff]  ;;  %v1052_v14 = vld [vmem:[%s28678_s3 + $0x48] sm:$0xff]  ;;  %v28717_v17 = vpack.c.bf16 %v1050_v12, %v1049_v11  ;;  %v1053_v19 = vld [vmem:[%s28678_s3 + $0x50] sm:$0xff]  ;;  %vm787_vm4 = vcmask 58368   ;;  %vm1325_vm5 = vcmask 31744  }
  0x58   : > { %33744 = vst [vmem:[#allocation19_spill] sm:$0xff] %v28700_v9  ;;  %v28719_v18 = vpack.c.bf16 %v1052_v14, %v1051_v13  ;;  %v1054_v20 = vld [vmem:[%s28678_s3 + $0x58] sm:$0xff]  ;;  %v1055_v21 = vld [vmem:[%s28678_s3 + $0x60] sm:$0xff]  ;;  %v1056_v22 = vld [vmem:[%s28678_s3 + $0x68] sm:$0xff]  ;;  %s33760_s6 = sld [smem:[#allocation89_spill]]  ;;  %s33761_s24 = sld [smem:[#allocation92_spill]] }
  0x59   : > { %33745 = vst [vmem:[#allocation20_spill] sm:$0xff] %v28702_v10  ;;  %33747 = vst [vmem:[#allocation21_spill] sm:$0xff] %v28717_v17  ;;  %v28729_v23 = vpack.c.bf16 %v1054_v20, %v1053_v19  ;;  %v28731_v24 = vpack.c.bf16 %v1056_v22, %v1055_v21  ;;  %v1057_v25 = vld [vmem:[%s28678_s3 + $0x70] sm:$0xff]  ;;  %v1058_v26 = vld [vmem:[%s28678_s3 + $0x78] sm:$0xff]  ;;  %vm4192_vm6 = vcmask 1043456   ;;  %vm832_vm7 = vcmask 60416  }
  0x5a   : > { %v28325_v0 = vld [vmem:[%s33742_s7] sm:$0xff]   ;;  %v28326_v1 = vld [vmem:[%s33742_s7 + $0x8] sm:$0xff]   ;;  %33748 = vst [vmem:[#allocation22_spill] sm:$0xff] %v28719_v18  ;;  %v28741_v29 = vpack.c.bf16 %v1058_v26, %v1057_v25  ;;  %v1061_v31 = vld [vmem:[%s28678_s3 + $0x90] sm:$0xff]  ;;  %s33763_s27 = sld [smem:[#allocation94_spill]]  ;;  %s33764_s28 = sld [smem:[#allocation91_spill]] }
  0x5b   : > { %23964 = vmatprep.subr.bf16.mxu1 %v28325_v0  ;;  %v21584_v15 = vld [vmem:[%s33746_s26 + $0x2] sm:$0x3]  ;;  %33749 = vst [vmem:[#allocation23_spill] sm:$0xff] %v28729_v23  ;;  %33750 = vst [vmem:[#allocation24_spill] sm:$0xff] %v28731_v24  ;;  %v1060_v28 = vld [vmem:[%s28678_s3 + $0x88] sm:$0xff]  ;;  %s33793_s9 = sld [smem:[#allocation95_spill]] }
  0x5c   : > { %23965 = vmatpush3.bf16.msra.mxu1 %v28325_v0  ;;  %v1507_v16 = vsel %vm1505_vm1, %v21584_v15, 0  ;;  %v1059_v27 = vld [vmem:[%s28678_s3 + $0x80] sm:$0xff]  ;;  %33751 = vst [vmem:[#allocation25_spill] sm:$0xff] %v28741_v29  ;;  %v1062_v32 = vld [vmem:[%s28678_s3 + $0x98] sm:$0xff]  ;;  %v1064_v34 = vld [vmem:[%s28678_s3 + $0xa8] sm:$0xff]  ;;  %s33849_s11 = sld [smem:[#allocation98_spill]] }
  0x5d   : > { %23966 = vmatprep.subr.bf16.mxu1 %v28326_v1  ;;  %v28743_v30 = vpack.c.bf16 %v1060_v28, %v1059_v27  ;;  %v1063_v33 = vld [vmem:[%s28678_s3 + $0xa0] sm:$0xff]  ;;  %v28753_v35 = vpack.c.bf16 %v1062_v32, %v1061_v31  ;;  %v1065_v37 = vld [vmem:[%s28678_s3 + $0xb0] sm:$0xff]  ;;  %v1066_v38 = vld [vmem:[%s28678_s3 + $0xb8] sm:$0xff]  ;;  %796 = vst.msk [vmem:[#allocation2 + $0x30] sm:$0x1] %vm793_vm2, %v33622_v52  ;;  %vm886_vm8 = vcmask 62464  }
  0x5e   : > { %v28755_v36 = vpack.c.bf16 %v1064_v34, %v1063_v33  ;;  %v1067_v39 = vld [vmem:[%s28678_s3 + $0xc0] sm:$0xff]  ;;  %v1068_v40 = vld [vmem:[%s28678_s3 + $0xc8] sm:$0xff]  ;;  %v28765_v41 = vpack.c.bf16 %v1066_v38, %v1065_v37  ;;  %v1069_v43 = vld [vmem:[%s28678_s3 + $0xd0] sm:$0xff]  ;;  %797 = vst.msk [vmem:[#allocation2 + $0x48] sm:$0x1] %vm793_vm2, %v33622_v52  ;;  %vm904_vm9 = vcmask 59392  }
  0x5f   : > { %33752 = vst [vmem:[#allocation26_spill] sm:$0xff] %v28743_v30  ;;  %33753 = vst [vmem:[#allocation27_spill] sm:$0xff] %v28753_v35  ;;  %v28767_v42 = vpack.c.bf16 %v1068_v40, %v1067_v39  ;;  %v1070_v44 = vld [vmem:[%s28678_s3 + $0xd8] sm:$0xff]  ;;  %v1071_v45 = vld [vmem:[%s28678_s3 + $0xe0] sm:$0xff]  ;;  %s33852_s10 = sld [smem:[#allocation97_spill]]  ;;  %s33853_s13 = sld [smem:[#allocation100_spill]] }
  0x60   : > { %23967 = vmatpush3.bf16.msra.mxu1 %v28326_v1  ;;  %33754 = vst [vmem:[#allocation28_spill] sm:$0xff] %v28755_v36  ;;  %33755 = vst [vmem:[#allocation29_spill] sm:$0xff] %v28765_v41  ;;  %v1072_v46 = vld [vmem:[%s28678_s3 + $0xe8] sm:$0xff]  ;;  %v28777_v47 = vpack.c.bf16 %v1070_v44, %v1069_v43  ;;  %v1073_v49 = vld [vmem:[%s28678_s3 + $0xf0] sm:$0xff]  ;;  %s33869_s14 = sld [smem:[#allocation101_spill]]  ;;  %s33870_s12 = sld [smem:[#allocation99_spill]] }
  0x61   : > { %28208 = vmatprep.subr.msk.bf16.mxu1 %vm1505_vm1, %v21584_v15  ;;  %33756 = vst [vmem:[#allocation30_spill] sm:$0xff] %v28767_v42  ;;  %v28779_v48 = vpack.c.bf16 %v1072_v46, %v1071_v45  ;;  %v1074_v50 = vld [vmem:[%s28678_s3 + $0xf8] sm:$0xff]  ;;  %798 = vst.msk [vmem:[#allocation2 + $0x60] sm:$0x1] %vm793_vm2, %v33622_v52  ;;  %v1406_v56 = vld [vmem:[%s33746_s26] sm:$0x3] }
  0x62   : > { %33757 = vst [vmem:[#allocation31_spill] sm:$0xff] %v28777_v47  ;;  %v28787_v51 = vpack.c.bf16 %v1074_v50, %v1073_v49  ;;  %799 = vst.msk [vmem:[#allocation2 + $0x78] sm:$0x1] %vm793_vm2, %v33622_v52  ;;  %v29075_v57 = vld [vmem:[%s33760_s6] ss:$0 sm:$0xff]  ;;  %v1719_v19 = vsel %vm1505_vm1, %v1406_v56, 0 }
  0x63   : > { %23969 = vmatmul.mubr.msk.bf16.vlgmr.msra.gmra.mrb[0].mxu1 %vm1114_vm0, %v28700_v9  ;;  %33758 = vst [vmem:[#allocation32_spill] sm:$0xff] %v28779_v48  ;;  %800 = vst.msk [vmem:[#allocation2 + $0x90] sm:$0x1] %vm793_vm2, %v33622_v52  ;;  %v29101_v22 = vld [vmem:[%s33746_s26 + $0x4] sm:$0x3]  ;;  %s33794_s6 = sld [smem:[#allocation93_spill]] }
  0x64   : > { %23972 = vmatprep.mubr.msk.bf16.mxu1 %vm1114_vm0, %v28702_v10  ;;  %24001 = vmatpush3.bf16.msra.mxu1 %v1507_v16  ;;  %33759 = vst [vmem:[#allocation33_spill] sm:$0xff] %v28787_v51  ;;  %801 = vst.msk [vmem:[#allocation2 + $0xa8] sm:$0x1] %vm793_vm2, %v33622_v52  ;;  %vm15237_vm10 = vcmask 1042432   ;;  %vm15057_vm11 = vcmask 48128   ;;  %vm990_vm12 = vcmask 61440  }
  0x65   : > { %802 = vst.msk [vmem:[#allocation2 + $0xc0] sm:$0x1] %vm793_vm2, %v33622_v52  ;;  %803 = vst.msk [vmem:[#allocation2 + $0xd8] sm:$0x1] %vm793_vm2, %v33622_v52  ;;  %28209 = vmatprep.subr.msk.bf16.mxu1 %vm1505_vm1, %v1406_v56  ;;  %s33994_s4 = sld [smem:[#allocation102_spill]]  ;;  %s33387_s0 = scalar_lea.vmem [#allocation9], %s21563_s8 }
  0x66   : > { %804 = vst.msk [vmem:[#allocation2 + $0xf0] sm:$0x1] %vm793_vm2, %v33622_v52  ;;  %805 = vst.msk [vmem:[#allocation2 + $0x108] sm:$0x1] %vm793_vm2, %v33622_v52  ;;  %s33995_s8 = sld [smem:[#allocation14_spill]]  ;;  %s33997_s7 = sld [smem:[#allocation103_spill]] }
  0x67   : > { %806 = vst.msk [vmem:[#allocation2 + $0x120] sm:$0x1] %vm793_vm2, %v33622_v52  ;;  %807 = vst.msk [vmem:[#allocation2 + $0x138] sm:$0x1] %vm793_vm2, %v33622_v52 }
  0x68   : > { %808 = vst.msk [vmem:[#allocation2 + $0x150] sm:$0x1] %vm793_vm2, %v33622_v52  ;;  %809 = vst.msk [vmem:[#allocation2 + $0x168] sm:$0x1] %vm793_vm2, %v33622_v52 }
  0x69   : > { %810 = vst.msk [vmem:[#allocation2 + $0x180] sm:$0x1] %vm793_vm2, %v33622_v52  ;;  %813 = vst.msk [vmem:[#allocation2 + $0x29] sm:$0x1] %vm793_vm2, %v33622_v52 }
  0x6a   : > { %814 = vst.msk [vmem:[#allocation2 + $0x41] sm:$0x1] %vm793_vm2, %v33622_v52  ;;  %815 = vst.msk [vmem:[#allocation2 + $0x59] sm:$0x1] %vm793_vm2, %v33622_v52 }
  0x6b   : > { %23973 = vmatmul.mubr.msk.bf16.gmra.mrb[4].mxu1 %vm1114_vm0, %v28717_v17  ;;  %816 = vst.msk [vmem:[#allocation2 + $0x71] sm:$0x1] %vm793_vm2, %v33622_v52  ;;  %817 = vst.msk [vmem:[#allocation2 + $0x89] sm:$0x1] %vm793_vm2, %v33622_v52 }
  0x6c   : > { %23976 = vmatprep.mubr.msk.bf16.mxu1 %vm1114_vm0, %v28719_v18  ;;  %818 = vst.msk [vmem:[#allocation2 + $0xa1] sm:$0x1] %vm793_vm2, %v33622_v52  ;;  %819 = vst.msk [vmem:[#allocation2 + $0xb9] sm:$0x1] %vm793_vm2, %v33622_v52  ;;  %s22769_s3 = sshll.u32 %s33995_s8, 12 }
  0x6d   : > { %820 = vst.msk [vmem:[#allocation2 + $0xd1] sm:$0x1] %vm793_vm2, %v33622_v52  ;;  %821 = vst.msk [vmem:[#allocation2 + $0xe9] sm:$0x1] %vm793_vm2, %v33622_v52 }
  0x6e   : > { %822 = vst.msk [vmem:[#allocation2 + $0x101] sm:$0x1] %vm793_vm2, %v33622_v52  ;;  %823 = vst.msk [vmem:[#allocation2 + $0x119] sm:$0x1] %vm793_vm2, %v33622_v52 }
  0x6f   : > { %824 = vst.msk [vmem:[#allocation2 + $0x131] sm:$0x1] %vm793_vm2, %v33622_v52  ;;  %825 = vst.msk [vmem:[#allocation2 + $0x149] sm:$0x1] %vm793_vm2, %v33622_v52 }
  0x70   : > { %826 = vst.msk [vmem:[#allocation2 + $0x161] sm:$0x1] %vm793_vm2, %v33622_v52  ;;  %827 = vst.msk [vmem:[#allocation2 + $0x179] sm:$0x1] %vm793_vm2, %v33622_v52 }
  0x71   : > { %828 = vst.msk [vmem:[#allocation2 + $0x191] sm:$0x1] %vm793_vm2, %v33622_v52 }
  0x72   : > { %785 = vst.msk [vmem:[#allocation2] sm:$0xff] %vm784_vm3, %v33622_v52  ;;  %786 = vst.msk [vmem:[#allocation2 + $0x8] sm:$0xff] %vm784_vm3, %v33622_v52 }
  0x73   : > { %23977 = vmatmul.mubr.msk.bf16.gmra.mrb[8].mxu1 %vm1114_vm0, %v28729_v23  ;;  %788 = vst.msk [vmem:[#allocation2 + $0x10] sm:$0x3] %vm787_vm4, %v33622_v52  ;;  %792 = vst.msk [vmem:[#allocation2 + $0x1a8] sm:$0x3] %vm787_vm4, %v33622_v52 }
  0x74   : > { %23980 = vmatprep.mubr.msk.bf16.mxu1 %vm1114_vm0, %v28731_v24  ;;  %790 = vst.msk [vmem:[#allocation2 + $0x198] sm:$0xff] %vm784_vm3, %v33622_v52  ;;  %791 = vst.msk [vmem:[#allocation2 + $0x1a0] sm:$0xff] %vm784_vm3, %v33622_v52 }
  0x75   : > { %830 = vst.msk [vmem:[#allocation3] sm:$0xff] %vm784_vm3, %v33622_v52  ;;  %831 = vst.msk [vmem:[#allocation3 + $0x8] sm:$0xff] %vm784_vm3, %v33622_v52 }
  0x76   : > { %834 = vst.msk [vmem:[#allocation3 + $0x18] sm:$0xff] %vm784_vm3, %v33622_v52  ;;  %835 = vst.msk [vmem:[#allocation3 + $0x20] sm:$0xff] %vm784_vm3, %v33622_v52 }
  0x77   : > { %838 = vst.msk [vmem:[#allocation3 + $0x1b0] sm:$0xff] %vm784_vm3, %v33622_v52  ;;  %839 = vst.msk [vmem:[#allocation3 + $0x1b8] sm:$0xff] %vm784_vm3, %v33622_v52 }
  0x78   : > { %841 = vst.msk [vmem:[#allocation3 + $0x1c8] sm:$0xff] %vm784_vm3, %v33622_v52  ;;  %842 = vst.msk [vmem:[#allocation3 + $0x1d0] sm:$0xff] %vm784_vm3, %v33622_v52 }
  0x79   : > { %846 = vst.msk [vmem:[#allocation3 + $0x30] sm:$0x3] %vm787_vm4, %v33622_v52  ;;  %847 = vst.msk [vmem:[#allocation3 + $0x48] sm:$0x3] %vm787_vm4, %v33622_v52  ;;  %v1407_v53 = vld [vmem:[#allocation2 + $0x1] sm:$0xff] }
  0x7a   : > { %848 = vst.msk [vmem:[#allocation3 + $0x60] sm:$0x3] %vm787_vm4, %v33622_v52  ;;  %849 = vst.msk [vmem:[#allocation3 + $0x78] sm:$0x3] %vm787_vm4, %v33622_v52  ;;  %v1408_v54 = vld [vmem:[#allocation2 + $0x9] sm:$0xff] }
  0x7b   : > { %23981 = vmatmul.mubr.msk.bf16.gmra.mrb[12].mxu1 %vm1114_vm0, %v28741_v29  ;;  %850 = vst.msk [vmem:[#allocation3 + $0x90] sm:$0x3] %vm787_vm4, %v33622_v52  ;;  %851 = vst.msk [vmem:[#allocation3 + $0xa8] sm:$0x3] %vm787_vm4, %v33622_v52  ;;  %v1439_v55 = vpack.c.bf16 %v1408_v54, %v1407_v53 }
  0x7c   : > { %23984 = vmatprep.mubr.msk.bf16.mxu1 %vm1114_vm0, %v28743_v30  ;;  %852 = vst.msk [vmem:[#allocation3 + $0xc0] sm:$0x3] %vm787_vm4, %v33622_v52  ;;  %853 = vst.msk [vmem:[#allocation3 + $0xd8] sm:$0x3] %vm787_vm4, %v33622_v52 }
  0x7d   : > { %854 = vst.msk [vmem:[#allocation3 + $0xf0] sm:$0x3] %vm787_vm4, %v33622_v52  ;;  %855 = vst.msk [vmem:[#allocation3 + $0x108] sm:$0x3] %vm787_vm4, %v33622_v52 }
  0x7e   : > { %856 = vst.msk [vmem:[#allocation3 + $0x120] sm:$0x3] %vm787_vm4, %v33622_v52  ;;  %857 = vst.msk [vmem:[#allocation3 + $0x138] sm:$0x3] %vm787_vm4, %v33622_v52 }
  0x7f   : > { %858 = vst.msk [vmem:[#allocation3 + $0x150] sm:$0x3] %vm787_vm4, %v33622_v52  ;;  %859 = vst.msk [vmem:[#allocation3 + $0x168] sm:$0x3] %vm787_vm4, %v33622_v52 }
  0x80   : > { %860 = vst.msk [vmem:[#allocation3 + $0x180] sm:$0x3] %vm787_vm4, %v33622_v52  ;;  %861 = vst.msk [vmem:[#allocation3 + $0x198] sm:$0x3] %vm787_vm4, %v33622_v52 }
  0x81   : > { %866 = vst.msk [vmem:[#allocation3 + $0x42] sm:$0x3] %vm787_vm4, %v33622_v52  ;;  %867 = vst.msk [vmem:[#allocation3 + $0x5a] sm:$0x3] %vm787_vm4, %v33622_v52 }
  0x82   : > { %868 = vst.msk [vmem:[#allocation3 + $0x72] sm:$0x3] %vm787_vm4, %v33622_v52  ;;  %869 = vst.msk [vmem:[#allocation3 + $0x8a] sm:$0x3] %vm787_vm4, %v33622_v52 }
  0x83   : > { %23985 = vmatmul.mubr.msk.bf16.gmra.mrb[16].mxu1 %vm1114_vm0, %v28753_v35  ;;  %870 = vst.msk [vmem:[#allocation3 + $0xa2] sm:$0x3] %vm787_vm4, %v33622_v52  ;;  %871 = vst.msk [vmem:[#allocation3 + $0xba] sm:$0x3] %vm787_vm4, %v33622_v52 }
  0x84   : > { %23988 = vmatprep.mubr.msk.bf16.mxu1 %vm1114_vm0, %v28755_v36  ;;  %872 = vst.msk [vmem:[#allocation3 + $0xd2] sm:$0x3] %vm787_vm4, %v33622_v52  ;;  %873 = vst.msk [vmem:[#allocation3 + $0xea] sm:$0x3] %vm787_vm4, %v33622_v52 }
  0x85   : > { %874 = vst.msk [vmem:[#allocation3 + $0x102] sm:$0x3] %vm787_vm4, %v33622_v52  ;;  %875 = vst.msk [vmem:[#allocation3 + $0x11a] sm:$0x3] %vm787_vm4, %v33622_v52 }
  0x86   : > { %876 = vst.msk [vmem:[#allocation3 + $0x132] sm:$0x3] %vm787_vm4, %v33622_v52  ;;  %877 = vst.msk [vmem:[#allocation3 + $0x14a] sm:$0x3] %vm787_vm4, %v33622_v52 }
  0x87   : > { %878 = vst.msk [vmem:[#allocation3 + $0x162] sm:$0x3] %vm787_vm4, %v33622_v52  ;;  %879 = vst.msk [vmem:[#allocation3 + $0x17a] sm:$0x3] %vm787_vm4, %v33622_v52 }
  0x88   : > { %880 = vst.msk [vmem:[#allocation3 + $0x192] sm:$0x3] %vm787_vm4, %v33622_v52  ;;  %881 = vst.msk [vmem:[#allocation3 + $0x1aa] sm:$0x3] %vm787_vm4, %v33622_v52 }
  0x89   : > { %884 = vst.msk [vmem:[#allocation4] sm:$0xff] %vm784_vm3, %v33622_v52  ;;  %885 = vst.msk [vmem:[#allocation4 + $0x8] sm:$0xff] %vm784_vm3, %v33622_v52 }
  0x8a   : > { %888 = vst.msk [vmem:[#allocation4 + $0x18] sm:$0xff] %vm784_vm3, %v33622_v52  ;;  %889 = vst.msk [vmem:[#allocation4 + $0x20] sm:$0xff] %vm784_vm3, %v33622_v52 }
  0x8b   : > { %23989 = vmatmul.mubr.msk.bf16.gmra.mrb[20].mxu1 %vm1114_vm0, %v28765_v41  ;;  %891 = vst.msk [vmem:[#allocation4 + $0x30] sm:$0xff] %vm784_vm3, %v33622_v52  ;;  %892 = vst.msk [vmem:[#allocation4 + $0x38] sm:$0xff] %vm784_vm3, %v33622_v52 }
  0x8c   : > { %23992 = vmatprep.mubr.msk.bf16.mxu1 %vm1114_vm0, %v28767_v42  ;;  %895 = vst.msk [vmem:[#allocation4 + $0x1c8] sm:$0xff] %vm784_vm3, %v33622_v52  ;;  %896 = vst.msk [vmem:[#allocation4 + $0x1d0] sm:$0xff] %vm784_vm3, %v33622_v52 }
  0x8d   : > { %898 = vst.msk [vmem:[#allocation4 + $0x1e0] sm:$0xff] %vm784_vm3, %v33622_v52  ;;  %899 = vst.msk [vmem:[#allocation4 + $0x1e8] sm:$0xff] %vm784_vm3, %v33622_v52 }
  0x8e   : > { %901 = vst.msk [vmem:[#allocation4 + $0x1f8] sm:$0xff] %vm784_vm3, %v33622_v52  ;;  %902 = vst.msk [vmem:[#allocation4 + $0x200] sm:$0xff] %vm784_vm3, %v33622_v52 }
  0x8f   : > { %949 = vst.msk [vmem:[#allocation5] sm:$0xff] %vm784_vm3, %v33622_v52  ;;  %950 = vst.msk [vmem:[#allocation5 + $0x8] sm:$0xff] %vm784_vm3, %v33622_v52 }
  0x90   : > { %951 = vst.msk [vmem:[#allocation5 + $0x10] sm:$0xff] %vm784_vm3, %v33622_v52  ;;  %953 = vst.msk [vmem:[#allocation5 + $0x20] sm:$0xff] %vm784_vm3, %v33622_v52 }
  0x91   : > { %952 = vst.msk [vmem:[#allocation5 + $0x18] sm:$0x3] %vm787_vm4, %v33622_v52  ;;  %956 = vst.msk [vmem:[#allocation5 + $0x38] sm:$0x3] %vm787_vm4, %v33622_v52 }
  0x92   : > { %954 = vst.msk [vmem:[#allocation5 + $0x28] sm:$0xff] %vm784_vm3, %v33622_v52  ;;  %955 = vst.msk [vmem:[#allocation5 + $0x30] sm:$0xff] %vm784_vm3, %v33622_v52 }
  0x93   : > { %23993 = vmatmul.mubr.msk.bf16.gmra.mrb[24].mxu1 %vm1114_vm0, %v28777_v47  ;;  %957 = vst.msk [vmem:[#allocation5 + $0x40] sm:$0xff] %vm784_vm3, %v33622_v52  ;;  %958 = vst.msk [vmem:[#allocation5 + $0x48] sm:$0xff] %vm784_vm3, %v33622_v52 }
  0x94   : > { %23996 = vmatprep.mubr.msk.bf16.mxu1 %vm1114_vm0, %v28779_v48  ;;  %959 = vst.msk [vmem:[#allocation5 + $0x50] sm:$0xff] %vm784_vm3, %v33622_v52  ;;  %961 = vst.msk [vmem:[#allocation5 + $0x60] sm:$0xff] %vm784_vm3, %v33622_v52 }
  0x95   : > { %960 = vst.msk [vmem:[#allocation5 + $0x58] sm:$0x3] %vm787_vm4, %v33622_v52  ;;  %964 = vst.msk [vmem:[#allocation5 + $0x78] sm:$0x3] %vm787_vm4, %v33622_v52 }
  0x96   : > { %962 = vst.msk [vmem:[#allocation5 + $0x68] sm:$0xff] %vm784_vm3, %v33622_v52  ;;  %963 = vst.msk [vmem:[#allocation5 + $0x70] sm:$0xff] %vm784_vm3, %v33622_v52 }
  0x97   : > { %965 = vst.msk [vmem:[#allocation5 + $0x80] sm:$0xff] %vm784_vm3, %v33622_v52  ;;  %966 = vst.msk [vmem:[#allocation5 + $0x88] sm:$0xff] %vm784_vm3, %v33622_v52 }
  0x98   : > { %967 = vst.msk [vmem:[#allocation5 + $0x90] sm:$0xff] %vm784_vm3, %v33622_v52  ;;  %970 = vst.msk [vmem:[#allocation5 + $0x2a0] sm:$0xff] %vm784_vm3, %v33622_v52 }
  0x99   : > { %968 = vst.msk [vmem:[#allocation5 + $0x98] sm:$0x3] %vm787_vm4, %v33622_v52  ;;  %973 = vst.msk [vmem:[#allocation5 + $0x2b8] sm:$0x3] %vm787_vm4, %v33622_v52 }
  0x9a   : > { %971 = vst.msk [vmem:[#allocation5 + $0x2a8] sm:$0xff] %vm784_vm3, %v33622_v52  ;;  %972 = vst.msk [vmem:[#allocation5 + $0x2b0] sm:$0xff] %vm784_vm3, %v33622_v52 }
  0x9b   : > { %23997 = vmatmul.mubr.msk.bf16.gmra.mrb[28].mxu1 %vm1114_vm0, %v28787_v51  ;;  %974 = vst.msk [vmem:[#allocation5 + $0x2c0] sm:$0xff] %vm784_vm3, %v33622_v52  ;;  %975 = vst.msk [vmem:[#allocation5 + $0x2c8] sm:$0xff] %vm784_vm3, %v33622_v52 }
  0x9c   : > { %976 = vst.msk [vmem:[#allocation5 + $0x2d0] sm:$0xff] %vm784_vm3, %v33622_v52  ;;  %978 = vst.msk [vmem:[#allocation5 + $0x2e0] sm:$0xff] %vm784_vm3, %v33622_v52  ;;  %24002 = vmatprep.mubr.msk.bf16.mxu1 %vm1325_vm5, %v1439_v55 }
  0x9d   : > { %977 = vst.msk [vmem:[#allocation5 + $0x2d8] sm:$0x3] %vm787_vm4, %v33622_v52  ;;  %981 = vst.msk [vmem:[#allocation5 + $0x2f8] sm:$0x3] %vm787_vm4, %v33622_v52 }
  0x9e   : > { %979 = vst.msk [vmem:[#allocation5 + $0x2e8] sm:$0xff] %vm784_vm3, %v33622_v52  ;;  %980 = vst.msk [vmem:[#allocation5 + $0x2f0] sm:$0xff] %vm784_vm3, %v33622_v52 }
  0x9f   : > { %982 = vst.msk [vmem:[#allocation5 + $0x300] sm:$0xff] %vm784_vm3, %v33622_v52  ;;  %983 = vst.msk [vmem:[#allocation5 + $0x308] sm:$0xff] %vm784_vm3, %v33622_v52 }
  0xa0   : > { %984 = vst.msk [vmem:[#allocation5 + $0x310] sm:$0xff] %vm784_vm3, %v33622_v52  ;;  %986 = vst.msk [vmem:[#allocation5 + $0x320] sm:$0xff] %vm784_vm3, %v33622_v52 }
  0xa1   : > { %985 = vst.msk [vmem:[#allocation5 + $0x318] sm:$0x3] %vm787_vm4, %v33622_v52  ;;  %989 = vst.msk [vmem:[#allocation5 + $0x338] sm:$0x3] %vm787_vm4, %v33622_v52 }
  0xa2   : > { %987 = vst.msk [vmem:[#allocation5 + $0x328] sm:$0xff] %vm784_vm3, %v33622_v52  ;;  %988 = vst.msk [vmem:[#allocation5 + $0x330] sm:$0xff] %vm784_vm3, %v33622_v52 }
  0xa3   : > { %844 = vst.msk [vmem:[#allocation3] sm:$0x3] %vm787_vm4, %v33622_v52  ;;  %845 = vst.msk [vmem:[#allocation3 + $0x18] sm:$0x3] %vm787_vm4, %v33622_v52 }
  0xa4   : > { %862 = vst.msk [vmem:[#allocation3 + $0x1b0] sm:$0x3] %vm787_vm4, %v33622_v52  ;;  %863 = vst.msk [vmem:[#allocation3 + $0x1c8] sm:$0x3] %vm787_vm4, %v33622_v52 }
  0xa5   : > { %794 = vst.msk [vmem:[#allocation2] sm:$0x1] %vm793_vm2, %v33622_v52  ;;  %811 = vst.msk [vmem:[#allocation2 + $0x198] sm:$0x1] %vm793_vm2, %v33622_v52 }
  0xa6   : > { %812 = vst.msk [vmem:[#allocation2 + $0x11] sm:$0x1] %vm793_vm2, %v33622_v52  ;;  %829 = vst.msk [vmem:[#allocation2 + $0x1a9] sm:$0x1] %vm793_vm2, %v33622_v52 }
 0x136   : > { %v23970_v58 = vpop.f32.mrb[0].mxu1 }
 0x137   : > { %v1206_v59 = vadd.f32 %v23970_v58, %v29075_v57  ;;  %v1197_v60 = vpop.f32.mrb[1].mxu1 }
 0x138   : > { %v1198_v61 = vadd.f32 %v29075_v57, %v1197_v60  ;;  %v23971_v62 = vpop.f32.mrb[2].mxu1 }
 0x139   : > { %1328 = vst.msk [vmem:[#allocation2 + $0x31] sm:$0xff] %vm1325_vm5, %v1206_v59  ;;  %v1209_v63 = vadd.f32 %v23971_v62, %v29075_v57  ;;  %v1200_v0 = vpop.f32.mrb[3].mxu1 }
 0x13a   : > { %1326 = vst.msk [vmem:[#allocation2 + $0x19] sm:$0xff] %vm1325_vm5, %v1198_v61  ;;  %v1201_v1 = vadd.f32 %v29075_v57, %v1200_v0 }
 0x13b   : > { %1329 = vst.msk [vmem:[#allocation2 + $0x39] sm:$0xff] %vm1325_vm5, %v1209_v63 }
 0x13c   : > { %1327 = vst.msk [vmem:[#allocation2 + $0x21] sm:$0xff] %vm1325_vm5, %v1201_v1 }
 0x13e   : > { %v23974_v2 = vpop.f32.mrb[4].mxu1 }
 0x13f   : > { %v1222_v3 = vadd.f32 %v23974_v2, %v29075_v57  ;;  %v1213_v5 = vpop.f32.mrb[5].mxu1 }
 0x140   : > { %v1214_v6 = vadd.f32 %v29075_v57, %v1213_v5  ;;  %v23975_v7 = vpop.f32.mrb[6].mxu1  ;;  %v1411_v20 = vld [vmem:[#allocation2 + $0x31] sm:$0xff] }
 0x141   : > { %1332 = vst.msk [vmem:[#allocation2 + $0x61] sm:$0xff] %vm1325_vm5, %v1222_v3  ;;  %v1225_v8 = vadd.f32 %v23975_v7, %v29075_v57  ;;  %v1216_v11 = vpop.f32.mrb[7].mxu1  ;;  %v1409_v14 = vld [vmem:[#allocation2 + $0x19] sm:$0xff] }
 0x142   : > { %1330 = vst.msk [vmem:[#allocation2 + $0x49] sm:$0xff] %vm1325_vm5, %v1214_v6  ;;  %v1217_v12 = vadd.f32 %v29075_v57, %v1216_v11  ;;  %v1412_v13 = vld [vmem:[#allocation2 + $0x39] sm:$0xff] }
 0x143   : > { %1333 = vst.msk [vmem:[#allocation2 + $0x69] sm:$0xff] %vm1325_vm5, %v1225_v8  ;;  %v1410_v15 = vld [vmem:[#allocation2 + $0x21] sm:$0xff]  ;;  %v29096_v21 = vpack.c.bf16 %v1412_v13, %v1411_v20 }
 0x144   : > { %1331 = vst.msk [vmem:[#allocation2 + $0x51] sm:$0xff] %vm1325_vm5, %v1217_v12  ;;  %v29093_v16 = vpack.c.bf16 %v1410_v15, %v1409_v14 }
 0x146   : > { %v23978_v25 = vpop.f32.mrb[8].mxu1  ;;  %24003 = vmatmul.mubr.msk.bf16.vlgmr.msra.gmra.mrb[32].mxu1 %vm1325_vm5, %v29093_v16 }
 0x147   : > { %v1238_v26 = vadd.f32 %v23978_v25, %v29075_v57  ;;  %24035 = vmatpush3.bf16.msra.mxu1 %v1719_v19  ;;  %v1229_v27 = vpop.f32.mrb[9].mxu1  ;;  %24006 = vmatprep.mubr.msk.bf16.mxu1 %vm1325_vm5, %v29096_v21 }
 0x148   : > { %v1230_v28 = vadd.f32 %v29075_v57, %v1229_v27  ;;  %v23979_v31 = vpop.f32.mrb[10].mxu1  ;;  %28210 = vmatprep.subr.msk.bf16.mxu1 %vm1505_vm1, %v29101_v22  ;;  %v1415_v43 = vld [vmem:[#allocation2 + $0x61] sm:$0xff] }
 0x149   : > { %1336 = vst.msk [vmem:[#allocation2 + $0x91] sm:$0xff] %vm1325_vm5, %v1238_v26  ;;  %v1241_v32 = vadd.f32 %v23979_v31, %v29075_v57  ;;  %v1232_v33 = vpop.f32.mrb[11].mxu1  ;;  %v1413_v38 = vld [vmem:[#allocation2 + $0x49] sm:$0xff] }
 0x14a   : > { %1334 = vst.msk [vmem:[#allocation2 + $0x79] sm:$0xff] %vm1325_vm5, %v1230_v28  ;;  %v1233_v34 = vadd.f32 %v29075_v57, %v1232_v33  ;;  %v1416_v37 = vld [vmem:[#allocation2 + $0x69] sm:$0xff] }
 0x14b   : > { %1337 = vst.msk [vmem:[#allocation2 + $0x99] sm:$0xff] %vm1325_vm5, %v1241_v32  ;;  %v1414_v39 = vld [vmem:[#allocation2 + $0x51] sm:$0xff]  ;;  %v29119_v44 = vpack.c.bf16 %v1416_v37, %v1415_v43 }
 0x14c   : > { %1335 = vst.msk [vmem:[#allocation2 + $0x81] sm:$0xff] %vm1325_vm5, %v1233_v34  ;;  %v29117_v40 = vpack.c.bf16 %v1414_v39, %v1413_v38 }
 0x14e   : > { %v23982_v45 = vpop.f32.mrb[12].mxu1  ;;  %24007 = vmatmul.mubr.msk.bf16.gmra.mrb[36].mxu1 %vm1325_vm5, %v29117_v40 }
 0x14f   : > { %v1254_v46 = vadd.f32 %v23982_v45, %v29075_v57  ;;  %v1245_v49 = vpop.f32.mrb[13].mxu1  ;;  %24010 = vmatprep.mubr.msk.bf16.mxu1 %vm1325_vm5, %v29119_v44 }
 0x150   : > { %v1246_v50 = vadd.f32 %v29075_v57, %v1245_v49  ;;  %v23983_v53 = vpop.f32.mrb[14].mxu1  ;;  %v1419_v62 = vld [vmem:[#allocation2 + $0x91] sm:$0xff] }
 0x151   : > { %1340 = vst.msk [vmem:[#allocation2 + $0xc1] sm:$0xff] %vm1325_vm5, %v1254_v46  ;;  %v1257_v54 = vadd.f32 %v23983_v53, %v29075_v57  ;;  %v1248_v55 = vpop.f32.mrb[15].mxu1  ;;  %v1417_v59 = vld [vmem:[#allocation2 + $0x79] sm:$0xff] }
 0x152   : > { %1338 = vst.msk [vmem:[#allocation2 + $0xa9] sm:$0xff] %vm1325_vm5, %v1246_v50  ;;  %v1249_v56 = vadd.f32 %v29075_v57, %v1248_v55  ;;  %v1420_v58 = vld [vmem:[#allocation2 + $0x99] sm:$0xff] }
 0x153   : > { %1341 = vst.msk [vmem:[#allocation2 + $0xc9] sm:$0xff] %vm1325_vm5, %v1257_v54  ;;  %v1418_v60 = vld [vmem:[#allocation2 + $0x81] sm:$0xff]  ;;  %v29135_v63 = vpack.c.bf16 %v1420_v58, %v1419_v62 }
 0x154   : > { %1339 = vst.msk [vmem:[#allocation2 + $0xb1] sm:$0xff] %vm1325_vm5, %v1249_v56  ;;  %v29133_v61 = vpack.c.bf16 %v1418_v60, %v1417_v59 }
 0x156   : > { %v23986_v0 = vpop.f32.mrb[16].mxu1  ;;  %24011 = vmatmul.mubr.msk.bf16.gmra.mrb[40].mxu1 %vm1325_vm5, %v29133_v61 }
 0x157   : > { %v1270_v1 = vadd.f32 %v23986_v0, %v29075_v57  ;;  %v1261_v2 = vpop.f32.mrb[17].mxu1  ;;  %24014 = vmatprep.mubr.msk.bf16.mxu1 %vm1325_vm5, %v29135_v63 }
 0x158   : > { %v1262_v3 = vadd.f32 %v29075_v57, %v1261_v2  ;;  %v23987_v5 = vpop.f32.mrb[18].mxu1  ;;  %v1423_v15 = vld [vmem:[#allocation2 + $0xc1] sm:$0xff] }
 0x159   : > { %1344 = vst.msk [vmem:[#allocation2 + $0xf1] sm:$0xff] %vm1325_vm5, %v1270_v1  ;;  %v1273_v6 = vadd.f32 %v23987_v5, %v29075_v57  ;;  %v1264_v7 = vpop.f32.mrb[19].mxu1  ;;  %v1421_v12 = vld [vmem:[#allocation2 + $0xa9] sm:$0xff] }
 0x15a   : > { %1342 = vst.msk [vmem:[#allocation2 + $0xd9] sm:$0xff] %vm1325_vm5, %v1262_v3  ;;  %v1265_v8 = vadd.f32 %v29075_v57, %v1264_v7  ;;  %v1424_v11 = vld [vmem:[#allocation2 + $0xc9] sm:$0xff] }
 0x15b   : > { %1345 = vst.msk [vmem:[#allocation2 + $0xf9] sm:$0xff] %vm1325_vm5, %v1273_v6  ;;  %v1422_v13 = vld [vmem:[#allocation2 + $0xb1] sm:$0xff]  ;;  %v29151_v19 = vpack.c.bf16 %v1424_v11, %v1423_v15 }
 0x15c   : > { %1343 = vst.msk [vmem:[#allocation2 + $0xe1] sm:$0xff] %vm1325_vm5, %v1265_v8  ;;  %v29149_v14 = vpack.c.bf16 %v1422_v13, %v1421_v12 }
 0x15e   : > { %v23990_v20 = vpop.f32.mrb[20].mxu1  ;;  %24015 = vmatmul.mubr.msk.bf16.gmra.mrb[44].mxu1 %vm1325_vm5, %v29149_v14 }
 0x15f   : > { %v1286_v25 = vadd.f32 %v23990_v20, %v29075_v57  ;;  %v1277_v26 = vpop.f32.mrb[21].mxu1  ;;  %24018 = vmatprep.mubr.msk.bf16.mxu1 %vm1325_vm5, %v29151_v19 }
 0x160   : > { %v1278_v27 = vadd.f32 %v29075_v57, %v1277_v26  ;;  %v23991_v28 = vpop.f32.mrb[22].mxu1  ;;  %v1427_v43 = vld [vmem:[#allocation2 + $0xf1] sm:$0xff] }
 0x161   : > { %1348 = vst.msk [vmem:[#allocation2 + $0x121] sm:$0xff] %vm1325_vm5, %v1286_v25  ;;  %v1289_v31 = vadd.f32 %v23991_v28, %v29075_v57  ;;  %v1280_v32 = vpop.f32.mrb[23].mxu1  ;;  %v1425_v37 = vld [vmem:[#allocation2 + $0xd9] sm:$0xff] }
 0x162   : > { %1346 = vst.msk [vmem:[#allocation2 + $0x109] sm:$0xff] %vm1325_vm5, %v1278_v27  ;;  %v1281_v33 = vadd.f32 %v29075_v57, %v1280_v32  ;;  %v1428_v34 = vld [vmem:[#allocation2 + $0xf9] sm:$0xff] }
 0x163   : > { %1349 = vst.msk [vmem:[#allocation2 + $0x129] sm:$0xff] %vm1325_vm5, %v1289_v31  ;;  %v1426_v38 = vld [vmem:[#allocation2 + $0xe1] sm:$0xff]  ;;  %v29167_v45 = vpack.c.bf16 %v1428_v34, %v1427_v43  ;;  %v1363_v43 = vld [vmem:[#allocation2 + $0x38] sm:$0xff] }
 0x164   : > { %1347 = vst.msk [vmem:[#allocation2 + $0x111] sm:$0xff] %vm1325_vm5, %v1281_v33  ;;  %v29165_v39 = vpack.c.bf16 %v1426_v38, %v1425_v37  ;;  %v1358_v31 = vld [vmem:[#allocation2] sm:$0xff] }
 0x165   : > { %v1361_v38 = vld [vmem:[#allocation2 + $0x20] sm:$0xff] }
 0x166   : > { %v23994_v46 = vpop.f32.mrb[24].mxu1  ;;  %24019 = vmatmul.mubr.msk.bf16.gmra.mrb[48].mxu1 %vm1325_vm5, %v29165_v39 }
 0x167   : > { %v1302_v49 = vadd.f32 %v23994_v46, %v29075_v57  ;;  %v1293_v50 = vpop.f32.mrb[25].mxu1  ;;  %24022 = vmatprep.mubr.msk.bf16.mxu1 %vm1325_vm5, %v29167_v45  ;;  %v1360_v46 = vld [vmem:[#allocation2 + $0x18] sm:$0xff] }
 0x168   : > { %v1294_v53 = vadd.f32 %v29075_v57, %v1293_v50  ;;  %v23995_v54 = vpop.f32.mrb[26].mxu1  ;;  %v1431_v1 = vld [vmem:[#allocation2 + $0x121] sm:$0xff]  ;;  %v1981_v50 = vsel %vm1505_vm1, %v29101_v22, 0 }
 0x169   : > { %1352 = vst.msk [vmem:[#allocation2 + $0x151] sm:$0xff] %vm1325_vm5, %v1302_v49  ;;  %v1305_v55 = vadd.f32 %v23995_v54, %v29075_v57  ;;  %v1296_v56 = vpop.f32.mrb[27].mxu1  ;;  %v1429_v60 = vld [vmem:[#allocation2 + $0x109] sm:$0xff]  ;;  %v29210_v49 = vpack.c.bf16 %v1361_v38, %v1360_v46 }
 0x16a   : > { %1350 = vst.msk [vmem:[#allocation2 + $0x139] sm:$0xff] %vm1325_vm5, %v1294_v53  ;;  %v1297_v58 = vadd.f32 %v29075_v57, %v1296_v56  ;;  %v1432_v59 = vld [vmem:[#allocation2 + $0x129] sm:$0xff] }
 0x16b   : > { %1353 = vst.msk [vmem:[#allocation2 + $0x159] sm:$0xff] %vm1325_vm5, %v1305_v55  ;;  %v1430_v62 = vld [vmem:[#allocation2 + $0x111] sm:$0xff]  ;;  %v29183_v2 = vpack.c.bf16 %v1432_v59, %v1431_v1  ;;  %v29219_v55 = vld [vmem:[%s33746_s26 + $0x6] sm:$0x3]  ;;  %v1367_v22 = vld [vmem:[#allocation2 + $0x68] sm:$0xff] }
 0x16c   : > { %1351 = vst.msk [vmem:[#allocation2 + $0x141] sm:$0xff] %vm1325_vm5, %v1297_v58  ;;  %v29181_v0 = vpack.c.bf16 %v1430_v62, %v1429_v60  ;;  %v1362_v53 = vld [vmem:[#allocation2 + $0x30] sm:$0xff]  ;;  %v1364_v58 = vld [vmem:[#allocation2 + $0x48] sm:$0xff]  ;;  %v1366_v60 = vld [vmem:[#allocation2 + $0x60] sm:$0xff] }
 0x16d   : > { %v29214_v54 = vpack.c.bf16 %v1363_v43, %v1362_v53  ;;  %v1365_v56 = vld [vmem:[#allocation2 + $0x50] sm:$0xff]  ;;  %v29229_v62 = vpack.c.bf16 %v1367_v22, %v1366_v60  ;;  %v1369_v1 = vld [vmem:[#allocation2 + $0x80] sm:$0xff]  ;;  %v1383_v43 = vld [vmem:[#allocation2 + $0x128] sm:$0xff] }
 0x16e   : > { %v23998_v3 = vpop.f32.mrb[28].mxu1  ;;  %24023 = vmatmul.mubr.msk.bf16.gmra.mrb[52].mxu1 %vm1325_vm5, %v29181_v0  ;;  %v29227_v59 = vpack.c.bf16 %v1365_v56, %v1364_v58  ;;  %v1381_v38 = vld [vmem:[#allocation2 + $0x110] sm:$0xff]  ;;  %v1380_v46 = vld [vmem:[#allocation2 + $0x108] sm:$0xff]  ;;  %v1382_v53 = vld [vmem:[#allocation2 + $0x120] sm:$0xff] }
 0x16f   : > { %v1318_v5 = vadd.f32 %v23998_v3, %v29075_v57  ;;  %v1309_v6 = vpop.f32.mrb[29].mxu1  ;;  %24026 = vmatprep.mubr.msk.bf16.mxu1 %vm1325_vm5, %v29183_v2  ;;  %v1371_v3 = vld [vmem:[#allocation2 + $0x98] sm:$0xff]  ;;  %v29261_v56 = vpack.c.bf16 %v1383_v43, %v1382_v53 }
 0x170   : > { %v1310_v7 = vadd.f32 %v29075_v57, %v1309_v6  ;;  %v23999_v8 = vpop.f32.mrb[30].mxu1  ;;  %v1435_v27 = vld [vmem:[#allocation2 + $0x151] sm:$0xff] }
 0x171   : > { %1356 = vst.msk [vmem:[#allocation2 + $0x181] sm:$0xff] %vm1325_vm5, %v1318_v5  ;;  %v1321_v11 = vadd.f32 %v23999_v8, %v29075_v57  ;;  %v1312_v12 = vpop.f32.mrb[31].mxu1  ;;  %v1433_v20 = vld [vmem:[#allocation2 + $0x139] sm:$0xff] }
 0x172   : > { %1354 = vst.msk [vmem:[#allocation2 + $0x169] sm:$0xff] %vm1325_vm5, %v1310_v7  ;;  %v1313_v13 = vadd.f32 %v29075_v57, %v1312_v12  ;;  %v1436_v15 = vld [vmem:[#allocation2 + $0x159] sm:$0xff]  ;;  %v1359_v57 = vld [vmem:[#allocation2 + $0x8] sm:$0xff]  ;;  %v1370_v7 = vld [vmem:[#allocation2 + $0x90] sm:$0xff] }
 0x173   : > { %1357 = vst.msk [vmem:[#allocation2 + $0x189] sm:$0xff] %vm1325_vm5, %v1321_v11  ;;  %v1434_v25 = vld [vmem:[#allocation2 + $0x141] sm:$0xff]  ;;  %v29199_v28 = vpack.c.bf16 %v1436_v15, %v1435_v27  ;;  %v1390_v34 = vpack.c.bf16 %v1359_v57, %v1358_v31  ;;  %v1368_v5 = vld [vmem:[#allocation2 + $0x78] sm:$0xff]  ;;  %v29237_v8 = vpack.c.bf16 %v1371_v3, %v1370_v7  ;;  %v1373_v11 = vld [vmem:[#allocation2 + $0xb0] sm:$0xff] }
 0x174   : > { %1355 = vst.msk [vmem:[#allocation2 + $0x171] sm:$0xff] %vm1325_vm5, %v1313_v13  ;;  %v29197_v26 = vpack.c.bf16 %v1434_v25, %v1433_v20  ;;  %v29235_v6 = vpack.c.bf16 %v1369_v1, %v1368_v5  ;;  %v1375_v12 = vld [vmem:[#allocation2 + $0xc8] sm:$0xff]  ;;  %v1374_v20 = vld [vmem:[#allocation2 + $0xc0] sm:$0xff]  ;;  %v1379_v31 = vld [vmem:[#allocation2 + $0xf8] sm:$0xff] }
 0x175   : > { %v1372_v13 = vld [vmem:[#allocation2 + $0xa8] sm:$0xff]  ;;  %v29245_v25 = vpack.c.bf16 %v1375_v12, %v1374_v20  ;;  %v1377_v27 = vld [vmem:[#allocation2 + $0xe0] sm:$0xff]  ;;  %v1376_v57 = vld [vmem:[#allocation2 + $0xd8] sm:$0xff] }
 0x176   : > { %24027 = vmatmul.mubr.msk.bf16.gmra.mrb[56].mxu1 %vm1325_vm5, %v29197_v26  ;;  %v29243_v15 = vpack.c.bf16 %v1373_v11, %v1372_v13  ;;  %v1385_v22 = vld [vmem:[#allocation2 + $0x140] sm:$0xff]  ;;  %v1387_v58 = vld [vmem:[#allocation2 + $0x158] sm:$0xff]  ;;  %v1386_v3 = vld [vmem:[#allocation2 + $0x150] sm:$0xff] }
 0x177   : > { %24030 = vmatprep.mubr.msk.bf16.mxu1 %vm1325_vm5, %v29199_v28  ;;  %v1384_v60 = vld [vmem:[#allocation2 + $0x138] sm:$0xff]  ;;  %v29269_v5 = vpack.c.bf16 %v1387_v58, %v1386_v3  ;;  %v1882_v7 = vld [vmem:[#allocation2 + $0x2] sm:$0xff]  ;;  %v1883_v11 = vld [vmem:[#allocation2 + $0xa] sm:$0xff] }
 0x178   : > { %v29267_v1 = vpack.c.bf16 %v1385_v22, %v1384_v60  ;;  %v1914_v20 = vpack.c.bf16 %v1883_v11, %v1882_v7  ;;  %v21651_v22 = vld [vmem:[%s33746_s26 + $0x8] sm:$0x3]  ;;  %v1888_v58 = vld [vmem:[#allocation2 + $0x4a] sm:$0xff]  ;;  %v1889_v60 = vld [vmem:[#allocation2 + $0x52] sm:$0xff] }
 0x179   : > { %v1437_v32 = vld [vmem:[#allocation2 + $0x169] sm:$0xff] }
 0x17a   : > { %v1388_v13 = vld [vmem:[#allocation2 + $0x168] sm:$0xff] }
 0x17b   : > { %v1438_v33 = vld [vmem:[#allocation2 + $0x171] sm:$0xff]  ;;  %v1890_v3 = vld [vmem:[#allocation2 + $0x62] sm:$0xff] }
 0x17c   : > { %v29205_v37 = vpack.c.bf16 %v1438_v33, %v1437_v32  ;;  %v29251_v32 = vpack.c.bf16 %v1377_v27, %v1376_v57  ;;  %v1378_v33 = vld [vmem:[#allocation2 + $0xf0] sm:$0xff]  ;;  %v1885_v57 = vld [vmem:[#allocation2 + $0x22] sm:$0xff] }
 0x17d   : > { %v1389_v12 = vld [vmem:[#allocation2 + $0x170] sm:$0xff] }
 0x17e   : > { %24031 = vmatmul.mubr.msk.bf16.gmra.mrb[60].mxu1 %vm1325_vm5, %v29205_v37  ;;  %v29275_v27 = vpack.c.bf16 %v1389_v12, %v1388_v13  ;;  %v1891_v7 = vld [vmem:[#allocation2 + $0x6a] sm:$0xff]  ;;  %v1892_v12 = vld [vmem:[#allocation2 + $0x7a] sm:$0xff]  ;;  %v1893_v13 = vld [vmem:[#allocation2 + $0x82] sm:$0xff] }
 0x17f   : > { %24036 = vmatprep.mubr.msk.bf16.mxu1 %vm1325_vm5, %v1390_v34  ;;  %v29253_v34 = vpack.c.bf16 %v1379_v31, %v1378_v33  ;;  %v1884_v31 = vld [vmem:[#allocation2 + $0x1a] sm:$0xff]  ;;  %v1886_v33 = vld [vmem:[#allocation2 + $0x32] sm:$0xff]  ;;  %v29296_v11 = vpack.c.bf16 %v1891_v7, %v1890_v3 }
 0x180   : > { %v29280_v43 = vpack.c.bf16 %v1885_v57, %v1884_v31  ;;  %v1895_v31 = vld [vmem:[#allocation2 + $0x9a] sm:$0xff]  ;;  %v29302_v57 = vpack.c.bf16 %v1893_v13, %v1892_v12  ;;  %v1901_v13 = vld [vmem:[#allocation2 + $0xe2] sm:$0xff] }
 0x181   : > { %v1900_v12 = vld [vmem:[#allocation2 + $0xda] sm:$0xff] }
 0x182   : > { %v29318_v52 = vpack.c.bf16 %v1901_v13, %v1900_v12  ;;  %v1908_v12 = vld [vmem:[#allocation2 + $0x13a] sm:$0xff]  ;;  %v1909_v13 = vld [vmem:[#allocation2 + $0x142] sm:$0xff] }
 0x183   : > { %v29334_v42 = vpack.c.bf16 %v1909_v13, %v1908_v12  ;;  %v21668_v12 = vld [vmem:[%s33746_s26 + $0xa] sm:$0x3] }
 0x186   : > { %24037 = vmatmul.mubr.msk.bf16.vlgmr.msra.gmra.mrb[32].mxu1 %vm1325_vm5, %v29210_v49 }
 0x187   : > { %24069 = vmatpush3.bf16.msra.mxu1 %v1981_v50  ;;  %24040 = vmatprep.mubr.msk.bf16.mxu1 %vm1325_vm5, %v29214_v54  ;;  %v29259_v50 = vpack.c.bf16 %v1381_v38, %v1380_v46  ;;  %v1887_v38 = vld [vmem:[#allocation2 + $0x3a] sm:$0xff]  ;;  %v2275_v46 = vsel %vm1505_vm1, %v29219_v55, 0 }
 0x188   : > { %28211 = vmatprep.subr.msk.bf16.mxu1 %vm1505_vm1, %v29219_v55  ;;  %v29284_v53 = vpack.c.bf16 %v1887_v38, %v1886_v33  ;;  %v29294_v55 = vpack.c.bf16 %v1889_v60, %v1888_v58  ;;  %v1896_v38 = vld [vmem:[#allocation2 + $0xaa] sm:$0xff]  ;;  %v1898_v58 = vld [vmem:[#allocation2 + $0xc2] sm:$0xff] }
 0x189   : > { %v1899_v60 = vld [vmem:[#allocation2 + $0xca] sm:$0xff] }
 0x18a   : > { %v29312_v7 = vpack.c.bf16 %v1899_v60, %v1898_v58  ;;  %v1906_v58 = vld [vmem:[#allocation2 + $0x122] sm:$0xff]  ;;  %v1907_v60 = vld [vmem:[#allocation2 + $0x12a] sm:$0xff] }
 0x18b   : > { %v29328_v47 = vpack.c.bf16 %v1907_v60, %v1906_v58  ;;  %v2569_v60 = vsel %vm1505_vm1, %v21651_v22, 0 }
 0x18e   : > { %24041 = vmatmul.mubr.msk.bf16.gmra.mrb[36].mxu1 %vm1325_vm5, %v29227_v59 }
 0x18f   : > { %24044 = vmatprep.mubr.msk.bf16.mxu1 %vm1325_vm5, %v29229_v62 }
 0x196   : > { %24045 = vmatmul.mubr.msk.bf16.gmra.mrb[40].mxu1 %vm1325_vm5, %v29235_v6 }
 0x197   : > { %24048 = vmatprep.mubr.msk.bf16.mxu1 %vm1325_vm5, %v29237_v8 }
 0x19e   : > { %24049 = vmatmul.mubr.msk.bf16.gmra.mrb[44].mxu1 %vm1325_vm5, %v29243_v15 }
 0x19f   : > { %24052 = vmatprep.mubr.msk.bf16.mxu1 %vm1325_vm5, %v29245_v25 }
 0x1a6   : > { %24053 = vmatmul.mubr.msk.bf16.gmra.mrb[48].mxu1 %vm1325_vm5, %v29251_v32 }
 0x1a7   : > { %24056 = vmatprep.mubr.msk.bf16.mxu1 %vm1325_vm5, %v29253_v34 }
 0x1ae   : > { %24057 = vmatmul.mubr.msk.bf16.gmra.mrb[52].mxu1 %vm1325_vm5, %v29259_v50 }
 0x1af   : > { %24060 = vmatprep.mubr.msk.bf16.mxu1 %vm1325_vm5, %v29261_v56 }
 0x1b6   : > { %24061 = vmatmul.mubr.msk.bf16.gmra.mrb[56].mxu1 %vm1325_vm5, %v29267_v1 }
 0x1b7   : > { %24064 = vmatprep.mubr.msk.bf16.mxu1 %vm1325_vm5, %v29269_v5 }
 0x1be   : > { %24065 = vmatmul.mubr.msk.bf16.gmra.mrb[60].mxu1 %vm1325_vm5, %v29275_v27 }
 0x1bf   : > { %24070 = vmatprep.mubr.msk.bf16.mxu1 %vm1325_vm5, %v1914_v20  ;;  %v1894_v20 = vld [vmem:[#allocation2 + $0x92] sm:$0xff] }
 0x1c0   : > { %v29304_v33 = vpack.c.bf16 %v1895_v31, %v1894_v20  ;;  %v1902_v20 = vld [vmem:[#allocation2 + $0xf2] sm:$0xff]  ;;  %v1903_v31 = vld [vmem:[#allocation2 + $0xfa] sm:$0xff] }
 0x1c1   : > { %v29320_v51 = vpack.c.bf16 %v1903_v31, %v1902_v20  ;;  %v1910_v20 = vld [vmem:[#allocation2 + $0x152] sm:$0xff]  ;;  %v1911_v31 = vld [vmem:[#allocation2 + $0x15a] sm:$0xff] }
 0x1c2   : > { %v29336_v41 = vpack.c.bf16 %v1911_v31, %v1910_v20  ;;  %v2863_v20 = vsel %vm1505_vm1, %v21668_v12, 0  ;;  %v21685_v31 = vld [vmem:[%s33746_s26 + $0xc] sm:$0x3] }
 0x1c6   : > { %24071 = vmatmul.mubr.msk.bf16.vlgmr.msra.gmra.mrb[32].mxu1 %vm1325_vm5, %v29280_v43 }
 0x1c7   : > { %24103 = vmatpush3.bf16.msra.mxu1 %v2275_v46  ;;  %24074 = vmatprep.mubr.msk.bf16.mxu1 %vm1325_vm5, %v29284_v53  ;;  %v1897_v46 = vld [vmem:[#allocation2 + $0xb2] sm:$0xff] }
 0x1c8   : > { %28212 = vmatprep.subr.msk.bf16.mxu1 %vm1505_vm1, %v21651_v22  ;;  %v29310_v3 = vpack.c.bf16 %v1897_v46, %v1896_v38  ;;  %v1904_v38 = vld [vmem:[#allocation2 + $0x10a] sm:$0xff]  ;;  %v1905_v46 = vld [vmem:[#allocation2 + $0x112] sm:$0xff]  ;;  %v2206_v22 = vld [vmem:[#allocation2 + $0x180] sm:$0xff] }
 0x1c9   : > { %v29326_v48 = vpack.c.bf16 %v1905_v46, %v1904_v38  ;;  %v1912_v38 = vld [vmem:[#allocation2 + $0x16a] sm:$0xff]  ;;  %v1913_v46 = vld [vmem:[#allocation2 + $0x172] sm:$0xff] }
 0x1ca   : > { %v29342_v58 = vpack.c.bf16 %v1913_v46, %v1912_v38  ;;  %v3359_v38 = vld [vmem:[#allocation2 + $0x79] sm:$0xff] }
 0x1ce   : > { %24075 = vmatmul.mubr.msk.bf16.gmra.mrb[36].mxu1 %vm1325_vm5, %v29294_v55 }
 0x1cf   : > { %24078 = vmatprep.mubr.msk.bf16.mxu1 %vm1325_vm5, %v29296_v11 }
 0x1d6   : > { %24079 = vmatmul.mubr.msk.bf16.gmra.mrb[40].mxu1 %vm1325_vm5, %v29302_v57 }
 0x1d7   : > { %24082 = vmatprep.mubr.msk.bf16.mxu1 %vm1325_vm5, %v29304_v33 }
 0x1de   : > { %24083 = vmatmul.mubr.msk.bf16.gmra.mrb[44].mxu1 %vm1325_vm5, %v29310_v3 }
 0x1df   : > { %24086 = vmatprep.mubr.msk.bf16.mxu1 %vm1325_vm5, %v29312_v7 }
 0x1e6   : > { %24087 = vmatmul.mubr.msk.bf16.gmra.mrb[48].mxu1 %vm1325_vm5, %v29318_v52 }
 0x1e7   : > { %24090 = vmatprep.mubr.msk.bf16.mxu1 %vm1325_vm5, %v29320_v51 }
 0x1ee   : > { %24091 = vmatmul.mubr.msk.bf16.gmra.mrb[52].mxu1 %vm1325_vm5, %v29326_v48 }
 0x1ef   : > { %24094 = vmatprep.mubr.msk.bf16.mxu1 %vm1325_vm5, %v29328_v47 }
 0x1f6   : > { %24095 = vmatmul.mubr.msk.bf16.gmra.mrb[56].mxu1 %vm1325_vm5, %v29334_v42 }
 0x1f7   : > { %24098 = vmatprep.mubr.msk.bf16.mxu1 %vm1325_vm5, %v29336_v41 }
 0x1fe   : > { %24099 = vmatmul.mubr.msk.bf16.gmra.mrb[60].mxu1 %vm1325_vm5, %v29342_v58 }
 0x1ff   : > { %24104 = vmatprep.mubr.msk.bf16.mxu1 %vm1325_vm5, %v29210_v49  ;;  %v2207_v49 = vld [vmem:[#allocation2 + $0x188] sm:$0xff] }
 0x200   : > { %v29381_v13 = vpack.c.bf16 %v2207_v49, %v2206_v22  ;;  %v3364_v49 = vld [vmem:[#allocation2 + $0xb1] sm:$0xff]  ;;  %v3366_v22 = vld [vmem:[#allocation2 + $0xc9] sm:$0xff] }
 0x206   : > { %24105 = vmatmul.mubr.msk.bf16.vlgmr.msra.gmra.mrb[32].mxu1 %vm1325_vm5, %v29214_v54 }
 0x207   : > { %24137 = vmatpush3.bf16.msra.mxu1 %v2569_v60  ;;  %24108 = vmatprep.mubr.msk.bf16.mxu1 %vm1325_vm5, %v29227_v59  ;;  %v3361_v60 = vld [vmem:[#allocation2 + $0x91] sm:$0xff] }
 0x208   : > { %28213 = vmatprep.subr.msk.bf16.mxu1 %vm1505_vm1, %v21668_v12 }
 0x20e   : > { %24109 = vmatmul.mubr.msk.bf16.gmra.mrb[36].mxu1 %vm1325_vm5, %v29229_v62 }
 0x20f   : > { %24112 = vmatprep.mubr.msk.bf16.mxu1 %vm1325_vm5, %v29235_v6 }
 0x216   : > { %24113 = vmatmul.mubr.msk.bf16.gmra.mrb[40].mxu1 %vm1325_vm5, %v29237_v8 }
 0x217   : > { %24116 = vmatprep.mubr.msk.bf16.mxu1 %vm1325_vm5, %v29243_v15 }
 0x21e   : > { %24117 = vmatmul.mubr.msk.bf16.gmra.mrb[44].mxu1 %vm1325_vm5, %v29245_v25 }
 0x21f   : > { %24120 = vmatprep.mubr.msk.bf16.mxu1 %vm1325_vm5, %v29251_v32 }
 0x226   : > { %24121 = vmatmul.mubr.msk.bf16.gmra.mrb[48].mxu1 %vm1325_vm5, %v29253_v34 }
 0x227   : > { %24124 = vmatprep.mubr.msk.bf16.mxu1 %vm1325_vm5, %v29259_v50 }
 0x22e   : > { %24125 = vmatmul.mubr.msk.bf16.gmra.mrb[52].mxu1 %vm1325_vm5, %v29261_v56 }
 0x22f   : > { %24128 = vmatprep.mubr.msk.bf16.mxu1 %vm1325_vm5, %v29267_v1 }
 0x236   : > { %24129 = vmatmul.mubr.msk.bf16.gmra.mrb[56].mxu1 %vm1325_vm5, %v29269_v5 }
 0x237   : > { %24132 = vmatprep.mubr.msk.bf16.mxu1 %vm1325_vm5, %v29275_v27 }
 0x23e   : > { %24133 = vmatmul.mubr.msk.bf16.gmra.mrb[60].mxu1 %vm1325_vm5, %v29381_v13 }
 0x23f   : > { %24138 = vmatprep.mubr.msk.bf16.mxu1 %vm1325_vm5, %v29093_v16  ;;  %v2501_v16 = vld [vmem:[#allocation2 + $0x189] sm:$0xff] }
 0x246   : > { %24139 = vmatmul.mubr.msk.bf16.vlgmr.msra.gmra.mrb[32].mxu1 %vm1325_vm5, %v29096_v21  ;;  %v2500_v21 = vld [vmem:[#allocation2 + $0x181] sm:$0xff] }
 0x247   : > { %24171 = vmatpush3.bf16.msra.mxu1 %v2863_v20  ;;  %24142 = vmatprep.mubr.msk.bf16.mxu1 %vm1325_vm5, %v29117_v40  ;;  %v29420_v40 = vpack.c.bf16 %v2501_v16, %v2500_v21  ;;  %v3368_v21 = vld [vmem:[#allocation2 + $0xe1] sm:$0xff] }
 0x248   : > { %28214 = vmatprep.subr.msk.bf16.mxu1 %vm1505_vm1, %v21685_v31 }
 0x24e   : > { %24143 = vmatmul.mubr.msk.bf16.gmra.mrb[36].mxu1 %vm1325_vm5, %v29119_v44  ;;  %v3158_v44 = vsel %vm1505_vm1, %v21685_v31, 0  ;;  %v3365_v31 = vld [vmem:[#allocation2 + $0xc1] sm:$0xff] }
 0x24f   : > { %24146 = vmatprep.mubr.msk.bf16.mxu1 %vm1325_vm5, %v29133_v61  ;;  %v21702_v61 = vld [vmem:[%s33746_s26 + $0xe] sm:$0x3]  ;;  %v3391_v16 = vpack.c.bf16 %v3366_v22, %v3365_v31 }
 0x256   : > { %24147 = vmatmul.mubr.msk.bf16.gmra.mrb[40].mxu1 %vm1325_vm5, %v29135_v63  ;;  %v2794_v63 = vld [vmem:[#allocation2 + $0x182] sm:$0xff] }
 0x257   : > { %24150 = vmatprep.mubr.msk.bf16.mxu1 %vm1325_vm5, %v29149_v14  ;;  %v2795_v14 = vld [vmem:[#allocation2 + $0x18a] sm:$0xff] }
 0x25e   : > { %24151 = vmatmul.mubr.msk.bf16.gmra.mrb[44].mxu1 %vm1325_vm5, %v29151_v19  ;;  %v29459_v19 = vpack.c.bf16 %v2795_v14, %v2794_v63  ;;  %v3369_v14 = vld [vmem:[#allocation2 + $0xf1] sm:$0xff] }
 0x25f   : > { %24154 = vmatprep.mubr.msk.bf16.mxu1 %vm1325_vm5, %v29165_v39  ;;  %v3452_v39 = vsel %vm1505_vm1, %v21702_v61, 0 }
 0x266   : > { %24155 = vmatmul.mubr.msk.bf16.gmra.mrb[48].mxu1 %vm1325_vm5, %v29167_v45  ;;  %v21719_v45 = vld [vmem:[%s33746_s26 + $0x10] sm:$0x3] }
 0x267   : > { %24158 = vmatprep.mubr.msk.bf16.mxu1 %vm1325_vm5, %v29181_v0  ;;  %v3089_v0 = vld [vmem:[#allocation2 + $0x198] sm:$0xff] }
 0x26e   : > { %24159 = vmatmul.mubr.msk.bf16.gmra.mrb[52].mxu1 %vm1325_vm5, %v29183_v2 }
 0x26f   : > { %24162 = vmatprep.mubr.msk.bf16.mxu1 %vm1325_vm5, %v29197_v26 }
 0x276   : > { %24163 = vmatmul.mubr.msk.bf16.gmra.mrb[56].mxu1 %vm1325_vm5, %v29199_v28 }
 0x277   : > { %24166 = vmatprep.mubr.msk.bf16.mxu1 %vm1325_vm5, %v29205_v37 }
 0x27e   : > { %24167 = vmatmul.mubr.msk.bf16.gmra.mrb[60].mxu1 %vm1325_vm5, %v29420_v40 }
 0x27f   : > { %24172 = vmatprep.mubr.msk.bf16.mxu1 %vm1325_vm5, %v29280_v43  ;;  %v3362_v43 = vld [vmem:[#allocation2 + $0x99] sm:$0xff] }
 0x280   : > { %v3389_v12 = vpack.c.bf16 %v3362_v43, %v3361_v60 }
 0x286   : > { %24173 = vmatmul.mubr.msk.bf16.vlgmr.msra.gmra.mrb[32].mxu1 %vm1325_vm5, %v29284_v53 }
 0x287   : > { %24205 = vmatpush3.bf16.msra.mxu1 %v3158_v44  ;;  %24176 = vmatprep.mubr.msk.bf16.mxu1 %vm1325_vm5, %v29294_v55  ;;  %v3370_v44 = vld [vmem:[#allocation2 + $0xf9] sm:$0xff] }
 0x288   : > { %28215 = vmatprep.subr.msk.bf16.mxu1 %vm1505_vm1, %v21702_v61  ;;  %v3367_v61 = vld [vmem:[#allocation2 + $0xd9] sm:$0xff] }
 0x289   : > { %v3392_v63 = vpack.c.bf16 %v3368_v21, %v3367_v61 }
 0x28e   : > { %24177 = vmatmul.mubr.msk.bf16.gmra.mrb[36].mxu1 %vm1325_vm5, %v29296_v11 }
 0x28f   : > { %24180 = vmatprep.mubr.msk.bf16.mxu1 %vm1325_vm5, %v29302_v57 }
 0x296   : > { %24181 = vmatmul.mubr.msk.bf16.gmra.mrb[40].mxu1 %vm1325_vm5, %v29304_v33 }
 0x297   : > { %24184 = vmatprep.mubr.msk.bf16.mxu1 %vm1325_vm5, %v29310_v3 }
 0x29e   : > { %24185 = vmatmul.mubr.msk.bf16.gmra.mrb[44].mxu1 %vm1325_vm5, %v29312_v7 }
 0x29f   : > { %24188 = vmatprep.mubr.msk.bf16.mxu1 %vm1325_vm5, %v29318_v52 }
 0x2a6   : > { %24189 = vmatmul.mubr.msk.bf16.gmra.mrb[48].mxu1 %vm1325_vm5, %v29320_v51 }
 0x2a7   : > { %24192 = vmatprep.mubr.msk.bf16.mxu1 %vm1325_vm5, %v29326_v48 }
 0x2ae   : > { %24193 = vmatmul.mubr.msk.bf16.gmra.mrb[52].mxu1 %vm1325_vm5, %v29328_v47 }
 0x2af   : > { %24196 = vmatprep.mubr.msk.bf16.mxu1 %vm1325_vm5, %v29334_v42 }
 0x2b6   : > { %24197 = vmatmul.mubr.msk.bf16.gmra.mrb[56].mxu1 %vm1325_vm5, %v29336_v41 }
 0x2b7   : > { %24200 = vmatprep.mubr.msk.bf16.mxu1 %vm1325_vm5, %v29342_v58 }
 0x2be   : > { %24201 = vmatmul.mubr.msk.bf16.gmra.mrb[60].mxu1 %vm1325_vm5, %v29459_v19 }
 0x2bf   : > { %24206 = vmatprep.mubr.msk.bf16.mxu1 %vm1325_vm5, %v29214_v54  ;;  %v3090_v54 = vld [vmem:[#allocation2 + $0x1a0] sm:$0xff] }
 0x2c6   : > { %24207 = vmatmul.mubr.msk.bf16.vlgmr.msra.gmra.mrb[32].mxu1 %vm1325_vm5, %v29227_v59  ;;  %v3106_v59 = vpack.c.bf16 %v3090_v54, %v3089_v0  ;;  %v3371_v0 = vld [vmem:[#allocation2 + $0x109] sm:$0xff] }
 0x2c7   : > { %24239 = vmatpush3.bf16.msra.mxu1 %v3452_v39  ;;  %24210 = vmatprep.mubr.msk.bf16.mxu1 %vm1325_vm5, %v29229_v62  ;;  %v3354_v62 = vld [vmem:[#allocation2 + $0x39] sm:$0xff]  ;;  %v3393_v39 = vpack.c.bf16 %v3370_v44, %v3369_v14 }
 0x2c8   : > { %28216 = vmatprep.subr.msk.bf16.mxu1 %vm1505_vm1, %v21719_v45 }
 0x2ce   : > { %24211 = vmatmul.mubr.msk.bf16.gmra.mrb[36].mxu1 %vm1325_vm5, %v29235_v6  ;;  %v3353_v6 = vld [vmem:[#allocation2 + $0x31] sm:$0xff] }
 0x2cf   : > { %24214 = vmatprep.mubr.msk.bf16.mxu1 %vm1325_vm5, %v29237_v8  ;;  %v3385_v8 = vpack.c.bf16 %v3354_v62, %v3353_v6  ;;  %v3384_v62 = vld [vmem:[#allocation2 + $0x1a1] sm:$0xff] }
 0x2d6   : > { %24215 = vmatmul.mubr.msk.bf16.gmra.mrb[40].mxu1 %vm1325_vm5, %v29243_v15  ;;  %v3356_v15 = vld [vmem:[#allocation2 + $0x51] sm:$0xff] }
 0x2d7   : > { %24218 = vmatprep.mubr.msk.bf16.mxu1 %vm1325_vm5, %v29245_v25  ;;  %v3358_v25 = vld [vmem:[#allocation2 + $0x69] sm:$0xff] }
 0x2de   : > { %24219 = vmatmul.mubr.msk.bf16.gmra.mrb[44].mxu1 %vm1325_vm5, %v29251_v32  ;;  %v3355_v32 = vld [vmem:[#allocation2 + $0x49] sm:$0xff] }
 0x2df   : > { %24222 = vmatprep.mubr.msk.bf16.mxu1 %vm1325_vm5, %v29253_v34  ;;  %v3386_v34 = vpack.c.bf16 %v3356_v15, %v3355_v32  ;;  %v21770_v15 = vld [vmem:[%s33761_s24 + $0x8] sm:$0xf]  ;;  %v29592_v32 = vld [vmem:[%s33764_s28] ss:$0 sm:$0xff]  ;;  %s33765_s28 = sld [smem:[#allocation96_spill]] }
 0x2e6   : > { %24223 = vmatmul.mubr.msk.bf16.gmra.mrb[48].mxu1 %vm1325_vm5, %v29259_v50  ;;  %v3746_v50 = vsel %vm1505_vm1, %v21719_v45, 0  ;;  %v3372_v45 = vld [vmem:[#allocation2 + $0x111] sm:$0xff] }
 0x2e7   : > { %24226 = vmatprep.mubr.msk.bf16.mxu1 %vm1325_vm5, %v29261_v56  ;;  %v3357_v56 = vld [vmem:[#allocation2 + $0x61] sm:$0xff]  ;;  %v3394_v54 = vpack.c.bf16 %v3372_v45, %v3371_v0 }
 0x2ee   : > { %24227 = vmatmul.mubr.msk.bf16.gmra.mrb[52].mxu1 %vm1325_vm5, %v29267_v1  ;;  %v3387_v1 = vpack.c.bf16 %v3358_v25, %v3357_v56  ;;  %v4668_v25 = vsel %vm4192_vm6, %v21770_v15, 0 }
 0x2ef   : > { %24230 = vmatprep.mubr.msk.bf16.mxu1 %vm1325_vm5, %v29269_v5  ;;  %v21737_v5 = vld [vmem:[%s33761_s24 + $0x4] sm:$0xf] }
 0x2f6   : > { %24231 = vmatmul.mubr.msk.bf16.gmra.mrb[56].mxu1 %vm1325_vm5, %v29275_v27  ;;  %v3360_v27 = vld [vmem:[#allocation2 + $0x81] sm:$0xff] }
 0x2f7   : > { %24234 = vmatprep.mubr.msk.bf16.mxu1 %vm1325_vm5, %v29381_v13  ;;  %v3388_v46 = vpack.c.bf16 %v3360_v27, %v3359_v38  ;;  %v3363_v13 = vld [vmem:[#allocation2 + $0xa9] sm:$0xff] }
 0x2f8   : > { %v3390_v20 = vpack.c.bf16 %v3364_v49, %v3363_v13 }
 0x2fe   : > { %24235 = vmatmul.mubr.msk.bf16.gmra.mrb[60].mxu1 %vm1325_vm5, %v3106_v59  ;;  %v3383_v59 = vld [vmem:[#allocation2 + $0x199] sm:$0xff] }
 0x2ff   : > { %24240 = vmatprep.mubr.msk.bf16.mxu1 %vm1325_vm5, %v3385_v8  ;;  %v3400_v6 = vpack.c.bf16 %v3384_v62, %v3383_v59  ;;  %v28328_v8 = vld [vmem:[%s33763_s27 + $0x8] sm:$0xff]  }
 0x306   : > { %24241 = vmatmul.mubr.msk.bf16.vlgmr.msra.gmra.mrb[32].mxu1 %vm1325_vm5, %v3386_v34 }
 0x307   : > { %24273 = vmatpush3.bf16.msra.mxu1 %v3746_v50  ;;  %24244 = vmatprep.mubr.msk.bf16.mxu1 %vm1325_vm5, %v3387_v1 }
 0x308   : > { %28217 = vmatprep.subr.msk.bf16.mxu1 %vm4192_vm6, %v21737_v5 }
 0x30e   : > { %24245 = vmatmul.mubr.msk.bf16.gmra.mrb[36].mxu1 %vm1325_vm5, %v3388_v46 }
 0x30f   : > { %24248 = vmatprep.mubr.msk.bf16.mxu1 %vm1325_vm5, %v3389_v12  ;;  %v29601_v12 = vld [vmem:[%s33761_s24 + $0xc] sm:$0xf] }
 0x316   : > { %24249 = vmatmul.mubr.msk.bf16.gmra.mrb[40].mxu1 %vm1325_vm5, %v3390_v20 }
 0x317   : > { %24252 = vmatprep.mubr.msk.bf16.mxu1 %vm1325_vm5, %v3391_v16 }
 0x31e   : > { %24253 = vmatmul.mubr.msk.bf16.gmra.mrb[44].mxu1 %vm1325_vm5, %v3392_v63 }
 0x31f   : > { %24256 = vmatprep.mubr.msk.bf16.mxu1 %vm1325_vm5, %v3393_v39 }
 0x326   : > { %24257 = vmatmul.mubr.msk.bf16.gmra.mrb[48].mxu1 %vm1325_vm5, %v3394_v54 }
 0x327   : > { %24260 = vmatprep.mubr.msk.bf16.mxu1 %vm1325_vm5, %v29183_v2  ;;  %v4194_v2 = vsel %vm4192_vm6, %v21737_v5, 0 }
 0x32e   : > { %24261 = vmatmul.mubr.msk.bf16.gmra.mrb[52].mxu1 %vm1325_vm5, %v29197_v26 }
 0x32f   : > { %24264 = vmatprep.mubr.msk.bf16.mxu1 %vm1325_vm5, %v29199_v28  ;;  %v4093_v28 = vld [vmem:[%s33761_s24] sm:$0xf] }
 0x330   : > { %28218 = vmatprep.subr.msk.bf16.mxu0 %vm4192_vm6, %v4093_v28 }
 0x336   : > { %24265 = vmatmul.mubr.msk.bf16.gmra.mrb[56].mxu1 %vm1325_vm5, %v29205_v37  ;;  %v4096_v37 = vld [vmem:[#allocation3 + $0x1a] sm:$0xff] }
 0x337   : > { %24268 = vmatprep.mubr.msk.bf16.mxu1 %vm1325_vm5, %v29420_v40 }
 0x33e   : > { %24269 = vmatmul.mubr.msk.bf16.gmra.mrb[60].mxu1 %vm1325_vm5, %v3400_v6 }
 0x33f   : > { %24274 = vmatprep.mubr.msk.bf16.mxu1 %vm1325_vm5, %v29284_v53 }
 0x346   : > { %24275 = vmatmul.mubr.msk.bf16.vlgmr.msra.gmra.mrb[32].mxu1 %vm1325_vm5, %v29294_v55 }
 0x347   : > { %24278 = vmatprep.mubr.msk.bf16.mxu1 %vm1325_vm5, %v29296_v11  ;;  %24307 = vmatpush3.bf16.msra.mxu1 %v4194_v2  ;;  %v4406_v11 = vsel %vm4192_vm6, %v4093_v28, 0 }
 0x348   : > { %24341 = vmatpush3.bf16.msra.mxu0 %v4406_v11 }
 0x349   : > { %28219 = vmatprep.subr.msk.bf16.mxu0 %vm4192_vm6, %v21770_v15 }
 0x34e   : > { %24279 = vmatmul.mubr.msk.bf16.gmra.mrb[36].mxu1 %vm1325_vm5, %v29302_v57  ;;  %v4045_v57 = vld [vmem:[#allocation3] sm:$0xff] }
 0x34f   : > { %24282 = vmatprep.mubr.msk.bf16.mxu1 %vm1325_vm5, %v29304_v33  ;;  %v4046_v33 = vld [vmem:[#allocation3 + $0x8] sm:$0xff] }
 0x356   : > { %24283 = vmatmul.mubr.msk.bf16.gmra.mrb[40].mxu1 %vm1325_vm5, %v29310_v3  ;;  %v4077_v3 = vpack.c.bf16 %v4046_v33, %v4045_v57 }
 0x357   : > { %24286 = vmatprep.mubr.msk.bf16.mxu1 %vm1325_vm5, %v29312_v7  ;;  %v4047_v7 = vld [vmem:[#allocation3 + $0x18] sm:$0xff] }
 0x358   : > { %24342 = vmatprep.mubr.msk.bf16.mxu0 %vm784_vm3, %v4077_v3 }
 0x35e   : > { %24287 = vmatmul.mubr.msk.bf16.gmra.mrb[44].mxu1 %vm1325_vm5, %v29318_v52  ;;  %v3677_v52 = vld [vmem:[#allocation2 + $0x19a] sm:$0xff] }
 0x35f   : > { %24290 = vmatprep.mubr.msk.bf16.mxu1 %vm1325_vm5, %v29320_v51  ;;  %v3678_v51 = vld [vmem:[#allocation2 + $0x1a2] sm:$0xff] }
 0x360   : > { %v3694_v26 = vpack.c.bf16 %v3678_v51, %v3677_v52 }
 0x366   : > { %24291 = vmatmul.mubr.msk.bf16.gmra.mrb[48].mxu1 %vm1325_vm5, %v29326_v48  ;;  %v33762_v48 = vmov 0.0  }
 0x367   : > { %24294 = vmatprep.mubr.msk.bf16.mxu1 %vm1325_vm5, %v29328_v47  ;;  %833 = vst.msk [vmem:[#allocation3 + $0x10] sm:$0xf] %vm832_vm7, %v33762_v48  ;;  %836 = vst.msk [vmem:[#allocation3 + $0x28] sm:$0xf] %vm832_vm7, %v33762_v48 }
 0x368   : > { %840 = vst.msk [vmem:[#allocation3 + $0x1c0] sm:$0xf] %vm832_vm7, %v33762_v48  ;;  %843 = vst.msk [vmem:[#allocation3 + $0x1d8] sm:$0xf] %vm832_vm7, %v33762_v48 }
 0x369   : > { %864 = vst.msk [vmem:[#allocation3 + $0x12] sm:$0x3] %vm787_vm4, %v33762_v48  ;;  %865 = vst.msk [vmem:[#allocation3 + $0x2a] sm:$0x3] %vm787_vm4, %v33762_v48 }
 0x36a   : > { %882 = vst.msk [vmem:[#allocation3 + $0x1c2] sm:$0x3] %vm787_vm4, %v33762_v48  ;;  %883 = vst.msk [vmem:[#allocation3 + $0x1da] sm:$0x3] %vm787_vm4, %v33762_v48 }
 0x36e   : > { %24295 = vmatmul.mubr.msk.bf16.gmra.mrb[52].mxu1 %vm1325_vm5, %v29334_v42  ;;  %v4095_v42 = vld [vmem:[#allocation3 + $0xa] sm:$0xff]  ;;  %v4097_v53 = vld [vmem:[#allocation3 + $0x22] sm:$0xff] }
 0x36f   : > { %24298 = vmatprep.mubr.msk.bf16.mxu1 %vm1325_vm5, %v29336_v41  ;;  %v4094_v41 = vld [vmem:[#allocation3 + $0x2] sm:$0xff]  ;;  %v4127_v55 = vpack.c.bf16 %v4097_v53, %v4096_v37 }
 0x370   : > { %v4126_v47 = vpack.c.bf16 %v4095_v42, %v4094_v41 }
 0x376   : > { %24299 = vmatmul.mubr.msk.bf16.gmra.mrb[56].mxu1 %vm1325_vm5, %v29342_v58  ;;  %v4048_v58 = vld [vmem:[#allocation3 + $0x20] sm:$0xff] }
 0x377   : > { %24302 = vmatprep.mubr.msk.bf16.mxu1 %vm1325_vm5, %v29459_v19  ;;  %v4078_v40 = vpack.c.bf16 %v4048_v58, %v4047_v7  ;;  %v28327_v19 = vld [vmem:[%s33763_s27] sm:$0xff]  }
 0x378   : > { %24612 = vmatprep.subr.bf16.mxu1 %v28327_v19 }
 0x379   : > { %24343 = vmatmul.mubr.msk.bf16.vlgmr.msra.gmra.mrb[0].mxu0 %vm784_vm3, %v4078_v40 }
 0x37a   : > { %24375 = vmatpush3.bf16.msra.mxu0 %v4668_v25 }
 0x37b   : > { %28220 = vmatprep.subr.msk.bf16.mxu0 %vm4192_vm6, %v29601_v12 }
 0x37e   : > { %24303 = vmatmul.mubr.msk.bf16.gmra.mrb[60].mxu1 %vm1325_vm5, %v3694_v26 }
 0x37f   : > { %24308 = vmatprep.mubr.msk.bf16.mxu1 %vm784_vm3, %v4126_v47 }
 0x386   : > { %24309 = vmatmul.mubr.msk.bf16.vlgmr.msra.gmra.mrb[64].mxu1 %vm784_vm3, %v4127_v55 }
 0x387   : > { %24613 = vmatpush3.bf16.msra.mxu1 %v28327_v19 }
 0x388   : > { %24614 = vmatprep.subr.bf16.mxu1 %v28328_v8 }
 0x38b   : > { %24615 = vmatpush3.bf16.msra.mxu1 %v28328_v8 }
 0x419   : > { %v24276_v34 = vpop.f32.mrb[32].mxu1 }
 0x41a   : > { %v3950_v50 = vadd.f32 %v24276_v34, %v29592_v32  ;;  %v3782_v56 = vpop.f32.mrb[33].mxu1 }
 0x41b   : > { %v3948_v1 = vadd.f32 %v29592_v32, %v3782_v56  ;;  %v24277_v5 = vpop.f32.mrb[34].mxu1 }
 0x41c   : > { %v3982_v27 = vmax.f32 %v3950_v50, 0.0  ;;  %v3951_v43 = vadd.f32 %v24277_v5, %v29592_v32  ;;  %v3785_v38 = vpop.f32.mrb[35].mxu1 }
 0x41d   : > { %v3980_v46 = vmax.f32 %v3948_v1, 0.0  ;;  %v3949_v60 = vadd.f32 %v29592_v32, %v3785_v38 }
 0x41e   : > { %4015 = vst.msk [vmem:[#allocation3 + $0x4a] sm:$0xff] %vm784_vm3, %v3982_v27  ;;  %v3983_v49 = vmax.f32 %v3951_v43, 0.0 }
 0x41f   : > { %4013 = vst.msk [vmem:[#allocation3 + $0x32] sm:$0xff] %vm784_vm3, %v3980_v46  ;;  %v3981_v22 = vmax.f32 %v3949_v60, 0.0 }
 0x420   : > { %4016 = vst.msk [vmem:[#allocation3 + $0x52] sm:$0xff] %vm784_vm3, %v3983_v49 }
 0x421   : > { %4014 = vst.msk [vmem:[#allocation3 + $0x3a] sm:$0xff] %vm784_vm3, %v3981_v22  ;;  %v24280_v13 = vpop.f32.mrb[36].mxu1 }
 0x422   : > { %v3954_v20 = vadd.f32 %v24280_v13, %v29592_v32  ;;  %v3798_v31 = vpop.f32.mrb[37].mxu1 }
 0x423   : > { %v3952_v16 = vadd.f32 %v29592_v32, %v3798_v31  ;;  %v24281_v21 = vpop.f32.mrb[38].mxu1 }
 0x424   : > { %v3986_v44 = vmax.f32 %v3954_v20, 0.0  ;;  %v3955_v61 = vadd.f32 %v24281_v21, %v29592_v32  ;;  %v3801_v63 = vpop.f32.mrb[39].mxu1 }
 0x425   : > { %v3984_v14 = vmax.f32 %v3952_v16, 0.0  ;;  %v3953_v39 = vadd.f32 %v29592_v32, %v3801_v63  ;;  %v4100_v42 = vld [vmem:[#allocation3 + $0x4a] sm:$0xff] }
 0x426   : > { %4019 = vst.msk [vmem:[#allocation3 + $0x7a] sm:$0xff] %vm784_vm3, %v3986_v44  ;;  %v3987_v45 = vmax.f32 %v3955_v61, 0.0  ;;  %v4098_v54 = vld [vmem:[#allocation3 + $0x32] sm:$0xff]  ;;  %v4051_v47 = vld [vmem:[#allocation3 + $0x48] sm:$0xff] }
 0x427   : > { %4017 = vst.msk [vmem:[#allocation3 + $0x62] sm:$0xff] %vm784_vm3, %v3984_v14  ;;  %v3985_v0 = vmax.f32 %v3953_v39, 0.0  ;;  %v4101_v59 = vld [vmem:[#allocation3 + $0x52] sm:$0xff] }
 0x428   : > { %v4052_v62 = vld [vmem:[#allocation3 + $0x50] sm:$0xff]  ;;  %4020 = vst.msk [vmem:[#allocation3 + $0x82] sm:$0xff] %vm784_vm3, %v3987_v45  ;;  %v4099_v6 = vld [vmem:[#allocation3 + $0x3a] sm:$0xff]  ;;  %v29622_v53 = vpack.c.bf16 %v4101_v59, %v4100_v42 }
 0x429   : > { %v4049_v2 = vld [vmem:[#allocation3 + $0x30] sm:$0xff]  ;;  %v4050_v52 = vld [vmem:[#allocation3 + $0x38] sm:$0xff]  ;;  %4018 = vst.msk [vmem:[#allocation3 + $0x6a] sm:$0xff] %vm784_vm3, %v3985_v0  ;;  %v24284_v51 = vpop.f32.mrb[40].mxu1  ;;  %v29617_v26 = vpack.c.bf16 %v4099_v6, %v4098_v54  ;;  %v29624_v55 = vpack.c.bf16 %v4052_v62, %v4051_v47 }
 0x42a   : > { %v29619_v41 = vpack.c.bf16 %v4050_v52, %v4049_v2  ;;  %v3958_v28 = vadd.f32 %v24284_v51, %v29592_v32  ;;  %v3814_v37 = vpop.f32.mrb[41].mxu1 }
 0x42b   : > { %v3956_v11 = vadd.f32 %v29592_v32, %v3814_v37  ;;  %v24285_v57 = vpop.f32.mrb[42].mxu1  ;;  %24312 = vmatprep.mubr.msk.bf16.mxu1 %vm784_vm3, %v29617_v26 }
 0x42c   : > { %24346 = vmatprep.mubr.msk.bf16.mxu0 %vm784_vm3, %v29619_v41  ;;  %v3990_v33 = vmax.f32 %v3958_v28, 0.0  ;;  %v3959_v3 = vadd.f32 %v24285_v57, %v29592_v32  ;;  %v3817_v7 = vpop.f32.mrb[43].mxu1  ;;  %24313 = vmatmul.mubr.msk.bf16.gmra.mrb[68].mxu1 %vm784_vm3, %v29622_v53 }
 0x42d   : > { %24347 = vmatmul.mubr.msk.bf16.gmra.mrb[4].mxu0 %vm784_vm3, %v29624_v55  ;;  %v3988_v58 = vmax.f32 %v3956_v11, 0.0  ;;  %v3957_v40 = vadd.f32 %v29592_v32, %v3817_v7  ;;  %v4104_v38 = vld [vmem:[#allocation3 + $0x7a] sm:$0xff] }
 0x42e   : > { %4023 = vst.msk [vmem:[#allocation3 + $0xaa] sm:$0xff] %vm784_vm3, %v3990_v33  ;;  %v3991_v19 = vmax.f32 %v3959_v3, 0.0  ;;  %v4102_v15 = vld [vmem:[#allocation3 + $0x62] sm:$0xff]  ;;  %v4055_v46 = vld [vmem:[#allocation3 + $0x78] sm:$0xff] }
 0x42f   : > { %4021 = vst.msk [vmem:[#allocation3 + $0x92] sm:$0xff] %vm784_vm3, %v3988_v58  ;;  %v3989_v8 = vmax.f32 %v3957_v40, 0.0  ;;  %v4105_v25 = vld [vmem:[#allocation3 + $0x82] sm:$0xff] }
 0x430   : > { %v4056_v34 = vld [vmem:[#allocation3 + $0x80] sm:$0xff]  ;;  %4024 = vst.msk [vmem:[#allocation3 + $0xb2] sm:$0xff] %vm784_vm3, %v3991_v19  ;;  %v4103_v50 = vld [vmem:[#allocation3 + $0x6a] sm:$0xff]  ;;  %v29646_v22 = vpack.c.bf16 %v4105_v25, %v4104_v38 }
 0x431   : > { %v4053_v56 = vld [vmem:[#allocation3 + $0x60] sm:$0xff]  ;;  %v4054_v1 = vld [vmem:[#allocation3 + $0x68] sm:$0xff]  ;;  %4022 = vst.msk [vmem:[#allocation3 + $0x9a] sm:$0xff] %vm784_vm3, %v3989_v8  ;;  %v24288_v5 = vpop.f32.mrb[44].mxu1  ;;  %v29641_v27 = vpack.c.bf16 %v4103_v50, %v4102_v15  ;;  %v29648_v13 = vpack.c.bf16 %v4056_v34, %v4055_v46 }
 0x432   : > { %v29643_v43 = vpack.c.bf16 %v4054_v1, %v4053_v56  ;;  %v3962_v60 = vadd.f32 %v24288_v5, %v29592_v32  ;;  %v3830_v49 = vpop.f32.mrb[45].mxu1 }
 0x433   : > { %v3960_v20 = vadd.f32 %v29592_v32, %v3830_v49  ;;  %v24289_v31 = vpop.f32.mrb[46].mxu1  ;;  %24316 = vmatprep.mubr.msk.bf16.mxu1 %vm784_vm3, %v29641_v27 }
 0x434   : > { %24350 = vmatprep.mubr.msk.bf16.mxu0 %vm784_vm3, %v29643_v43  ;;  %v3994_v16 = vmax.f32 %v3962_v60, 0.0  ;;  %v3963_v21 = vadd.f32 %v24289_v31, %v29592_v32  ;;  %v3833_v44 = vpop.f32.mrb[47].mxu1  ;;  %24317 = vmatmul.mubr.msk.bf16.gmra.mrb[72].mxu1 %vm784_vm3, %v29646_v22 }
 0x435   : > { %24351 = vmatmul.mubr.msk.bf16.gmra.mrb[8].mxu0 %vm784_vm3, %v29648_v13  ;;  %v3992_v61 = vmax.f32 %v3960_v20, 0.0  ;;  %v3961_v63 = vadd.f32 %v29592_v32, %v3833_v44  ;;  %v4108_v42 = vld [vmem:[#allocation3 + $0xaa] sm:$0xff] }
 0x436   : > { %4027 = vst.msk [vmem:[#allocation3 + $0xda] sm:$0xff] %vm784_vm3, %v3994_v16  ;;  %v3995_v14 = vmax.f32 %v3963_v21, 0.0  ;;  %v4106_v45 = vld [vmem:[#allocation3 + $0x92] sm:$0xff]  ;;  %v4059_v47 = vld [vmem:[#allocation3 + $0xa8] sm:$0xff] }
 0x437   : > { %4025 = vst.msk [vmem:[#allocation3 + $0xc2] sm:$0xff] %vm784_vm3, %v3992_v61  ;;  %v3993_v39 = vmax.f32 %v3961_v63, 0.0  ;;  %v4109_v0 = vld [vmem:[#allocation3 + $0xb2] sm:$0xff] }
 0x438   : > { %v4060_v54 = vld [vmem:[#allocation3 + $0xb0] sm:$0xff]  ;;  %4028 = vst.msk [vmem:[#allocation3 + $0xe2] sm:$0xff] %vm784_vm3, %v3995_v14  ;;  %v4107_v59 = vld [vmem:[#allocation3 + $0x9a] sm:$0xff]  ;;  %v29670_v11 = vpack.c.bf16 %v4109_v0, %v4108_v42 }
 0x439   : > { %v4057_v62 = vld [vmem:[#allocation3 + $0x90] sm:$0xff]  ;;  %v4058_v6 = vld [vmem:[#allocation3 + $0x98] sm:$0xff]  ;;  %4026 = vst.msk [vmem:[#allocation3 + $0xca] sm:$0xff] %vm784_vm3, %v3993_v39  ;;  %v24292_v2 = vpop.f32.mrb[48].mxu1  ;;  %v29665_v52 = vpack.c.bf16 %v4107_v59, %v4106_v45  ;;  %v29672_v57 = vpack.c.bf16 %v4060_v54, %v4059_v47 }
 0x43a   : > { %v29667_v51 = vpack.c.bf16 %v4058_v6, %v4057_v62  ;;  %v3966_v28 = vadd.f32 %v24292_v2, %v29592_v32  ;;  %v3846_v37 = vpop.f32.mrb[49].mxu1 }
 0x43b   : > { %v3964_v33 = vadd.f32 %v29592_v32, %v3846_v37  ;;  %v24293_v3 = vpop.f32.mrb[50].mxu1  ;;  %24320 = vmatprep.mubr.msk.bf16.mxu1 %vm784_vm3, %v29665_v52 }
 0x43c   : > { %24354 = vmatprep.mubr.msk.bf16.mxu0 %vm784_vm3, %v29667_v51  ;;  %v3998_v7 = vmax.f32 %v3966_v28, 0.0  ;;  %v3967_v58 = vadd.f32 %v24293_v3, %v29592_v32  ;;  %v3849_v40 = vpop.f32.mrb[51].mxu1  ;;  %24321 = vmatmul.mubr.msk.bf16.gmra.mrb[76].mxu1 %vm784_vm3, %v29670_v11 }
 0x43d   : > { %24355 = vmatmul.mubr.msk.bf16.gmra.mrb[12].mxu0 %vm784_vm3, %v29672_v57  ;;  %v3996_v19 = vmax.f32 %v3964_v33, 0.0  ;;  %v3965_v8 = vadd.f32 %v29592_v32, %v3849_v40  ;;  %v4112_v20 = vld [vmem:[#allocation3 + $0xda] sm:$0xff] }
 0x43e   : > { %4031 = vst.msk [vmem:[#allocation3 + $0x10a] sm:$0xff] %vm784_vm3, %v3998_v7  ;;  %v3999_v15 = vmax.f32 %v3967_v58, 0.0  ;;  %v4110_v34 = vld [vmem:[#allocation3 + $0xc2] sm:$0xff]  ;;  %v4063_v31 = vld [vmem:[#allocation3 + $0xd8] sm:$0xff] }
 0x43f   : > { %4029 = vst.msk [vmem:[#allocation3 + $0xf2] sm:$0xff] %vm784_vm3, %v3996_v19  ;;  %v3997_v25 = vmax.f32 %v3965_v8, 0.0  ;;  %v4113_v50 = vld [vmem:[#allocation3 + $0xe2] sm:$0xff] }
 0x440   : > { %v4064_v56 = vld [vmem:[#allocation3 + $0xe0] sm:$0xff]  ;;  %4032 = vst.msk [vmem:[#allocation3 + $0x112] sm:$0xff] %vm784_vm3, %v3999_v15  ;;  %v4111_v1 = vld [vmem:[#allocation3 + $0xca] sm:$0xff]  ;;  %v29694_v44 = vpack.c.bf16 %v4113_v50, %v4112_v20 }
 0x441   : > { %v4061_v5 = vld [vmem:[#allocation3 + $0xc0] sm:$0xff]  ;;  %v4062_v38 = vld [vmem:[#allocation3 + $0xc8] sm:$0xff]  ;;  %4030 = vst.msk [vmem:[#allocation3 + $0xfa] sm:$0xff] %vm784_vm3, %v3997_v25  ;;  %v24296_v46 = vpop.f32.mrb[52].mxu1  ;;  %v29689_v60 = vpack.c.bf16 %v4111_v1, %v4110_v34  ;;  %v29696_v61 = vpack.c.bf16 %v4064_v56, %v4063_v31 }
 0x442   : > { %v29691_v49 = vpack.c.bf16 %v4062_v38, %v4061_v5  ;;  %v3970_v16 = vadd.f32 %v24296_v46, %v29592_v32  ;;  %v3862_v21 = vpop.f32.mrb[53].mxu1 }
 0x443   : > { %v3968_v63 = vadd.f32 %v29592_v32, %v3862_v21  ;;  %v24297_v14 = vpop.f32.mrb[54].mxu1  ;;  %24324 = vmatprep.mubr.msk.bf16.mxu1 %vm784_vm3, %v29689_v60 }
 0x444   : > { %24358 = vmatprep.mubr.msk.bf16.mxu0 %vm784_vm3, %v29691_v49  ;;  %v4002_v39 = vmax.f32 %v3970_v16, 0.0  ;;  %v3971_v45 = vadd.f32 %v24297_v14, %v29592_v32  ;;  %v3865_v0 = vpop.f32.mrb[55].mxu1  ;;  %24325 = vmatmul.mubr.msk.bf16.gmra.mrb[80].mxu1 %vm784_vm3, %v29694_v44 }
 0x445   : > { %24359 = vmatmul.mubr.msk.bf16.gmra.mrb[16].mxu0 %vm784_vm3, %v29696_v61  ;;  %v4000_v54 = vmax.f32 %v3968_v63, 0.0  ;;  %v3969_v59 = vadd.f32 %v29592_v32, %v3865_v0  ;;  %v4116_v40 = vld [vmem:[#allocation3 + $0x10a] sm:$0xff] }
 0x446   : > { %4035 = vst.msk [vmem:[#allocation3 + $0x13a] sm:$0xff] %vm784_vm3, %v4002_v39  ;;  %v4003_v62 = vmax.f32 %v3971_v45, 0.0  ;;  %v4114_v2 = vld [vmem:[#allocation3 + $0xf2] sm:$0xff]  ;;  %v4067_v19 = vld [vmem:[#allocation3 + $0x108] sm:$0xff] }
 0x447   : > { %4033 = vst.msk [vmem:[#allocation3 + $0x122] sm:$0xff] %vm784_vm3, %v4000_v54  ;;  %v4001_v6 = vmax.f32 %v3969_v59, 0.0  ;;  %v4117_v42 = vld [vmem:[#allocation3 + $0x112] sm:$0xff] }
 0x448   : > { %v4068_v47 = vld [vmem:[#allocation3 + $0x110] sm:$0xff]  ;;  %4036 = vst.msk [vmem:[#allocation3 + $0x142] sm:$0xff] %vm784_vm3, %v4003_v62  ;;  %v4115_v28 = vld [vmem:[#allocation3 + $0xfa] sm:$0xff]  ;;  %v29718_v25 = vpack.c.bf16 %v4117_v42, %v4116_v40 }
 0x449   : > { %v4065_v37 = vld [vmem:[#allocation3 + $0xf0] sm:$0xff]  ;;  %v4066_v33 = vld [vmem:[#allocation3 + $0xf8] sm:$0xff]  ;;  %4034 = vst.msk [vmem:[#allocation3 + $0x12a] sm:$0xff] %vm784_vm3, %v4001_v6  ;;  %v24300_v3 = vpop.f32.mrb[56].mxu1  ;;  %v29713_v7 = vpack.c.bf16 %v4115_v28, %v4114_v2  ;;  %v29720_v34 = vpack.c.bf16 %v4068_v47, %v4067_v19 }
 0x44a   : > { %v29715_v58 = vpack.c.bf16 %v4066_v33, %v4065_v37  ;;  %v3974_v8 = vadd.f32 %v24300_v3, %v29592_v32  ;;  %v3878_v15 = vpop.f32.mrb[57].mxu1 }
 0x44b   : > { %v3972_v50 = vadd.f32 %v29592_v32, %v3878_v15  ;;  %v24301_v56 = vpop.f32.mrb[58].mxu1  ;;  %24328 = vmatprep.mubr.msk.bf16.mxu1 %vm784_vm3, %v29713_v7 }
 0x44c   : > { %24362 = vmatprep.mubr.msk.bf16.mxu0 %vm784_vm3, %v29715_v58  ;;  %v4006_v1 = vmax.f32 %v3974_v8, 0.0  ;;  %v3975_v5 = vadd.f32 %v24301_v56, %v29592_v32  ;;  %v3881_v38 = vpop.f32.mrb[59].mxu1  ;;  %24329 = vmatmul.mubr.msk.bf16.gmra.mrb[84].mxu1 %vm784_vm3, %v29718_v25 }
 0x44d   : > { %24363 = vmatmul.mubr.msk.bf16.gmra.mrb[20].mxu0 %vm784_vm3, %v29720_v34  ;;  %v4004_v46 = vmax.f32 %v3972_v50, 0.0  ;;  %v3973_v20 = vadd.f32 %v29592_v32, %v3881_v38  ;;  %v4120_v6 = vld [vmem:[#allocation3 + $0x13a] sm:$0xff] }
 0x44e   : > { %4039 = vst.msk [vmem:[#allocation3 + $0x16a] sm:$0xff] %vm784_vm3, %v4006_v1  ;;  %v4007_v31 = vmax.f32 %v3975_v5, 0.0  ;;  %v4118_v21 = vld [vmem:[#allocation3 + $0x122] sm:$0xff]  ;;  %v4071_v2 = vld [vmem:[#allocation3 + $0x138] sm:$0xff]  ;;  %v4570_v5 = vld [vmem:[#allocation3 + $0xc] sm:$0xff] }
 0x44f   : > { %4037 = vst.msk [vmem:[#allocation3 + $0x152] sm:$0xff] %vm784_vm3, %v4004_v46  ;;  %v4005_v16 = vmax.f32 %v3973_v20, 0.0  ;;  %v4121_v63 = vld [vmem:[#allocation3 + $0x142] sm:$0xff]  ;;  %v5764_v48 = vld [vmem:[#allocation3 + $0x138] sm:$0xff] }
 0x450   : > { %v4072_v14 = vld [vmem:[#allocation3 + $0x140] sm:$0xff]  ;;  %4040 = vst.msk [vmem:[#allocation3 + $0x172] sm:$0xff] %vm784_vm3, %v4007_v31  ;;  %v4119_v39 = vld [vmem:[#allocation3 + $0x12a] sm:$0xff]  ;;  %v29742_v28 = vpack.c.bf16 %v4121_v63, %v4120_v6 }
 0x451   : > { %v4069_v45 = vld [vmem:[#allocation3 + $0x120] sm:$0xff]  ;;  %v4070_v0 = vld [vmem:[#allocation3 + $0x128] sm:$0xff]  ;;  %4038 = vst.msk [vmem:[#allocation3 + $0x15a] sm:$0xff] %vm784_vm3, %v4005_v16  ;;  %v24304_v54 = vpop.f32.mrb[60].mxu1  ;;  %v29737_v59 = vpack.c.bf16 %v4119_v39, %v4118_v21  ;;  %v29744_v37 = vpack.c.bf16 %v4072_v14, %v4071_v2 }
 0x452   : > { %v29739_v62 = vpack.c.bf16 %v4070_v0, %v4069_v45  ;;  %v3978_v42 = vadd.f32 %v24304_v54, %v29592_v32  ;;  %v3894_v47 = vpop.f32.mrb[61].mxu1  ;;  %v4569_v1 = vld [vmem:[#allocation3 + $0x4] sm:$0xff]  ;;  %v4571_v2 = vld [vmem:[#allocation3 + $0x1c] sm:$0xff] }
 0x453   : > { %v3976_v33 = vadd.f32 %v29592_v32, %v3894_v47  ;;  %v24305_v3 = vpop.f32.mrb[62].mxu1  ;;  %24332 = vmatprep.mubr.msk.bf16.mxu1 %vm784_vm3, %v29737_v59  ;;  %v4601_v0 = vpack.c.bf16 %v4570_v5, %v4569_v1 }
 0x454   : > { %24366 = vmatprep.mubr.msk.bf16.mxu0 %vm784_vm3, %v29739_v62  ;;  %v4010_v40 = vmax.f32 %v3978_v42, 0.0  ;;  %v3979_v19 = vadd.f32 %v24305_v3, %v29592_v32  ;;  %v3897_v8 = vpop.f32.mrb[63].mxu1  ;;  %24333 = vmatmul.mubr.msk.bf16.gmra.mrb[88].mxu1 %vm784_vm3, %v29742_v28  ;;  %v4572_v42 = vld [vmem:[#allocation3 + $0x24] sm:$0xff]  ;;  %v4574_v3 = vld [vmem:[#allocation3 + $0x3c] sm:$0xff] }
 0x455   : > { %24367 = vmatmul.mubr.msk.bf16.gmra.mrb[24].mxu0 %vm784_vm3, %v29744_v37  ;;  %v4008_v15 = vmax.f32 %v3976_v33, 0.0  ;;  %v3977_v50 = vadd.f32 %v29592_v32, %v3897_v8  ;;  %v4124_v39 = vld [vmem:[#allocation3 + $0x16a] sm:$0xff]  ;;  %v4602_v47 = vpack.c.bf16 %v4572_v42, %v4571_v2  ;;  %v4573_v33 = vld [vmem:[#allocation3 + $0x34] sm:$0xff]  ;;  %v29790_v8 = vld [vmem:[%s33761_s24 + $0x10] sm:$0xf] }
 0x456   : > { %4043 = vst.msk [vmem:[#allocation3 + $0x19a] sm:$0xff] %vm784_vm3, %v4010_v40  ;;  %v4011_v56 = vmax.f32 %v3979_v19, 0.0  ;;  %v4122_v46 = vld [vmem:[#allocation3 + $0x152] sm:$0xff]  ;;  %v4075_v45 = vld [vmem:[#allocation3 + $0x168] sm:$0xff]  ;;  %v29780_v40 = vpack.c.bf16 %v4574_v3, %v4573_v33  ;;  %v4962_v19 = vsel %vm4192_vm6, %v29601_v12, 0 }
 0x457   : > { %4041 = vst.msk [vmem:[#allocation3 + $0x182] sm:$0xff] %vm784_vm3, %v4008_v15  ;;  %v4009_v38 = vmax.f32 %v3977_v50, 0.0  ;;  %v4125_v20 = vld [vmem:[#allocation3 + $0x172] sm:$0xff]  ;;  %v4577_v12 = vld [vmem:[#allocation3 + $0x64] sm:$0xff] }
 0x458   : > { %v4076_v31 = vld [vmem:[#allocation3 + $0x170] sm:$0xff]  ;;  %4044 = vst.msk [vmem:[#allocation3 + $0x1a2] sm:$0xff] %vm784_vm3, %v4011_v56  ;;  %v4123_v16 = vld [vmem:[#allocation3 + $0x15a] sm:$0xff]  ;;  %v29765_v54 = vpack.c.bf16 %v4125_v20, %v4124_v39 }
 0x459   : > { %v4073_v21 = vld [vmem:[#allocation3 + $0x150] sm:$0xff]  ;;  %v4074_v63 = vld [vmem:[#allocation3 + $0x158] sm:$0xff]  ;;  %4042 = vst.msk [vmem:[#allocation3 + $0x18a] sm:$0xff] %vm784_vm3, %v4009_v38  ;;  %v29761_v14 = vpack.c.bf16 %v4123_v16, %v4122_v46  ;;  %v29767_v6 = vpack.c.bf16 %v4076_v31, %v4075_v45  ;;  %v4580_v46 = vld [vmem:[#allocation3 + $0x84] sm:$0xff]  ;;  %v29822_v45 = vpop.f32.mrb[64].mxu1 }
 0x45a   : > { %v29763_v32 = vpack.c.bf16 %v4074_v63, %v4073_v21  ;;  %v4575_v15 = vld [vmem:[#allocation3 + $0x4c] sm:$0xff]  ;;  %v4576_v50 = vld [vmem:[#allocation3 + $0x54] sm:$0xff]  ;;  %v4579_v38 = vld [vmem:[#allocation3 + $0x7c] sm:$0xff]  ;;  %v29824_v42 = vpop.f32.mrb[65].mxu1 }
 0x45b   : > { %24336 = vmatprep.mubr.msk.bf16.mxu1 %vm784_vm3, %v29761_v14  ;;  %v4578_v56 = vld [vmem:[#allocation3 + $0x6c] sm:$0xff]  ;;  %v29798_v1 = vpack.c.bf16 %v4576_v50, %v4575_v15  ;;  %v4581_v20 = vld [vmem:[#allocation3 + $0x94] sm:$0xff]  ;;  %v4582_v31 = vld [vmem:[#allocation3 + $0x9c] sm:$0xff]  ;;  %v29810_v16 = vpack.c.bf16 %v4580_v46, %v4579_v38 }
 0x45c   : > { %24370 = vmatprep.mubr.msk.bf16.mxu0 %vm784_vm3, %v29763_v32  ;;  %24337 = vmatmul.mubr.msk.bf16.gmra.mrb[92].mxu1 %vm784_vm3, %v29765_v54  ;;  %v29800_v5 = vpack.c.bf16 %v4578_v56, %v4577_v12  ;;  %v29812_v21 = vpack.c.bf16 %v4582_v31, %v4581_v20  ;;  %v4583_v63 = vld [vmem:[#allocation3 + $0xac] sm:$0xff]  ;;  %v4584_v39 = vld [vmem:[#allocation3 + $0xb4] sm:$0xff]  ;;  %v4587_v15 = vld [vmem:[#allocation3 + $0xdc] sm:$0xff] }
 0x45d   : > { %24371 = vmatmul.mubr.msk.bf16.gmra.mrb[28].mxu0 %vm784_vm3, %v29767_v6  ;;  %24616 = vmatprep.mubr.msk.bf16.mxu1 %vm1114_vm0, %v28692_v4  ;;  %v4586_v2 = vld [vmem:[#allocation3 + $0xcc] sm:$0xff]  ;;  %v29828_v33 = vpack.c.bf16 %v4584_v39, %v4583_v63  ;;  %v4588_v50 = vld [vmem:[#allocation3 + $0xe4] sm:$0xff]  ;;  %v4589_v12 = vld [vmem:[#allocation3 + $0xf4] sm:$0xff] }
 0x45e   : > { %24376 = vmatprep.mubr.msk.bf16.mxu0 %vm784_vm3, %v4601_v0  ;;  %v4585_v0 = vld [vmem:[#allocation3 + $0xc4] sm:$0xff]  ;;  %v4590_v56 = vld [vmem:[#allocation3 + $0xfc] sm:$0xff]  ;;  %v29842_v38 = vpack.c.bf16 %v4588_v50, %v4587_v15  ;;  %v21909_v20 = vld [vmem:[%s33765_s28 + $0x2] sm:$0x3] }
 0x45f   : > { %v29844_v46 = vpack.c.bf16 %v4590_v56, %v4589_v12  ;;  %28226 = vmatprep.subr.msk.bf16.mxu1 %vm1505_vm1, %v21909_v20  ;;  %v4591_v31 = vld [vmem:[#allocation3 + $0x10c] sm:$0xff]  ;;  %v4592_v63 = vld [vmem:[#allocation3 + $0x114] sm:$0xff]  ;;  %v7031_v39 = vsel %vm1505_vm1, %v21909_v20, 0  ;;  %v4595_v20 = vld [vmem:[#allocation3 + $0x13c] sm:$0xff] }
 0x460   : > { %v29859_v15 = vpack.c.bf16 %v4592_v63, %v4591_v31  ;;  %v33766_v12 = vld [vmem:[#allocation29_spill] sm:$0xff]  ;;  %v33767_v56 = vld [vmem:[#allocation30_spill] sm:$0xff] }
 0x461   : > { %v6040_v4 = vld [vmem:[#allocation3 + $0x62] sm:$0xff] }
 0x464   : > { %24617 = vmatmul.mubr.msk.bf16.vlgmr.msra.gmra.mrb[96].mxu1 %vm1114_vm0, %v28700_v9 }
 0x465   : > { %24377 = vmatmul.mubr.msk.bf16.vlgmr.msra.gmra.mrb[0].mxu0 %vm784_vm3, %v4602_v47  ;;  %24620 = vmatprep.mubr.msk.bf16.mxu1 %vm1114_vm0, %v28702_v10  ;;  %v29826_v47 = vpop.f32.mrb[66].mxu1 }
 0x466   : > { %24380 = vmatprep.mubr.msk.bf16.mxu0 %vm784_vm3, %v29780_v40  ;;  %24409 = vmatpush3.bf16.msra.mxu0 %v4962_v19  ;;  %v29830_v3 = vpop.f32.mrb[67].mxu1  ;;  %v29832_v19 = vpack.c.bf16 %v4586_v2, %v4585_v0  ;;  %v4593_v0 = vld [vmem:[#allocation3 + $0x124] sm:$0xff]  ;;  %v4594_v2 = vld [vmem:[#allocation3 + $0x12c] sm:$0xff] }
 0x467   : > { %28221 = vmatprep.subr.msk.bf16.mxu0 %vm4192_vm6, %v29790_v8  ;;  %24649 = vmatpush3.bf16.msra.mxu1 %v7031_v39  ;;  %v29861_v50 = vpack.c.bf16 %v4594_v2, %v4593_v0  ;;  %v4598_v39 = vld [vmem:[#allocation3 + $0x15c] sm:$0xff] }
 0x468   : > { %v33768_v0 = vld [vmem:[#allocation31_spill] sm:$0xff]  ;;  %v33769_v2 = vld [vmem:[#allocation32_spill] sm:$0xff] }
 0x46c   : > { %24621 = vmatmul.mubr.msk.bf16.gmra.mrb[100].mxu1 %vm1114_vm0, %v28717_v17 }
 0x46d   : > { %24381 = vmatmul.mubr.msk.bf16.gmra.mrb[4].mxu0 %vm784_vm3, %v29798_v1  ;;  %24624 = vmatprep.mubr.msk.bf16.mxu1 %vm1114_vm0, %v28719_v18 }
 0x46e   : > { %24384 = vmatprep.mubr.msk.bf16.mxu0 %vm784_vm3, %v29800_v5 }
 0x474   : > { %24625 = vmatmul.mubr.msk.bf16.gmra.mrb[104].mxu1 %vm1114_vm0, %v28729_v23 }
 0x475   : > { %24385 = vmatmul.mubr.msk.bf16.gmra.mrb[8].mxu0 %vm784_vm3, %v29810_v16  ;;  %24628 = vmatprep.mubr.msk.bf16.mxu1 %vm1114_vm0, %v28731_v24 }
 0x476   : > { %24388 = vmatprep.mubr.msk.bf16.mxu0 %vm784_vm3, %v29812_v21 }
 0x47c   : > { %24629 = vmatmul.mubr.msk.bf16.gmra.mrb[108].mxu1 %vm1114_vm0, %v28741_v29 }
 0x47d   : > { %24389 = vmatmul.mubr.msk.bf16.gmra.mrb[12].mxu0 %vm784_vm3, %v29828_v33  ;;  %24632 = vmatprep.mubr.msk.bf16.mxu1 %vm1114_vm0, %v28743_v30 }
 0x47e   : > { %24392 = vmatprep.mubr.msk.bf16.mxu0 %vm784_vm3, %v29832_v19 }
 0x484   : > { %24633 = vmatmul.mubr.msk.bf16.gmra.mrb[112].mxu1 %vm1114_vm0, %v28753_v35  ;;  %v4597_v35 = vld [vmem:[#allocation3 + $0x154] sm:$0xff] }
 0x485   : > { %24393 = vmatmul.mubr.msk.bf16.gmra.mrb[16].mxu0 %vm784_vm3, %v29842_v38  ;;  %24636 = vmatprep.mubr.msk.bf16.mxu1 %vm1114_vm0, %v28755_v36  ;;  %v4596_v36 = vld [vmem:[#allocation3 + $0x144] sm:$0xff]  ;;  %v29873_v63 = vpack.c.bf16 %v4598_v39, %v4597_v35 }
 0x486   : > { %24396 = vmatprep.mubr.msk.bf16.mxu0 %vm784_vm3, %v29844_v46  ;;  %v29871_v31 = vpack.c.bf16 %v4596_v36, %v4595_v20  ;;  %v33770_v35 = vld [vmem:[#allocation33_spill] sm:$0xff]  ;;  %v5256_v36 = vsel %vm4192_vm6, %v29790_v8, 0  ;;  %v21821_v20 = vld [vmem:[%s33761_s24 + $0x14] sm:$0xf] }
 0x487   : > { %v5185_v8 = vld [vmem:[#allocation3 + $0x182] sm:$0xff] }
 0x48c   : > { %24637 = vmatmul.mubr.msk.bf16.gmra.mrb[116].mxu1 %vm1114_vm0, %v33766_v12  ;;  %v4600_v12 = vld [vmem:[#allocation3 + $0x174] sm:$0xff] }
 0x48d   : > { %24397 = vmatmul.mubr.msk.bf16.gmra.mrb[20].mxu0 %vm784_vm3, %v29859_v15  ;;  %24640 = vmatprep.mubr.msk.bf16.mxu1 %vm1114_vm0, %v33767_v56  ;;  %v4599_v56 = vld [vmem:[#allocation3 + $0x16c] sm:$0xff] }
 0x48e   : > { %24400 = vmatprep.mubr.msk.bf16.mxu0 %vm784_vm3, %v29861_v50  ;;  %v29883_v30 = vpack.c.bf16 %v4600_v12, %v4599_v56 }
 0x494   : > { %24641 = vmatmul.mubr.msk.bf16.gmra.mrb[120].mxu1 %vm1114_vm0, %v33768_v0 }
 0x495   : > { %24401 = vmatmul.mubr.msk.bf16.gmra.mrb[24].mxu0 %vm784_vm3, %v29871_v31  ;;  %24644 = vmatprep.mubr.msk.bf16.mxu1 %vm1114_vm0, %v33769_v2 }
 0x496   : > { %24404 = vmatprep.mubr.msk.bf16.mxu0 %vm784_vm3, %v29873_v63 }
 0x49c   : > { %24645 = vmatmul.mubr.msk.bf16.gmra.mrb[124].mxu1 %vm1114_vm0, %v33770_v35 }
 0x49d   : > { %24405 = vmatmul.mubr.msk.bf16.gmra.mrb[28].mxu0 %vm784_vm3, %v29883_v30 }
 0x49e   : > { %24410 = vmatprep.mubr.msk.bf16.mxu0 %vm784_vm3, %v29619_v41  ;;  %v6932_v41 = vld [vmem:[#allocation2 + $0x1] sm:$0xff] }
 0x4a5   : > { %24411 = vmatmul.mubr.msk.bf16.vlgmr.msra.gmra.mrb[0].mxu0 %vm784_vm3, %v29624_v55  ;;  %v6933_v55 = vld [vmem:[#allocation2 + $0x9] sm:$0xff] }
 0x4a6   : > { %24414 = vmatprep.mubr.msk.bf16.mxu0 %vm784_vm3, %v29643_v43  ;;  %24443 = vmatpush3.bf16.msra.mxu0 %v5256_v36  ;;  %v29920_v43 = vld [vmem:[%s33765_s28] sm:$0x3]  ;;  %v5187_v36 = vld [vmem:[#allocation3 + $0x19a] sm:$0xff] }
 0x4a7   : > { %28222 = vmatprep.subr.msk.bf16.mxu0 %vm4192_vm6, %v21821_v20  ;;  %28227 = vmatprep.subr.msk.bf16.mxu1 %vm1505_vm1, %v29920_v43 }
 0x4ad   : > { %24415 = vmatmul.mubr.msk.bf16.gmra.mrb[4].mxu0 %vm784_vm3, %v29648_v13  ;;  %v6964_v13 = vpack.c.bf16 %v6933_v55, %v6932_v41 }
 0x4ae   : > { %24418 = vmatprep.mubr.msk.bf16.mxu0 %vm784_vm3, %v29667_v51  ;;  %v4892_v51 = vld [vmem:[#allocation3 + $0x188] sm:$0xff] }
 0x4af   : > { %24650 = vmatprep.mubr.msk.bf16.mxu1 %vm1325_vm5, %v6964_v13 }
 0x4b5   : > { %24419 = vmatmul.mubr.msk.bf16.gmra.mrb[8].mxu0 %vm784_vm3, %v29672_v57  ;;  %v4891_v57 = vld [vmem:[#allocation3 + $0x180] sm:$0xff] }
 0x4b6   : > { %24422 = vmatprep.mubr.msk.bf16.mxu0 %vm784_vm3, %v29691_v49  ;;  %v29929_v49 = vpack.c.bf16 %v4892_v51, %v4891_v57 }
 0x4bd   : > { %24423 = vmatmul.mubr.msk.bf16.gmra.mrb[12].mxu0 %vm784_vm3, %v29696_v61  ;;  %v4894_v61 = vld [vmem:[#allocation3 + $0x1a0] sm:$0xff] }
 0x4be   : > { %24426 = vmatprep.mubr.msk.bf16.mxu0 %vm784_vm3, %v29715_v58  ;;  %v4893_v58 = vld [vmem:[#allocation3 + $0x198] sm:$0xff] }
 0x4c5   : > { %24427 = vmatmul.mubr.msk.bf16.gmra.mrb[16].mxu0 %vm784_vm3, %v29720_v34  ;;  %v29935_v34 = vpack.c.bf16 %v4894_v61, %v4893_v58  ;;  %v30026_v61 = vld [vmem:[%s33761_s24 + $0x1c] sm:$0xf] }
 0x4c6   : > { %24430 = vmatprep.mubr.msk.bf16.mxu0 %vm784_vm3, %v29739_v62  ;;  %v5550_v62 = vsel %vm4192_vm6, %v21821_v20, 0  ;;  %v6139_v29 = vsel %vm4192_vm6, %v30026_v61, 0 }
 0x4cd   : > { %24431 = vmatmul.mubr.msk.bf16.gmra.mrb[20].mxu0 %vm784_vm3, %v29744_v37  ;;  %v21838_v37 = vld [vmem:[%s33761_s24 + $0x18] sm:$0xf] }
 0x4ce   : > { %24434 = vmatprep.mubr.msk.bf16.mxu0 %vm784_vm3, %v29763_v32  ;;  %v5186_v32 = vld [vmem:[#allocation3 + $0x18a] sm:$0xff]  ;;  %v5845_v57 = vsel %vm4192_vm6, %v21838_v37, 0 }
 0x4cf   : > { %v29994_v12 = vpack.c.bf16 %v5186_v32, %v5185_v8 }
 0x4d5   : > { %24435 = vmatmul.mubr.msk.bf16.gmra.mrb[24].mxu0 %vm784_vm3, %v29767_v6 }
 0x4d6   : > { %24438 = vmatprep.mubr.msk.bf16.mxu0 %vm784_vm3, %v29929_v49 }
 0x4dd   : > { %24439 = vmatmul.mubr.msk.bf16.gmra.mrb[28].mxu0 %vm784_vm3, %v29935_v34 }
 0x4de   : > { %24444 = vmatprep.mubr.msk.bf16.mxu0 %vm784_vm3, %v29617_v26 }
 0x4e5   : > { %24445 = vmatmul.mubr.msk.bf16.vlgmr.msra.gmra.mrb[0].mxu0 %vm784_vm3, %v29622_v53 }
 0x4e6   : > { %24448 = vmatprep.mubr.msk.bf16.mxu0 %vm784_vm3, %v29641_v27  ;;  %24477 = vmatpush3.bf16.msra.mxu0 %v5550_v62 }
 0x4e7   : > { %28223 = vmatprep.subr.msk.bf16.mxu0 %vm4192_vm6, %v21838_v37 }
 0x4ed   : > { %24449 = vmatmul.mubr.msk.bf16.gmra.mrb[4].mxu0 %vm784_vm3, %v29646_v22 }
 0x4ee   : > { %24452 = vmatprep.mubr.msk.bf16.mxu0 %vm784_vm3, %v29665_v52 }
 0x4f5   : > { %24453 = vmatmul.mubr.msk.bf16.gmra.mrb[8].mxu0 %vm784_vm3, %v29670_v11 }
 0x4f6   : > { %24456 = vmatprep.mubr.msk.bf16.mxu0 %vm784_vm3, %v29689_v60 }
 0x4fd   : > { %24457 = vmatmul.mubr.msk.bf16.gmra.mrb[12].mxu0 %vm784_vm3, %v29694_v44 }
 0x4fe   : > { %24460 = vmatprep.mubr.msk.bf16.mxu0 %vm784_vm3, %v29713_v7 }
 0x4ff   : > { %v29962_v26 = vpop.f32.mrb[68].mxu1 }
 0x500   : > { %v29964_v53 = vpop.f32.mrb[69].mxu1 }
 0x501   : > { %v29966_v27 = vpop.f32.mrb[70].mxu1 }
 0x502   : > { %v29968_v22 = vpop.f32.mrb[71].mxu1 }
 0x505   : > { %24461 = vmatmul.mubr.msk.bf16.gmra.mrb[16].mxu0 %vm784_vm3, %v29718_v25 }
 0x506   : > { %24464 = vmatprep.mubr.msk.bf16.mxu0 %vm784_vm3, %v29737_v59 }
 0x507   : > { %v29974_v52 = vpop.f32.mrb[72].mxu1 }
 0x508   : > { %v29976_v11 = vpop.f32.mrb[73].mxu1 }
 0x509   : > { %v29978_v60 = vpop.f32.mrb[74].mxu1 }
 0x50a   : > { %33771 = vst [vmem:[#allocation34_spill] sm:$0xff] %v29978_v60  ;;  %v29980_v44 = vpop.f32.mrb[75].mxu1 }
 0x50b   : > { %33772 = vst [vmem:[#allocation35_spill] sm:$0xff] %v29980_v44 }
 0x50d   : > { %24465 = vmatmul.mubr.msk.bf16.gmra.mrb[20].mxu0 %vm784_vm3, %v29742_v28 }
 0x50e   : > { %24468 = vmatprep.mubr.msk.bf16.mxu0 %vm784_vm3, %v29761_v14  ;;  %v5188_v14 = vld [vmem:[#allocation3 + $0x1a2] sm:$0xff] }
 0x50f   : > { %v29986_v7 = vpop.f32.mrb[76].mxu1  ;;  %v30008_v41 = vpack.c.bf16 %v5188_v14, %v5187_v36 }
 0x510   : > { %33773 = vst [vmem:[#allocation36_spill] sm:$0xff] %v29986_v7  ;;  %v29988_v25 = vpop.f32.mrb[77].mxu1 }
 0x511   : > { %33774 = vst [vmem:[#allocation37_spill] sm:$0xff] %v29988_v25  ;;  %v29990_v59 = vpop.f32.mrb[78].mxu1 }
 0x512   : > { %33775 = vst [vmem:[#allocation38_spill] sm:$0xff] %v29990_v59  ;;  %v29992_v6 = vpop.f32.mrb[79].mxu1 }
 0x513   : > { %33776 = vst [vmem:[#allocation39_spill] sm:$0xff] %v29992_v6 }
 0x515   : > { %24469 = vmatmul.mubr.msk.bf16.gmra.mrb[24].mxu0 %vm784_vm3, %v29765_v54 }
 0x516   : > { %24472 = vmatprep.mubr.msk.bf16.mxu0 %vm784_vm3, %v29994_v12 }
 0x517   : > { %v30000_v28 = vpop.f32.mrb[80].mxu1 }
 0x518   : > { %33777 = vst [vmem:[#allocation40_spill] sm:$0xff] %v30000_v28  ;;  %v30002_v56 = vpop.f32.mrb[81].mxu1 }
 0x519   : > { %33778 = vst [vmem:[#allocation41_spill] sm:$0xff] %v30002_v56  ;;  %v30004_v39 = vpop.f32.mrb[82].mxu1 }
 0x51a   : > { %33779 = vst [vmem:[#allocation42_spill] sm:$0xff] %v30004_v39  ;;  %v30006_v20 = vpop.f32.mrb[83].mxu1 }
 0x51b   : > { %33780 = vst [vmem:[#allocation43_spill] sm:$0xff] %v30006_v20 }
 0x51d   : > { %24473 = vmatmul.mubr.msk.bf16.gmra.mrb[28].mxu0 %vm784_vm3, %v30008_v41 }
 0x51e   : > { %24478 = vmatprep.mubr.msk.bf16.mxu0 %vm784_vm3, %v29780_v40 }
 0x51f   : > { %v30014_v54 = vpop.f32.mrb[84].mxu1 }
 0x520   : > { %33781 = vst [vmem:[#allocation44_spill] sm:$0xff] %v30014_v54  ;;  %v30016_v55 = vpop.f32.mrb[85].mxu1 }
 0x521   : > { %33782 = vst [vmem:[#allocation45_spill] sm:$0xff] %v30016_v55  ;;  %v30018_v13 = vpop.f32.mrb[86].mxu1  ;;  %v6058_v55 = vld [vmem:[#allocation3 + $0x13a] sm:$0xff] }
 0x522   : > { %33783 = vst [vmem:[#allocation46_spill] sm:$0xff] %v30018_v13  ;;  %v30020_v51 = vpop.f32.mrb[87].mxu1  ;;  %v6061_v13 = vld [vmem:[#allocation3 + $0x15a] sm:$0xff] }
 0x523   : > { %33784 = vst [vmem:[#allocation47_spill] sm:$0xff] %v30020_v51 }
 0x525   : > { %24479 = vmatmul.mubr.msk.bf16.vlgmr.msra.gmra.mrb[0].mxu0 %vm784_vm3, %v29798_v1 }
 0x526   : > { %24482 = vmatprep.mubr.msk.bf16.mxu0 %vm784_vm3, %v29800_v5  ;;  %24511 = vmatpush3.bf16.msra.mxu0 %v5845_v57 }
 0x527   : > { %28224 = vmatprep.subr.msk.bf16.mxu0 %vm4192_vm6, %v30026_v61  ;;  %v30034_v40 = vpop.f32.mrb[88].mxu1 }
 0x528   : > { %33785 = vst [vmem:[#allocation48_spill] sm:$0xff] %v30034_v40  ;;  %v30036_v58 = vpop.f32.mrb[89].mxu1  ;;  %v6056_v40 = vld [vmem:[#allocation3 + $0x122] sm:$0xff] }
 0x529   : > { %33786 = vst [vmem:[#allocation49_spill] sm:$0xff] %v30036_v58  ;;  %v30038_v62 = vpop.f32.mrb[90].mxu1 }
 0x52a   : > { %33787 = vst [vmem:[#allocation50_spill] sm:$0xff] %v30038_v62  ;;  %v30040_v37 = vpop.f32.mrb[91].mxu1 }
 0x52b   : > { %33788 = vst [vmem:[#allocation51_spill] sm:$0xff] %v30040_v37 }
 0x52d   : > { %24483 = vmatmul.mubr.msk.bf16.gmra.mrb[4].mxu0 %vm784_vm3, %v29810_v16  ;;  %v30061_v16 = vld [vmem:[%s33793_s9] ss:$0 sm:$0xff]  ;;  %s33996_s9 = sld [smem:[#allocation17_spill]] }
 0x52e   : > { %24486 = vmatprep.mubr.msk.bf16.mxu0 %vm784_vm3, %v29812_v21 }
 0x52f   : > { %v30046_v1 = vpop.f32.mrb[92].mxu1 }
 0x530   : > { %33789 = vst [vmem:[#allocation52_spill] sm:$0xff] %v30046_v1  ;;  %v30048_v5 = vpop.f32.mrb[93].mxu1 }
 0x531   : > { %33790 = vst [vmem:[#allocation53_spill] sm:$0xff] %v30048_v5  ;;  %v30050_v32 = vpop.f32.mrb[94].mxu1 }
 0x532   : > { %33791 = vst [vmem:[#allocation54_spill] sm:$0xff] %v30050_v32  ;;  %v30052_v8 = vpop.f32.mrb[95].mxu1  ;;  %v6043_v32 = vld [vmem:[#allocation3 + $0x82] sm:$0xff] }
 0x533   : > { %33792 = vst [vmem:[#allocation55_spill] sm:$0xff] %v30052_v8  ;;  %p33998_p11 = scmp.ne.s32.totalorder %s33996_s9, 0 }
 0x535   : > { %24487 = vmatmul.mubr.msk.bf16.gmra.mrb[8].mxu0 %vm784_vm3, %v29828_v33 }
 0x536   : > { %24490 = vmatprep.mubr.msk.bf16.mxu0 %vm784_vm3, %v29832_v19 }
 0x537   : > { %v24618_v21 = vpop.f32.mrb[96].mxu1 }
 0x538   : > { %v6733_v14 = vadd.f32 %v24618_v21, %v30061_v16  ;;  %v6724_v36 = vpop.f32.mrb[97].mxu1 }
 0x539   : > { %v6725_v57 = vadd.f32 %v30061_v16, %v6724_v36  ;;  %v24619_v35 = vpop.f32.mrb[98].mxu1 }
 0x53a   : > { %6853 = vst.msk [vmem:[#allocation2 + $0x31] sm:$0xff] %vm1325_vm5, %v6733_v14  ;;  %v6736_v2 = vadd.f32 %v24619_v35, %v30061_v16  ;;  %v6727_v33 = vpop.f32.mrb[99].mxu1 }
 0x53b   : > { %6851 = vst.msk [vmem:[#allocation2 + $0x19] sm:$0xff] %vm1325_vm5, %v6725_v57  ;;  %v6728_v19 = vadd.f32 %v30061_v16, %v6727_v33 }
 0x53c   : > { %6854 = vst.msk [vmem:[#allocation2 + $0x39] sm:$0xff] %vm1325_vm5, %v6736_v2 }
 0x53d   : > { %24491 = vmatmul.mubr.msk.bf16.gmra.mrb[12].mxu0 %vm784_vm3, %v29842_v38  ;;  %6852 = vst.msk [vmem:[#allocation2 + $0x21] sm:$0xff] %vm1325_vm5, %v6728_v19 }
 0x53e   : > { %24494 = vmatprep.mubr.msk.bf16.mxu0 %vm784_vm3, %v29844_v46 }
 0x53f   : > { %v24622_v21 = vpop.f32.mrb[100].mxu1 }
 0x540   : > { %v6749_v14 = vadd.f32 %v24622_v21, %v30061_v16  ;;  %v6740_v36 = vpop.f32.mrb[101].mxu1 }
 0x541   : > { %v6741_v35 = vadd.f32 %v30061_v16, %v6740_v36  ;;  %v24623_v0 = vpop.f32.mrb[102].mxu1 }
 0x542   : > { %6857 = vst.msk [vmem:[#allocation2 + $0x61] sm:$0xff] %vm1325_vm5, %v6749_v14  ;;  %v6752_v57 = vadd.f32 %v24623_v0, %v30061_v16  ;;  %v6743_v2 = vpop.f32.mrb[103].mxu1  ;;  %v6934_v46 = vld [vmem:[#allocation2 + $0x19] sm:$0xff]  ;;  %v7243_v0 = vsel %vm1505_vm1, %v29920_v43, 0  ;;  %v6936_v14 = vld [vmem:[#allocation2 + $0x31] sm:$0xff] }
 0x543   : > { %6855 = vst.msk [vmem:[#allocation2 + $0x49] sm:$0xff] %vm1325_vm5, %v6741_v35  ;;  %v6744_v38 = vadd.f32 %v30061_v16, %v6743_v2  ;;  %v6937_v33 = vld [vmem:[#allocation2 + $0x39] sm:$0xff]  ;;  %v30092_v35 = vld [vmem:[%s33765_s28 + $0x4] sm:$0x3] }
 0x544   : > { %6858 = vst.msk [vmem:[#allocation2 + $0x69] sm:$0xff] %vm1325_vm5, %v6752_v57  ;;  %v6935_v19 = vld [vmem:[#allocation2 + $0x21] sm:$0xff]  ;;  %v6966_v36 = vpack.c.bf16 %v6937_v33, %v6936_v14 }
 0x545   : > { %24495 = vmatmul.mubr.msk.bf16.gmra.mrb[16].mxu0 %vm784_vm3, %v29859_v15  ;;  %6856 = vst.msk [vmem:[#allocation2 + $0x51] sm:$0xff] %vm1325_vm5, %v6744_v38  ;;  %v6965_v21 = vpack.c.bf16 %v6935_v19, %v6934_v46  ;;  %v7408_v54 = vld [vmem:[#allocation2 + $0x1a] sm:$0xff] }
 0x546   : > { %24498 = vmatprep.mubr.msk.bf16.mxu0 %vm784_vm3, %v29861_v50  ;;  %v7411_v20 = vld [vmem:[#allocation2 + $0x3a] sm:$0xff] }
 0x547   : > { %v24626_v57 = vpop.f32.mrb[104].mxu1  ;;  %24651 = vmatmul.mubr.msk.bf16.vlgmr.msra.gmra.mrb[128].mxu1 %vm1325_vm5, %v6965_v21 }
 0x548   : > { %v6765_v15 = vadd.f32 %v24626_v57, %v30061_v16  ;;  %24683 = vmatpush3.bf16.msra.mxu1 %v7243_v0  ;;  %v6756_v2 = vpop.f32.mrb[105].mxu1  ;;  %24654 = vmatprep.mubr.msk.bf16.mxu1 %vm1325_vm5, %v6966_v36 }
 0x549   : > { %v6757_v50 = vadd.f32 %v30061_v16, %v6756_v2  ;;  %v24627_v38 = vpop.f32.mrb[106].mxu1  ;;  %28228 = vmatprep.subr.msk.bf16.mxu1 %vm1505_vm1, %v30092_v35  ;;  %v6940_v36 = vld [vmem:[#allocation2 + $0x61] sm:$0xff] }
 0x54a   : > { %6861 = vst.msk [vmem:[#allocation2 + $0x91] sm:$0xff] %vm1325_vm5, %v6765_v15  ;;  %v6768_v43 = vadd.f32 %v24627_v38, %v30061_v16  ;;  %v6759_v33 = vpop.f32.mrb[107].mxu1  ;;  %v6938_v21 = vld [vmem:[#allocation2 + $0x49] sm:$0xff]  ;;  %v5479_v38 = vld [vmem:[#allocation3 + $0x184] sm:$0xff] }
 0x54b   : > { %6859 = vst.msk [vmem:[#allocation2 + $0x79] sm:$0xff] %vm1325_vm5, %v6757_v50  ;;  %v6760_v46 = vadd.f32 %v30061_v16, %v6759_v33  ;;  %v6941_v19 = vld [vmem:[#allocation2 + $0x69] sm:$0xff] }
 0x54c   : > { %6862 = vst.msk [vmem:[#allocation2 + $0x99] sm:$0xff] %vm1325_vm5, %v6768_v43  ;;  %v6939_v0 = vld [vmem:[#allocation2 + $0x51] sm:$0xff]  ;;  %v6968_v57 = vpack.c.bf16 %v6941_v19, %v6940_v36 }
 0x54d   : > { %24499 = vmatmul.mubr.msk.bf16.gmra.mrb[20].mxu0 %vm784_vm3, %v29871_v31  ;;  %6860 = vst.msk [vmem:[#allocation2 + $0x81] sm:$0xff] %vm1325_vm5, %v6760_v46  ;;  %v6967_v14 = vpack.c.bf16 %v6939_v0, %v6938_v21  ;;  %v5480_v31 = vld [vmem:[#allocation3 + $0x18c] sm:$0xff] }
 0x54e   : > { %24502 = vmatprep.mubr.msk.bf16.mxu0 %vm784_vm3, %v29873_v63  ;;  %v30118_v21 = vpack.c.bf16 %v5480_v31, %v5479_v38  ;;  %v5481_v38 = vld [vmem:[#allocation3 + $0x19c] sm:$0xff]  ;;  %v5482_v31 = vld [vmem:[#allocation3 + $0x1a4] sm:$0xff] }
 0x54f   : > { %v24630_v15 = vpop.f32.mrb[108].mxu1  ;;  %24655 = vmatmul.mubr.msk.bf16.gmra.mrb[132].mxu1 %vm1325_vm5, %v6967_v14 }
 0x550   : > { %v6781_v2 = vadd.f32 %v24630_v15, %v30061_v16  ;;  %v6772_v50 = vpop.f32.mrb[109].mxu1  ;;  %24658 = vmatprep.mubr.msk.bf16.mxu1 %vm1325_vm5, %v6968_v57 }
 0x551   : > { %v6773_v43 = vadd.f32 %v30061_v16, %v6772_v50  ;;  %v24631_v33 = vpop.f32.mrb[110].mxu1  ;;  %v6944_v15 = vld [vmem:[#allocation2 + $0x91] sm:$0xff] }
 0x552   : > { %6865 = vst.msk [vmem:[#allocation2 + $0xc1] sm:$0xff] %vm1325_vm5, %v6781_v2  ;;  %v6784_v63 = vadd.f32 %v24631_v33, %v30061_v16  ;;  %v6775_v46 = vpop.f32.mrb[111].mxu1  ;;  %v6942_v14 = vld [vmem:[#allocation2 + $0x79] sm:$0xff] }
 0x553   : > { %6863 = vst.msk [vmem:[#allocation2 + $0xa9] sm:$0xff] %vm1325_vm5, %v6773_v43  ;;  %v6776_v19 = vadd.f32 %v30061_v16, %v6775_v46  ;;  %v6945_v0 = vld [vmem:[#allocation2 + $0x99] sm:$0xff] }
 0x554   : > { %6866 = vst.msk [vmem:[#allocation2 + $0xc9] sm:$0xff] %vm1325_vm5, %v6784_v63  ;;  %v6943_v36 = vld [vmem:[#allocation2 + $0x81] sm:$0xff]  ;;  %v6970_v2 = vpack.c.bf16 %v6945_v0, %v6944_v15  ;;  %v30132_v0 = vpack.c.bf16 %v5482_v31, %v5481_v38 }
 0x555   : > { %24503 = vmatmul.mubr.msk.bf16.gmra.mrb[24].mxu0 %vm784_vm3, %v29883_v30  ;;  %6864 = vst.msk [vmem:[#allocation2 + $0xb1] sm:$0xff] %vm1325_vm5, %v6776_v19  ;;  %v6969_v57 = vpack.c.bf16 %v6943_v36, %v6942_v14  ;;  %v5747_v30 = vld [vmem:[#allocation3 + $0x68] sm:$0xff]  ;;  %v5746_v36 = vld [vmem:[#allocation3 + $0x60] sm:$0xff] }
 0x556   : > { %24506 = vmatprep.mubr.msk.bf16.mxu0 %vm784_vm3, %v30118_v21  ;;  %v5778_v15 = vpack.c.bf16 %v5747_v30, %v5746_v36  ;;  %v5749_v30 = vld [vmem:[#allocation3 + $0x80] sm:$0xff] }
 0x557   : > { %v24634_v50 = vpop.f32.mrb[112].mxu1  ;;  %24659 = vmatmul.mubr.msk.bf16.gmra.mrb[136].mxu1 %vm1325_vm5, %v6969_v57 }
 0x558   : > { %v6797_v43 = vadd.f32 %v24634_v50, %v30061_v16  ;;  %v6788_v33 = vpop.f32.mrb[113].mxu1  ;;  %24662 = vmatprep.mubr.msk.bf16.mxu1 %vm1325_vm5, %v6970_v2 }
 0x559   : > { %v6789_v63 = vadd.f32 %v30061_v16, %v6788_v33  ;;  %v24635_v46 = vpop.f32.mrb[114].mxu1  ;;  %v6948_v31 = vld [vmem:[#allocation2 + $0xc1] sm:$0xff] }
 0x55a   : > { %6869 = vst.msk [vmem:[#allocation2 + $0xf1] sm:$0xff] %vm1325_vm5, %v6797_v43  ;;  %v6800_v19 = vadd.f32 %v24635_v46, %v30061_v16  ;;  %v6791_v14 = vpop.f32.mrb[115].mxu1  ;;  %v6946_v2 = vld [vmem:[#allocation2 + $0xa9] sm:$0xff] }
 0x55b   : > { %6867 = vst.msk [vmem:[#allocation2 + $0xd9] sm:$0xff] %vm1325_vm5, %v6789_v63  ;;  %v6792_v57 = vadd.f32 %v30061_v16, %v6791_v14  ;;  %v6949_v50 = vld [vmem:[#allocation2 + $0xc9] sm:$0xff] }
 0x55c   : > { %6870 = vst.msk [vmem:[#allocation2 + $0xf9] sm:$0xff] %vm1325_vm5, %v6800_v19  ;;  %v6947_v33 = vld [vmem:[#allocation2 + $0xb1] sm:$0xff]  ;;  %v30143_v43 = vpack.c.bf16 %v6949_v50, %v6948_v31  ;;  %v5751_v14 = vld [vmem:[#allocation3 + $0x98] sm:$0xff]  ;;  %v5750_v31 = vld [vmem:[#allocation3 + $0x90] sm:$0xff] }
 0x55d   : > { %24507 = vmatmul.mubr.msk.bf16.gmra.mrb[28].mxu0 %vm784_vm3, %v30132_v0  ;;  %6868 = vst.msk [vmem:[#allocation2 + $0xe1] sm:$0xff] %vm1325_vm5, %v6792_v57  ;;  %v30141_v38 = vpack.c.bf16 %v6947_v33, %v6946_v2  ;;  %v5780_v24 = vpack.c.bf16 %v5751_v14, %v5750_v31  ;;  %v7421_v39 = vld [vmem:[#allocation2 + $0xb2] sm:$0xff] }
 0x55e   : > { %24512 = vmatprep.mubr.msk.bf16.mxu0 %vm784_vm3, %v5778_v15  ;;  %v5748_v15 = vld [vmem:[#allocation3 + $0x78] sm:$0xff] }
 0x55f   : > { %v24638_v63 = vpop.f32.mrb[116].mxu1  ;;  %24663 = vmatmul.mubr.msk.bf16.gmra.mrb[140].mxu1 %vm1325_vm5, %v30141_v38  ;;  %v5779_v33 = vpack.c.bf16 %v5749_v30, %v5748_v15  ;;  %v5753_v15 = vld [vmem:[#allocation3 + $0xb0] sm:$0xff] }
 0x560   : > { %v6813_v46 = vadd.f32 %v24638_v63, %v30061_v16  ;;  %v6804_v19 = vpop.f32.mrb[117].mxu1  ;;  %24666 = vmatprep.mubr.msk.bf16.mxu1 %vm1325_vm5, %v30143_v43 }
 0x561   : > { %v6805_v36 = vadd.f32 %v30061_v16, %v6804_v19  ;;  %v24639_v57 = vpop.f32.mrb[118].mxu1  ;;  %v30160_v19 = vld [vmem:[%s33761_s24 + $0x20] sm:$0xf]  ;;  %v6903_v5 = vld [vmem:[#allocation2 + $0xf0] sm:$0xff] }
 0x562   : > { %6873 = vst.msk [vmem:[#allocation2 + $0x121] sm:$0xff] %vm1325_vm5, %v6813_v46  ;;  %v6816_v50 = vadd.f32 %v24639_v57, %v30061_v16  ;;  %v6807_v2 = vpop.f32.mrb[119].mxu1  ;;  %v6950_v30 = vld [vmem:[#allocation2 + $0xd9] sm:$0xff] }
 0x563   : > { %6871 = vst.msk [vmem:[#allocation2 + $0x109] sm:$0xff] %vm1325_vm5, %v6805_v36  ;;  %v6808_v63 = vadd.f32 %v30061_v16, %v6807_v2  ;;  %v6953_v23 = vld [vmem:[#allocation2 + $0xf9] sm:$0xff]  ;;  %v6952_v36 = vld [vmem:[#allocation2 + $0xf1] sm:$0xff] }
 0x564   : > { %6874 = vst.msk [vmem:[#allocation2 + $0x129] sm:$0xff] %vm1325_vm5, %v6816_v50  ;;  %v6951_v46 = vld [vmem:[#allocation2 + $0xe1] sm:$0xff]  ;;  %v30168_v14 = vpack.c.bf16 %v6953_v23, %v6952_v36  ;;  %v5752_v23 = vld [vmem:[#allocation3 + $0xa8] sm:$0xff] }
 0x565   : > { %24513 = vmatmul.mubr.msk.bf16.vlgmr.msra.gmra.mrb[0].mxu0 %vm784_vm3, %v5779_v33  ;;  %6872 = vst.msk [vmem:[#allocation2 + $0x111] sm:$0xff] %vm1325_vm5, %v6808_v63  ;;  %v30166_v61 = vpack.c.bf16 %v6951_v46, %v6950_v30  ;;  %v5781_v30 = vpack.c.bf16 %v5753_v15, %v5752_v23  ;;  %v5754_v46 = vld [vmem:[#allocation3 + $0xc0] sm:$0xff]  ;;  %v7424_v56 = vld [vmem:[#allocation2 + $0xda] sm:$0xff]  ;;  %v7425_v28 = vld [vmem:[#allocation2 + $0xe2] sm:$0xff] }
 0x566   : > { %24516 = vmatprep.mubr.msk.bf16.mxu0 %vm784_vm3, %v5780_v24  ;;  %24545 = vmatpush3.bf16.msra.mxu0 %v6139_v29  ;;  %v5755_v24 = vld [vmem:[#allocation3 + $0xc8] sm:$0xff] }
 0x567   : > { %28225 = vmatprep.subr.msk.bf16.mxu0 %vm4192_vm6, %v30160_v19  ;;  %v24642_v57 = vpop.f32.mrb[120].mxu1  ;;  %24667 = vmatmul.mubr.msk.bf16.gmra.mrb[144].mxu1 %vm1325_vm5, %v30166_v61  ;;  %v7426_v6 = vld [vmem:[#allocation2 + $0xf2] sm:$0xff] }
 0x568   : > { %v6829_v50 = vadd.f32 %v24642_v57, %v30061_v16  ;;  %v6820_v2 = vpop.f32.mrb[121].mxu1  ;;  %24670 = vmatprep.mubr.msk.bf16.mxu1 %vm1325_vm5, %v30168_v14  ;;  %v5782_v57 = vpack.c.bf16 %v5755_v24, %v5754_v46  ;;  %v5757_v24 = vld [vmem:[#allocation3 + $0xe0] sm:$0xff] }
 0x569   : > { %v6821_v33 = vadd.f32 %v30061_v16, %v6820_v2  ;;  %v24643_v29 = vpop.f32.mrb[122].mxu1  ;;  %v6956_v15 = vld [vmem:[#allocation2 + $0x121] sm:$0xff] }
 0x56a   : > { %6877 = vst.msk [vmem:[#allocation2 + $0x151] sm:$0xff] %vm1325_vm5, %v6829_v50  ;;  %v6832_v31 = vadd.f32 %v24643_v29, %v30061_v16  ;;  %v6823_v63 = vpop.f32.mrb[123].mxu1  ;;  %v6954_v2 = vld [vmem:[#allocation2 + $0x109] sm:$0xff] }
 0x56b   : > { %6875 = vst.msk [vmem:[#allocation2 + $0x139] sm:$0xff] %vm1325_vm5, %v6821_v33  ;;  %v6824_v36 = vadd.f32 %v30061_v16, %v6823_v63  ;;  %v6957_v18 = vld [vmem:[#allocation2 + $0x129] sm:$0xff] }
 0x56c   : > { %6878 = vst.msk [vmem:[#allocation2 + $0x159] sm:$0xff] %vm1325_vm5, %v6832_v31  ;;  %v6955_v17 = vld [vmem:[#allocation2 + $0x111] sm:$0xff]  ;;  %v30188_v29 = vpack.c.bf16 %v6957_v18, %v6956_v15  ;;  %v5759_v63 = vld [vmem:[#allocation3 + $0xf8] sm:$0xff] }
 0x56d   : > { %24517 = vmatmul.mubr.msk.bf16.gmra.mrb[4].mxu0 %vm784_vm3, %v5781_v30  ;;  %6876 = vst.msk [vmem:[#allocation2 + $0x141] sm:$0xff] %vm1325_vm5, %v6824_v36  ;;  %v30186_v50 = vpack.c.bf16 %v6955_v17, %v6954_v2  ;;  %v5756_v17 = vld [vmem:[#allocation3 + $0xd8] sm:$0xff]  ;;  %v5758_v2 = vld [vmem:[#allocation3 + $0xf0] sm:$0xff]  ;;  %v7429_v59 = vld [vmem:[#allocation2 + $0x112] sm:$0xff] }
 0x56e   : > { %24520 = vmatprep.mubr.msk.bf16.mxu0 %vm784_vm3, %v5782_v57  ;;  %v5783_v57 = vpack.c.bf16 %v5757_v24, %v5756_v17  ;;  %v6883_v17 = vld [vmem:[#allocation2] sm:$0xff] }
 0x56f   : > { %v24646_v33 = vpop.f32.mrb[124].mxu1  ;;  %24671 = vmatmul.mubr.msk.bf16.gmra.mrb[148].mxu1 %vm1325_vm5, %v30186_v50  ;;  %v7430_v25 = vld [vmem:[#allocation2 + $0x122] sm:$0xff] }
 0x570   : > { %v6845_v23 = vadd.f32 %v24646_v33, %v30061_v16  ;;  %v6836_v31 = vpop.f32.mrb[125].mxu1  ;;  %24674 = vmatprep.mubr.msk.bf16.mxu1 %vm1325_vm5, %v30188_v29  ;;  %v5784_v33 = vpack.c.bf16 %v5759_v63, %v5758_v2  ;;  %v5763_v63 = vld [vmem:[#allocation3 + $0x128] sm:$0xff] }
 0x571   : > { %v6837_v30 = vadd.f32 %v30061_v16, %v6836_v31  ;;  %v24647_v46 = vpop.f32.mrb[126].mxu1  ;;  %v6960_v24 = vld [vmem:[#allocation2 + $0x151] sm:$0xff] }
 0x572   : > { %6881 = vst.msk [vmem:[#allocation2 + $0x181] sm:$0xff] %vm1325_vm5, %v6845_v23  ;;  %v6848_v18 = vadd.f32 %v24647_v46, %v30061_v16  ;;  %v6839_v36 = vpop.f32.mrb[127].mxu1  ;;  %v6958_v31 = vld [vmem:[#allocation2 + $0x139] sm:$0xff] }
 0x573   : > { %6879 = vst.msk [vmem:[#allocation2 + $0x169] sm:$0xff] %vm1325_vm5, %v6837_v30  ;;  %v6840_v15 = vadd.f32 %v30061_v16, %v6839_v36  ;;  %v6961_v10 = vld [vmem:[#allocation2 + $0x159] sm:$0xff] }
 0x574   : > { %6882 = vst.msk [vmem:[#allocation2 + $0x189] sm:$0xff] %vm1325_vm5, %v6848_v18  ;;  %v6959_v9 = vld [vmem:[#allocation2 + $0x141] sm:$0xff]  ;;  %v30206_v46 = vpack.c.bf16 %v6961_v10, %v6960_v24  ;;  %v5760_v30 = vld [vmem:[#allocation3 + $0x108] sm:$0xff] }
 0x575   : > { %24521 = vmatmul.mubr.msk.bf16.gmra.mrb[8].mxu0 %vm784_vm3, %v5783_v57  ;;  %6880 = vst.msk [vmem:[#allocation2 + $0x171] sm:$0xff] %vm1325_vm5, %v6840_v15  ;;  %v30204_v23 = vpack.c.bf16 %v6959_v9, %v6958_v31  ;;  %v5761_v16 = vld [vmem:[#allocation3 + $0x110] sm:$0xff]  ;;  %v6884_v18 = vld [vmem:[#allocation2 + $0x8] sm:$0xff]  ;;  %v5762_v57 = vld [vmem:[#allocation3 + $0x120] sm:$0xff] }
 0x576   : > { %24524 = vmatprep.mubr.msk.bf16.mxu0 %vm784_vm3, %v5784_v33  ;;  %v5785_v36 = vpack.c.bf16 %v5761_v16, %v5760_v30  ;;  %v5786_v2 = vpack.c.bf16 %v5763_v63, %v5762_v57  ;;  %v6915_v10 = vpack.c.bf16 %v6884_v18, %v6883_v17  ;;  %v5765_v31 = vld [vmem:[#allocation3 + $0x140] sm:$0xff]  ;;  %v5767_v24 = vld [vmem:[#allocation3 + $0x158] sm:$0xff]  ;;  %v5766_v30 = vld [vmem:[#allocation3 + $0x150] sm:$0xff] }
 0x577   : > { %24675 = vmatmul.mubr.msk.bf16.gmra.mrb[152].mxu1 %vm1325_vm5, %v30204_v23  ;;  %v5787_v16 = vpack.c.bf16 %v5765_v31, %v5764_v48  ;;  %v6886_v63 = vld [vmem:[#allocation2 + $0x20] sm:$0xff]  ;;  %v5788_v57 = vpack.c.bf16 %v5767_v24, %v5766_v30  ;;  %v6885_v17 = vld [vmem:[#allocation2 + $0x18] sm:$0xff]  ;;  %v6890_v24 = vld [vmem:[#allocation2 + $0x50] sm:$0xff] }
 0x578   : > { %24678 = vmatprep.mubr.msk.bf16.mxu1 %vm1325_vm5, %v30206_v46  ;;  %v30221_v18 = vpack.c.bf16 %v6886_v63, %v6885_v17  ;;  %v30230_v48 = vld [vmem:[%s33765_s28 + $0x6] sm:$0x3]  ;;  %v5768_v31 = vld [vmem:[#allocation3 + $0x168] sm:$0xff]  ;;  %v6889_v30 = vld [vmem:[#allocation2 + $0x48] sm:$0xff] }
 0x579   : > { %v30241_v63 = vpack.c.bf16 %v6890_v24, %v6889_v30  ;;  %v5774_v17 = vld [vmem:[#allocation3 + $0x1b0] sm:$0xff]  ;;  %v6895_v24 = vld [vmem:[#allocation2 + $0x90] sm:$0xff]  ;;  %v6912_v58 = vld [vmem:[#allocation2 + $0x158] sm:$0xff] }
 0x57a   : > { %v6962_v9 = vld [vmem:[#allocation2 + $0x169] sm:$0xff]  ;;  %v5777_v30 = vld [vmem:[#allocation3 + $0x1d0] sm:$0xff]  ;;  %v7434_v44 = vld [vmem:[#allocation2 + $0x152] sm:$0xff] }
 0x57b   : > { %v7433_v7 = vld [vmem:[#allocation2 + $0x142] sm:$0xff] }
 0x57c   : > { %v6963_v15 = vld [vmem:[#allocation2 + $0x171] sm:$0xff] }
 0x57d   : > { %24525 = vmatmul.mubr.msk.bf16.gmra.mrb[12].mxu0 %vm784_vm3, %v5785_v36  ;;  %v30214_v33 = vpack.c.bf16 %v6963_v15, %v6962_v9  ;;  %v6888_v36 = vld [vmem:[#allocation2 + $0x38] sm:$0xff]  ;;  %v6887_v9 = vld [vmem:[#allocation2 + $0x30] sm:$0xff] }
 0x57e   : > { %24528 = vmatprep.mubr.msk.bf16.mxu0 %vm784_vm3, %v5786_v2  ;;  %v7505_v2 = vsel %vm1505_vm1, %v30092_v35, 0  ;;  %v30225_v15 = vpack.c.bf16 %v6888_v36, %v6887_v9  ;;  %v6914_v51 = vld [vmem:[#allocation2 + $0x170] sm:$0xff] }
 0x57f   : > { %24679 = vmatmul.mubr.msk.bf16.gmra.mrb[156].mxu1 %vm1325_vm5, %v30214_v33  ;;  %v7437_v60 = vld [vmem:[#allocation2 + $0x172] sm:$0xff] }
 0x580   : > { %24684 = vmatprep.mubr.msk.bf16.mxu1 %vm1325_vm5, %v6915_v10  ;;  %v5769_v10 = vld [vmem:[#allocation3 + $0x170] sm:$0xff] }
 0x581   : > { %v5789_v35 = vpack.c.bf16 %v5769_v10, %v5768_v31  ;;  %v6894_v10 = vld [vmem:[#allocation2 + $0x80] sm:$0xff]  ;;  %v6896_v31 = vld [vmem:[#allocation2 + $0x98] sm:$0xff] }
 0x585   : > { %24529 = vmatmul.mubr.msk.bf16.gmra.mrb[16].mxu0 %vm784_vm3, %v5787_v16  ;;  %v6892_v16 = vld [vmem:[#allocation2 + $0x68] sm:$0xff] }
 0x586   : > { %24532 = vmatprep.mubr.msk.bf16.mxu0 %vm784_vm3, %v5788_v57  ;;  %v6891_v57 = vld [vmem:[#allocation2 + $0x60] sm:$0xff] }
 0x587   : > { %24685 = vmatmul.mubr.msk.bf16.vlgmr.msra.gmra.mrb[128].mxu1 %vm1325_vm5, %v30221_v18  ;;  %v30243_v36 = vpack.c.bf16 %v6892_v16, %v6891_v57  ;;  %v5776_v16 = vld [vmem:[#allocation3 + $0x1c8] sm:$0xff]  ;;  %v30254_v57 = vpack.c.bf16 %v6896_v31, %v6895_v24  ;;  %v6899_v31 = vld [vmem:[#allocation2 + $0xc0] sm:$0xff] }
 0x588   : > { %24717 = vmatpush3.bf16.msra.mxu1 %v7505_v2  ;;  %24688 = vmatprep.mubr.msk.bf16.mxu1 %vm1325_vm5, %v30225_v15  ;;  %v5775_v2 = vld [vmem:[#allocation3 + $0x1b8] sm:$0xff] }
 0x589   : > { %28229 = vmatprep.subr.msk.bf16.mxu1 %vm1505_vm1, %v30230_v48  ;;  %v5792_v9 = vpack.c.bf16 %v5775_v2, %v5774_v17  ;;  %v5793_v17 = vpack.c.bf16 %v5777_v30, %v5776_v16  ;;  %v6041_v2 = vld [vmem:[#allocation3 + $0x6a] sm:$0xff]  ;;  %v6045_v16 = vld [vmem:[#allocation3 + $0x9a] sm:$0xff] }
 0x58a   : > { %v6072_v8 = vpack.c.bf16 %v6041_v2, %v6040_v4  ;;  %v6042_v4 = vld [vmem:[#allocation3 + $0x7a] sm:$0xff]  ;;  %v6044_v2 = vld [vmem:[#allocation3 + $0x92] sm:$0xff] }
 0x58b   : > { %v6073_v30 = vpack.c.bf16 %v6043_v32, %v6042_v4  ;;  %v6047_v32 = vld [vmem:[#allocation3 + $0xb2] sm:$0xff] }
 0x58d   : > { %24533 = vmatmul.mubr.msk.bf16.gmra.mrb[20].mxu0 %vm784_vm3, %v5789_v35 }
 0x58e   : > { %24536 = vmatprep.mubr.msk.bf16.mxu0 %vm784_vm3, %v29929_v49  ;;  %v6893_v49 = vld [vmem:[#allocation2 + $0x78] sm:$0xff] }
 0x58f   : > { %24689 = vmatmul.mubr.msk.bf16.gmra.mrb[132].mxu1 %vm1325_vm5, %v30241_v63  ;;  %v30251_v35 = vpack.c.bf16 %v6894_v10, %v6893_v49  ;;  %v6900_v10 = vld [vmem:[#allocation2 + $0xc8] sm:$0xff] }
 0x590   : > { %24692 = vmatprep.mubr.msk.bf16.mxu1 %vm1325_vm5, %v30243_v36  ;;  %v6897_v49 = vld [vmem:[#allocation2 + $0xa8] sm:$0xff]  ;;  %v30264_v24 = vpack.c.bf16 %v6900_v10, %v6899_v31  ;;  %v6901_v10 = vld [vmem:[#allocation2 + $0xd8] sm:$0xff] }
 0x595   : > { %24537 = vmatmul.mubr.msk.bf16.gmra.mrb[24].mxu0 %vm784_vm3, %v29935_v34  ;;  %v6898_v34 = vld [vmem:[#allocation2 + $0xb0] sm:$0xff] }
 0x596   : > { %24540 = vmatprep.mubr.msk.bf16.mxu0 %vm784_vm3, %v5792_v9  ;;  %v30262_v9 = vpack.c.bf16 %v6898_v34, %v6897_v49  ;;  %v6074_v34 = vpack.c.bf16 %v6045_v16, %v6044_v2  ;;  %v6904_v49 = vld [vmem:[#allocation2 + $0xf8] sm:$0xff]  ;;  %v6906_v2 = vld [vmem:[#allocation2 + $0x110] sm:$0xff] }
 0x597   : > { %24693 = vmatmul.mubr.msk.bf16.gmra.mrb[136].mxu1 %vm1325_vm5, %v30251_v35  ;;  %v30276_v1 = vpack.c.bf16 %v6904_v49, %v6903_v5  ;;  %v6046_v16 = vld [vmem:[#allocation3 + $0xaa] sm:$0xff] }
 0x598   : > { %24696 = vmatprep.mubr.msk.bf16.mxu1 %vm1325_vm5, %v30254_v57  ;;  %v6075_v4 = vpack.c.bf16 %v6047_v32, %v6046_v16  ;;  %v6053_v32 = vld [vmem:[#allocation3 + $0xfa] sm:$0xff] }
 0x59d   : > { %24541 = vmatmul.mubr.msk.bf16.gmra.mrb[28].mxu0 %vm784_vm3, %v5793_v17  ;;  %v6902_v17 = vld [vmem:[#allocation2 + $0xe0] sm:$0xff] }
 0x59e   : > { %24546 = vmatprep.mubr.msk.bf16.mxu0 %vm784_vm3, %v6072_v8  ;;  %v6433_v8 = vsel %vm4192_vm6, %v30160_v19, 0  ;;  %v30274_v31 = vpack.c.bf16 %v6902_v17, %v6901_v10  ;;  %v6049_v19 = vld [vmem:[#allocation3 + $0xca] sm:$0xff]  ;;  %v6905_v17 = vld [vmem:[#allocation2 + $0x108] sm:$0xff]  ;;  %v6051_v10 = vld [vmem:[#allocation3 + $0xe2] sm:$0xff] }
 0x59f   : > { %24697 = vmatmul.mubr.msk.bf16.gmra.mrb[140].mxu1 %vm1325_vm5, %v30262_v9  ;;  %v30284_v5 = vpack.c.bf16 %v6906_v2, %v6905_v17 }
 0x5a0   : > { %24700 = vmatprep.mubr.msk.bf16.mxu1 %vm1325_vm5, %v30264_v24 }
 0x5a5   : > { %24547 = vmatmul.mubr.msk.bf16.vlgmr.msra.gmra.mrb[0].mxu0 %vm784_vm3, %v6073_v30  ;;  %v6048_v30 = vld [vmem:[#allocation3 + $0xc2] sm:$0xff] }
 0x5a6   : > { %24550 = vmatprep.mubr.msk.bf16.mxu0 %vm784_vm3, %v6074_v34  ;;  %24579 = vmatpush3.bf16.msra.mxu0 %v6433_v8  ;;  %v6076_v37 = vpack.c.bf16 %v6049_v19, %v6048_v30  ;;  %v6908_v34 = vld [vmem:[#allocation2 + $0x128] sm:$0xff]  ;;  %v6907_v8 = vld [vmem:[#allocation2 + $0x120] sm:$0xff] }
 0x5a7   : > { %24701 = vmatmul.mubr.msk.bf16.gmra.mrb[144].mxu1 %vm1325_vm5, %v30274_v31  ;;  %v30286_v49 = vpack.c.bf16 %v6908_v34, %v6907_v8  ;;  %v6050_v19 = vld [vmem:[#allocation3 + $0xda] sm:$0xff]  ;;  %v6052_v30 = vld [vmem:[#allocation3 + $0xf2] sm:$0xff] }
 0x5a8   : > { %24704 = vmatprep.mubr.msk.bf16.mxu1 %vm1325_vm5, %v30276_v1  ;;  %v6077_v16 = vpack.c.bf16 %v6051_v10, %v6050_v19  ;;  %v6078_v62 = vpack.c.bf16 %v6053_v32, %v6052_v30  ;;  %v6911_v34 = vld [vmem:[#allocation2 + $0x150] sm:$0xff]  ;;  %v6055_v8 = vld [vmem:[#allocation3 + $0x112] sm:$0xff]  ;;  %v6057_v10 = vld [vmem:[#allocation3 + $0x12a] sm:$0xff] }
 0x5a9   : > { %v30296_v17 = vpack.c.bf16 %v6912_v58, %v6911_v34  ;;  %v6054_v32 = vld [vmem:[#allocation3 + $0x10a] sm:$0xff]  ;;  %v7406_v19 = vld [vmem:[#allocation2 + $0x2] sm:$0xff]  ;;  %v7407_v30 = vld [vmem:[#allocation2 + $0xa] sm:$0xff] }
 0x5aa   : > { %v7438_v58 = vpack.c.bf16 %v7407_v30, %v7406_v19  ;;  %v6059_v34 = vld [vmem:[#allocation3 + $0x142] sm:$0xff]  ;;  %v7799_v19 = vsel %vm1505_vm1, %v30230_v48, 0 }
 0x5ad   : > { %24551 = vmatmul.mubr.msk.bf16.gmra.mrb[4].mxu0 %vm784_vm3, %v6075_v4  ;;  %v6910_v4 = vld [vmem:[#allocation2 + $0x140] sm:$0xff] }
 0x5ae   : > { %24554 = vmatprep.mubr.msk.bf16.mxu0 %vm784_vm3, %v6076_v37  ;;  %v6909_v37 = vld [vmem:[#allocation2 + $0x138] sm:$0xff] }
 0x5af   : > { %24705 = vmatmul.mubr.msk.bf16.gmra.mrb[148].mxu1 %vm1325_vm5, %v30284_v5  ;;  %v30294_v2 = vpack.c.bf16 %v6910_v4, %v6909_v37  ;;  %v6913_v4 = vld [vmem:[#allocation2 + $0x168] sm:$0xff] }
 0x5b0   : > { %24708 = vmatprep.mubr.msk.bf16.mxu1 %vm1325_vm5, %v30286_v49  ;;  %v30304_v37 = vpack.c.bf16 %v6914_v51, %v6913_v4  ;;  %v7414_v4 = vld [vmem:[#allocation2 + $0x62] sm:$0xff] }
 0x5b5   : > { %24555 = vmatmul.mubr.msk.bf16.gmra.mrb[8].mxu0 %vm784_vm3, %v6077_v16  ;;  %v6079_v16 = vpack.c.bf16 %v6055_v8, %v6054_v32  ;;  %v6081_v8 = vpack.c.bf16 %v6059_v34, %v6058_v55  ;;  %v6060_v32 = vld [vmem:[#allocation3 + $0x152] sm:$0xff] }
 0x5b6   : > { %24558 = vmatprep.mubr.msk.bf16.mxu0 %vm784_vm3, %v6078_v62  ;;  %v6080_v62 = vpack.c.bf16 %v6057_v10, %v6056_v40  ;;  %v7409_v40 = vld [vmem:[#allocation2 + $0x22] sm:$0xff]  ;;  %v6082_v10 = vpack.c.bf16 %v6061_v13, %v6060_v32 }
 0x5b7   : > { %24709 = vmatmul.mubr.msk.bf16.gmra.mrb[152].mxu1 %vm1325_vm5, %v30294_v2  ;;  %v30311_v51 = vpack.c.bf16 %v7409_v40, %v7408_v54  ;;  %v30320_v55 = vld [vmem:[%s33765_s28 + $0x8] sm:$0x3]  ;;  %v6062_v54 = vld [vmem:[#allocation3 + $0x16a] sm:$0xff]  ;;  %v6069_v40 = vld [vmem:[#allocation3 + $0x1ba] sm:$0xff] }
 0x5b8   : > { %24712 = vmatprep.mubr.msk.bf16.mxu1 %vm1325_vm5, %v30296_v17  ;;  %v6063_v13 = vld [vmem:[#allocation3 + $0x172] sm:$0xff] }
 0x5b9   : > { %v6083_v48 = vpack.c.bf16 %v6063_v13, %v6062_v54  ;;  %v6068_v32 = vld [vmem:[#allocation3 + $0x1b2] sm:$0xff]  ;;  %v7418_v13 = vld [vmem:[#allocation2 + $0x92] sm:$0xff]  ;;  %v7419_v54 = vld [vmem:[#allocation2 + $0x9a] sm:$0xff] }
 0x5bd   : > { %24559 = vmatmul.mubr.msk.bf16.gmra.mrb[12].mxu0 %vm784_vm3, %v6079_v16  ;;  %v7410_v16 = vld [vmem:[#allocation2 + $0x32] sm:$0xff] }
 0x5be   : > { %24562 = vmatprep.mubr.msk.bf16.mxu0 %vm784_vm3, %v6080_v62  ;;  %v30315_v30 = vpack.c.bf16 %v7411_v20, %v7410_v16  ;;  %v7412_v20 = vld [vmem:[#allocation2 + $0x4a] sm:$0xff]  ;;  %v7413_v62 = vld [vmem:[#allocation2 + $0x52] sm:$0xff]  ;;  %v7416_v16 = vld [vmem:[#allocation2 + $0x7a] sm:$0xff] }
 0x5bf   : > { %24713 = vmatmul.mubr.msk.bf16.gmra.mrb[156].mxu1 %vm1325_vm5, %v30304_v37  ;;  %v30331_v34 = vpack.c.bf16 %v7413_v62, %v7412_v20  ;;  %v6071_v20 = vld [vmem:[#allocation3 + $0x1d2] sm:$0xff]  ;;  %v30344_v62 = vpack.c.bf16 %v7419_v54, %v7418_v13  ;;  %v6336_v54 = vld [vmem:[#allocation3 + $0x7c] sm:$0xff] }
 0x5c0   : > { %24718 = vmatprep.mubr.msk.bf16.mxu1 %vm1325_vm5, %v7438_v58  ;;  %v7415_v58 = vld [vmem:[#allocation2 + $0x6a] sm:$0xff] }
 0x5c5   : > { %24563 = vmatmul.mubr.msk.bf16.gmra.mrb[16].mxu0 %vm784_vm3, %v6081_v8  ;;  %v30333_v8 = vpack.c.bf16 %v7415_v58, %v7414_v4  ;;  %v6334_v58 = vld [vmem:[#allocation3 + $0x64] sm:$0xff] }
 0x5c6   : > { %24566 = vmatprep.mubr.msk.bf16.mxu0 %vm784_vm3, %v6082_v10  ;;  %v6086_v10 = vpack.c.bf16 %v6069_v40, %v6068_v32  ;;  %v6335_v32 = vld [vmem:[#allocation3 + $0x6c] sm:$0xff]  ;;  %v7420_v40 = vld [vmem:[#allocation2 + $0xaa] sm:$0xff] }
 0x5c7   : > { %24719 = vmatmul.mubr.msk.bf16.vlgmr.msra.gmra.mrb[128].mxu1 %vm1325_vm5, %v30311_v51 }
 0x5c8   : > { %24751 = vmatpush3.bf16.msra.mxu1 %v7799_v19  ;;  %24722 = vmatprep.mubr.msk.bf16.mxu1 %vm1325_vm5, %v30315_v30  ;;  %v7417_v19 = vld [vmem:[#allocation2 + $0x82] sm:$0xff] }
 0x5c9   : > { %28230 = vmatprep.subr.msk.bf16.mxu1 %vm1505_vm1, %v30320_v55 }
 0x5cd   : > { %24567 = vmatmul.mubr.msk.bf16.gmra.mrb[20].mxu0 %vm784_vm3, %v6083_v48  ;;  %v6070_v48 = vld [vmem:[#allocation3 + $0x1ca] sm:$0xff] }
 0x5ce   : > { %24570 = vmatprep.mubr.msk.bf16.mxu0 %vm784_vm3, %v29994_v12  ;;  %v30341_v12 = vpack.c.bf16 %v7417_v19, %v7416_v16  ;;  %v6087_v4 = vpack.c.bf16 %v6071_v20, %v6070_v48  ;;  %v7422_v16 = vld [vmem:[#allocation2 + $0xc2] sm:$0xff]  ;;  %v7423_v19 = vld [vmem:[#allocation2 + $0xca] sm:$0xff]  ;;  %v6337_v48 = vld [vmem:[#allocation3 + $0x84] sm:$0xff] }
 0x5cf   : > { %24723 = vmatmul.mubr.msk.bf16.gmra.mrb[132].mxu1 %vm1325_vm5, %v30331_v34  ;;  %v30354_v13 = vpack.c.bf16 %v7423_v19, %v7422_v16  ;;  %v6338_v20 = vld [vmem:[#allocation3 + $0x94] sm:$0xff]  ;;  %v6340_v16 = vld [vmem:[#allocation3 + $0xac] sm:$0xff] }
 0x5d0   : > { %24726 = vmatprep.mubr.msk.bf16.mxu1 %vm1325_vm5, %v30333_v8  ;;  %v6341_v19 = vld [vmem:[#allocation3 + $0xb4] sm:$0xff] }
 0x5d5   : > { %24571 = vmatmul.mubr.msk.bf16.gmra.mrb[24].mxu0 %vm784_vm3, %v30008_v41  ;;  %v6366_v41 = vpack.c.bf16 %v6335_v32, %v6334_v58  ;;  %v6339_v58 = vld [vmem:[#allocation3 + $0x9c] sm:$0xff]  ;;  %v6367_v32 = vpack.c.bf16 %v6337_v48, %v6336_v54  ;;  %v6342_v54 = vld [vmem:[#allocation3 + $0xc4] sm:$0xff]  ;;  %v6343_v48 = vld [vmem:[#allocation3 + $0xcc] sm:$0xff] }
 0x5d6   : > { %24574 = vmatprep.mubr.msk.bf16.mxu0 %vm784_vm3, %v6086_v10  ;;  %v30352_v10 = vpack.c.bf16 %v7421_v39, %v7420_v40  ;;  %v30362_v39 = vpack.c.bf16 %v7425_v28, %v7424_v56  ;;  %v6344_v56 = vld [vmem:[#allocation3 + $0xdc] sm:$0xff] }
 0x5d7   : > { %24727 = vmatmul.mubr.msk.bf16.gmra.mrb[136].mxu1 %vm1325_vm5, %v30341_v12 }
 0x5d8   : > { %24730 = vmatprep.mubr.msk.bf16.mxu1 %vm1325_vm5, %v30344_v62 }
 0x5dd   : > { %24575 = vmatmul.mubr.msk.bf16.gmra.mrb[28].mxu0 %vm784_vm3, %v6087_v4  ;;  %v6368_v4 = vpack.c.bf16 %v6339_v58, %v6338_v20  ;;  %v6369_v20 = vpack.c.bf16 %v6341_v19, %v6340_v16  ;;  %v7428_v58 = vld [vmem:[#allocation2 + $0x10a] sm:$0xff] }
 0x5de   : > { %24580 = vmatprep.mubr.msk.bf16.mxu0 %vm784_vm3, %v6366_v41  ;;  %v7427_v41 = vld [vmem:[#allocation2 + $0xfa] sm:$0xff]  ;;  %v6346_v16 = vld [vmem:[#allocation3 + $0xf4] sm:$0xff]  ;;  %v6347_v19 = vld [vmem:[#allocation3 + $0xfc] sm:$0xff] }
 0x5df   : > { %24731 = vmatmul.mubr.msk.bf16.gmra.mrb[140].mxu1 %vm1325_vm5, %v30352_v10  ;;  %v30364_v40 = vpack.c.bf16 %v7427_v41, %v7426_v6  ;;  %v30372_v6 = vpack.c.bf16 %v7429_v59, %v7428_v58  ;;  %v6345_v41 = vld [vmem:[#allocation3 + $0xe4] sm:$0xff]  ;;  %v6348_v58 = vld [vmem:[#allocation3 + $0x10c] sm:$0xff] }
 0x5e0   : > { %24734 = vmatprep.mubr.msk.bf16.mxu1 %vm1325_vm5, %v30354_v13 }
 0x5e5   : > { %24581 = vmatmul.mubr.msk.bf16.vlgmr.msra.gmra.mrb[0].mxu0 %vm784_vm3, %v6367_v32  ;;  %v6370_v32 = vpack.c.bf16 %v6343_v48, %v6342_v54  ;;  %v6371_v54 = vpack.c.bf16 %v6345_v41, %v6344_v56  ;;  %v7432_v48 = vld [vmem:[#allocation2 + $0x13a] sm:$0xff] }
 0x5e6   : > { %24584 = vmatprep.mubr.msk.bf16.mxu0 %vm784_vm3, %v6368_v4  ;;  %v7431_v4 = vld [vmem:[#allocation2 + $0x12a] sm:$0xff]  ;;  %v6350_v56 = vld [vmem:[#allocation3 + $0x124] sm:$0xff]  ;;  %v6351_v41 = vld [vmem:[#allocation3 + $0x12c] sm:$0xff] }
 0x5e7   : > { %24735 = vmatmul.mubr.msk.bf16.gmra.mrb[144].mxu1 %vm1325_vm5, %v30362_v39  ;;  %v30374_v28 = vpack.c.bf16 %v7431_v4, %v7430_v25  ;;  %v30382_v25 = vpack.c.bf16 %v7433_v7, %v7432_v48  ;;  %v6349_v4 = vld [vmem:[#allocation3 + $0x114] sm:$0xff]  ;;  %v6352_v7 = vld [vmem:[#allocation3 + $0x13c] sm:$0xff]  ;;  %v6353_v48 = vld [vmem:[#allocation3 + $0x144] sm:$0xff] }
 0x5e8   : > { %24738 = vmatprep.mubr.msk.bf16.mxu1 %vm1325_vm5, %v30364_v40 }
 0x5ed   : > { %24585 = vmatmul.mubr.msk.bf16.gmra.mrb[4].mxu0 %vm784_vm3, %v6369_v20  ;;  %v6372_v20 = vpack.c.bf16 %v6347_v19, %v6346_v16  ;;  %v6373_v16 = vpack.c.bf16 %v6349_v4, %v6348_v58  ;;  %v7436_v19 = vld [vmem:[#allocation2 + $0x16a] sm:$0xff]  ;;  %v6375_v58 = vpack.c.bf16 %v6353_v48, %v6352_v7  ;;  %v6364_v7 = vld [vmem:[#allocation3 + $0x1cc] sm:$0xff] }
 0x5ee   : > { %24588 = vmatprep.mubr.msk.bf16.mxu0 %vm784_vm3, %v6370_v32  ;;  %v7435_v32 = vld [vmem:[#allocation2 + $0x15a] sm:$0xff]  ;;  %v6365_v48 = vld [vmem:[#allocation3 + $0x1d4] sm:$0xff] }
 0x5ef   : > { %24739 = vmatmul.mubr.msk.bf16.gmra.mrb[148].mxu1 %vm1325_vm5, %v30372_v6  ;;  %v30384_v59 = vpack.c.bf16 %v7435_v32, %v7434_v44  ;;  %v30392_v44 = vpack.c.bf16 %v7437_v60, %v7436_v19  ;;  %v6355_v32 = vld [vmem:[#allocation3 + $0x15c] sm:$0xff]  ;;  %v8093_v60 = vsel %vm1505_vm1, %v30320_v55, 0  ;;  %v6362_v55 = vld [vmem:[#allocation3 + $0x1b4] sm:$0xff] }
 0x5f0   : > { %24742 = vmatprep.mubr.msk.bf16.mxu1 %vm1325_vm5, %v30374_v28  ;;  %v6363_v19 = vld [vmem:[#allocation3 + $0x1bc] sm:$0xff] }
 0x5f5   : > { %24589 = vmatmul.mubr.msk.bf16.gmra.mrb[8].mxu0 %vm784_vm3, %v6371_v54  ;;  %v6374_v54 = vpack.c.bf16 %v6351_v41, %v6350_v56  ;;  %v21993_v56 = vld [vmem:[%s33765_s28 + $0xa] sm:$0x3]  ;;  %v6356_v41 = vld [vmem:[#allocation3 + $0x16c] sm:$0xff] }
 0x5f6   : > { %24592 = vmatprep.mubr.msk.bf16.mxu0 %vm784_vm3, %v6372_v20  ;;  %v6354_v20 = vld [vmem:[#allocation3 + $0x154] sm:$0xff] }
 0x5f7   : > { %24743 = vmatmul.mubr.msk.bf16.gmra.mrb[152].mxu1 %vm1325_vm5, %v30382_v25  ;;  %v6376_v4 = vpack.c.bf16 %v6355_v32, %v6354_v20  ;;  %v22010_v20 = vld [vmem:[%s33765_s28 + $0xc] sm:$0x3] }
 0x5f8   : > { %24746 = vmatprep.mubr.msk.bf16.mxu1 %vm1325_vm5, %v30384_v59  ;;  %v8001_v32 = vld [vmem:[#allocation2 + $0x69] sm:$0xff] }
 0x5fd   : > { %24593 = vmatmul.mubr.msk.bf16.gmra.mrb[12].mxu0 %vm784_vm3, %v6373_v16 }
 0x5fe   : > { %24596 = vmatprep.mubr.msk.bf16.mxu0 %vm784_vm3, %v6374_v54  ;;  %v6380_v54 = vpack.c.bf16 %v6363_v19, %v6362_v55 }
 0x5ff   : > { %24747 = vmatmul.mubr.msk.bf16.gmra.mrb[156].mxu1 %vm1325_vm5, %v30392_v44 }
 0x600   : > { %24752 = vmatprep.mubr.msk.bf16.mxu1 %vm1325_vm5, %v30221_v18  ;;  %v6357_v18 = vld [vmem:[#allocation3 + $0x174] sm:$0xff] }
 0x601   : > { %v6377_v16 = vpack.c.bf16 %v6357_v18, %v6356_v41  ;;  %v8005_v18 = vld [vmem:[#allocation2 + $0x99] sm:$0xff] }
 0x605   : > { %24597 = vmatmul.mubr.msk.bf16.gmra.mrb[16].mxu0 %vm784_vm3, %v6375_v58  ;;  %v8003_v58 = vld [vmem:[#allocation2 + $0x81] sm:$0xff] }
 0x606   : > { %24600 = vmatprep.mubr.msk.bf16.mxu0 %vm784_vm3, %v6376_v4  ;;  %v8000_v4 = vld [vmem:[#allocation2 + $0x61] sm:$0xff] }
 0x607   : > { %24753 = vmatmul.mubr.msk.bf16.vlgmr.msra.gmra.mrb[128].mxu1 %vm1325_vm5, %v30225_v15 }
 0x608   : > { %24785 = vmatpush3.bf16.msra.mxu1 %v8093_v60  ;;  %24756 = vmatprep.mubr.msk.bf16.mxu1 %vm1325_vm5, %v30241_v63  ;;  %v30459_v60 = vpack.c.bf16 %v8001_v32, %v8000_v4  ;;  %v33804_v4 = vld [vmem:[#allocation35_spill] sm:$0xff] }
 0x609   : > { %28231 = vmatprep.subr.msk.bf16.mxu1 %vm1505_vm1, %v21993_v56 }
 0x60d   : > { %24601 = vmatmul.mubr.msk.bf16.gmra.mrb[20].mxu0 %vm784_vm3, %v6377_v16  ;;  %v8004_v16 = vld [vmem:[#allocation2 + $0x91] sm:$0xff] }
 0x60e   : > { %24604 = vmatprep.mubr.msk.bf16.mxu0 %vm784_vm3, %v30118_v21  ;;  %v6381_v21 = vpack.c.bf16 %v6365_v48, %v6364_v7  ;;  %v30467_v55 = vpack.c.bf16 %v8005_v18, %v8004_v16  ;;  %v8587_v48 = vld [vmem:[#allocation2 + $0x68] sm:$0xff]  ;;  %v8591_v18 = vld [vmem:[#allocation2 + $0x98] sm:$0xff] }
 0x60f   : > { %24757 = vmatmul.mubr.msk.bf16.gmra.mrb[132].mxu1 %vm1325_vm5, %v30243_v36  ;;  %v7995_v36 = vld [vmem:[#allocation2 + $0x21] sm:$0xff]  ;;  %v8588_v16 = vld [vmem:[#allocation2 + $0x78] sm:$0xff] }
 0x610   : > { %24760 = vmatprep.mubr.msk.bf16.mxu1 %vm1325_vm5, %v30251_v35  ;;  %v7730_v35 = vld [vmem:[#allocation2 + $0x180] sm:$0xff] }
 0x615   : > { %24605 = vmatmul.mubr.msk.bf16.gmra.mrb[24].mxu0 %vm784_vm3, %v30132_v0  ;;  %v7731_v0 = vld [vmem:[#allocation2 + $0x188] sm:$0xff] }
 0x616   : > { %24608 = vmatprep.mubr.msk.bf16.mxu0 %vm784_vm3, %v6380_v54 }
 0x617   : > { %24761 = vmatmul.mubr.msk.bf16.gmra.mrb[136].mxu1 %vm1325_vm5, %v30254_v57  ;;  %v30441_v57 = vpack.c.bf16 %v7731_v0, %v7730_v35  ;;  %v30581_v35 = vld [vmem:[%s33765_s28 + $0x10] sm:$0x3] }
 0x618   : > { %24764 = vmatprep.mubr.msk.bf16.mxu1 %vm1325_vm5, %v30262_v9 }
 0x61d   : > { %24609 = vmatmul.mubr.msk.bf16.gmra.mrb[28].mxu0 %vm784_vm3, %v6381_v21 }
 0x61f   : > { %24765 = vmatmul.mubr.msk.bf16.gmra.mrb[140].mxu1 %vm1325_vm5, %v30264_v24  ;;  %v7997_v24 = vld [vmem:[#allocation2 + $0x39] sm:$0xff] }
 0x620   : > { %24768 = vmatprep.mubr.msk.bf16.mxu1 %vm1325_vm5, %v30274_v31  ;;  %v7999_v31 = vld [vmem:[#allocation2 + $0x51] sm:$0xff] }
 0x627   : > { %24769 = vmatmul.mubr.msk.bf16.gmra.mrb[144].mxu1 %vm1325_vm5, %v30276_v1  ;;  %v7994_v1 = vld [vmem:[#allocation2 + $0x19] sm:$0xff] }
 0x628   : > { %24772 = vmatprep.mubr.msk.bf16.mxu1 %vm1325_vm5, %v30284_v5  ;;  %v8026_v9 = vpack.c.bf16 %v7995_v36, %v7994_v1  ;;  %v7996_v5 = vld [vmem:[#allocation2 + $0x31] sm:$0xff]  ;;  %v8586_v36 = vld [vmem:[#allocation2 + $0x60] sm:$0xff] }
 0x62f   : > { %24773 = vmatmul.mubr.msk.bf16.gmra.mrb[148].mxu1 %vm1325_vm5, %v30286_v49  ;;  %v30446_v49 = vpack.c.bf16 %v7997_v24, %v7996_v5 }
 0x630   : > { %24776 = vmatprep.mubr.msk.bf16.mxu1 %vm1325_vm5, %v30294_v2  ;;  %v8387_v2 = vsel %vm1505_vm1, %v21993_v56, 0  ;;  %v8002_v56 = vld [vmem:[#allocation2 + $0x79] sm:$0xff] }
 0x631   : > { %v30461_v41 = vpack.c.bf16 %v8003_v58, %v8002_v56  ;;  %v8589_v58 = vld [vmem:[#allocation2 + $0x80] sm:$0xff] }
 0x637   : > { %24777 = vmatmul.mubr.msk.bf16.gmra.mrb[152].mxu1 %vm1325_vm5, %v30296_v17  ;;  %v7998_v17 = vld [vmem:[#allocation2 + $0x49] sm:$0xff] }
 0x638   : > { %24780 = vmatprep.mubr.msk.bf16.mxu1 %vm1325_vm5, %v30304_v37  ;;  %v30449_v37 = vpack.c.bf16 %v7999_v31, %v7998_v17  ;;  %v33803_v17 = vld [vmem:[#allocation34_spill] sm:$0xff] }
 0x63f   : > { %24781 = vmatmul.mubr.msk.bf16.gmra.mrb[156].mxu1 %vm1325_vm5, %v30441_v57 }
 0x640   : > { %24786 = vmatprep.mubr.msk.bf16.mxu1 %vm1325_vm5, %v8026_v9 }
 0x647   : > { %24787 = vmatmul.mubr.msk.bf16.vlgmr.msra.gmra.mrb[128].mxu1 %vm1325_vm5, %v30446_v49 }
 0x648   : > { %24819 = vmatpush3.bf16.msra.mxu1 %v8387_v2  ;;  %24790 = vmatprep.mubr.msk.bf16.mxu1 %vm1325_vm5, %v30449_v37 }
 0x649   : > { %28232 = vmatprep.subr.msk.bf16.mxu1 %vm1505_vm1, %v22010_v20 }
 0x64f   : > { %24791 = vmatmul.mubr.msk.bf16.gmra.mrb[132].mxu1 %vm1325_vm5, %v30459_v60 }
 0x650   : > { %24794 = vmatprep.mubr.msk.bf16.mxu1 %vm1325_vm5, %v30461_v41 }
 0x657   : > { %24795 = vmatmul.mubr.msk.bf16.gmra.mrb[136].mxu1 %vm1325_vm5, %v30467_v55 }
 0x658   : > { %24798 = vmatprep.mubr.msk.bf16.mxu1 %vm1325_vm5, %v30141_v38  ;;  %v8025_v38 = vld [vmem:[#allocation2 + $0x189] sm:$0xff] }
 0x65f   : > { %24799 = vmatmul.mubr.msk.bf16.gmra.mrb[140].mxu1 %vm1325_vm5, %v30143_v43  ;;  %v8024_v43 = vld [vmem:[#allocation2 + $0x181] sm:$0xff] }
 0x660   : > { %24802 = vmatprep.mubr.msk.bf16.mxu1 %vm1325_vm5, %v30166_v61  ;;  %v30489_v61 = vpack.c.bf16 %v8025_v38, %v8024_v43  ;;  %v8617_v43 = vpack.c.bf16 %v8589_v58, %v8588_v16  ;;  %v33818_v58 = vld [vmem:[#allocation41_spill] sm:$0xff] }
 0x667   : > { %24803 = vmatmul.mubr.msk.bf16.gmra.mrb[144].mxu1 %vm1325_vm5, %v30168_v14  ;;  %v8681_v14 = vsel %vm1505_vm1, %v22010_v20, 0 }
 0x668   : > { %24806 = vmatprep.mubr.msk.bf16.mxu1 %vm1325_vm5, %v30186_v50  ;;  %v22027_v50 = vld [vmem:[%s33765_s28 + $0xe] sm:$0x3] }
 0x66f   : > { %24807 = vmatmul.mubr.msk.bf16.gmra.mrb[148].mxu1 %vm1325_vm5, %v30188_v29 }
 0x670   : > { %24810 = vmatprep.mubr.msk.bf16.mxu1 %vm1325_vm5, %v30204_v23 }
 0x677   : > { %24811 = vmatmul.mubr.msk.bf16.gmra.mrb[152].mxu1 %vm1325_vm5, %v30206_v46 }
 0x678   : > { %24814 = vmatprep.mubr.msk.bf16.mxu1 %vm1325_vm5, %v30214_v33  ;;  %v30532_v33 = vld [vmem:[%s33794_s6] ss:$0 sm:$0xff]  ;;  %s21483_s6 = sshll.u32 %s33387_s0, 4  ;;  %s33531_s6 = int_to_ptr.vmem [resolvable:$true] %s21483_s6 }
 0x67f   : > { %24815 = vmatmul.mubr.msk.bf16.gmra.mrb[156].mxu1 %vm1325_vm5, %v30489_v61 }
 0x680   : > { %24820 = vmatprep.mubr.msk.bf16.mxu1 %vm1325_vm5, %v30311_v51 }
 0x687   : > { %24821 = vmatmul.mubr.msk.bf16.vlgmr.msra.gmra.mrb[128].mxu1 %vm1325_vm5, %v30315_v30 }
 0x688   : > { %24853 = vmatpush3.bf16.msra.mxu1 %v8681_v14  ;;  %24824 = vmatprep.mubr.msk.bf16.mxu1 %vm1325_vm5, %v30331_v34  ;;  %v8590_v14 = vld [vmem:[#allocation2 + $0x90] sm:$0xff] }
 0x689   : > { %28233 = vmatprep.subr.msk.bf16.mxu1 %vm1505_vm1, %v22027_v50 }
 0x68f   : > { %24825 = vmatmul.mubr.msk.bf16.gmra.mrb[132].mxu1 %vm1325_vm5, %v30333_v8 }
 0x690   : > { %24828 = vmatprep.mubr.msk.bf16.mxu1 %vm1325_vm5, %v30341_v12  ;;  %v8318_v12 = vld [vmem:[#allocation2 + $0x182] sm:$0xff] }
 0x697   : > { %24829 = vmatmul.mubr.msk.bf16.gmra.mrb[136].mxu1 %vm1325_vm5, %v30344_v62  ;;  %v8319_v62 = vld [vmem:[#allocation2 + $0x18a] sm:$0xff] }
 0x698   : > { %24832 = vmatprep.mubr.msk.bf16.mxu1 %vm1325_vm5, %v30352_v10 }
 0x69f   : > { %24833 = vmatmul.mubr.msk.bf16.gmra.mrb[140].mxu1 %vm1325_vm5, %v30354_v13 }
 0x6a0   : > { %24836 = vmatprep.mubr.msk.bf16.mxu1 %vm1325_vm5, %v30362_v39 }
 0x6a7   : > { %24837 = vmatmul.mubr.msk.bf16.gmra.mrb[144].mxu1 %vm1325_vm5, %v30364_v40 }
 0x6a8   : > { %24840 = vmatprep.mubr.msk.bf16.mxu1 %vm1325_vm5, %v30372_v6 }
 0x6af   : > { %24841 = vmatmul.mubr.msk.bf16.gmra.mrb[148].mxu1 %vm1325_vm5, %v30374_v28 }
 0x6b0   : > { %24844 = vmatprep.mubr.msk.bf16.mxu1 %vm1325_vm5, %v30382_v25 }
 0x6b7   : > { %24845 = vmatmul.mubr.msk.bf16.gmra.mrb[152].mxu1 %vm1325_vm5, %v30384_v59 }
 0x6b8   : > { %v24582_v29 = vpop.f32.mrb[0].mxu0  ;;  %24848 = vmatprep.mubr.msk.bf16.mxu1 %vm1325_vm5, %v30392_v44 }
 0x6b9   : > { %v26352_v23 = vadd.f32 %v24582_v29, %v29822_v45  ;;  %v6469_v46 = vpop.f32.mrb[1].mxu0  ;;  %v8618_v29 = vpack.c.bf16 %v8591_v18, %v8590_v14  ;;  %v33819_v18 = vld [vmem:[#allocation42_spill] sm:$0xff] }
 0x6ba   : > { %v26353_v51 = vadd.f32 %v6469_v46, %v29824_v42  ;;  %v24583_v30 = vpop.f32.mrb[2].mxu0  ;;  %v30549_v42 = vpack.c.bf16 %v8319_v62, %v8318_v12  ;;  %v8597_v14 = vld [vmem:[#allocation2 + $0xe0] sm:$0xff] }
 0x6bb   : > { %v26354_v34 = vadd.f32 %v24583_v30, %v29826_v47  ;;  %v6472_v8 = vpop.f32.mrb[3].mxu0  ;;  %v30538_v45 = vadd.f32 %v26352_v23, %v30532_v33 }
 0x6bc   : > { %v26355_v10 = vadd.f32 %v6472_v8, %v29830_v3  ;;  %v30544_v39 = vadd.f32 %v26353_v51, %v30532_v33  ;;  %v33809_v51 = vld [vmem:[#allocation36_spill] sm:$0xff]  ;;  %v33810_v8 = vld [vmem:[#allocation37_spill] sm:$0xff] }
 0x6bd   : > { %33795 = vst [vmem:[#allocation56_spill] sm:$0xff] %v30538_v45  ;;  %v30541_v13 = vadd.f32 %v26354_v34, %v30532_v33 }
 0x6be   : > { %33797 = vst [vmem:[#allocation58_spill] sm:$0xff] %v30544_v39  ;;  %v30547_v40 = vadd.f32 %v26355_v10, %v30532_v33  ;;  %v33811_v10 = vld [vmem:[#allocation38_spill] sm:$0xff] }
 0x6bf   : > { %33796 = vst [vmem:[#allocation57_spill] sm:$0xff] %v30541_v13  ;;  %24849 = vmatmul.mubr.msk.bf16.gmra.mrb[156].mxu1 %vm1325_vm5, %v30549_v42 }
 0x6c0   : > { %33798 = vst [vmem:[#allocation59_spill] sm:$0xff] %v30547_v40  ;;  %v24586_v6 = vpop.f32.mrb[4].mxu0  ;;  %24854 = vmatprep.mubr.msk.bf16.mxu1 %vm1325_vm5, %v30225_v15 }
 0x6c1   : > { %v26356_v28 = vadd.f32 %v24586_v6, %v29962_v26  ;;  %v6485_v25 = vpop.f32.mrb[5].mxu0 }
 0x6c2   : > { %v26357_v59 = vadd.f32 %v6485_v25, %v29964_v53  ;;  %v24587_v44 = vpop.f32.mrb[6].mxu0  ;;  %v8975_v53 = vsel %vm1505_vm1, %v22027_v50, 0  ;;  %v8593_v25 = vld [vmem:[#allocation2 + $0xb0] sm:$0xff] }
 0x6c3   : > { %v26358_v19 = vadd.f32 %v24587_v44, %v29966_v27  ;;  %v6488_v54 = vpop.f32.mrb[7].mxu0  ;;  %v30564_v21 = vadd.f32 %v26356_v28, %v30532_v33 }
 0x6c4   : > { %v26359_v7 = vadd.f32 %v6488_v54, %v29968_v22  ;;  %v30570_v26 = vadd.f32 %v26357_v59, %v30532_v33  ;;  %v8616_v22 = vpack.c.bf16 %v8587_v48, %v8586_v36  ;;  %v33812_v59 = vld [vmem:[#allocation39_spill] sm:$0xff] }
 0x6c5   : > { %33799 = vst [vmem:[#allocation60_spill] sm:$0xff] %v30564_v21  ;;  %v30567_v0 = vadd.f32 %v26358_v19, %v30532_v33  ;;  %v8595_v19 = vld [vmem:[#allocation2 + $0xc8] sm:$0xff] }
 0x6c6   : > { %33801 = vst [vmem:[#allocation62_spill] sm:$0xff] %v30570_v26  ;;  %v30573_v15 = vadd.f32 %v26359_v7, %v30532_v33  ;;  %v8592_v48 = vld [vmem:[#allocation2 + $0xa8] sm:$0xff] }
 0x6c7   : > { %33800 = vst [vmem:[#allocation61_spill] sm:$0xff] %v30567_v0  ;;  %24855 = vmatmul.mubr.msk.bf16.vlgmr.msra.gmra.mrb[128].mxu1 %vm1325_vm5, %v30241_v63 }
 0x6c8   : > { %33802 = vst [vmem:[#allocation63_spill] sm:$0xff] %v30573_v15  ;;  %v24590_v9 = vpop.f32.mrb[8].mxu0  ;;  %24887 = vmatpush3.bf16.msra.mxu1 %v8975_v53  ;;  %24858 = vmatprep.mubr.msk.bf16.mxu1 %vm1325_vm5, %v8616_v22  ;;  %v8619_v22 = vpack.c.bf16 %v8593_v25, %v8592_v48 }
 0x6c9   : > { %v26360_v24 = vadd.f32 %v24590_v9, %v29974_v52  ;;  %v6501_v31 = vpop.f32.mrb[9].mxu0  ;;  %28234 = vmatprep.subr.msk.bf16.mxu1 %vm1505_vm1, %v30581_v35  ;;  %v8594_v9 = vld [vmem:[#allocation2 + $0xc0] sm:$0xff] }
 0x6ca   : > { %v26361_v5 = vadd.f32 %v6501_v31, %v29976_v11  ;;  %v24591_v2 = vpop.f32.mrb[10].mxu0  ;;  %v8620_v31 = vpack.c.bf16 %v8595_v19, %v8594_v9  ;;  %v33825_v19 = vld [vmem:[#allocation44_spill] sm:$0xff]  ;;  %v33826_v9 = vld [vmem:[#allocation45_spill] sm:$0xff] }
 0x6cb   : > { %v26362_v20 = vadd.f32 %v24591_v2, %v33803_v17  ;;  %v6504_v32 = vpop.f32.mrb[11].mxu0  ;;  %v30595_v63 = vadd.f32 %v26360_v24, %v30532_v33  ;;  %v33817_v17 = vld [vmem:[#allocation40_spill] sm:$0xff] }
 0x6cc   : > { %v26363_v56 = vadd.f32 %v6504_v32, %v33804_v4  ;;  %v30601_v11 = vadd.f32 %v26361_v5, %v30532_v33 }
 0x6cd   : > { %33805 = vst [vmem:[#allocation34_spill] sm:$0xff] %v30595_v63  ;;  %v30598_v52 = vadd.f32 %v26362_v20, %v30532_v33 }
 0x6ce   : > { %33807 = vst [vmem:[#allocation64_spill] sm:$0xff] %v30601_v11  ;;  %v30604_v38 = vadd.f32 %v26363_v56, %v30532_v33 }
 0x6cf   : > { %33806 = vst [vmem:[#allocation35_spill] sm:$0xff] %v30598_v52  ;;  %24859 = vmatmul.mubr.msk.bf16.gmra.mrb[132].mxu1 %vm1325_vm5, %v8617_v43 }
 0x6d0   : > { %33808 = vst [vmem:[#allocation65_spill] sm:$0xff] %v30604_v38  ;;  %v24594_v46 = vpop.f32.mrb[12].mxu0  ;;  %24862 = vmatprep.mubr.msk.bf16.mxu1 %vm1325_vm5, %v8618_v29  ;;  %v33820_v29 = vld [vmem:[#allocation43_spill] sm:$0xff] }
 0x6d1   : > { %v26364_v30 = vadd.f32 %v24594_v46, %v33809_v51  ;;  %v6517_v34 = vpop.f32.mrb[13].mxu0  ;;  %v8599_v51 = vld [vmem:[#allocation2 + $0xf8] sm:$0xff] }
 0x6d2   : > { %v26365_v12 = vadd.f32 %v6517_v34, %v33810_v8  ;;  %v24595_v62 = vpop.f32.mrb[14].mxu0  ;;  %v8596_v8 = vld [vmem:[#allocation2 + $0xd8] sm:$0xff] }
 0x6d3   : > { %v26366_v6 = vadd.f32 %v24595_v62, %v33811_v10  ;;  %v6520_v28 = vpop.f32.mrb[15].mxu0  ;;  %v30617_v54 = vadd.f32 %v26364_v30, %v30532_v33  ;;  %v8621_v10 = vpack.c.bf16 %v8597_v14, %v8596_v8  ;;  %v8600_v14 = vld [vmem:[#allocation2 + $0x108] sm:$0xff]  ;;  %v8602_v8 = vld [vmem:[#allocation2 + $0x120] sm:$0xff] }
 0x6d4   : > { %v26367_v44 = vadd.f32 %v6520_v28, %v33812_v59  ;;  %v30623_v53 = vadd.f32 %v26365_v12, %v30532_v33  ;;  %v8609_v28 = vld [vmem:[#allocation2 + $0x170] sm:$0xff] }
 0x6d5   : > { %33813 = vst [vmem:[#allocation36_spill] sm:$0xff] %v30617_v54  ;;  %v30620_v7 = vadd.f32 %v26366_v6, %v30532_v33  ;;  %v8598_v6 = vld [vmem:[#allocation2 + $0xf0] sm:$0xff] }
 0x6d6   : > { %33815 = vst [vmem:[#allocation38_spill] sm:$0xff] %v30623_v53  ;;  %v30626_v36 = vadd.f32 %v26367_v44, %v30532_v33  ;;  %v8622_v25 = vpack.c.bf16 %v8599_v51, %v8598_v6 }
 0x6d7   : > { %33814 = vst [vmem:[#allocation37_spill] sm:$0xff] %v30620_v7  ;;  %24863 = vmatmul.mubr.msk.bf16.gmra.mrb[136].mxu1 %vm1325_vm5, %v8619_v22 }
 0x6d8   : > { %33816 = vst [vmem:[#allocation39_spill] sm:$0xff] %v30626_v36  ;;  %v24598_v2 = vpop.f32.mrb[16].mxu0  ;;  %24866 = vmatprep.mubr.msk.bf16.mxu1 %vm1325_vm5, %v8620_v31 }
 0x6d9   : > { %v26368_v20 = vadd.f32 %v24598_v2, %v33817_v17  ;;  %v6533_v32 = vpop.f32.mrb[17].mxu0  ;;  %v33827_v17 = vld [vmem:[#allocation46_spill] sm:$0xff] }
 0x6da   : > { %v26369_v4 = vadd.f32 %v6533_v32, %v33818_v58  ;;  %v24599_v56 = vpop.f32.mrb[18].mxu0  ;;  %v8601_v58 = vld [vmem:[#allocation2 + $0x110] sm:$0xff] }
 0x6db   : > { %v26370_v16 = vadd.f32 %v24599_v56, %v33819_v18  ;;  %v6536_v43 = vpop.f32.mrb[19].mxu0  ;;  %v30639_v30 = vadd.f32 %v26368_v20, %v30532_v33  ;;  %v8603_v18 = vld [vmem:[#allocation2 + $0x128] sm:$0xff]  ;;  %v8623_v51 = vpack.c.bf16 %v8601_v58, %v8600_v14  ;;  %v8605_v58 = vld [vmem:[#allocation2 + $0x140] sm:$0xff] }
 0x6dc   : > { %v26371_v46 = vadd.f32 %v6536_v43, %v33820_v29  ;;  %v30645_v12 = vadd.f32 %v26369_v4, %v30532_v33  ;;  %v33828_v4 = vld [vmem:[#allocation47_spill] sm:$0xff]  ;;  %v8624_v6 = vpack.c.bf16 %v8603_v18, %v8602_v8  ;;  %v8607_v18 = vld [vmem:[#allocation2 + $0x158] sm:$0xff] }
 0x6dd   : > { %33821 = vst [vmem:[#allocation40_spill] sm:$0xff] %v30639_v30  ;;  %v30642_v34 = vadd.f32 %v26370_v16, %v30532_v33  ;;  %v8604_v8 = vld [vmem:[#allocation2 + $0x138] sm:$0xff] }
 0x6de   : > { %33823 = vst [vmem:[#allocation42_spill] sm:$0xff] %v30645_v12  ;;  %v30648_v62 = vadd.f32 %v26371_v46, %v30532_v33 }
 0x6df   : > { %33822 = vst [vmem:[#allocation41_spill] sm:$0xff] %v30642_v34  ;;  %24867 = vmatmul.mubr.msk.bf16.gmra.mrb[140].mxu1 %vm1325_vm5, %v8621_v10 }
 0x6e0   : > { %33824 = vst [vmem:[#allocation43_spill] sm:$0xff] %v30648_v62  ;;  %v24602_v44 = vpop.f32.mrb[20].mxu0  ;;  %24870 = vmatprep.mubr.msk.bf16.mxu1 %vm1325_vm5, %v8622_v25 }
 0x6e1   : > { %v26372_v48 = vadd.f32 %v24602_v44, %v33825_v19  ;;  %v6549_v22 = vpop.f32.mrb[21].mxu0  ;;  %v33833_v19 = vld [vmem:[#allocation48_spill] sm:$0xff] }
 0x6e2   : > { %v26373_v31 = vadd.f32 %v6549_v22, %v33826_v9  ;;  %v24603_v2 = vpop.f32.mrb[22].mxu0  ;;  %v33834_v9 = vld [vmem:[#allocation49_spill] sm:$0xff] }
 0x6e3   : > { %v26374_v20 = vadd.f32 %v24603_v2, %v33827_v17  ;;  %v6552_v32 = vpop.f32.mrb[23].mxu0  ;;  %v30661_v16 = vadd.f32 %v26372_v48, %v30532_v33  ;;  %v33835_v17 = vld [vmem:[#allocation50_spill] sm:$0xff] }
 0x6e4   : > { %v26375_v56 = vadd.f32 %v6552_v32, %v33828_v4  ;;  %v30667_v29 = vadd.f32 %v26373_v31, %v30532_v33  ;;  %v33836_v4 = vld [vmem:[#allocation51_spill] sm:$0xff] }
 0x6e5   : > { %33829 = vst [vmem:[#allocation44_spill] sm:$0xff] %v30661_v16  ;;  %v30664_v43 = vadd.f32 %v26374_v20, %v30532_v33 }
 0x6e6   : > { %33831 = vst [vmem:[#allocation46_spill] sm:$0xff] %v30667_v29  ;;  %v30670_v46 = vadd.f32 %v26375_v56, %v30532_v33 }
 0x6e7   : > { %33830 = vst [vmem:[#allocation45_spill] sm:$0xff] %v30664_v43  ;;  %24871 = vmatmul.mubr.msk.bf16.gmra.mrb[144].mxu1 %vm1325_vm5, %v8623_v51 }
 0x6e8   : > { %33832 = vst [vmem:[#allocation47_spill] sm:$0xff] %v30670_v46  ;;  %v24606_v44 = vpop.f32.mrb[24].mxu0  ;;  %24874 = vmatprep.mubr.msk.bf16.mxu1 %vm1325_vm5, %v8624_v6 }
 0x6e9   : > { %v26376_v48 = vadd.f32 %v24606_v44, %v33833_v19  ;;  %v6565_v22 = vpop.f32.mrb[25].mxu0  ;;  %v8625_v19 = vpack.c.bf16 %v8605_v58, %v8604_v8  ;;  %v33843_v58 = vld [vmem:[#allocation54_spill] sm:$0xff] }
 0x6ea   : > { %v26377_v31 = vadd.f32 %v6565_v22, %v33834_v9  ;;  %v24607_v2 = vpop.f32.mrb[26].mxu0  ;;  %v8606_v22 = vld [vmem:[#allocation2 + $0x150] sm:$0xff]  ;;  %v33844_v9 = vld [vmem:[#allocation55_spill] sm:$0xff] }
 0x6eb   : > { %v26378_v20 = vadd.f32 %v24607_v2, %v33835_v17  ;;  %v6568_v32 = vpop.f32.mrb[27].mxu0  ;;  %v30683_v14 = vadd.f32 %v26376_v48, %v30532_v33  ;;  %v8626_v2 = vpack.c.bf16 %v8607_v18, %v8606_v22 }
 0x6ec   : > { %v26379_v56 = vadd.f32 %v6568_v32, %v33836_v4  ;;  %v30689_v44 = vadd.f32 %v26377_v31, %v30532_v33  ;;  %v33842_v31 = vld [vmem:[#allocation53_spill] sm:$0xff] }
 0x6ed   : > { %33837 = vst [vmem:[#allocation48_spill] sm:$0xff] %v30683_v14  ;;  %v30686_v51 = vadd.f32 %v26378_v20, %v30532_v33  ;;  %v33841_v20 = vld [vmem:[#allocation52_spill] sm:$0xff] }
 0x6ee   : > { %33839 = vst [vmem:[#allocation50_spill] sm:$0xff] %v30689_v44  ;;  %v30692_v6 = vadd.f32 %v26379_v56, %v30532_v33 }
 0x6ef   : > { %33838 = vst [vmem:[#allocation49_spill] sm:$0xff] %v30686_v51  ;;  %24875 = vmatmul.mubr.msk.bf16.gmra.mrb[148].mxu1 %vm1325_vm5, %v8625_v19  ;;  %v8608_v19 = vld [vmem:[#allocation2 + $0x168] sm:$0xff] }
 0x6f0   : > { %33840 = vst [vmem:[#allocation51_spill] sm:$0xff] %v30692_v6  ;;  %v24610_v17 = vpop.f32.mrb[28].mxu0  ;;  %24878 = vmatprep.mubr.msk.bf16.mxu1 %vm1325_vm5, %v8626_v2 }
 0x6f1   : > { %v26380_v32 = vadd.f32 %v24610_v17, %v33841_v20  ;;  %v6581_v4 = vpop.f32.mrb[29].mxu0  ;;  %v8627_v20 = vpack.c.bf16 %v8609_v28, %v8608_v19  ;;  %v8890_v19 = vld [vmem:[#allocation2 + $0xd9] sm:$0xff] }
 0x6f2   : > { %v26381_v56 = vadd.f32 %v6581_v4, %v33842_v31  ;;  %v24611_v10 = vpop.f32.mrb[30].mxu0  ;;  %v8889_v31 = vld [vmem:[#allocation2 + $0xc9] sm:$0xff] }
 0x6f3   : > { %v26382_v8 = vadd.f32 %v24611_v10, %v33843_v58  ;;  %v6584_v25 = vpop.f32.mrb[31].mxu0  ;;  %v30705_v22 = vadd.f32 %v26380_v32, %v30532_v33  ;;  %v8613_v32 = vld [vmem:[#allocation2 + $0x1a0] sm:$0xff] }
 0x6f4   : > { %v26383_v18 = vadd.f32 %v6584_v25, %v33844_v9  ;;  %v30711_v17 = vadd.f32 %v26381_v56, %v30532_v33  ;;  %v8612_v9 = vld [vmem:[#allocation2 + $0x198] sm:$0xff]  ;;  %v8886_v56 = vld [vmem:[#allocation2 + $0xa9] sm:$0xff] }
 0x6f5   : > { %33845 = vst [vmem:[#allocation52_spill] sm:$0xff] %v30705_v22  ;;  %v30708_v48 = vadd.f32 %v26382_v8, %v30532_v33  ;;  %v8629_v4 = vpack.c.bf16 %v8613_v32, %v8612_v9  ;;  %v8888_v8 = vld [vmem:[#allocation2 + $0xc1] sm:$0xff]  ;;  %v8894_v32 = vld [vmem:[#allocation2 + $0x109] sm:$0xff] }
 0x6f6   : > { %33847 = vst [vmem:[#allocation54_spill] sm:$0xff] %v30711_v17  ;;  %v30714_v2 = vadd.f32 %v26383_v18, %v30532_v33  ;;  %v22062_v33 = vld [vmem:[%s33849_s11 + $0x4] sm:$0xf]  ;;  %v8914_v18 = vpack.c.bf16 %v8889_v31, %v8888_v8  ;;  %v8898_v31 = vld [vmem:[#allocation2 + $0x139] sm:$0xff] }
 0x6f7   : > { %33846 = vst [vmem:[#allocation53_spill] sm:$0xff] %v30708_v48  ;;  %24879 = vmatmul.mubr.msk.bf16.gmra.mrb[152].mxu1 %vm1325_vm5, %v8627_v20  ;;  %28235 = vmatprep.subr.msk.bf16.mxu0 %vm4192_vm6, %v22062_v33  ;;  %v9716_v28 = vsel %vm4192_vm6, %v22062_v33, 0  ;;  %v8892_v20 = vld [vmem:[#allocation2 + $0xf1] sm:$0xff]  ;;  %v8896_v33 = vld [vmem:[#allocation2 + $0x121] sm:$0xff] }
 0x6f8   : > { %33848 = vst [vmem:[#allocation55_spill] sm:$0xff] %v30714_v2  ;;  %24882 = vmatprep.mubr.msk.bf16.mxu1 %vm1325_vm5, %v30441_v57  ;;  %24955 = vmatpush3.bf16.msra.mxu0 %v9716_v28  ;;  %v9269_v57 = vsel %vm1505_vm1, %v30581_v35, 0  ;;  %v8893_v35 = vld [vmem:[#allocation2 + $0xf9] sm:$0xff] }
 0x6f9   : > { %v8916_v9 = vpack.c.bf16 %v8893_v35, %v8892_v20 }
 0x6ff   : > { %24883 = vmatmul.mubr.msk.bf16.gmra.mrb[156].mxu1 %vm1325_vm5, %v8629_v4 }
 0x700   : > { %24888 = vmatprep.mubr.msk.bf16.mxu1 %vm1325_vm5, %v30446_v49  ;;  %v8887_v49 = vld [vmem:[#allocation2 + $0xb1] sm:$0xff] }
 0x701   : > { %v8913_v58 = vpack.c.bf16 %v8887_v49, %v8886_v56  ;;  %v8901_v49 = vld [vmem:[#allocation2 + $0x159] sm:$0xff] }
 0x707   : > { %24889 = vmatmul.mubr.msk.bf16.vlgmr.msra.gmra.mrb[128].mxu1 %vm1325_vm5, %v30449_v37  ;;  %v8891_v37 = vld [vmem:[#allocation2 + $0xe1] sm:$0xff] }
 0x708   : > { %24921 = vmatpush3.bf16.msra.mxu1 %v9269_v57  ;;  %24892 = vmatprep.mubr.msk.bf16.mxu1 %vm1325_vm5, %v30459_v60  ;;  %v8915_v60 = vpack.c.bf16 %v8891_v37, %v8890_v19  ;;  %v8899_v57 = vld [vmem:[#allocation2 + $0x141] sm:$0xff]  ;;  %v8902_v37 = vld [vmem:[#allocation2 + $0x169] sm:$0xff]  ;;  %v8906_v19 = vld [vmem:[#allocation2 + $0x199] sm:$0xff] }
 0x709   : > { %v8919_v56 = vpack.c.bf16 %v8899_v57, %v8898_v31  ;;  %v9177_v31 = vld [vmem:[#allocation2 + $0x82] sm:$0xff] }
 0x70f   : > { %24893 = vmatmul.mubr.msk.bf16.gmra.mrb[132].mxu1 %vm1325_vm5, %v30461_v41  ;;  %v8895_v41 = vld [vmem:[#allocation2 + $0x111] sm:$0xff] }
 0x710   : > { %24896 = vmatprep.mubr.msk.bf16.mxu1 %vm1325_vm5, %v30467_v55  ;;  %v8897_v55 = vld [vmem:[#allocation2 + $0x129] sm:$0xff]  ;;  %v8917_v4 = vpack.c.bf16 %v8895_v41, %v8894_v32  ;;  %v9171_v41 = vld [vmem:[#allocation2 + $0x3a] sm:$0xff] }
 0x711   : > { %v8918_v28 = vpack.c.bf16 %v8897_v55, %v8896_v33  ;;  %v9172_v32 = vld [vmem:[#allocation2 + $0x4a] sm:$0xff]  ;;  %v9174_v33 = vld [vmem:[#allocation2 + $0x62] sm:$0xff] }
 0x717   : > { %24897 = vmatmul.mubr.msk.bf16.gmra.mrb[136].mxu1 %vm1325_vm5, %v8913_v58  ;;  %v8900_v58 = vld [vmem:[#allocation2 + $0x151] sm:$0xff] }
 0x718   : > { %24900 = vmatprep.mubr.msk.bf16.mxu1 %vm1325_vm5, %v8914_v18  ;;  %v8920_v8 = vpack.c.bf16 %v8901_v49, %v8900_v58  ;;  %v8903_v18 = vld [vmem:[#allocation2 + $0x171] sm:$0xff]  ;;  %v9179_v58 = vld [vmem:[#allocation2 + $0x9a] sm:$0xff] }
 0x719   : > { %v8921_v35 = vpack.c.bf16 %v8903_v18, %v8902_v37  ;;  %v9180_v37 = vld [vmem:[#allocation2 + $0xaa] sm:$0xff] }
 0x71f   : > { %24901 = vmatmul.mubr.msk.bf16.gmra.mrb[140].mxu1 %vm1325_vm5, %v8915_v60  ;;  %v8907_v60 = vld [vmem:[#allocation2 + $0x1a1] sm:$0xff] }
 0x720   : > { %24904 = vmatprep.mubr.msk.bf16.mxu1 %vm1325_vm5, %v8916_v9  ;;  %v8923_v20 = vpack.c.bf16 %v8907_v60, %v8906_v19  ;;  %v9170_v9 = vld [vmem:[#allocation2 + $0x32] sm:$0xff]  ;;  %v9182_v19 = vld [vmem:[#allocation2 + $0xc2] sm:$0xff]  ;;  %v9183_v60 = vld [vmem:[#allocation2 + $0xca] sm:$0xff] }
 0x721   : > { %v9202_v55 = vpack.c.bf16 %v9171_v41, %v9170_v9  ;;  %v9208_v9 = vpack.c.bf16 %v9183_v60, %v9182_v19  ;;  %v9184_v41 = vld [vmem:[#allocation2 + $0xda] sm:$0xff] }
 0x727   : > { %24905 = vmatmul.mubr.msk.bf16.gmra.mrb[144].mxu1 %vm1325_vm5, %v8917_v4  ;;  %v9173_v4 = vld [vmem:[#allocation2 + $0x52] sm:$0xff] }
 0x728   : > { %24908 = vmatprep.mubr.msk.bf16.mxu1 %vm1325_vm5, %v8918_v28  ;;  %v9175_v28 = vld [vmem:[#allocation2 + $0x6a] sm:$0xff]  ;;  %v9203_v57 = vpack.c.bf16 %v9173_v4, %v9172_v32  ;;  %v9186_v32 = vld [vmem:[#allocation2 + $0xf2] sm:$0xff]  ;;  %v9187_v4 = vld [vmem:[#allocation2 + $0xfa] sm:$0xff] }
 0x729   : > { %v9204_v49 = vpack.c.bf16 %v9175_v28, %v9174_v33  ;;  %v9210_v28 = vpack.c.bf16 %v9187_v4, %v9186_v32  ;;  %v9201_v32 = vld [vmem:[#allocation2 + $0x1a2] sm:$0xff] }
 0x72f   : > { %24909 = vmatmul.mubr.msk.bf16.gmra.mrb[148].mxu1 %vm1325_vm5, %v8919_v56  ;;  %v9178_v56 = vld [vmem:[#allocation2 + $0x92] sm:$0xff] }
 0x730   : > { %24912 = vmatprep.mubr.msk.bf16.mxu1 %vm1325_vm5, %v8920_v8  ;;  %v9206_v18 = vpack.c.bf16 %v9179_v58, %v9178_v56 }
 0x737   : > { %24913 = vmatmul.mubr.msk.bf16.gmra.mrb[152].mxu1 %vm1325_vm5, %v8921_v35  ;;  %v9181_v35 = vld [vmem:[#allocation2 + $0xb2] sm:$0xff] }
 0x738   : > { %24916 = vmatprep.mubr.msk.bf16.mxu1 %vm1325_vm5, %v30489_v61  ;;  %v9176_v61 = vld [vmem:[#allocation2 + $0x7a] sm:$0xff] }
 0x739   : > { %v9205_v8 = vpack.c.bf16 %v9177_v31, %v9176_v61  ;;  %v9190_v61 = vld [vmem:[#allocation2 + $0x122] sm:$0xff]  ;;  %v9191_v31 = vld [vmem:[#allocation2 + $0x12a] sm:$0xff] }
 0x73a   : > { %v9212_v58 = vpack.c.bf16 %v9191_v31, %v9190_v61 }
 0x73f   : > { %24917 = vmatmul.mubr.msk.bf16.gmra.mrb[156].mxu1 %vm1325_vm5, %v8923_v20  ;;  %v9207_v20 = vpack.c.bf16 %v9181_v35, %v9180_v37  ;;  %v9194_v37 = vld [vmem:[#allocation2 + $0x152] sm:$0xff]  ;;  %v9195_v35 = vld [vmem:[#allocation2 + $0x15a] sm:$0xff] }
 0x740   : > { %24922 = vmatprep.mubr.msk.bf16.mxu1 %vm1325_vm5, %v9202_v55  ;;  %v9185_v55 = vld [vmem:[#allocation2 + $0xe2] sm:$0xff]  ;;  %v9214_v60 = vpack.c.bf16 %v9195_v35, %v9194_v37 }
 0x741   : > { %v9209_v33 = vpack.c.bf16 %v9185_v55, %v9184_v41  ;;  %v9200_v55 = vld [vmem:[#allocation2 + $0x19a] sm:$0xff] }
 0x742   : > { %v9217_v4 = vpack.c.bf16 %v9201_v32, %v9200_v55 }
 0x747   : > { %24923 = vmatmul.mubr.msk.bf16.vlgmr.msra.gmra.mrb[128].mxu1 %vm1325_vm5, %v9203_v57  ;;  %v9188_v57 = vld [vmem:[#allocation2 + $0x10a] sm:$0xff] }
 0x748   : > { %24926 = vmatprep.mubr.msk.bf16.mxu1 %vm1325_vm5, %v9204_v49  ;;  %v9189_v49 = vld [vmem:[#allocation2 + $0x112] sm:$0xff] }
 0x749   : > { %v9211_v56 = vpack.c.bf16 %v9189_v49, %v9188_v57  ;;  %v33851_v57 = vmov 0.0   ;;  %v9619_v49 = vld [vmem:[#allocation4 + $0x1b] sm:$0xff] }
 0x74a   : > { %887 = vst.msk [vmem:[#allocation4 + $0x10] sm:$0x3f] %vm886_vm8, %v33851_v57  ;;  %890 = vst.msk [vmem:[#allocation4 + $0x28] sm:$0x3f] %vm886_vm8, %v33851_v57 }
 0x74b   : > { %893 = vst.msk [vmem:[#allocation4 + $0x40] sm:$0x3f] %vm886_vm8, %v33851_v57  ;;  %897 = vst.msk [vmem:[#allocation4 + $0x1d8] sm:$0x3f] %vm886_vm8, %v33851_v57 }
 0x74c   : > { %900 = vst.msk [vmem:[#allocation4 + $0x1f0] sm:$0x3f] %vm886_vm8, %v33851_v57  ;;  %903 = vst.msk [vmem:[#allocation4 + $0x208] sm:$0x3f] %vm886_vm8, %v33851_v57 }
 0x74d   : > { %905 = vst.msk [vmem:[#allocation4] sm:$0x7] %vm904_vm9, %v33851_v57  ;;  %906 = vst.msk [vmem:[#allocation4 + $0x18] sm:$0x7] %vm904_vm9, %v33851_v57 }
 0x74e   : > { %907 = vst.msk [vmem:[#allocation4 + $0x30] sm:$0x7] %vm904_vm9, %v33851_v57  ;;  %908 = vst.msk [vmem:[#allocation4 + $0x48] sm:$0x7] %vm904_vm9, %v33851_v57 }
 0x74f   : > { %24927 = vmatmul.mubr.msk.bf16.gmra.mrb[132].mxu1 %vm1325_vm5, %v9205_v8  ;;  %v9192_v8 = vld [vmem:[#allocation2 + $0x13a] sm:$0xff]  ;;  %909 = vst.msk [vmem:[#allocation4 + $0x60] sm:$0x7] %vm904_vm9, %v33851_v57  ;;  %910 = vst.msk [vmem:[#allocation4 + $0x78] sm:$0x7] %vm904_vm9, %v33851_v57 }
 0x750   : > { %24930 = vmatprep.mubr.msk.bf16.mxu1 %vm1325_vm5, %v9206_v18  ;;  %v9193_v18 = vld [vmem:[#allocation2 + $0x142] sm:$0xff]  ;;  %911 = vst.msk [vmem:[#allocation4 + $0x90] sm:$0x7] %vm904_vm9, %v33851_v57  ;;  %912 = vst.msk [vmem:[#allocation4 + $0xa8] sm:$0x7] %vm904_vm9, %v33851_v57 }
 0x751   : > { %v9213_v19 = vpack.c.bf16 %v9193_v18, %v9192_v8  ;;  %v9618_v61 = vld [vmem:[#allocation4 + $0xb] sm:$0xff]  ;;  %v9620_v31 = vld [vmem:[#allocation4 + $0x23] sm:$0xff]  ;;  %913 = vst.msk [vmem:[#allocation4 + $0xc0] sm:$0x7] %vm904_vm9, %v33851_v57  ;;  %914 = vst.msk [vmem:[#allocation4 + $0xd8] sm:$0x7] %vm904_vm9, %v33851_v57 }
 0x752   : > { %v9650_v8 = vpack.c.bf16 %v9620_v31, %v9619_v49  ;;  %v9622_v18 = vld [vmem:[#allocation4 + $0x3b] sm:$0xff]  ;;  %915 = vst.msk [vmem:[#allocation4 + $0xf0] sm:$0x7] %vm904_vm9, %v33851_v57  ;;  %916 = vst.msk [vmem:[#allocation4 + $0x108] sm:$0x7] %vm904_vm9, %v33851_v57 }
 0x753   : > { %917 = vst.msk [vmem:[#allocation4 + $0x120] sm:$0x7] %vm904_vm9, %v33851_v57  ;;  %918 = vst.msk [vmem:[#allocation4 + $0x138] sm:$0x7] %vm904_vm9, %v33851_v57 }
 0x754   : > { %919 = vst.msk [vmem:[#allocation4 + $0x150] sm:$0x7] %vm904_vm9, %v33851_v57  ;;  %920 = vst.msk [vmem:[#allocation4 + $0x168] sm:$0x7] %vm904_vm9, %v33851_v57 }
 0x755   : > { %921 = vst.msk [vmem:[#allocation4 + $0x180] sm:$0x7] %vm904_vm9, %v33851_v57  ;;  %922 = vst.msk [vmem:[#allocation4 + $0x198] sm:$0x7] %vm904_vm9, %v33851_v57 }
 0x756   : > { %923 = vst.msk [vmem:[#allocation4 + $0x1b0] sm:$0x7] %vm904_vm9, %v33851_v57  ;;  %924 = vst.msk [vmem:[#allocation4 + $0x1c8] sm:$0x7] %vm904_vm9, %v33851_v57 }
 0x757   : > { %24931 = vmatmul.mubr.msk.bf16.gmra.mrb[136].mxu1 %vm1325_vm5, %v9207_v20  ;;  %v9196_v20 = vld [vmem:[#allocation2 + $0x16a] sm:$0xff]  ;;  %925 = vst.msk [vmem:[#allocation4 + $0x1e0] sm:$0x7] %vm904_vm9, %v33851_v57  ;;  %926 = vst.msk [vmem:[#allocation4 + $0x1f8] sm:$0x7] %vm904_vm9, %v33851_v57 }
 0x758   : > { %24934 = vmatprep.mubr.msk.bf16.mxu1 %vm1325_vm5, %v9208_v9  ;;  %v9197_v9 = vld [vmem:[#allocation2 + $0x172] sm:$0xff]  ;;  %927 = vst.msk [vmem:[#allocation4 + $0x13] sm:$0x7] %vm904_vm9, %v33851_v57  ;;  %928 = vst.msk [vmem:[#allocation4 + $0x2b] sm:$0x7] %vm904_vm9, %v33851_v57 }
 0x759   : > { %v9215_v41 = vpack.c.bf16 %v9197_v9, %v9196_v20  ;;  %929 = vst.msk [vmem:[#allocation4 + $0x43] sm:$0x7] %vm904_vm9, %v33851_v57  ;;  %930 = vst.msk [vmem:[#allocation4 + $0x5b] sm:$0x7] %vm904_vm9, %v33851_v57 }
 0x75a   : > { %931 = vst.msk [vmem:[#allocation4 + $0x73] sm:$0x7] %vm904_vm9, %v33851_v57  ;;  %932 = vst.msk [vmem:[#allocation4 + $0x8b] sm:$0x7] %vm904_vm9, %v33851_v57 }
 0x75b   : > { %933 = vst.msk [vmem:[#allocation4 + $0xa3] sm:$0x7] %vm904_vm9, %v33851_v57  ;;  %934 = vst.msk [vmem:[#allocation4 + $0xbb] sm:$0x7] %vm904_vm9, %v33851_v57 }
 0x75c   : > { %935 = vst.msk [vmem:[#allocation4 + $0xd3] sm:$0x7] %vm904_vm9, %v33851_v57  ;;  %936 = vst.msk [vmem:[#allocation4 + $0xeb] sm:$0x7] %vm904_vm9, %v33851_v57 }
 0x75d   : > { %937 = vst.msk [vmem:[#allocation4 + $0x103] sm:$0x7] %vm904_vm9, %v33851_v57  ;;  %938 = vst.msk [vmem:[#allocation4 + $0x11b] sm:$0x7] %vm904_vm9, %v33851_v57 }
 0x75e   : > { %939 = vst.msk [vmem:[#allocation4 + $0x133] sm:$0x7] %vm904_vm9, %v33851_v57  ;;  %940 = vst.msk [vmem:[#allocation4 + $0x14b] sm:$0x7] %vm904_vm9, %v33851_v57 }
 0x75f   : > { %24935 = vmatmul.mubr.msk.bf16.gmra.mrb[140].mxu1 %vm1325_vm5, %v9209_v33  ;;  %v33850_v33 = vld [vmem:[#allocation18_spill] sm:$0xff]  ;;  %941 = vst.msk [vmem:[#allocation4 + $0x163] sm:$0x7] %vm904_vm9, %v33851_v57  ;;  %942 = vst.msk [vmem:[#allocation4 + $0x17b] sm:$0x7] %vm904_vm9, %v33851_v57 }
 0x760   : > { %24938 = vmatprep.mubr.msk.bf16.mxu1 %vm1325_vm5, %v9210_v28  ;;  %v9616_v28 = vld [vmem:[%s33849_s11] sm:$0xf]  ;;  %943 = vst.msk [vmem:[#allocation4 + $0x193] sm:$0x7] %vm904_vm9, %v33851_v57  ;;  %944 = vst.msk [vmem:[#allocation4 + $0x1ab] sm:$0x7] %vm904_vm9, %v33851_v57 }
 0x761   : > { %28236 = vmatprep.subr.msk.bf16.mxu0 %vm4192_vm6, %v9616_v28  ;;  %v9928_v37 = vsel %vm4192_vm6, %v9616_v28, 0  ;;  %945 = vst.msk [vmem:[#allocation4 + $0x1c3] sm:$0x7] %vm904_vm9, %v33851_v57  ;;  %946 = vst.msk [vmem:[#allocation4 + $0x1db] sm:$0x7] %vm904_vm9, %v33851_v57 }
 0x762   : > { %947 = vst.msk [vmem:[#allocation4 + $0x1f3] sm:$0x7] %vm904_vm9, %v33851_v57  ;;  %948 = vst.msk [vmem:[#allocation4 + $0x20b] sm:$0x7] %vm904_vm9, %v33851_v57 }
 0x767   : > { %24939 = vmatmul.mubr.msk.bf16.gmra.mrb[144].mxu1 %vm1325_vm5, %v9211_v56  ;;  %v9621_v56 = vld [vmem:[#allocation4 + $0x33] sm:$0xff] }
 0x768   : > { %24942 = vmatprep.mubr.msk.bf16.mxu1 %vm1325_vm5, %v9212_v58  ;;  %v9651_v35 = vpack.c.bf16 %v9622_v18, %v9621_v56 }
 0x76f   : > { %24943 = vmatmul.mubr.msk.bf16.gmra.mrb[148].mxu1 %vm1325_vm5, %v9213_v19  ;;  %v30877_v19 = vld [vmem:[%s33849_s11 + $0x8] sm:$0xf] }
 0x770   : > { %24946 = vmatprep.mubr.msk.bf16.mxu1 %vm1325_vm5, %v9214_v60  ;;  %v30884_v60 = vld [vmem:[%s33852_s10] ss:$0 sm:$0xff]  ;;  %s33529_s10 = scalar_lea.hbm %s33997_s7, %s22769_s3  ;;  %s28435_s3 = smov [#allocation9]  }
 0x771   : > { %s28367_s29 = sshll.u32 %s28435_s3, 4  ;;  %s28368_s29 = int_to_ptr.vmem [resolvable:$false] %s28367_s29 }
 0x772   : > { %p28370_p8 = scmp.lt.s32.totalorder %s33531_s6, %s28368_s29 }
 0x777   : > { %24947 = vmatmul.mubr.msk.bf16.gmra.mrb[152].mxu1 %vm1325_vm5, %v9215_v41 }
 0x778   : > { %24950 = vmatprep.mubr.msk.bf16.mxu1 %vm1325_vm5, %v30549_v42  ;;  %v9617_v42 = vld [vmem:[#allocation4 + $0x3] sm:$0xff] }
 0x779   : > { %v9649_v58 = vpack.c.bf16 %v9618_v61, %v9617_v42 }
 0x77b   : > { %24956 = vmatprep.mubr.msk.bf16.mxu0 %vm784_vm3, %v9649_v58 }
 0x77c   : > { %24957 = vmatmul.mubr.msk.bf16.vlgmr.msra.gmra.mrb[32].mxu0 %vm784_vm3, %v9650_v8 }
 0x77d   : > { %24989 = vmatpush3.bf16.msra.mxu0 %v9928_v37  ;;  %24960 = vmatprep.mubr.msk.bf16.mxu0 %vm784_vm3, %v9651_v35 }
 0x77e   : > { %28237 = vmatprep.subr.msk.bf16.mxu0 %vm4192_vm6, %v30877_v19 }
 0x77f   : > { %24951 = vmatmul.mubr.msk.bf16.gmra.mrb[156].mxu1 %vm1325_vm5, %v9217_v4 }
 0x780   : > { %25264 = vmatprep.mubr.msk.bf16.mxu1 %vm1114_vm0, %v33850_v33 }
 0x81a   : > { %v24924_v20 = vpop.f32.mrb[128].mxu1 }
 0x81b   : > { %v9473_v9 = vadd.f32 %v24924_v20, %v30884_v60  ;;  %v9305_v41 = vpop.f32.mrb[129].mxu1 }
 0x81c   : > { %v9471_v55 = vadd.f32 %v30884_v60, %v9305_v41  ;;  %v24925_v32 = vpop.f32.mrb[130].mxu1 }
 0x81d   : > { %v9505_v4 = vmax.f32 %v9473_v9, 0.0  ;;  %v9474_v28 = vadd.f32 %v24925_v32, %v30884_v60  ;;  %v9308_v42 = vpop.f32.mrb[131].mxu1 }
 0x81e   : > { %v9503_v49 = vmax.f32 %v9471_v55, 0.0  ;;  %v9472_v61 = vadd.f32 %v30884_v60, %v9308_v42 }
 0x81f   : > { %9538 = vst.msk [vmem:[#allocation4 + $0x63] sm:$0xff] %vm784_vm3, %v9505_v4  ;;  %v9506_v31 = vmax.f32 %v9474_v28, 0.0 }
 0x820   : > { %9536 = vst.msk [vmem:[#allocation4 + $0x4b] sm:$0xff] %vm784_vm3, %v9503_v49  ;;  %v9504_v56 = vmax.f32 %v9472_v61, 0.0 }
 0x821   : > { %9539 = vst.msk [vmem:[#allocation4 + $0x6b] sm:$0xff] %vm784_vm3, %v9506_v31 }
 0x822   : > { %9537 = vst.msk [vmem:[#allocation4 + $0x53] sm:$0xff] %vm784_vm3, %v9504_v56  ;;  %v24928_v58 = vpop.f32.mrb[132].mxu1 }
 0x823   : > { %v9477_v8 = vadd.f32 %v24928_v58, %v30884_v60  ;;  %v9321_v18 = vpop.f32.mrb[133].mxu1 }
 0x824   : > { %v9475_v37 = vadd.f32 %v30884_v60, %v9321_v18  ;;  %v24929_v35 = vpop.f32.mrb[134].mxu1 }
 0x825   : > { %v9509_v20 = vmax.f32 %v9477_v8, 0.0  ;;  %v9478_v9 = vadd.f32 %v24929_v35, %v30884_v60  ;;  %v9324_v41 = vpop.f32.mrb[135].mxu1 }
 0x826   : > { %v9507_v55 = vmax.f32 %v9475_v37, 0.0  ;;  %v9476_v32 = vadd.f32 %v30884_v60, %v9324_v41  ;;  %v9625_v58 = vld [vmem:[#allocation4 + $0x63] sm:$0xff] }
 0x827   : > { %9542 = vst.msk [vmem:[#allocation4 + $0x93] sm:$0xff] %vm784_vm3, %v9509_v20  ;;  %v9510_v4 = vmax.f32 %v9478_v9, 0.0  ;;  %v9623_v49 = vld [vmem:[#allocation4 + $0x4b] sm:$0xff] }
 0x828   : > { %9540 = vst.msk [vmem:[#allocation4 + $0x7b] sm:$0xff] %vm784_vm3, %v9507_v55  ;;  %v9508_v28 = vmax.f32 %v9476_v32, 0.0  ;;  %v9626_v42 = vld [vmem:[#allocation4 + $0x6b] sm:$0xff] }
 0x829   : > { %9543 = vst.msk [vmem:[#allocation4 + $0x9b] sm:$0xff] %vm784_vm3, %v9510_v4  ;;  %v9624_v61 = vld [vmem:[#allocation4 + $0x53] sm:$0xff]  ;;  %v30905_v37 = vpack.c.bf16 %v9626_v42, %v9625_v58 }
 0x82a   : > { %9541 = vst.msk [vmem:[#allocation4 + $0x83] sm:$0xff] %vm784_vm3, %v9508_v28  ;;  %v24932_v31 = vpop.f32.mrb[136].mxu1  ;;  %v30902_v56 = vpack.c.bf16 %v9624_v61, %v9623_v49 }
 0x82b   : > { %v9481_v8 = vadd.f32 %v24932_v31, %v30884_v60  ;;  %v9337_v18 = vpop.f32.mrb[137].mxu1 }
 0x82c   : > { %v9479_v35 = vadd.f32 %v30884_v60, %v9337_v18  ;;  %v24933_v20 = vpop.f32.mrb[138].mxu1  ;;  %24961 = vmatmul.mubr.msk.bf16.gmra.mrb[36].mxu0 %vm784_vm3, %v30902_v56 }
 0x82d   : > { %v9513_v9 = vmax.f32 %v9481_v8, 0.0  ;;  %v9482_v41 = vadd.f32 %v24933_v20, %v30884_v60  ;;  %v9340_v55 = vpop.f32.mrb[139].mxu1  ;;  %24964 = vmatprep.mubr.msk.bf16.mxu0 %vm784_vm3, %v30905_v37 }
 0x82e   : > { %v9511_v32 = vmax.f32 %v9479_v35, 0.0  ;;  %v9480_v4 = vadd.f32 %v30884_v60, %v9340_v55  ;;  %v9629_v18 = vld [vmem:[#allocation4 + $0x93] sm:$0xff] }
 0x82f   : > { %9546 = vst.msk [vmem:[#allocation4 + $0xc3] sm:$0xff] %vm784_vm3, %v9513_v9  ;;  %v9514_v28 = vmax.f32 %v9482_v41, 0.0  ;;  %v9627_v61 = vld [vmem:[#allocation4 + $0x7b] sm:$0xff] }
 0x830   : > { %9544 = vst.msk [vmem:[#allocation4 + $0xab] sm:$0xff] %vm784_vm3, %v9511_v32  ;;  %v9512_v42 = vmax.f32 %v9480_v4, 0.0  ;;  %v9630_v49 = vld [vmem:[#allocation4 + $0x9b] sm:$0xff] }
 0x831   : > { %9547 = vst.msk [vmem:[#allocation4 + $0xcb] sm:$0xff] %vm784_vm3, %v9514_v28  ;;  %v9628_v31 = vld [vmem:[#allocation4 + $0x83] sm:$0xff]  ;;  %v30921_v55 = vpack.c.bf16 %v9630_v49, %v9629_v18 }
 0x832   : > { %9545 = vst.msk [vmem:[#allocation4 + $0xb3] sm:$0xff] %vm784_vm3, %v9512_v42  ;;  %v24936_v58 = vpop.f32.mrb[140].mxu1  ;;  %v30918_v8 = vpack.c.bf16 %v9628_v31, %v9627_v61 }
 0x833   : > { %v9485_v35 = vadd.f32 %v24936_v58, %v30884_v60  ;;  %v9353_v20 = vpop.f32.mrb[141].mxu1 }
 0x834   : > { %v9483_v9 = vadd.f32 %v30884_v60, %v9353_v20  ;;  %v24937_v41 = vpop.f32.mrb[142].mxu1  ;;  %24965 = vmatmul.mubr.msk.bf16.gmra.mrb[40].mxu0 %vm784_vm3, %v30918_v8 }
 0x835   : > { %v9517_v32 = vmax.f32 %v9485_v35, 0.0  ;;  %v9486_v4 = vadd.f32 %v24937_v41, %v30884_v60  ;;  %v9356_v28 = vpop.f32.mrb[143].mxu1  ;;  %24968 = vmatprep.mubr.msk.bf16.mxu0 %vm784_vm3, %v30921_v55 }
 0x836   : > { %v9515_v42 = vmax.f32 %v9483_v9, 0.0  ;;  %v9484_v61 = vadd.f32 %v30884_v60, %v9356_v28  ;;  %v9633_v10 = vld [vmem:[#allocation4 + $0xc3] sm:$0xff] }
 0x837   : > { %9550 = vst.msk [vmem:[#allocation4 + $0xf3] sm:$0xff] %vm784_vm3, %v9517_v32  ;;  %v9518_v49 = vmax.f32 %v9486_v4, 0.0  ;;  %v9631_v18 = vld [vmem:[#allocation4 + $0xab] sm:$0xff] }
 0x838   : > { %9548 = vst.msk [vmem:[#allocation4 + $0xdb] sm:$0xff] %vm784_vm3, %v9515_v42  ;;  %v9516_v31 = vmax.f32 %v9484_v61, 0.0  ;;  %v9634_v58 = vld [vmem:[#allocation4 + $0xcb] sm:$0xff] }
 0x839   : > { %9551 = vst.msk [vmem:[#allocation4 + $0xfb] sm:$0xff] %vm784_vm3, %v9518_v49  ;;  %v9632_v35 = vld [vmem:[#allocation4 + $0xb3] sm:$0xff]  ;;  %v30937_v25 = vpack.c.bf16 %v9634_v58, %v9633_v10 }
 0x83a   : > { %9549 = vst.msk [vmem:[#allocation4 + $0xe3] sm:$0xff] %vm784_vm3, %v9516_v31  ;;  %v24940_v20 = vpop.f32.mrb[144].mxu1  ;;  %v30934_v41 = vpack.c.bf16 %v9632_v35, %v9631_v18 }
 0x83b   : > { %v9489_v9 = vadd.f32 %v24940_v20, %v30884_v60  ;;  %v9369_v28 = vpop.f32.mrb[145].mxu1 }
 0x83c   : > { %v9487_v32 = vadd.f32 %v30884_v60, %v9369_v28  ;;  %v24941_v4 = vpop.f32.mrb[146].mxu1  ;;  %24969 = vmatmul.mubr.msk.bf16.gmra.mrb[44].mxu0 %vm784_vm3, %v30934_v41 }
 0x83d   : > { %v9521_v42 = vmax.f32 %v9489_v9, 0.0  ;;  %v9490_v61 = vadd.f32 %v24941_v4, %v30884_v60  ;;  %v9372_v49 = vpop.f32.mrb[147].mxu1  ;;  %24972 = vmatprep.mubr.msk.bf16.mxu0 %vm784_vm3, %v30937_v25 }
 0x83e   : > { %v9519_v31 = vmax.f32 %v9487_v32, 0.0  ;;  %v9488_v18 = vadd.f32 %v30884_v60, %v9372_v49  ;;  %v9637_v59 = vld [vmem:[#allocation4 + $0xf3] sm:$0xff] }
 0x83f   : > { %9554 = vst.msk [vmem:[#allocation4 + $0x123] sm:$0xff] %vm784_vm3, %v9521_v42  ;;  %v9522_v10 = vmax.f32 %v9490_v61, 0.0  ;;  %v9635_v20 = vld [vmem:[#allocation4 + $0xdb] sm:$0xff]  ;;  %v9588_v47 = vld [vmem:[#allocation4 + $0xf0] sm:$0xff] }
 0x840   : > { %9552 = vst.msk [vmem:[#allocation4 + $0x10b] sm:$0xff] %vm784_vm3, %v9519_v31  ;;  %v9520_v58 = vmax.f32 %v9488_v18, 0.0  ;;  %v9638_v35 = vld [vmem:[#allocation4 + $0xfb] sm:$0xff] }
 0x841   : > { %9555 = vst.msk [vmem:[#allocation4 + $0x12b] sm:$0xff] %vm784_vm3, %v9522_v10  ;;  %v9636_v9 = vld [vmem:[#allocation4 + $0xe3] sm:$0xff]  ;;  %v30953_v24 = vpack.c.bf16 %v9638_v35, %v9637_v59 }
 0x842   : > { %9553 = vst.msk [vmem:[#allocation4 + $0x113] sm:$0xff] %vm784_vm3, %v9520_v58  ;;  %v24944_v28 = vpop.f32.mrb[148].mxu1  ;;  %v30950_v4 = vpack.c.bf16 %v9636_v9, %v9635_v20  ;;  %v10112_v29 = vld [vmem:[#allocation4 + $0xfe] sm:$0xff] }
 0x843   : > { %v9493_v32 = vadd.f32 %v24944_v28, %v30884_v60  ;;  %v9385_v49 = vpop.f32.mrb[149].mxu1 }
 0x844   : > { %v9491_v42 = vadd.f32 %v30884_v60, %v9385_v49  ;;  %v24945_v61 = vpop.f32.mrb[150].mxu1  ;;  %24973 = vmatmul.mubr.msk.bf16.gmra.mrb[48].mxu0 %vm784_vm3, %v30950_v4 }
 0x845   : > { %v9525_v31 = vmax.f32 %v9493_v32, 0.0  ;;  %v9494_v18 = vadd.f32 %v24945_v61, %v30884_v60  ;;  %v9388_v10 = vpop.f32.mrb[151].mxu1  ;;  %24976 = vmatprep.mubr.msk.bf16.mxu0 %vm784_vm3, %v30953_v24 }
 0x846   : > { %v9523_v58 = vmax.f32 %v9491_v42, 0.0  ;;  %v9492_v20 = vadd.f32 %v30884_v60, %v9388_v10  ;;  %v9641_v5 = vld [vmem:[#allocation4 + $0x123] sm:$0xff] }
 0x847   : > { %9558 = vst.msk [vmem:[#allocation4 + $0x153] sm:$0xff] %vm784_vm3, %v9525_v31  ;;  %v9526_v59 = vmax.f32 %v9494_v18, 0.0  ;;  %v9639_v28 = vld [vmem:[#allocation4 + $0x10b] sm:$0xff]  ;;  %v9592_v33 = vld [vmem:[#allocation4 + $0x120] sm:$0xff] }
 0x848   : > { %9556 = vst.msk [vmem:[#allocation4 + $0x13b] sm:$0xff] %vm784_vm3, %v9523_v58  ;;  %v9524_v35 = vmax.f32 %v9492_v20, 0.0  ;;  %v9642_v9 = vld [vmem:[#allocation4 + $0x12b] sm:$0xff] }
 0x849   : > { %9559 = vst.msk [vmem:[#allocation4 + $0x15b] sm:$0xff] %vm784_vm3, %v9526_v59  ;;  %v9640_v32 = vld [vmem:[#allocation4 + $0x113] sm:$0xff]  ;;  %v30969_v50 = vpack.c.bf16 %v9642_v9, %v9641_v5  ;;  %v10115_v46 = vld [vmem:[#allocation4 + $0x126] sm:$0xff] }
 0x84a   : > { %9557 = vst.msk [vmem:[#allocation4 + $0x143] sm:$0xff] %vm784_vm3, %v9524_v35  ;;  %v24948_v49 = vpop.f32.mrb[152].mxu1  ;;  %v30966_v61 = vpack.c.bf16 %v9640_v32, %v9639_v28  ;;  %v10116_v30 = vld [vmem:[#allocation4 + $0x12e] sm:$0xff] }
 0x84b   : > { %v9497_v42 = vadd.f32 %v24948_v49, %v30884_v60  ;;  %v9401_v10 = vpop.f32.mrb[153].mxu1  ;;  %v31115_v12 = vpack.c.bf16 %v10116_v30, %v10115_v46 }
 0x84c   : > { %v9495_v31 = vadd.f32 %v30884_v60, %v9401_v10  ;;  %v24949_v18 = vpop.f32.mrb[154].mxu1  ;;  %24977 = vmatmul.mubr.msk.bf16.gmra.mrb[52].mxu0 %vm784_vm3, %v30966_v61 }
 0x84d   : > { %v9529_v58 = vmax.f32 %v9497_v42, 0.0  ;;  %v9498_v20 = vadd.f32 %v24949_v18, %v30884_v60  ;;  %v9404_v59 = vpop.f32.mrb[155].mxu1  ;;  %24980 = vmatprep.mubr.msk.bf16.mxu0 %vm784_vm3, %v30969_v50 }
 0x84e   : > { %v9527_v35 = vmax.f32 %v9495_v31, 0.0  ;;  %v9496_v28 = vadd.f32 %v30884_v60, %v9404_v59  ;;  %v9645_v23 = vld [vmem:[#allocation4 + $0x153] sm:$0xff] }
 0x84f   : > { %9562 = vst.msk [vmem:[#allocation4 + $0x183] sm:$0xff] %vm784_vm3, %v9529_v58  ;;  %v9530_v5 = vmax.f32 %v9498_v20, 0.0  ;;  %v9643_v49 = vld [vmem:[#allocation4 + $0x13b] sm:$0xff]  ;;  %v9596_v48 = vld [vmem:[#allocation4 + $0x150] sm:$0xff] }
 0x850   : > { %9560 = vst.msk [vmem:[#allocation4 + $0x16b] sm:$0xff] %vm784_vm3, %v9527_v35  ;;  %v9528_v9 = vmax.f32 %v9496_v28, 0.0  ;;  %v9646_v32 = vld [vmem:[#allocation4 + $0x15b] sm:$0xff] }
 0x851   : > { %9563 = vst.msk [vmem:[#allocation4 + $0x18b] sm:$0xff] %vm784_vm3, %v9530_v5  ;;  %v9644_v42 = vld [vmem:[#allocation4 + $0x143] sm:$0xff]  ;;  %v30985_v27 = vpack.c.bf16 %v9646_v32, %v9645_v23 }
 0x852   : > { %9561 = vst.msk [vmem:[#allocation4 + $0x173] sm:$0xff] %vm784_vm3, %v9528_v9  ;;  %v24952_v10 = vpop.f32.mrb[156].mxu1  ;;  %v30982_v18 = vpack.c.bf16 %v9644_v42, %v9643_v49  ;;  %v9568_v42 = vld [vmem:[#allocation4] sm:$0xff] }
 0x853   : > { %v9501_v31 = vadd.f32 %v24952_v10, %v30884_v60  ;;  %v9417_v59 = vpop.f32.mrb[157].mxu1  ;;  %v9569_v10 = vld [vmem:[#allocation4 + $0x8] sm:$0xff] }
 0x854   : > { %v9499_v58 = vadd.f32 %v30884_v60, %v9417_v59  ;;  %v24953_v20 = vpop.f32.mrb[158].mxu1  ;;  %24981 = vmatmul.mubr.msk.bf16.gmra.mrb[56].mxu0 %vm784_vm3, %v30982_v18 }
 0x855   : > { %v9533_v35 = vmax.f32 %v9501_v31, 0.0  ;;  %v9502_v28 = vadd.f32 %v24953_v20, %v30884_v60  ;;  %v9420_v5 = vpop.f32.mrb[159].mxu1  ;;  %24984 = vmatprep.mubr.msk.bf16.mxu0 %vm784_vm3, %v30985_v27  ;;  %v9600_v20 = vpack.c.bf16 %v9569_v10, %v9568_v42  ;;  %v31008_v42 = vld [vmem:[%s33849_s11 + $0xc] sm:$0xf]  ;;  %v9575_v10 = vld [vmem:[#allocation4 + $0x50] sm:$0xff] }
 0x856   : > { %v9531_v9 = vmax.f32 %v9499_v58, 0.0  ;;  %v9500_v49 = vadd.f32 %v30884_v60, %v9420_v5  ;;  %v9570_v60 = vld [vmem:[#allocation4 + $0x18] sm:$0xff]  ;;  %v9571_v58 = vld [vmem:[#allocation4 + $0x20] sm:$0xff]  ;;  %v10484_v6 = vsel %vm4192_vm6, %v31008_v42, 0 }
 0x857   : > { %9566 = vst.msk [vmem:[#allocation4 + $0x1b3] sm:$0xff] %vm784_vm3, %v9533_v35  ;;  %v9534_v23 = vmax.f32 %v9502_v28, 0.0  ;;  %v9647_v31 = vld [vmem:[#allocation4 + $0x16b] sm:$0xff]  ;;  %v9573_v28 = vld [vmem:[#allocation4 + $0x38] sm:$0xff]  ;;  %v9601_v5 = vpack.c.bf16 %v9571_v58, %v9570_v60 }
 0x858   : > { %9564 = vst.msk [vmem:[#allocation4 + $0x19b] sm:$0xff] %vm784_vm3, %v9531_v9  ;;  %v9532_v32 = vmax.f32 %v9500_v49, 0.0  ;;  %v9572_v35 = vld [vmem:[#allocation4 + $0x30] sm:$0xff]  ;;  %v10190_v49 = vsel %vm4192_vm6, %v30877_v19, 0  ;;  %v9581_v60 = vld [vmem:[#allocation4 + $0x98] sm:$0xff] }
 0x859   : > { %9567 = vst.msk [vmem:[#allocation4 + $0x1bb] sm:$0xff] %vm784_vm3, %v9534_v23  ;;  %v9648_v59 = vld [vmem:[#allocation4 + $0x173] sm:$0xff]  ;;  %v9602_v9 = vpack.c.bf16 %v9573_v28, %v9572_v35  ;;  %v9577_v23 = vld [vmem:[#allocation4 + $0x68] sm:$0xff] }
 0x85a   : > { %9565 = vst.msk [vmem:[#allocation4 + $0x1a3] sm:$0xff] %vm784_vm3, %v9532_v32  ;;  %v30998_v1 = vpack.c.bf16 %v9648_v59, %v9647_v31  ;;  %v9574_v32 = vld [vmem:[#allocation4 + $0x48] sm:$0xff]  ;;  %v9576_v59 = vld [vmem:[#allocation4 + $0x60] sm:$0xff]  ;;  %v9578_v58 = vld [vmem:[#allocation4 + $0x78] sm:$0xff] }
 0x85b   : > { %v31014_v31 = vpack.c.bf16 %v9575_v10, %v9574_v32  ;;  %v31016_v19 = vpack.c.bf16 %v9577_v23, %v9576_v59  ;;  %v9580_v28 = vld [vmem:[#allocation4 + $0x90] sm:$0xff]  ;;  %v9582_v10 = vld [vmem:[#allocation4 + $0xa8] sm:$0xff]  ;;  %v9584_v32 = vld [vmem:[#allocation4 + $0xc0] sm:$0xff] }
 0x85c   : > { %24985 = vmatmul.mubr.msk.bf16.gmra.mrb[60].mxu0 %vm784_vm3, %v30998_v1  ;;  %v10121_v30 = vld [vmem:[#allocation4 + $0x16e] sm:$0xff]  ;;  %v10122_v46 = vld [vmem:[#allocation4 + $0x176] sm:$0xff] }
 0x85d   : > { %24990 = vmatprep.mubr.msk.bf16.mxu0 %vm784_vm3, %v9600_v20  ;;  %v9579_v20 = vld [vmem:[#allocation4 + $0x80] sm:$0xff] }
 0x85e   : > { %v31022_v35 = vpack.c.bf16 %v9579_v20, %v9578_v58  ;;  %v9587_v20 = vld [vmem:[#allocation4 + $0xe0] sm:$0xff]  ;;  %v9586_v58 = vld [vmem:[#allocation4 + $0xd8] sm:$0xff] }
 0x864   : > { %24991 = vmatmul.mubr.msk.bf16.vlgmr.msra.gmra.mrb[32].mxu0 %vm784_vm3, %v9601_v5  ;;  %v31024_v5 = vpack.c.bf16 %v9581_v60, %v9580_v28  ;;  %v9589_v60 = vld [vmem:[#allocation4 + $0xf8] sm:$0xff]  ;;  %v31038_v28 = vpack.c.bf16 %v9587_v20, %v9586_v58 }
 0x865   : > { %25023 = vmatpush3.bf16.msra.mxu0 %v10190_v49  ;;  %24994 = vmatprep.mubr.msk.bf16.mxu0 %vm784_vm3, %v9602_v9  ;;  %v9583_v9 = vld [vmem:[#allocation4 + $0xb0] sm:$0xff]  ;;  %v9585_v49 = vld [vmem:[#allocation4 + $0xc8] sm:$0xff]  ;;  %v31040_v3 = vpack.c.bf16 %v9589_v60, %v9588_v47  ;;  %v9595_v47 = vld [vmem:[#allocation4 + $0x140] sm:$0xff] }
 0x866   : > { %28238 = vmatprep.subr.msk.bf16.mxu0 %vm4192_vm6, %v31008_v42  ;;  %v31030_v23 = vpack.c.bf16 %v9583_v9, %v9582_v10  ;;  %v31032_v59 = vpack.c.bf16 %v9585_v49, %v9584_v32  ;;  %v9591_v9 = vld [vmem:[#allocation4 + $0x110] sm:$0xff]  ;;  %v9593_v49 = vld [vmem:[#allocation4 + $0x128] sm:$0xff]  ;;  %v9597_v20 = vld [vmem:[#allocation4 + $0x158] sm:$0xff] }
 0x867   : > { %v9590_v10 = vld [vmem:[#allocation4 + $0x108] sm:$0xff]  ;;  %v31048_v22 = vpack.c.bf16 %v9593_v49, %v9592_v33  ;;  %v9594_v60 = vld [vmem:[#allocation4 + $0x138] sm:$0xff]  ;;  %v31056_v17 = vpack.c.bf16 %v9597_v20, %v9596_v48  ;;  %v9599_v49 = vld [vmem:[#allocation4 + $0x170] sm:$0xff] }
 0x868   : > { %v31046_v32 = vpack.c.bf16 %v9591_v9, %v9590_v10  ;;  %v31054_v58 = vpack.c.bf16 %v9595_v47, %v9594_v60  ;;  %v10091_v33 = vld [vmem:[#allocation4 + $0x6] sm:$0xff]  ;;  %v10092_v9 = vld [vmem:[#allocation4 + $0xe] sm:$0xff]  ;;  %v10093_v48 = vld [vmem:[#allocation4 + $0x1e] sm:$0xff] }
 0x869   : > { %v9598_v10 = vld [vmem:[#allocation4 + $0x168] sm:$0xff]  ;;  %v10123_v2 = vpack.c.bf16 %v10092_v9, %v10091_v33  ;;  %v10095_v20 = vld [vmem:[#allocation4 + $0x36] sm:$0xff]  ;;  %v10096_v60 = vld [vmem:[#allocation4 + $0x3e] sm:$0xff] }
 0x86a   : > { %v31062_v14 = vpack.c.bf16 %v9599_v49, %v9598_v10  ;;  %v10094_v47 = vld [vmem:[#allocation4 + $0x26] sm:$0xff]  ;;  %v10125_v44 = vpack.c.bf16 %v10096_v60, %v10095_v20  ;;  %v31072_v33 = vld [vmem:[%s33849_s11 + $0x10] sm:$0xf]  ;;  %v10098_v9 = vld [vmem:[#allocation4 + $0x56] sm:$0xff] }
 0x86b   : > { %v10124_v51 = vpack.c.bf16 %v10094_v47, %v10093_v48  ;;  %v10099_v49 = vld [vmem:[#allocation4 + $0x66] sm:$0xff]  ;;  %v10100_v10 = vld [vmem:[#allocation4 + $0x6e] sm:$0xff]  ;;  %v10104_v47 = vld [vmem:[#allocation4 + $0x9e] sm:$0xff] }
 0x86c   : > { %24995 = vmatmul.mubr.msk.bf16.gmra.mrb[36].mxu0 %vm784_vm3, %v31014_v31  ;;  %v31080_v42 = vpack.c.bf16 %v10100_v10, %v10099_v49  ;;  %v10107_v49 = vld [vmem:[#allocation4 + $0xc6] sm:$0xff]  ;;  %v10108_v10 = vld [vmem:[#allocation4 + $0xce] sm:$0xff] }
 0x86d   : > { %24998 = vmatprep.mubr.msk.bf16.mxu0 %vm784_vm3, %v31016_v19  ;;  %v31096_v43 = vpack.c.bf16 %v10108_v10, %v10107_v49  ;;  %v10113_v49 = vld [vmem:[#allocation4 + $0x10e] sm:$0xff]  ;;  %v10114_v10 = vld [vmem:[#allocation4 + $0x116] sm:$0xff] }
 0x86e   : > { %v31113_v34 = vpack.c.bf16 %v10114_v10, %v10113_v49  ;;  %v31129_v49 = vpack.c.bf16 %v10122_v46, %v10121_v30  ;;  %v28330_v10 = vld [vmem:[%s33853_s13 + $0x8] sm:$0xff]   ;;  %v33860_v30 = vld [vmem:[#allocation25_spill] sm:$0xff]  ;;  %v33861_v46 = vld [vmem:[#allocation26_spill] sm:$0xff] }
 0x874   : > { %24999 = vmatmul.mubr.msk.bf16.gmra.mrb[40].mxu0 %vm784_vm3, %v31022_v35 }
 0x875   : > { %25002 = vmatprep.mubr.msk.bf16.mxu0 %vm784_vm3, %v31024_v5 }
 0x87c   : > { %25003 = vmatmul.mubr.msk.bf16.gmra.mrb[44].mxu0 %vm784_vm3, %v31030_v23 }
 0x87d   : > { %25006 = vmatprep.mubr.msk.bf16.mxu0 %vm784_vm3, %v31032_v59 }
 0x884   : > { %25007 = vmatmul.mubr.msk.bf16.gmra.mrb[48].mxu0 %vm784_vm3, %v31038_v28 }
 0x885   : > { %25010 = vmatprep.mubr.msk.bf16.mxu0 %vm784_vm3, %v31040_v3 }
 0x88c   : > { %25011 = vmatmul.mubr.msk.bf16.gmra.mrb[52].mxu0 %vm784_vm3, %v31046_v32 }
 0x88d   : > { %25014 = vmatprep.mubr.msk.bf16.mxu0 %vm784_vm3, %v31048_v22 }
 0x894   : > { %25015 = vmatmul.mubr.msk.bf16.gmra.mrb[56].mxu0 %vm784_vm3, %v31054_v58 }
 0x895   : > { %25018 = vmatprep.mubr.msk.bf16.mxu0 %vm784_vm3, %v31056_v17 }
 0x89c   : > { %25019 = vmatmul.mubr.msk.bf16.gmra.mrb[60].mxu0 %vm784_vm3, %v31062_v14 }
 0x89d   : > { %25024 = vmatprep.mubr.msk.bf16.mxu0 %vm784_vm3, %v10123_v2  ;;  %v10097_v2 = vld [vmem:[#allocation4 + $0x4e] sm:$0xff] }
 0x89e   : > { %v31078_v48 = vpack.c.bf16 %v10098_v9, %v10097_v2  ;;  %v10105_v2 = vld [vmem:[#allocation4 + $0xae] sm:$0xff]  ;;  %v10106_v9 = vld [vmem:[#allocation4 + $0xb6] sm:$0xff] }
 0x89f   : > { %v31094_v16 = vpack.c.bf16 %v10106_v9, %v10105_v2 }
 0x8a4   : > { %25025 = vmatmul.mubr.msk.bf16.vlgmr.msra.gmra.mrb[32].mxu0 %vm784_vm3, %v10124_v51  ;;  %v10101_v51 = vld [vmem:[#allocation4 + $0x7e] sm:$0xff] }
 0x8a5   : > { %25057 = vmatpush3.bf16.msra.mxu0 %v10484_v6  ;;  %25028 = vmatprep.mubr.msk.bf16.mxu0 %vm784_vm3, %v10125_v44  ;;  %v10102_v6 = vld [vmem:[#allocation4 + $0x86] sm:$0xff]  ;;  %v10103_v44 = vld [vmem:[#allocation4 + $0x96] sm:$0xff] }
 0x8a6   : > { %28239 = vmatprep.subr.msk.bf16.mxu0 %vm4192_vm6, %v31072_v33  ;;  %v31086_v20 = vpack.c.bf16 %v10102_v6, %v10101_v51  ;;  %v31088_v60 = vpack.c.bf16 %v10104_v47, %v10103_v44  ;;  %v28329_v51 = vld [vmem:[%s33853_s13] sm:$0xff]   ;;  %v10109_v6 = vld [vmem:[#allocation4 + $0xde] sm:$0xff]  ;;  %v10110_v44 = vld [vmem:[#allocation4 + $0xe6] sm:$0xff] }
 0x8a7   : > { %25260 = vmatprep.subr.bf16.mxu1 %v28329_v51  ;;  %v10111_v47 = vld [vmem:[#allocation4 + $0xf6] sm:$0xff]  ;;  %v31105_v2 = vpack.c.bf16 %v10110_v44, %v10109_v6  ;;  %v10120_v44 = vld [vmem:[#allocation4 + $0x15e] sm:$0xff] }
 0x8a8   : > { %25261 = vmatpush3.bf16.msra.mxu1 %v28329_v51  ;;  %v31107_v9 = vpack.c.bf16 %v10112_v29, %v10111_v47  ;;  %v10117_v29 = vld [vmem:[#allocation4 + $0x13e] sm:$0xff]  ;;  %v10118_v51 = vld [vmem:[#allocation4 + $0x146] sm:$0xff]  ;;  %v10119_v6 = vld [vmem:[#allocation4 + $0x156] sm:$0xff] }
 0x8a9   : > { %v31121_v47 = vpack.c.bf16 %v10118_v51, %v10117_v29  ;;  %v31123_v62 = vpack.c.bf16 %v10120_v44, %v10119_v6  ;;  %25262 = vmatprep.subr.bf16.mxu1 %v28330_v10  ;;  %v10778_v29 = vsel %vm4192_vm6, %v31072_v33, 0  ;;  %v22146_v51 = vld [vmem:[%s33849_s11 + $0x14] sm:$0xf]  ;;  %v33854_v6 = vld [vmem:[#allocation19_spill] sm:$0xff]  ;;  %v33856_v33 = vld [vmem:[#allocation21_spill] sm:$0xff] }
 0x8aa   : > { %v33857_v44 = vld [vmem:[#allocation22_spill] sm:$0xff] }
 0x8ac   : > { %25029 = vmatmul.mubr.msk.bf16.gmra.mrb[36].mxu0 %vm784_vm3, %v31078_v48  ;;  %25263 = vmatpush3.bf16.msra.mxu1 %v28330_v10  ;;  %v33862_v10 = vld [vmem:[#allocation27_spill] sm:$0xff] }
 0x8ad   : > { %25032 = vmatprep.mubr.msk.bf16.mxu0 %vm784_vm3, %v31080_v42 }
 0x8af   : > { %25265 = vmatmul.mubr.msk.bf16.vlgmr.msra.gmra.mrb[160].mxu1 %vm1114_vm0, %v33854_v6  ;;  %v10415_v6 = vld [vmem:[#allocation4 + $0x1b0] sm:$0xff] }
 0x8b4   : > { %25033 = vmatmul.mubr.msk.bf16.gmra.mrb[40].mxu0 %vm784_vm3, %v31086_v20 }
 0x8b5   : > { %25036 = vmatprep.mubr.msk.bf16.mxu0 %vm784_vm3, %v31088_v60 }
 0x8bc   : > { %25037 = vmatmul.mubr.msk.bf16.gmra.mrb[44].mxu0 %vm784_vm3, %v31094_v16 }
 0x8bd   : > { %25040 = vmatprep.mubr.msk.bf16.mxu0 %vm784_vm3, %v31096_v43 }
 0x8c4   : > { %25041 = vmatmul.mubr.msk.bf16.gmra.mrb[48].mxu0 %vm784_vm3, %v31105_v2 }
 0x8c5   : > { %25044 = vmatprep.mubr.msk.bf16.mxu0 %vm784_vm3, %v31107_v9 }
 0x8cc   : > { %25045 = vmatmul.mubr.msk.bf16.gmra.mrb[52].mxu0 %vm784_vm3, %v31113_v34 }
 0x8cd   : > { %25048 = vmatprep.mubr.msk.bf16.mxu0 %vm784_vm3, %v31115_v12 }
 0x8d4   : > { %25049 = vmatmul.mubr.msk.bf16.gmra.mrb[56].mxu0 %vm784_vm3, %v31121_v47 }
 0x8d5   : > { %25052 = vmatprep.mubr.msk.bf16.mxu0 %vm784_vm3, %v31123_v62 }
 0x8dc   : > { %25053 = vmatmul.mubr.msk.bf16.gmra.mrb[60].mxu0 %vm784_vm3, %v31129_v49 }
 0x8dd   : > { %25058 = vmatprep.mubr.msk.bf16.mxu0 %vm784_vm3, %v31014_v31  ;;  %v33855_v31 = vld [vmem:[#allocation20_spill] sm:$0xff] }
 0x8de   : > { %25268 = vmatprep.mubr.msk.bf16.mxu1 %vm1114_vm0, %v33855_v31  ;;  %v33866_v31 = vld [vmem:[#allocation31_spill] sm:$0xff] }
 0x8df   : > { %25269 = vmatmul.mubr.msk.bf16.gmra.mrb[164].mxu1 %vm1114_vm0, %v33856_v33 }
 0x8e0   : > { %25272 = vmatprep.mubr.msk.bf16.mxu1 %vm1114_vm0, %v33857_v44 }
 0x8e4   : > { %25059 = vmatmul.mubr.msk.bf16.vlgmr.msra.gmra.mrb[32].mxu0 %vm784_vm3, %v31016_v19  ;;  %v33858_v19 = vld [vmem:[#allocation23_spill] sm:$0xff] }
 0x8e5   : > { %25091 = vmatpush3.bf16.msra.mxu0 %v10778_v29  ;;  %25062 = vmatprep.mubr.msk.bf16.mxu0 %vm784_vm3, %v31022_v35  ;;  %v33859_v35 = vld [vmem:[#allocation24_spill] sm:$0xff] }
 0x8e6   : > { %28240 = vmatprep.subr.msk.bf16.mxu0 %vm4192_vm6, %v22146_v51  ;;  %v33863_v29 = vld [vmem:[#allocation28_spill] sm:$0xff] }
 0x8e7   : > { %25273 = vmatmul.mubr.msk.bf16.gmra.mrb[168].mxu1 %vm1114_vm0, %v33858_v19  ;;  %v10411_v19 = vld [vmem:[#allocation4 + $0x180] sm:$0xff] }
 0x8e8   : > { %25276 = vmatprep.mubr.msk.bf16.mxu1 %vm1114_vm0, %v33859_v35  ;;  %v10414_v35 = vld [vmem:[#allocation4 + $0x1a0] sm:$0xff] }
 0x8ec   : > { %25063 = vmatmul.mubr.msk.bf16.gmra.mrb[36].mxu0 %vm784_vm3, %v31024_v5 }
 0x8ed   : > { %25066 = vmatprep.mubr.msk.bf16.mxu0 %vm784_vm3, %v31030_v23 }
 0x8ef   : > { %25277 = vmatmul.mubr.msk.bf16.gmra.mrb[172].mxu1 %vm1114_vm0, %v33860_v30  ;;  %v33864_v30 = vld [vmem:[#allocation29_spill] sm:$0xff] }
 0x8f0   : > { %25280 = vmatprep.mubr.msk.bf16.mxu1 %vm1114_vm0, %v33861_v46  ;;  %v33865_v46 = vld [vmem:[#allocation30_spill] sm:$0xff] }
 0x8f4   : > { %25067 = vmatmul.mubr.msk.bf16.gmra.mrb[40].mxu0 %vm784_vm3, %v31032_v59 }
 0x8f5   : > { %25070 = vmatprep.mubr.msk.bf16.mxu0 %vm784_vm3, %v31038_v28 }
 0x8f7   : > { %25281 = vmatmul.mubr.msk.bf16.gmra.mrb[176].mxu1 %vm1114_vm0, %v33862_v10  ;;  %v10412_v10 = vld [vmem:[#allocation4 + $0x188] sm:$0xff] }
 0x8f8   : > { %25284 = vmatprep.mubr.msk.bf16.mxu1 %vm1114_vm0, %v33863_v29  ;;  %v31192_v44 = vpack.c.bf16 %v10412_v10, %v10411_v19  ;;  %v10413_v29 = vld [vmem:[#allocation4 + $0x198] sm:$0xff]  ;;  %v33868_v19 = vld [vmem:[#allocation33_spill] sm:$0xff] }
 0x8f9   : > { %v31194_v33 = vpack.c.bf16 %v10414_v35, %v10413_v29  ;;  %v11072_v35 = vsel %vm4192_vm6, %v22146_v51, 0  ;;  %v22163_v10 = vld [vmem:[%s33849_s11 + $0x18] sm:$0xf] }
 0x8fc   : > { %25071 = vmatmul.mubr.msk.bf16.gmra.mrb[44].mxu0 %vm784_vm3, %v31040_v3 }
 0x8fd   : > { %25074 = vmatprep.mubr.msk.bf16.mxu0 %vm784_vm3, %v31046_v32 }
 0x8ff   : > { %25285 = vmatmul.mubr.msk.bf16.gmra.mrb[180].mxu1 %vm1114_vm0, %v33864_v30  ;;  %v33867_v30 = vld [vmem:[#allocation32_spill] sm:$0xff] }
 0x900   : > { %25288 = vmatprep.mubr.msk.bf16.mxu1 %vm1114_vm0, %v33865_v46  ;;  %v10416_v46 = vld [vmem:[#allocation4 + $0x1b8] sm:$0xff] }
 0x901   : > { %v31204_v54 = vpack.c.bf16 %v10416_v46, %v10415_v6  ;;  %v11003_v6 = vld [vmem:[#allocation4 + $0x1b6] sm:$0xff]  ;;  %v11004_v46 = vld [vmem:[#allocation4 + $0x1be] sm:$0xff] }
 0x902   : > { %v31292_v29 = vpack.c.bf16 %v11004_v46, %v11003_v6  ;;  %v11562_v6 = vld [vmem:[#allocation4 + $0x93] sm:$0xff] }
 0x904   : > { %25075 = vmatmul.mubr.msk.bf16.gmra.mrb[48].mxu0 %vm784_vm3, %v31048_v22 }
 0x905   : > { %25078 = vmatprep.mubr.msk.bf16.mxu0 %vm784_vm3, %v31054_v58 }
 0x907   : > { %25289 = vmatmul.mubr.msk.bf16.gmra.mrb[184].mxu1 %vm1114_vm0, %v33866_v31 }
 0x908   : > { %25292 = vmatprep.mubr.msk.bf16.mxu1 %vm1114_vm0, %v33867_v30 }
 0x90c   : > { %25079 = vmatmul.mubr.msk.bf16.gmra.mrb[52].mxu0 %vm784_vm3, %v31056_v17 }
 0x90d   : > { %25082 = vmatprep.mubr.msk.bf16.mxu0 %vm784_vm3, %v31062_v14 }
 0x90f   : > { %25293 = vmatmul.mubr.msk.bf16.gmra.mrb[188].mxu1 %vm1114_vm0, %v33868_v19 }
 0x914   : > { %25083 = vmatmul.mubr.msk.bf16.gmra.mrb[56].mxu0 %vm784_vm3, %v31192_v44 }
 0x915   : > { %25086 = vmatprep.mubr.msk.bf16.mxu0 %vm784_vm3, %v31194_v33 }
 0x91c   : > { %25087 = vmatmul.mubr.msk.bf16.gmra.mrb[60].mxu0 %vm784_vm3, %v31204_v54 }
 0x91d   : > { %25092 = vmatprep.mubr.msk.bf16.mxu0 %vm784_vm3, %v30902_v56  ;;  %v10708_v56 = vld [vmem:[#allocation4 + $0x1a3] sm:$0xff] }
 0x924   : > { %25093 = vmatmul.mubr.msk.bf16.vlgmr.msra.gmra.mrb[32].mxu0 %vm784_vm3, %v30905_v37  ;;  %v10705_v37 = vld [vmem:[#allocation4 + $0x183] sm:$0xff] }
 0x925   : > { %25125 = vmatpush3.bf16.msra.mxu0 %v11072_v35  ;;  %25096 = vmatprep.mubr.msk.bf16.mxu0 %vm784_vm3, %v30918_v8 }
 0x926   : > { %28241 = vmatprep.subr.msk.bf16.mxu0 %vm4192_vm6, %v22163_v10 }
 0x92c   : > { %25097 = vmatmul.mubr.msk.bf16.gmra.mrb[36].mxu0 %vm784_vm3, %v30921_v55 }
 0x92d   : > { %25100 = vmatprep.mubr.msk.bf16.mxu0 %vm784_vm3, %v30934_v41  ;;  %v10709_v41 = vld [vmem:[#allocation4 + $0x1b3] sm:$0xff] }
 0x934   : > { %25101 = vmatmul.mubr.msk.bf16.gmra.mrb[40].mxu0 %vm784_vm3, %v30937_v25  ;;  %v10706_v25 = vld [vmem:[#allocation4 + $0x18b] sm:$0xff] }
 0x935   : > { %25104 = vmatprep.mubr.msk.bf16.mxu0 %vm784_vm3, %v30950_v4  ;;  %v31241_v8 = vpack.c.bf16 %v10706_v25, %v10705_v37  ;;  %v22180_v4 = vld [vmem:[%s33849_s11 + $0x1c] sm:$0xf]  ;;  %v11299_v37 = vld [vmem:[#allocation4 + $0x200] sm:$0xff] }
 0x936   : > { %v11661_v35 = vsel %vm4192_vm6, %v22180_v4, 0 }
 0x93c   : > { %25105 = vmatmul.mubr.msk.bf16.gmra.mrb[44].mxu0 %vm784_vm3, %v30953_v24  ;;  %v10707_v24 = vld [vmem:[#allocation4 + $0x19b] sm:$0xff] }
 0x93d   : > { %25108 = vmatprep.mubr.msk.bf16.mxu0 %vm784_vm3, %v30966_v61  ;;  %v31243_v55 = vpack.c.bf16 %v10708_v56, %v10707_v24  ;;  %v10999_v61 = vld [vmem:[#allocation4 + $0x186] sm:$0xff]  ;;  %v11298_v56 = vld [vmem:[#allocation4 + $0x1f8] sm:$0xff] }
 0x944   : > { %25109 = vmatmul.mubr.msk.bf16.gmra.mrb[48].mxu0 %vm784_vm3, %v30969_v50  ;;  %v10710_v50 = vld [vmem:[#allocation4 + $0x1bb] sm:$0xff] }
 0x945   : > { %25112 = vmatprep.mubr.msk.bf16.mxu0 %vm784_vm3, %v30982_v18  ;;  %v11000_v18 = vld [vmem:[#allocation4 + $0x18e] sm:$0xff] }
 0x94c   : > { %25113 = vmatmul.mubr.msk.bf16.gmra.mrb[52].mxu0 %vm784_vm3, %v30985_v27  ;;  %v31249_v27 = vpack.c.bf16 %v10710_v50, %v10709_v41 }
 0x94d   : > { %25116 = vmatprep.mubr.msk.bf16.mxu0 %vm784_vm3, %v30998_v1  ;;  %v11367_v1 = vsel %vm4192_vm6, %v22163_v10, 0  ;;  %v31302_v10 = vld [vmem:[%s33849_s11 + $0x20] sm:$0xf]  ;;  %s28363_s11 = scalar_lea.vmem %s33531_s6, 4096 }
 0x94e   : > { %p28364_p6 = scmp.ne.s32.totalorder %s33531_s6, %s28363_s11 }
 0x950   : > { %p28365_p12 = pnand %p28364_p6, %p33998_p11 }
 0x952   : > { %p28366_p13 = pneg %p28365_p12 }
 0x954   : > { %25117 = vmatmul.mubr.msk.bf16.gmra.mrb[56].mxu0 %vm784_vm3, %v31241_v8 }
 0x955   : > { %25120 = vmatprep.mubr.msk.bf16.mxu0 %vm784_vm3, %v31243_v55 }
 0x95c   : > { %25121 = vmatmul.mubr.msk.bf16.gmra.mrb[60].mxu0 %vm784_vm3, %v31249_v27 }
 0x95d   : > { %25126 = vmatprep.mubr.msk.bf16.mxu0 %vm784_vm3, %v31078_v48  ;;  %v11001_v48 = vld [vmem:[#allocation4 + $0x19e] sm:$0xff] }
 0x964   : > { %25127 = vmatmul.mubr.msk.bf16.vlgmr.msra.gmra.mrb[32].mxu0 %vm784_vm3, %v31080_v42  ;;  %v11002_v42 = vld [vmem:[#allocation4 + $0x1a6] sm:$0xff] }
 0x965   : > { %25159 = vmatpush3.bf16.msra.mxu0 %v11367_v1  ;;  %25130 = vmatprep.mubr.msk.bf16.mxu0 %vm784_vm3, %v31086_v20  ;;  %v31284_v20 = vpack.c.bf16 %v11000_v18, %v10999_v61  ;;  %v31286_v51 = vpack.c.bf16 %v11002_v42, %v11001_v48  ;;  %v11315_v18 = vpack.c.bf16 %v11299_v37, %v11298_v56  ;;  %v11563_v48 = vld [vmem:[#allocation4 + $0x9b] sm:$0xff]  ;;  %v11955_v56 = vsel %vm4192_vm6, %v31302_v10, 0  ;;  %v11566_v37 = vld [vmem:[#allocation4 + $0xc3] sm:$0xff] }
 0x966   : > { %28242 = vmatprep.subr.msk.bf16.mxu0 %vm4192_vm6, %v22180_v4  ;;  %v11594_v46 = vpack.c.bf16 %v11563_v48, %v11562_v6  ;;  %v11571_v48 = vld [vmem:[#allocation4 + $0xfb] sm:$0xff] }
 0x96c   : > { %25131 = vmatmul.mubr.msk.bf16.gmra.mrb[36].mxu0 %vm784_vm3, %v31088_v60 }
 0x96d   : > { %25134 = vmatprep.mubr.msk.bf16.mxu0 %vm784_vm3, %v31094_v16 }
 0x974   : > { %25135 = vmatmul.mubr.msk.bf16.gmra.mrb[40].mxu0 %vm784_vm3, %v31096_v43 }
 0x975   : > { %25138 = vmatprep.mubr.msk.bf16.mxu0 %vm784_vm3, %v31105_v2 }
 0x97c   : > { %25139 = vmatmul.mubr.msk.bf16.gmra.mrb[44].mxu0 %vm784_vm3, %v31107_v9 }
 0x97d   : > { %25142 = vmatprep.mubr.msk.bf16.mxu0 %vm784_vm3, %v31113_v34 }
 0x984   : > { %25143 = vmatmul.mubr.msk.bf16.gmra.mrb[48].mxu0 %vm784_vm3, %v31115_v12 }
 0x985   : > { %25146 = vmatprep.mubr.msk.bf16.mxu0 %vm784_vm3, %v31121_v47 }
 0x98c   : > { %25147 = vmatmul.mubr.msk.bf16.gmra.mrb[52].mxu0 %vm784_vm3, %v31123_v62 }
 0x98d   : > { %25150 = vmatprep.mubr.msk.bf16.mxu0 %vm784_vm3, %v31129_v49 }
 0x994   : > { %25151 = vmatmul.mubr.msk.bf16.gmra.mrb[56].mxu0 %vm784_vm3, %v31284_v20 }
 0x995   : > { %25154 = vmatprep.mubr.msk.bf16.mxu0 %vm784_vm3, %v31286_v51 }
 0x99c   : > { %25155 = vmatmul.mubr.msk.bf16.gmra.mrb[60].mxu0 %vm784_vm3, %v31292_v29 }
 0x99d   : > { %25160 = vmatprep.mubr.msk.bf16.mxu0 %vm784_vm3, %v31024_v5  ;;  %v25266_v5 = vpop.f32.mrb[160].mxu1 }
 0x9a4   : > { %25161 = vmatmul.mubr.msk.bf16.vlgmr.msra.gmra.mrb[32].mxu0 %vm784_vm3, %v31030_v23  ;;  %v31333_v23 = vld [vmem:[%s33869_s14] ss:$0 sm:$0xff] }
 0x9a5   : > { %25193 = vmatpush3.bf16.msra.mxu0 %v11661_v35  ;;  %25164 = vmatprep.mubr.msk.bf16.mxu0 %vm784_vm3, %v31032_v59  ;;  %v11297_v59 = vld [vmem:[#allocation4 + $0x1e8] sm:$0xff] }
 0x9a6   : > { %28243 = vmatprep.subr.msk.bf16.mxu0 %vm4192_vm6, %v31302_v10 }
 0x9ac   : > { %25165 = vmatmul.mubr.msk.bf16.gmra.mrb[36].mxu0 %vm784_vm3, %v31038_v28  ;;  %v12246_v28 = vpop.f32.mrb[161].mxu1 }
 0x9ad   : > { %25168 = vmatprep.mubr.msk.bf16.mxu0 %vm784_vm3, %v31040_v3  ;;  %v11294_v3 = vld [vmem:[#allocation4 + $0x1c8] sm:$0xff] }
 0x9b4   : > { %25169 = vmatmul.mubr.msk.bf16.gmra.mrb[40].mxu0 %vm784_vm3, %v31046_v32  ;;  %v12247_v32 = vadd.f32 %v31333_v23, %v12246_v28 }
 0x9b5   : > { %25172 = vmatprep.mubr.msk.bf16.mxu0 %vm784_vm3, %v31048_v22  ;;  %v11295_v22 = vld [vmem:[#allocation4 + $0x1d0] sm:$0xff] }
 0x9b6   : > { %12373 = vst.msk [vmem:[#allocation2 + $0x19] sm:$0xff] %vm1325_vm5, %v12247_v32  ;;  %v11567_v32 = vld [vmem:[#allocation4 + $0xcb] sm:$0xff] }
 0x9bc   : > { %25173 = vmatmul.mubr.msk.bf16.gmra.mrb[44].mxu0 %vm784_vm3, %v31054_v58  ;;  %v25267_v58 = vpop.f32.mrb[162].mxu1 }
 0x9bd   : > { %25176 = vmatprep.mubr.msk.bf16.mxu0 %vm784_vm3, %v31056_v17  ;;  %v11296_v17 = vld [vmem:[#allocation4 + $0x1e0] sm:$0xff]  ;;  %v12249_v25 = vpop.f32.mrb[163].mxu1 }
 0x9be   : > { %v12250_v24 = vadd.f32 %v31333_v23, %v12249_v25  ;;  %v25270_v50 = vpop.f32.mrb[164].mxu1 }
 0x9bf   : > { %v12271_v41 = vadd.f32 %v25270_v50, %v31333_v23  ;;  %v12262_v1 = vpop.f32.mrb[165].mxu1  ;;  %v31367_v50 = vld [vmem:[%s33596_s15 + $0x2] sm:$0x3] }
 0x9c0   : > { %12374 = vst.msk [vmem:[#allocation2 + $0x21] sm:$0xff] %vm1325_vm5, %v12250_v24  ;;  %v12263_v4 = vadd.f32 %v31333_v23, %v12262_v1  ;;  %v25271_v61 = vpop.f32.mrb[166].mxu1  ;;  %v11596_v24 = vpack.c.bf16 %v11567_v32, %v11566_v37 }
 0x9c1   : > { %12379 = vst.msk [vmem:[#allocation2 + $0x61] sm:$0xff] %vm1325_vm5, %v12271_v41  ;;  %v12274_v42 = vadd.f32 %v25271_v61, %v31333_v23  ;;  %v12265_v35 = vpop.f32.mrb[167].mxu1 }
 0x9c2   : > { %12377 = vst.msk [vmem:[#allocation2 + $0x49] sm:$0xff] %vm1325_vm5, %v12263_v4  ;;  %v11569_v4 = vld [vmem:[#allocation4 + $0xe3] sm:$0xff] }
 0x9c3   : > { %12380 = vst.msk [vmem:[#allocation2 + $0x69] sm:$0xff] %vm1325_vm5, %v12274_v42 }
 0x9c4   : > { %25177 = vmatmul.mubr.msk.bf16.gmra.mrb[48].mxu0 %vm784_vm3, %v31062_v14  ;;  %v12255_v14 = vadd.f32 %v25266_v5, %v31333_v23 }
 0x9c5   : > { %25180 = vmatprep.mubr.msk.bf16.mxu0 %vm784_vm3, %v31192_v44  ;;  %v11314_v44 = vpack.c.bf16 %v11297_v59, %v11296_v17  ;;  %v11565_v59 = vld [vmem:[#allocation4 + $0xb3] sm:$0xff] }
 0x9c6   : > { %12375 = vst.msk [vmem:[#allocation2 + $0x31] sm:$0xff] %vm1325_vm5, %v12255_v14 }
 0x9cc   : > { %25181 = vmatmul.mubr.msk.bf16.gmra.mrb[52].mxu0 %vm784_vm3, %v31194_v33  ;;  %v11313_v33 = vpack.c.bf16 %v11295_v22, %v11294_v3  ;;  %v12266_v3 = vadd.f32 %v31333_v23, %v12265_v35  ;;  %v25274_v22 = vpop.f32.mrb[168].mxu1 }
 0x9cd   : > { %25184 = vmatprep.mubr.msk.bf16.mxu0 %vm784_vm3, %v31204_v54  ;;  %v12258_v54 = vadd.f32 %v25267_v58, %v31333_v23  ;;  %v12287_v5 = vadd.f32 %v25274_v22, %v31333_v23  ;;  %v12278_v17 = vpop.f32.mrb[169].mxu1  ;;  %v11570_v22 = vld [vmem:[#allocation4 + $0xf3] sm:$0xff] }
 0x9ce   : > { %12378 = vst.msk [vmem:[#allocation2 + $0x51] sm:$0xff] %vm1325_vm5, %v12266_v3  ;;  %v12279_v14 = vadd.f32 %v31333_v23, %v12278_v17  ;;  %v25275_v28 = vpop.f32.mrb[170].mxu1 }
 0x9cf   : > { %12376 = vst.msk [vmem:[#allocation2 + $0x39] sm:$0xff] %vm1325_vm5, %v12258_v54  ;;  %12383 = vst.msk [vmem:[#allocation2 + $0x91] sm:$0xff] %vm1325_vm5, %v12287_v5  ;;  %v12290_v58 = vadd.f32 %v25275_v28, %v31333_v23  ;;  %v11564_v54 = vld [vmem:[#allocation4 + $0xab] sm:$0xff]  ;;  %v11598_v5 = vpack.c.bf16 %v11571_v48, %v11570_v22  ;;  %v11573_v28 = vld [vmem:[#allocation4 + $0x113] sm:$0xff] }
 0x9d0   : > { %12381 = vst.msk [vmem:[#allocation2 + $0x79] sm:$0xff] %vm1325_vm5, %v12279_v14  ;;  %v11595_v25 = vpack.c.bf16 %v11565_v59, %v11564_v54 }
 0x9d1   : > { %12384 = vst.msk [vmem:[#allocation2 + $0x99] sm:$0xff] %vm1325_vm5, %v12290_v58 }
 0x9d4   : > { %25185 = vmatmul.mubr.msk.bf16.gmra.mrb[56].mxu0 %vm784_vm3, %v11313_v33  ;;  %v12281_v33 = vpop.f32.mrb[171].mxu1 }
 0x9d5   : > { %25188 = vmatprep.mubr.msk.bf16.mxu0 %vm784_vm3, %v11314_v44  ;;  %v12282_v44 = vadd.f32 %v31333_v23, %v12281_v33  ;;  %v25278_v41 = vpop.f32.mrb[172].mxu1  ;;  %v11575_v33 = vld [vmem:[#allocation4 + $0x12b] sm:$0xff] }
 0x9d6   : > { %v12303_v10 = vadd.f32 %v25278_v41, %v31333_v23  ;;  %v12294_v1 = vpop.f32.mrb[173].mxu1 }
 0x9d7   : > { %12382 = vst.msk [vmem:[#allocation2 + $0x81] sm:$0xff] %vm1325_vm5, %v12282_v44  ;;  %v12295_v61 = vadd.f32 %v31333_v23, %v12294_v1 }
 0x9d8   : > { %12387 = vst.msk [vmem:[#allocation2 + $0xc1] sm:$0xff] %vm1325_vm5, %v12303_v10 }
 0x9d9   : > { %12385 = vst.msk [vmem:[#allocation2 + $0xa9] sm:$0xff] %vm1325_vm5, %v12295_v61  ;;  %v11577_v61 = vld [vmem:[#allocation4 + $0x143] sm:$0xff] }
 0x9dc   : > { %25189 = vmatmul.mubr.msk.bf16.gmra.mrb[60].mxu0 %vm784_vm3, %v11315_v18  ;;  %v25279_v18 = vpop.f32.mrb[174].mxu1 }
 0x9dd   : > { %25194 = vmatprep.mubr.msk.bf16.mxu0 %vm784_vm3, %v11594_v46  ;;  %v12306_v42 = vadd.f32 %v25279_v18, %v31333_v23  ;;  %v12297_v6 = vpop.f32.mrb[175].mxu1  ;;  %v11568_v46 = vld [vmem:[#allocation4 + $0xdb] sm:$0xff] }
 0x9de   : > { %v12298_v35 = vadd.f32 %v31333_v23, %v12297_v6  ;;  %v11597_v3 = vpack.c.bf16 %v11569_v4, %v11568_v46  ;;  %v25282_v17 = vpop.f32.mrb[176].mxu1 }
 0x9df   : > { %12388 = vst.msk [vmem:[#allocation2 + $0xc9] sm:$0xff] %vm1325_vm5, %v12306_v42  ;;  %v12319_v59 = vadd.f32 %v25282_v17, %v31333_v23  ;;  %v12310_v14 = vpop.f32.mrb[177].mxu1  ;;  %v11579_v42 = vld [vmem:[#allocation4 + $0x15b] sm:$0xff] }
 0x9e0   : > { %12386 = vst.msk [vmem:[#allocation2 + $0xb1] sm:$0xff] %vm1325_vm5, %v12298_v35  ;;  %v12311_v32 = vadd.f32 %v31333_v23, %v12310_v14  ;;  %v25283_v58 = vpop.f32.mrb[178].mxu1  ;;  %v11576_v35 = vld [vmem:[#allocation4 + $0x13b] sm:$0xff] }
 0x9e1   : > { %12391 = vst.msk [vmem:[#allocation2 + $0xf1] sm:$0xff] %vm1325_vm5, %v12319_v59  ;;  %v12322_v54 = vadd.f32 %v25283_v58, %v31333_v23  ;;  %v12313_v44 = vpop.f32.mrb[179].mxu1  ;;  %v11601_v22 = vpack.c.bf16 %v11577_v61, %v11576_v35 }
 0x9e2   : > { %12389 = vst.msk [vmem:[#allocation2 + $0xd9] sm:$0xff] %vm1325_vm5, %v12311_v32  ;;  %v25286_v10 = vpop.f32.mrb[180].mxu1  ;;  %v11581_v32 = vld [vmem:[#allocation4 + $0x173] sm:$0xff] }
 0x9e3   : > { %12392 = vst.msk [vmem:[#allocation2 + $0xf9] sm:$0xff] %vm1325_vm5, %v12322_v54  ;;  %v12335_v1 = vadd.f32 %v25286_v10, %v31333_v23  ;;  %v12326_v4 = vpop.f32.mrb[181].mxu1 }
 0x9e4   : > { %25195 = vmatmul.mubr.msk.bf16.vlgmr.msra.gmra.mrb[32].mxu0 %vm784_vm3, %v11595_v25  ;;  %v11572_v25 = vld [vmem:[#allocation4 + $0x10b] sm:$0xff]  ;;  %v12327_v18 = vadd.f32 %v31333_v23, %v12326_v4  ;;  %v25287_v48 = vpop.f32.mrb[182].mxu1 }
 0x9e5   : > { %25227 = vmatpush3.bf16.msra.mxu0 %v11955_v56  ;;  %25198 = vmatprep.mubr.msk.bf16.mxu0 %vm784_vm3, %v11596_v24  ;;  %v12314_v56 = vadd.f32 %v31333_v23, %v12313_v44  ;;  %v11599_v37 = vpack.c.bf16 %v11573_v28, %v11572_v25  ;;  %v11574_v24 = vld [vmem:[#allocation4 + $0x123] sm:$0xff]  ;;  %12395 = vst.msk [vmem:[#allocation2 + $0x121] sm:$0xff] %vm1325_vm5, %v12335_v1  ;;  %v12329_v46 = vpop.f32.mrb[183].mxu1  ;;  %v11580_v25 = vld [vmem:[#allocation4 + $0x16b] sm:$0xff] }
 0x9e6   : > { %28244 = vmatprep.subr.msk.bf16.mxu0 %vm1505_vm1, %v31367_v50  ;;  %v11600_v41 = vpack.c.bf16 %v11575_v33, %v11574_v24  ;;  %v12338_v6 = vadd.f32 %v25287_v48, %v31333_v23  ;;  %12393 = vst.msk [vmem:[#allocation2 + $0x109] sm:$0xff] %vm1325_vm5, %v12327_v18  ;;  %v25290_v59 = vpop.f32.mrb[184].mxu1  ;;  %v12944_v30 = vld [vmem:[#allocation2 + $0xc2] sm:$0xff] }
 0x9e7   : > { %12390 = vst.msk [vmem:[#allocation2 + $0xe1] sm:$0xff] %vm1325_vm5, %v12314_v56  ;;  %v12351_v14 = vadd.f32 %v25290_v59, %v31333_v23  ;;  %v12342_v28 = vpop.f32.mrb[185].mxu1  ;;  %v12459_v59 = vld [vmem:[#allocation2 + $0x39] sm:$0xff] }
 0x9e8   : > { %12396 = vst.msk [vmem:[#allocation2 + $0x129] sm:$0xff] %vm1325_vm5, %v12338_v6  ;;  %v12343_v58 = vadd.f32 %v31333_v23, %v12342_v28  ;;  %v25291_v33 = vpop.f32.mrb[186].mxu1  ;;  %v11590_v6 = vld [vmem:[#allocation4 + $0x1e3] sm:$0xff] }
 0x9e9   : > { %12399 = vst.msk [vmem:[#allocation2 + $0x151] sm:$0xff] %vm1325_vm5, %v12351_v14  ;;  %v12354_v54 = vadd.f32 %v25291_v33, %v31333_v23  ;;  %v12345_v44 = vpop.f32.mrb[187].mxu1  ;;  %v12460_v33 = vld [vmem:[#allocation2 + $0x49] sm:$0xff] }
 0x9ea   : > { %12397 = vst.msk [vmem:[#allocation2 + $0x139] sm:$0xff] %vm1325_vm5, %v12343_v58  ;;  %v12346_v56 = vadd.f32 %v31333_v23, %v12345_v44  ;;  %v25294_v24 = vpop.f32.mrb[188].mxu1  ;;  %v31474_v58 = vld [vmem:[%s33596_s15 + $0x4] sm:$0x3]  ;;  %v12949_v11 = vld [vmem:[#allocation2 + $0xfa] sm:$0xff] }
 0x9eb   : > { %12400 = vst.msk [vmem:[#allocation2 + $0x159] sm:$0xff] %vm1325_vm5, %v12354_v54  ;;  %v12358_v10 = vpop.f32.mrb[189].mxu1  ;;  %v12461_v54 = vld [vmem:[#allocation2 + $0x51] sm:$0xff]  ;;  %v12462_v44 = vld [vmem:[#allocation2 + $0x61] sm:$0xff] }
 0x9ec   : > { %25199 = vmatmul.mubr.msk.bf16.gmra.mrb[36].mxu0 %vm784_vm3, %v11597_v3  ;;  %v12330_v3 = vadd.f32 %v31333_v23, %v12329_v46  ;;  %12398 = vst.msk [vmem:[#allocation2 + $0x141] sm:$0xff] %vm1325_vm5, %v12346_v56  ;;  %v12359_v1 = vadd.f32 %v31333_v23, %v12358_v10  ;;  %v25295_v4 = vpop.f32.mrb[190].mxu1  ;;  %v11591_v46 = vld [vmem:[#allocation4 + $0x1eb] sm:$0xff]  ;;  %v31482_v56 = vpack.c.bf16 %v12461_v54, %v12460_v33  ;;  %v12466_v10 = vld [vmem:[#allocation2 + $0x91] sm:$0xff] }
 0x9ed   : > { %25202 = vmatprep.mubr.msk.bf16.mxu0 %vm784_vm3, %v11598_v5  ;;  %v11578_v5 = vld [vmem:[#allocation4 + $0x153] sm:$0xff]  ;;  %v12370_v61 = vadd.f32 %v25295_v4, %v31333_v23  ;;  %v12361_v18 = vpop.f32.mrb[191].mxu1  ;;  %v12407_v33 = vld [vmem:[#allocation2 + $0x18] sm:$0xff] }
 0x9ee   : > { %v11602_v17 = vpack.c.bf16 %v11579_v42, %v11578_v5  ;;  %12394 = vst.msk [vmem:[#allocation2 + $0x111] sm:$0xff] %vm1325_vm5, %v12330_v3  ;;  %12401 = vst.msk [vmem:[#allocation2 + $0x169] sm:$0xff] %vm1325_vm5, %v12359_v1  ;;  %v12362_v48 = vadd.f32 %v31333_v23, %v12361_v18  ;;  %v11589_v42 = vld [vmem:[#allocation4 + $0x1d3] sm:$0xff]  ;;  %v11608_v3 = vpack.c.bf16 %v11591_v46, %v11590_v6  ;;  %v12467_v1 = vld [vmem:[#allocation2 + $0x99] sm:$0xff] }
 0x9ef   : > { %12404 = vst.msk [vmem:[#allocation2 + $0x189] sm:$0xff] %vm1325_vm5, %v12370_v61  ;;  %v31492_v61 = vpack.c.bf16 %v12467_v1, %v12466_v10  ;;  %v12468_v18 = vld [vmem:[#allocation2 + $0xa9] sm:$0xff]  ;;  %v12408_v54 = vld [vmem:[#allocation2 + $0x20] sm:$0xff] }
 0x9f0   : > { %12402 = vst.msk [vmem:[#allocation2 + $0x171] sm:$0xff] %vm1325_vm5, %v12362_v48  ;;  %v12469_v48 = vld [vmem:[#allocation2 + $0xb1] sm:$0xff]  ;;  %v31544_v1 = vld [vmem:[%s33596_s15 + $0x6] sm:$0x3] }
 0x9f1   : > { %v31498_v6 = vpack.c.bf16 %v12469_v48, %v12468_v18  ;;  %v12411_v18 = vld [vmem:[#allocation2 + $0x48] sm:$0xff]  ;;  %v12412_v48 = vld [vmem:[#allocation2 + $0x50] sm:$0xff] }
 0x9f2   : > { %v12953_v45 = vld [vmem:[#allocation2 + $0x12a] sm:$0xff] }
 0x9f4   : > { %25203 = vmatmul.mubr.msk.bf16.gmra.mrb[40].mxu0 %vm784_vm3, %v11599_v37  ;;  %v11603_v37 = vpack.c.bf16 %v11581_v32, %v11580_v25  ;;  %v12463_v25 = vld [vmem:[#allocation2 + $0x69] sm:$0xff] }
 0x9f5   : > { %25206 = vmatprep.mubr.msk.bf16.mxu0 %vm784_vm3, %v11600_v41  ;;  %v12367_v41 = vadd.f32 %v25294_v24, %v31333_v23  ;;  %v11592_v23 = vld [vmem:[#allocation4 + $0x1fb] sm:$0xff]  ;;  %v12464_v24 = vld [vmem:[#allocation2 + $0x79] sm:$0xff] }
 0x9f7   : > { %12403 = vst.msk [vmem:[#allocation2 + $0x181] sm:$0xff] %vm1325_vm5, %v12367_v41  ;;  %v12465_v41 = vld [vmem:[#allocation2 + $0x81] sm:$0xff] }
 0x9f8   : > { %v31490_v4 = vpack.c.bf16 %v12465_v41, %v12464_v24  ;;  %v31535_v24 = vpack.c.bf16 %v12408_v54, %v12407_v33  ;;  %v13027_v41 = vsel %vm1505_vm1, %v31474_v58, 0 }
 0x9fc   : > { %25207 = vmatmul.mubr.msk.bf16.gmra.mrb[44].mxu0 %vm784_vm3, %v11601_v22  ;;  %v11593_v22 = vld [vmem:[#allocation4 + $0x203] sm:$0xff] }
 0x9fd   : > { %25210 = vmatprep.mubr.msk.bf16.mxu0 %vm784_vm3, %v11602_v17  ;;  %v11609_v5 = vpack.c.bf16 %v11593_v22, %v11592_v23  ;;  %v12458_v17 = vld [vmem:[#allocation2 + $0x31] sm:$0xff]  ;;  %v12475_v22 = vld [vmem:[#allocation2 + $0xf9] sm:$0xff] }
 0x9fe   : > { %v31469_v32 = vpack.c.bf16 %v12459_v59, %v12458_v17  ;;  %v12474_v23 = vld [vmem:[#allocation2 + $0xf1] sm:$0xff] }
 0x9ff   : > { %v12485_v17 = vld [vmem:[#allocation2 + $0x171] sm:$0xff] }
 0xa04   : > { %25211 = vmatmul.mubr.msk.bf16.gmra.mrb[48].mxu0 %vm784_vm3, %v11603_v37  ;;  %v31484_v37 = vpack.c.bf16 %v12463_v25, %v12462_v44  ;;  %v12409_v44 = vld [vmem:[#allocation2 + $0x30] sm:$0xff]  ;;  %v12410_v25 = vld [vmem:[#allocation2 + $0x38] sm:$0xff] }
 0xa05   : > { %25214 = vmatprep.mubr.msk.bf16.mxu0 %vm784_vm3, %v31241_v8  ;;  %v11588_v8 = vld [vmem:[#allocation4 + $0x1cb] sm:$0xff]  ;;  %v31539_v10 = vpack.c.bf16 %v12410_v25, %v12409_v44  ;;  %v12427_v44 = vld [vmem:[#allocation2 + $0x108] sm:$0xff]  ;;  %v12428_v25 = vld [vmem:[#allocation2 + $0x110] sm:$0xff] }
 0xa06   : > { %v11607_v35 = vpack.c.bf16 %v11589_v42, %v11588_v8  ;;  %v12470_v8 = vld [vmem:[#allocation2 + $0xc1] sm:$0xff]  ;;  %v12471_v42 = vld [vmem:[#allocation2 + $0xc9] sm:$0xff] }
 0xa07   : > { %v31500_v46 = vpack.c.bf16 %v12471_v42, %v12470_v8  ;;  %v12414_v8 = vld [vmem:[#allocation2 + $0x68] sm:$0xff]  ;;  %v31552_v42 = vpack.c.bf16 %v12412_v48, %v12411_v18  ;;  %v31584_v48 = vpack.c.bf16 %v12428_v25, %v12427_v44  ;;  %v12932_v25 = vld [vmem:[#allocation2 + $0x32] sm:$0xff] }
 0xa08   : > { %v12430_v18 = vld [vmem:[#allocation2 + $0x128] sm:$0xff] }
 0xa09   : > { %v12931_v44 = vld [vmem:[#allocation2 + $0x22] sm:$0xff] }
 0xa0c   : > { %25215 = vmatmul.mubr.msk.bf16.gmra.mrb[52].mxu0 %vm784_vm3, %v31243_v55  ;;  %v12553_v55 = vsel %vm1505_vm1, %v31367_v50, 0 }
 0xa0d   : > { %25218 = vmatprep.mubr.msk.bf16.mxu0 %vm784_vm3, %v31249_v27  ;;  %v12453_v27 = vld [vmem:[%s33596_s15] sm:$0x3] }
 0xa0e   : > { %v12765_v28 = vsel %vm1505_vm1, %v12453_v27, 0 }
 0xa14   : > { %25219 = vmatmul.mubr.msk.bf16.gmra.mrb[56].mxu0 %vm784_vm3, %v11607_v35  ;;  %v12472_v35 = vld [vmem:[#allocation2 + $0xd9] sm:$0xff] }
 0xa15   : > { %25222 = vmatprep.mubr.msk.bf16.mxu0 %vm784_vm3, %v11608_v3  ;;  %v12473_v3 = vld [vmem:[#allocation2 + $0xe1] sm:$0xff] }
 0xa1c   : > { %25223 = vmatmul.mubr.msk.bf16.gmra.mrb[60].mxu0 %vm784_vm3, %v11609_v5  ;;  %v31506_v5 = vpack.c.bf16 %v12473_v3, %v12472_v35  ;;  %v12415_v3 = vld [vmem:[#allocation2 + $0x78] sm:$0xff] }
 0xa1d   : > { %25228 = vmatprep.mubr.msk.bf16.mxu0 %vm784_vm3, %v31088_v60 }
 0xa24   : > { %25229 = vmatmul.mubr.msk.bf16.vlgmr.msra.gmra.mrb[32].mxu0 %vm784_vm3, %v31094_v16  ;;  %v11884_v16 = vld [vmem:[#allocation4 + $0x1e6] sm:$0xff] }
 0xa25   : > { %25297 = vmatpush3.bf16.msra.mxu0 %v12553_v55  ;;  %25232 = vmatprep.mubr.msk.bf16.mxu0 %vm784_vm3, %v31096_v43  ;;  %v11885_v43 = vld [vmem:[#allocation4 + $0x1ee] sm:$0xff]  ;;  %v31508_v55 = vpack.c.bf16 %v12475_v22, %v12474_v23  ;;  %v12417_v22 = vld [vmem:[#allocation2 + $0x90] sm:$0xff] }
 0xa26   : > { %28245 = vmatprep.subr.msk.bf16.mxu0 %vm1505_vm1, %v12453_v27  ;;  %v12476_v27 = vld [vmem:[#allocation2 + $0x109] sm:$0xff]  ;;  %v12416_v23 = vld [vmem:[#allocation2 + $0x80] sm:$0xff] }
 0xa2c   : > { %25233 = vmatmul.mubr.msk.bf16.gmra.mrb[36].mxu0 %vm784_vm3, %v31105_v2  ;;  %v11902_v2 = vpack.c.bf16 %v11885_v43, %v11884_v16  ;;  %v12479_v16 = vld [vmem:[#allocation2 + $0x129] sm:$0xff] }
 0xa2d   : > { %25236 = vmatprep.mubr.msk.bf16.mxu0 %vm784_vm3, %v31107_v9  ;;  %v11887_v9 = vld [vmem:[#allocation4 + $0x206] sm:$0xff] }
 0xa34   : > { %25237 = vmatmul.mubr.msk.bf16.gmra.mrb[40].mxu0 %vm784_vm3, %v31113_v34  ;;  %v11882_v34 = vld [vmem:[#allocation4 + $0x1ce] sm:$0xff] }
 0xa35   : > { %25240 = vmatprep.mubr.msk.bf16.mxu0 %vm784_vm3, %v31115_v12  ;;  %v11883_v12 = vld [vmem:[#allocation4 + $0x1d6] sm:$0xff] }
 0xa36   : > { %v11901_v60 = vpack.c.bf16 %v11883_v12, %v11882_v34  ;;  %v12477_v34 = vld [vmem:[#allocation2 + $0x111] sm:$0xff]  ;;  %v12478_v12 = vld [vmem:[#allocation2 + $0x121] sm:$0xff] }
 0xa37   : > { %v31514_v43 = vpack.c.bf16 %v12477_v34, %v12476_v27  ;;  %v12418_v27 = vld [vmem:[#allocation2 + $0x98] sm:$0xff]  ;;  %v31560_v34 = vpack.c.bf16 %v12416_v23, %v12415_v3  ;;  %v12432_v3 = vld [vmem:[#allocation2 + $0x140] sm:$0xff]  ;;  %v12433_v23 = vld [vmem:[#allocation2 + $0x150] sm:$0xff] }
 0xa3c   : > { %25241 = vmatmul.mubr.msk.bf16.gmra.mrb[44].mxu0 %vm784_vm3, %v31121_v47  ;;  %v12454_v47 = vld [vmem:[#allocation2 + $0x1] sm:$0xff] }
 0xa3d   : > { %25244 = vmatprep.mubr.msk.bf16.mxu0 %vm784_vm3, %v31123_v62  ;;  %v11886_v62 = vld [vmem:[#allocation4 + $0x1fe] sm:$0xff] }
 0xa44   : > { %25245 = vmatmul.mubr.msk.bf16.gmra.mrb[48].mxu0 %vm784_vm3, %v31129_v49  ;;  %v12455_v49 = vld [vmem:[#allocation2 + $0x9] sm:$0xff] }
 0xa45   : > { %25248 = vmatprep.mubr.msk.bf16.mxu0 %vm784_vm3, %v31284_v20  ;;  %v11903_v20 = vpack.c.bf16 %v11887_v9, %v11886_v62  ;;  %v12486_v50 = vpack.c.bf16 %v12455_v49, %v12454_v47  ;;  %v12481_v62 = vld [vmem:[#allocation2 + $0x141] sm:$0xff]  ;;  %v12482_v9 = vld [vmem:[#allocation2 + $0x151] sm:$0xff]  ;;  %v12483_v47 = vld [vmem:[#allocation2 + $0x159] sm:$0xff] }
 0xa4c   : > { %25249 = vmatmul.mubr.msk.bf16.gmra.mrb[52].mxu0 %vm784_vm3, %v31286_v51  ;;  %v12456_v51 = vld [vmem:[#allocation2 + $0x19] sm:$0xff] }
 0xa4d   : > { %25252 = vmatprep.mubr.msk.bf16.mxu0 %vm784_vm3, %v31292_v29  ;;  %v12457_v29 = vld [vmem:[#allocation2 + $0x21] sm:$0xff] }
 0xa4e   : > { %v31466_v14 = vpack.c.bf16 %v12457_v29, %v12456_v51  ;;  %v12406_v51 = vld [vmem:[#allocation2 + $0x8] sm:$0xff] }
 0xa4f   : > { %v12484_v29 = vld [vmem:[#allocation2 + $0x169] sm:$0xff] }
 0xa54   : > { %25253 = vmatmul.mubr.msk.bf16.gmra.mrb[56].mxu0 %vm784_vm3, %v11901_v60  ;;  %v31516_v60 = vpack.c.bf16 %v12479_v16, %v12478_v12  ;;  %v31562_v12 = vpack.c.bf16 %v12418_v27, %v12417_v22  ;;  %v12419_v16 = vld [vmem:[#allocation2 + $0xa8] sm:$0xff]  ;;  %v12434_v22 = vld [vmem:[#allocation2 + $0x158] sm:$0xff] }
 0xa55   : > { %25256 = vmatprep.mubr.msk.bf16.mxu0 %vm784_vm3, %v11902_v2  ;;  %v12480_v2 = vld [vmem:[#allocation2 + $0x139] sm:$0xff] }
 0xa56   : > { %v31522_v49 = vpack.c.bf16 %v12481_v62, %v12480_v2  ;;  %v12420_v2 = vld [vmem:[#allocation2 + $0xb0] sm:$0xff]  ;;  %v12421_v62 = vld [vmem:[#allocation2 + $0xc0] sm:$0xff] }
 0xa5c   : > { %25257 = vmatmul.mubr.msk.bf16.gmra.mrb[60].mxu0 %vm784_vm3, %v11903_v20  ;;  %v31524_v20 = vpack.c.bf16 %v12483_v47, %v12482_v9  ;;  %v12422_v9 = vld [vmem:[#allocation2 + $0xc8] sm:$0xff]  ;;  %v31568_v47 = vpack.c.bf16 %v12420_v2, %v12419_v16  ;;  %v31594_v16 = vpack.c.bf16 %v12434_v22, %v12433_v23 }
 0xa5d   : > { %25298 = vmatprep.mubr.msk.bf16.mxu0 %vm1325_vm5, %v12486_v50  ;;  %v12405_v50 = vld [vmem:[#allocation2] sm:$0xff]  ;;  %v31614_v23 = vld [vmem:[%s33596_s15 + $0x8] sm:$0x3]  ;;  %v12934_v22 = vld [vmem:[#allocation2 + $0x4a] sm:$0xff] }
 0xa5e   : > { %v12437_v59 = vpack.c.bf16 %v12406_v51, %v12405_v50  ;;  %v31570_v50 = vpack.c.bf16 %v12422_v9, %v12421_v62  ;;  %v12423_v51 = vld [vmem:[#allocation2 + $0xd8] sm:$0xff]  ;;  %v12928_v2 = vld [vmem:[#allocation2 + $0x2] sm:$0xff]  ;;  %v12929_v62 = vld [vmem:[#allocation2 + $0xa] sm:$0xff] }
 0xa5f   : > { %v12435_v9 = vld [vmem:[#allocation2 + $0x168] sm:$0xff] }
 0xa64   : > { %25299 = vmatmul.mubr.msk.bf16.vlgmr.msra.gmra.mrb[64].mxu0 %vm1325_vm5, %v31466_v14 }
 0xa65   : > { %25331 = vmatpush3.bf16.msra.mxu0 %v12765_v28  ;;  %25302 = vmatprep.mubr.msk.bf16.mxu0 %vm1325_vm5, %v31469_v32  ;;  %v31530_v28 = vpack.c.bf16 %v12485_v17, %v12484_v29  ;;  %v12424_v29 = vld [vmem:[#allocation2 + $0xe0] sm:$0xff]  ;;  %v12425_v17 = vld [vmem:[#allocation2 + $0xf0] sm:$0xff] }
 0xa66   : > { %28246 = vmatprep.subr.msk.bf16.mxu0 %vm1505_vm1, %v31474_v58  ;;  %v12413_v58 = vld [vmem:[#allocation2 + $0x60] sm:$0xff]  ;;  %v31576_v33 = vpack.c.bf16 %v12424_v29, %v12423_v51  ;;  %v12436_v51 = vld [vmem:[#allocation2 + $0x170] sm:$0xff]  ;;  %v12960_v29 = vpack.c.bf16 %v12929_v62, %v12928_v2 }
 0xa67   : > { %v31554_v35 = vpack.c.bf16 %v12414_v8, %v12413_v58  ;;  %v12431_v8 = vld [vmem:[#allocation2 + $0x138] sm:$0xff]  ;;  %v12937_v62 = vld [vmem:[#allocation2 + $0x6a] sm:$0xff] }
 0xa68   : > { %v31592_v27 = vpack.c.bf16 %v12432_v3, %v12431_v8  ;;  %v13321_v8 = vsel %vm1505_vm1, %v31544_v1, 0  ;;  %v12935_v2 = vld [vmem:[#allocation2 + $0x52] sm:$0xff] }
 0xa6c   : > { %25303 = vmatmul.mubr.msk.bf16.gmra.mrb[68].mxu0 %vm1325_vm5, %v31482_v56 }
 0xa6d   : > { %25306 = vmatprep.mubr.msk.bf16.mxu0 %vm1325_vm5, %v31484_v37 }
 0xa74   : > { %25307 = vmatmul.mubr.msk.bf16.gmra.mrb[72].mxu0 %vm1325_vm5, %v31490_v4 }
 0xa75   : > { %25310 = vmatprep.mubr.msk.bf16.mxu0 %vm1325_vm5, %v31492_v61 }
 0xa7c   : > { %25311 = vmatmul.mubr.msk.bf16.gmra.mrb[76].mxu0 %vm1325_vm5, %v31498_v6 }
 0xa7d   : > { %25314 = vmatprep.mubr.msk.bf16.mxu0 %vm1325_vm5, %v31500_v46 }
 0xa84   : > { %25315 = vmatmul.mubr.msk.bf16.gmra.mrb[80].mxu0 %vm1325_vm5, %v31506_v5 }
 0xa85   : > { %25318 = vmatprep.mubr.msk.bf16.mxu0 %vm1325_vm5, %v31508_v55 }
 0xa8c   : > { %25319 = vmatmul.mubr.msk.bf16.gmra.mrb[84].mxu0 %vm1325_vm5, %v31514_v43 }
 0xa8d   : > { %25322 = vmatprep.mubr.msk.bf16.mxu0 %vm1325_vm5, %v31516_v60 }
 0xa94   : > { %25323 = vmatmul.mubr.msk.bf16.gmra.mrb[88].mxu0 %vm1325_vm5, %v31522_v49 }
 0xa95   : > { %25326 = vmatprep.mubr.msk.bf16.mxu0 %vm1325_vm5, %v31524_v20 }
 0xa9c   : > { %25327 = vmatmul.mubr.msk.bf16.gmra.mrb[92].mxu0 %vm1325_vm5, %v31530_v28 }
 0xa9d   : > { %25332 = vmatprep.mubr.msk.bf16.mxu0 %vm1325_vm5, %v12437_v59  ;;  %v12426_v59 = vld [vmem:[#allocation2 + $0xf8] sm:$0xff] }
 0xa9e   : > { %v31578_v54 = vpack.c.bf16 %v12426_v59, %v12425_v17  ;;  %v31600_v17 = vpack.c.bf16 %v12436_v51, %v12435_v9  ;;  %v12930_v59 = vld [vmem:[#allocation2 + $0x1a] sm:$0xff]  ;;  %v31622_v9 = vpack.c.bf16 %v12935_v2, %v12934_v22 }
 0xa9f   : > { %v31641_v2 = vld [vmem:[%s33870_s12] ss:$0 sm:$0xff] }
 0xaa4   : > { %25333 = vmatmul.mubr.msk.bf16.vlgmr.msra.gmra.mrb[64].mxu0 %vm1325_vm5, %v31535_v24 }
 0xaa5   : > { %25365 = vmatpush3.bf16.msra.mxu0 %v13027_v41  ;;  %25336 = vmatprep.mubr.msk.bf16.mxu0 %vm1325_vm5, %v31539_v10  ;;  %v12429_v41 = vld [vmem:[#allocation2 + $0x120] sm:$0xff] }
 0xaa6   : > { %28247 = vmatprep.subr.msk.bf16.mxu0 %vm1505_vm1, %v31544_v1  ;;  %v31586_v58 = vpack.c.bf16 %v12430_v18, %v12429_v41  ;;  %v12933_v41 = vld [vmem:[#allocation2 + $0x3a] sm:$0xff]  ;;  %v31605_v18 = vpack.c.bf16 %v12931_v44, %v12930_v59  ;;  %v12936_v1 = vld [vmem:[#allocation2 + $0x62] sm:$0xff]  ;;  %v12940_v44 = vld [vmem:[#allocation2 + $0x92] sm:$0xff] }
 0xaa7   : > { %v31609_v3 = vpack.c.bf16 %v12933_v41, %v12932_v25  ;;  %v31624_v51 = vpack.c.bf16 %v12937_v62, %v12936_v1  ;;  %v12939_v59 = vld [vmem:[#allocation2 + $0x82] sm:$0xff]  ;;  %v12941_v25 = vld [vmem:[#allocation2 + $0x9a] sm:$0xff]  ;;  %v12942_v1 = vld [vmem:[#allocation2 + $0xaa] sm:$0xff] }
 0xaa8   : > { %v12943_v62 = vld [vmem:[#allocation2 + $0xb2] sm:$0xff] }
 0xaa9   : > { %v31649_v7 = vpack.c.bf16 %v12943_v62, %v12942_v1  ;;  %v12947_v62 = vld [vmem:[#allocation2 + $0xe2] sm:$0xff] }
 0xaac   : > { %25337 = vmatmul.mubr.msk.bf16.gmra.mrb[68].mxu0 %vm1325_vm5, %v31552_v42 }
 0xaad   : > { %25340 = vmatprep.mubr.msk.bf16.mxu0 %vm1325_vm5, %v31554_v35 }
 0xab4   : > { %25341 = vmatmul.mubr.msk.bf16.gmra.mrb[72].mxu0 %vm1325_vm5, %v31560_v34 }
 0xab5   : > { %25344 = vmatprep.mubr.msk.bf16.mxu0 %vm1325_vm5, %v31562_v12 }
 0xabc   : > { %25345 = vmatmul.mubr.msk.bf16.gmra.mrb[76].mxu0 %vm1325_vm5, %v31568_v47 }
 0xabd   : > { %25348 = vmatprep.mubr.msk.bf16.mxu0 %vm1325_vm5, %v31570_v50 }
 0xac4   : > { %25349 = vmatmul.mubr.msk.bf16.gmra.mrb[80].mxu0 %vm1325_vm5, %v31576_v33 }
 0xac5   : > { %25352 = vmatprep.mubr.msk.bf16.mxu0 %vm1325_vm5, %v31578_v54 }
 0xacc   : > { %25353 = vmatmul.mubr.msk.bf16.gmra.mrb[84].mxu0 %vm1325_vm5, %v31584_v48 }
 0xacd   : > { %25356 = vmatprep.mubr.msk.bf16.mxu0 %vm1325_vm5, %v31586_v58 }
 0xad4   : > { %25357 = vmatmul.mubr.msk.bf16.gmra.mrb[88].mxu0 %vm1325_vm5, %v31592_v27 }
 0xad5   : > { %25360 = vmatprep.mubr.msk.bf16.mxu0 %vm1325_vm5, %v31594_v16 }
 0xadc   : > { %25361 = vmatmul.mubr.msk.bf16.gmra.mrb[92].mxu0 %vm1325_vm5, %v31600_v17 }
 0xadd   : > { %25366 = vmatprep.mubr.msk.bf16.mxu0 %vm1325_vm5, %v12960_v29  ;;  %v12938_v29 = vld [vmem:[#allocation2 + $0x7a] sm:$0xff] }
 0xade   : > { %v31630_v41 = vpack.c.bf16 %v12939_v59, %v12938_v29  ;;  %v12945_v29 = vld [vmem:[#allocation2 + $0xca] sm:$0xff] }
 0xadf   : > { %v31657_v63 = vpack.c.bf16 %v12945_v29, %v12944_v30 }
 0xae4   : > { %25367 = vmatmul.mubr.msk.bf16.vlgmr.msra.gmra.mrb[64].mxu0 %vm1325_vm5, %v31605_v18 }
 0xae5   : > { %25399 = vmatpush3.bf16.msra.mxu0 %v13321_v8  ;;  %25370 = vmatprep.mubr.msk.bf16.mxu0 %vm1325_vm5, %v31609_v3  ;;  %v31632_v8 = vpack.c.bf16 %v12941_v25, %v12940_v44 }
 0xae6   : > { %28248 = vmatprep.subr.msk.bf16.mxu0 %vm1505_vm1, %v31614_v23 }
 0xaec   : > { %25371 = vmatmul.mubr.msk.bf16.gmra.mrb[68].mxu0 %vm1325_vm5, %v31622_v9 }
 0xaed   : > { %25374 = vmatprep.mubr.msk.bf16.mxu0 %vm1325_vm5, %v31624_v51 }
 0xaf4   : > { %25375 = vmatmul.mubr.msk.bf16.gmra.mrb[72].mxu0 %vm1325_vm5, %v31630_v41 }
 0xaf5   : > { %25378 = vmatprep.mubr.msk.bf16.mxu0 %vm1325_vm5, %v31632_v8 }
 0xaf7   : > { %v25230_v22 = vpop.f32.mrb[32].mxu0 }
 0xaf8   : > { %v11991_v19 = vpop.f32.mrb[33].mxu0  ;;  %v31644_v44 = vadd.f32 %v25230_v22, %v31641_v2 }
 0xaf9   : > { %v25231_v59 = vpop.f32.mrb[34].mxu0  ;;  %v31652_v53 = vadd.f32 %v31641_v2, %v11991_v19  ;;  %v12946_v19 = vld [vmem:[#allocation2 + $0xda] sm:$0xff] }
 0xafa   : > { %v31647_v25 = vadd.f32 %v25231_v59, %v31641_v2  ;;  %v11994_v31 = vpop.f32.mrb[35].mxu0  ;;  %v31673_v21 = vpack.c.bf16 %v12947_v62, %v12946_v19  ;;  %v12950_v62 = vld [vmem:[#allocation2 + $0x10a] sm:$0xff] }
 0xafb   : > { %v31655_v36 = vadd.f32 %v31641_v2, %v11994_v31  ;;  %v12948_v31 = vld [vmem:[#allocation2 + $0xf2] sm:$0xff] }
 0xafc   : > { %25379 = vmatmul.mubr.msk.bf16.gmra.mrb[76].mxu0 %vm1325_vm5, %v31649_v7  ;;  %v31681_v26 = vpack.c.bf16 %v12949_v11, %v12948_v31 }
 0xafd   : > { %25382 = vmatprep.mubr.msk.bf16.mxu0 %vm1325_vm5, %v31657_v63 }
 0xaff   : > { %v25234_v1 = vpop.f32.mrb[36].mxu0 }
 0xb00   : > { %v12007_v59 = vpop.f32.mrb[37].mxu0  ;;  %v31668_v29 = vadd.f32 %v25234_v1, %v31641_v2 }
 0xb01   : > { %v25235_v30 = vpop.f32.mrb[38].mxu0  ;;  %v31676_v22 = vadd.f32 %v31641_v2, %v12007_v59  ;;  %v12951_v59 = vld [vmem:[#allocation2 + $0x112] sm:$0xff] }
 0xb02   : > { %33871 = vst [vmem:[#allocation66_spill] sm:$0xff] %v31668_v29  ;;  %v31671_v52 = vadd.f32 %v25235_v30, %v31641_v2  ;;  %v12010_v38 = vpop.f32.mrb[39].mxu0  ;;  %v31697_v39 = vpack.c.bf16 %v12951_v59, %v12950_v62  ;;  %v12954_v59 = vld [vmem:[#allocation2 + $0x13a] sm:$0xff] }
 0xb03   : > { %33873 = vst [vmem:[#allocation68_spill] sm:$0xff] %v31676_v22  ;;  %v31679_v0 = vadd.f32 %v31641_v2, %v12010_v38  ;;  %v12952_v38 = vld [vmem:[#allocation2 + $0x122] sm:$0xff] }
 0xb04   : > { %33872 = vst [vmem:[#allocation67_spill] sm:$0xff] %v31671_v52  ;;  %25383 = vmatmul.mubr.msk.bf16.gmra.mrb[80].mxu0 %vm1325_vm5, %v31673_v21  ;;  %v31705_v57 = vpack.c.bf16 %v12953_v45, %v12952_v38  ;;  %v12957_v52 = vld [vmem:[#allocation2 + $0x15a] sm:$0xff] }
 0xb05   : > { %25386 = vmatprep.mubr.msk.bf16.mxu0 %vm1325_vm5, %v31681_v26 }
 0xb07   : > { %v25238_v19 = vpop.f32.mrb[40].mxu0 }
 0xb08   : > { %v12023_v30 = vpop.f32.mrb[41].mxu0  ;;  %v31692_v31 = vadd.f32 %v25238_v19, %v31641_v2 }
 0xb09   : > { %v25239_v11 = vpop.f32.mrb[42].mxu0  ;;  %v31700_v1 = vadd.f32 %v31641_v2, %v12023_v30  ;;  %v12955_v30 = vld [vmem:[#allocation2 + $0x142] sm:$0xff] }
 0xb0a   : > { %33874 = vst [vmem:[#allocation69_spill] sm:$0xff] %v31692_v31  ;;  %v31695_v15 = vadd.f32 %v25239_v11, %v31641_v2  ;;  %v12026_v13 = vpop.f32.mrb[43].mxu0 }
 0xb0b   : > { %33876 = vst [vmem:[#allocation71_spill] sm:$0xff] %v31700_v1  ;;  %v31703_v40 = vadd.f32 %v31641_v2, %v12026_v13  ;;  %v12956_v13 = vld [vmem:[#allocation2 + $0x152] sm:$0xff] }
 0xb0c   : > { %33875 = vst [vmem:[#allocation70_spill] sm:$0xff] %v31695_v15  ;;  %25387 = vmatmul.mubr.msk.bf16.gmra.mrb[84].mxu0 %vm1325_vm5, %v31697_v39  ;;  %v31721_v15 = vpack.c.bf16 %v12955_v30, %v12954_v59  ;;  %v12958_v30 = vld [vmem:[#allocation2 + $0x16a] sm:$0xff] }
 0xb0d   : > { %33877 = vst [vmem:[#allocation72_spill] sm:$0xff] %v31703_v40  ;;  %25390 = vmatprep.mubr.msk.bf16.mxu0 %vm1325_vm5, %v31705_v57  ;;  %v31729_v40 = vpack.c.bf16 %v12957_v52, %v12956_v13 }
 0xb0f   : > { %v25242_v62 = vpop.f32.mrb[44].mxu0 }
 0xb10   : > { %v12039_v11 = vpop.f32.mrb[45].mxu0  ;;  %v31716_v38 = vadd.f32 %v25242_v62, %v31641_v2 }
 0xb11   : > { %v25243_v45 = vpop.f32.mrb[46].mxu0  ;;  %v31724_v19 = vadd.f32 %v31641_v2, %v12039_v11  ;;  %v12959_v11 = vld [vmem:[#allocation2 + $0x172] sm:$0xff] }
 0xb12   : > { %33878 = vst [vmem:[#allocation73_spill] sm:$0xff] %v31716_v38  ;;  %v31719_v29 = vadd.f32 %v25243_v45, %v31641_v2  ;;  %v12042_v31 = vpop.f32.mrb[47].mxu0  ;;  %v31745_v38 = vpack.c.bf16 %v12959_v11, %v12958_v30 }
 0xb13   : > { %33880 = vst [vmem:[#allocation75_spill] sm:$0xff] %v31724_v19  ;;  %v31727_v1 = vadd.f32 %v31641_v2, %v12042_v31  ;;  %v13615_v19 = vsel %vm1505_vm1, %v31614_v23, 0 }
 0xb14   : > { %33879 = vst [vmem:[#allocation74_spill] sm:$0xff] %v31719_v29  ;;  %25391 = vmatmul.mubr.msk.bf16.gmra.mrb[88].mxu0 %vm1325_vm5, %v31721_v15 }
 0xb15   : > { %33881 = vst [vmem:[#allocation76_spill] sm:$0xff] %v31727_v1  ;;  %25394 = vmatprep.mubr.msk.bf16.mxu0 %vm1325_vm5, %v31729_v40 }
 0xb17   : > { %v25246_v59 = vpop.f32.mrb[48].mxu0 }
 0xb18   : > { %v12055_v45 = vpop.f32.mrb[49].mxu0  ;;  %v31740_v52 = vadd.f32 %v25246_v59, %v31641_v2 }
 0xb19   : > { %v25247_v31 = vpop.f32.mrb[50].mxu0  ;;  %v31748_v29 = vadd.f32 %v31641_v2, %v12055_v45 }
 0xb1a   : > { %33882 = vst [vmem:[#allocation77_spill] sm:$0xff] %v31740_v52  ;;  %v31743_v13 = vadd.f32 %v25247_v31, %v31641_v2  ;;  %v12058_v22 = vpop.f32.mrb[51].mxu0 }
 0xb1b   : > { %33884 = vst [vmem:[#allocation79_spill] sm:$0xff] %v31748_v29  ;;  %v31751_v62 = vadd.f32 %v31641_v2, %v12058_v22 }
 0xb1c   : > { %33883 = vst [vmem:[#allocation78_spill] sm:$0xff] %v31743_v13  ;;  %25395 = vmatmul.mubr.msk.bf16.gmra.mrb[92].mxu0 %vm1325_vm5, %v31745_v38 }
 0xb1d   : > { %25400 = vmatprep.mubr.msk.bf16.mxu0 %vm1325_vm5, %v31535_v24  ;;  %v22318_v24 = vld [vmem:[%s33596_s15 + $0xa] sm:$0x3] }
 0xb1f   : > { %v25250_v30 = vpop.f32.mrb[52].mxu0 }
 0xb20   : > { %v12071_v11 = vpop.f32.mrb[53].mxu0  ;;  %v31762_v45 = vadd.f32 %v25250_v30, %v31641_v2 }
 0xb21   : > { %v25251_v31 = vpop.f32.mrb[54].mxu0  ;;  %v31770_v52 = vadd.f32 %v31641_v2, %v12071_v11 }
 0xb22   : > { %33885 = vst [vmem:[#allocation80_spill] sm:$0xff] %v31762_v45  ;;  %v31765_v22 = vadd.f32 %v25251_v31, %v31641_v2  ;;  %v12074_v1 = vpop.f32.mrb[55].mxu0 }
 0xb23   : > { %33887 = vst [vmem:[#allocation82_spill] sm:$0xff] %v31770_v52  ;;  %v31773_v59 = vadd.f32 %v31641_v2, %v12074_v1 }
 0xb24   : > { %33886 = vst [vmem:[#allocation81_spill] sm:$0xff] %v31765_v22  ;;  %25401 = vmatmul.mubr.msk.bf16.vlgmr.msra.gmra.mrb[64].mxu0 %vm1325_vm5, %v31539_v10 }
 0xb25   : > { %33888 = vst [vmem:[#allocation83_spill] sm:$0xff] %v31773_v59  ;;  %25433 = vmatpush3.bf16.msra.mxu0 %v13615_v19  ;;  %25404 = vmatprep.mubr.msk.bf16.mxu0 %vm1325_vm5, %v31552_v42 }
 0xb26   : > { %28249 = vmatprep.subr.msk.bf16.mxu0 %vm1505_vm1, %v22318_v24 }
 0xb27   : > { %v25254_v23 = vpop.f32.mrb[56].mxu0 }
 0xb28   : > { %v12087_v1 = vpop.f32.mrb[57].mxu0  ;;  %v31788_v13 = vadd.f32 %v25254_v23, %v31641_v2  ;;  %v22335_v23 = vld [vmem:[%s33596_s15 + $0xc] sm:$0x3] }
 0xb29   : > { %v25255_v11 = vpop.f32.mrb[58].mxu0  ;;  %v31794_v22 = vadd.f32 %v31641_v2, %v12087_v1 }
 0xb2a   : > { %33889 = vst [vmem:[#allocation84_spill] sm:$0xff] %v31788_v13  ;;  %v31791_v30 = vadd.f32 %v25255_v11, %v31641_v2  ;;  %v12090_v45 = vpop.f32.mrb[59].mxu0 }
 0xb2b   : > { %v31797_v19 = vadd.f32 %v31641_v2, %v12090_v45 }
 0xb2c   : > { %25405 = vmatmul.mubr.msk.bf16.gmra.mrb[68].mxu0 %vm1325_vm5, %v31554_v35 }
 0xb2d   : > { %25408 = vmatprep.mubr.msk.bf16.mxu0 %vm1325_vm5, %v31560_v34 }
 0xb2f   : > { %v25258_v11 = vpop.f32.mrb[60].mxu0 }
 0xb30   : > { %v12103_v52 = vpop.f32.mrb[61].mxu0  ;;  %v31808_v1 = vadd.f32 %v25258_v11, %v31641_v2 }
 0xb31   : > { %v25259_v59 = vpop.f32.mrb[62].mxu0  ;;  %v31814_v31 = vadd.f32 %v31641_v2, %v12103_v52 }
 0xb32   : > { %33890 = vst [vmem:[#allocation85_spill] sm:$0xff] %v31808_v1  ;;  %v31811_v45 = vadd.f32 %v25259_v59, %v31641_v2  ;;  %v12106_v29 = vpop.f32.mrb[63].mxu0  ;;  %v13909_v59 = vsel %vm1505_vm1, %v22318_v24, 0 }
 0xb33   : > { %v31817_v13 = vadd.f32 %v31641_v2, %v12106_v29  ;;  %v13252_v2 = vld [vmem:[#allocation2 + $0x180] sm:$0xff]  ;;  %v13253_v29 = vld [vmem:[#allocation2 + $0x188] sm:$0xff] }
 0xb34   : > { %33891 = vst [vmem:[#allocation86_spill] sm:$0xff] %v31811_v45  ;;  %25409 = vmatmul.mubr.msk.bf16.gmra.mrb[72].mxu0 %vm1325_vm5, %v31562_v12  ;;  %v31843_v52 = vpack.c.bf16 %v13253_v29, %v13252_v2  ;;  %v14409_v2 = vld [vmem:[#allocation2 + $0xb1] sm:$0xff]  ;;  %v14410_v29 = vld [vmem:[#allocation2 + $0xc1] sm:$0xff] }
 0xb35   : > { %25412 = vmatprep.mubr.msk.bf16.mxu0 %vm1325_vm5, %v31568_v47 }
 0xb3c   : > { %25413 = vmatmul.mubr.msk.bf16.gmra.mrb[76].mxu0 %vm1325_vm5, %v31570_v50 }
 0xb3d   : > { %25416 = vmatprep.mubr.msk.bf16.mxu0 %vm1325_vm5, %v31576_v33 }
 0xb44   : > { %25417 = vmatmul.mubr.msk.bf16.gmra.mrb[80].mxu0 %vm1325_vm5, %v31578_v54 }
 0xb45   : > { %25420 = vmatprep.mubr.msk.bf16.mxu0 %vm1325_vm5, %v31584_v48 }
 0xb4c   : > { %25421 = vmatmul.mubr.msk.bf16.gmra.mrb[84].mxu0 %vm1325_vm5, %v31586_v58 }
 0xb4d   : > { %25424 = vmatprep.mubr.msk.bf16.mxu0 %vm1325_vm5, %v31592_v27 }
 0xb54   : > { %25425 = vmatmul.mubr.msk.bf16.gmra.mrb[88].mxu0 %vm1325_vm5, %v31594_v16 }
 0xb55   : > { %25428 = vmatprep.mubr.msk.bf16.mxu0 %vm1325_vm5, %v31600_v17 }
 0xb5c   : > { %25429 = vmatmul.mubr.msk.bf16.gmra.mrb[92].mxu0 %vm1325_vm5, %v31843_v52 }
 0xb5d   : > { %25434 = vmatprep.mubr.msk.bf16.mxu0 %vm1325_vm5, %v31466_v14  ;;  %v13546_v14 = vld [vmem:[#allocation2 + $0x181] sm:$0xff] }
 0xb64   : > { %25435 = vmatmul.mubr.msk.bf16.vlgmr.msra.gmra.mrb[64].mxu0 %vm1325_vm5, %v31469_v32  ;;  %v13547_v32 = vld [vmem:[#allocation2 + $0x189] sm:$0xff] }
 0xb65   : > { %25467 = vmatpush3.bf16.msra.mxu0 %v13909_v59  ;;  %25438 = vmatprep.mubr.msk.bf16.mxu0 %vm1325_vm5, %v31482_v56  ;;  %v31882_v56 = vpack.c.bf16 %v13547_v32, %v13546_v14  ;;  %v14412_v32 = vld [vmem:[#allocation2 + $0xd9] sm:$0xff] }
 0xb66   : > { %28250 = vmatprep.subr.msk.bf16.mxu0 %vm1505_vm1, %v22335_v23 }
 0xb6c   : > { %25439 = vmatmul.mubr.msk.bf16.gmra.mrb[68].mxu0 %vm1325_vm5, %v31484_v37  ;;  %v14203_v37 = vsel %vm1505_vm1, %v22335_v23, 0  ;;  %v14408_v23 = vld [vmem:[#allocation2 + $0xa9] sm:$0xff] }
 0xb6d   : > { %25442 = vmatprep.mubr.msk.bf16.mxu0 %vm1325_vm5, %v31490_v4  ;;  %v22352_v4 = vld [vmem:[%s33596_s15 + $0xe] sm:$0x3]  ;;  %v14435_v59 = vpack.c.bf16 %v14409_v2, %v14408_v23 }
 0xb74   : > { %25443 = vmatmul.mubr.msk.bf16.gmra.mrb[72].mxu0 %vm1325_vm5, %v31492_v61  ;;  %v13840_v61 = vld [vmem:[#allocation2 + $0x182] sm:$0xff] }
 0xb75   : > { %25446 = vmatprep.mubr.msk.bf16.mxu0 %vm1325_vm5, %v31498_v6  ;;  %v13841_v6 = vld [vmem:[#allocation2 + $0x18a] sm:$0xff] }
 0xb7c   : > { %25447 = vmatmul.mubr.msk.bf16.gmra.mrb[76].mxu0 %vm1325_vm5, %v31500_v46  ;;  %v31921_v46 = vpack.c.bf16 %v13841_v6, %v13840_v61  ;;  %v14415_v61 = vld [vmem:[#allocation2 + $0xf9] sm:$0xff] }
 0xb7d   : > { %25450 = vmatprep.mubr.msk.bf16.mxu0 %vm1325_vm5, %v31506_v5  ;;  %v14497_v5 = vsel %vm1505_vm1, %v22352_v4, 0 }
 0xb84   : > { %25451 = vmatmul.mubr.msk.bf16.gmra.mrb[80].mxu0 %vm1325_vm5, %v31508_v55  ;;  %v22369_v55 = vld [vmem:[%s33596_s15 + $0x10] sm:$0x3] }
 0xb85   : > { %25454 = vmatprep.mubr.msk.bf16.mxu0 %vm1325_vm5, %v31514_v43  ;;  %v14134_v43 = vld [vmem:[#allocation2 + $0x198] sm:$0xff] }
 0xb8c   : > { %25455 = vmatmul.mubr.msk.bf16.gmra.mrb[84].mxu0 %vm1325_vm5, %v31516_v60  ;;  %v14135_v60 = vld [vmem:[#allocation2 + $0x1a0] sm:$0xff] }
 0xb8d   : > { %25458 = vmatprep.mubr.msk.bf16.mxu0 %vm1325_vm5, %v31522_v49  ;;  %v14151_v49 = vpack.c.bf16 %v14135_v60, %v14134_v43  ;;  %v14417_v43 = vld [vmem:[#allocation2 + $0x111] sm:$0xff]  ;;  %v14418_v60 = vld [vmem:[#allocation2 + $0x121] sm:$0xff] }
 0xb94   : > { %25459 = vmatmul.mubr.msk.bf16.gmra.mrb[88].mxu0 %vm1325_vm5, %v31524_v20  ;;  %v14398_v20 = vld [vmem:[#allocation2 + $0x31] sm:$0xff] }
 0xb95   : > { %25462 = vmatprep.mubr.msk.bf16.mxu0 %vm1325_vm5, %v31530_v28  ;;  %v14399_v28 = vld [vmem:[#allocation2 + $0x39] sm:$0xff] }
 0xb9c   : > { %25463 = vmatmul.mubr.msk.bf16.gmra.mrb[92].mxu0 %vm1325_vm5, %v31882_v56 }
 0xb9d   : > { %25468 = vmatprep.mubr.msk.bf16.mxu0 %vm1325_vm5, %v31605_v18 }
 0xba4   : > { %25469 = vmatmul.mubr.msk.bf16.vlgmr.msra.gmra.mrb[64].mxu0 %vm1325_vm5, %v31609_v3 }
 0xba5   : > { %25501 = vmatpush3.bf16.msra.mxu0 %v14203_v37  ;;  %25472 = vmatprep.mubr.msk.bf16.mxu0 %vm1325_vm5, %v31622_v9  ;;  %v14413_v37 = vld [vmem:[#allocation2 + $0xe1] sm:$0xff] }
 0xba6   : > { %28251 = vmatprep.subr.msk.bf16.mxu0 %vm1505_vm1, %v22352_v4  ;;  %v14414_v4 = vld [vmem:[#allocation2 + $0xf1] sm:$0xff]  ;;  %v14437_v6 = vpack.c.bf16 %v14413_v37, %v14412_v32 }
 0xbac   : > { %25473 = vmatmul.mubr.msk.bf16.gmra.mrb[68].mxu0 %vm1325_vm5, %v31624_v51 }
 0xbad   : > { %25476 = vmatprep.mubr.msk.bf16.mxu0 %vm1325_vm5, %v31630_v41 }
 0xbb4   : > { %25477 = vmatmul.mubr.msk.bf16.gmra.mrb[72].mxu0 %vm1325_vm5, %v31632_v8 }
 0xbb5   : > { %25480 = vmatprep.mubr.msk.bf16.mxu0 %vm1325_vm5, %v31649_v7 }
 0xbbc   : > { %25481 = vmatmul.mubr.msk.bf16.gmra.mrb[76].mxu0 %vm1325_vm5, %v31657_v63 }
 0xbbd   : > { %25484 = vmatprep.mubr.msk.bf16.mxu0 %vm1325_vm5, %v31673_v21 }
 0xbc4   : > { %25485 = vmatmul.mubr.msk.bf16.gmra.mrb[80].mxu0 %vm1325_vm5, %v31681_v26 }
 0xbc5   : > { %25488 = vmatprep.mubr.msk.bf16.mxu0 %vm1325_vm5, %v31697_v39 }
 0xbcc   : > { %25489 = vmatmul.mubr.msk.bf16.gmra.mrb[84].mxu0 %vm1325_vm5, %v31705_v57 }
 0xbcd   : > { %25492 = vmatprep.mubr.msk.bf16.mxu0 %vm1325_vm5, %v31721_v15 }
 0xbd4   : > { %25493 = vmatmul.mubr.msk.bf16.gmra.mrb[88].mxu0 %vm1325_vm5, %v31729_v40 }
 0xbd5   : > { %25496 = vmatprep.mubr.msk.bf16.mxu0 %vm1325_vm5, %v31745_v38 }
 0xbdc   : > { %25497 = vmatmul.mubr.msk.bf16.gmra.mrb[92].mxu0 %vm1325_vm5, %v31921_v46 }
 0xbdd   : > { %25502 = vmatprep.mubr.msk.bf16.mxu0 %vm1325_vm5, %v31539_v10  ;;  %v14430_v10 = vpack.c.bf16 %v14399_v28, %v14398_v20 }
 0xbe4   : > { %25503 = vmatmul.mubr.msk.bf16.vlgmr.msra.gmra.mrb[64].mxu0 %vm1325_vm5, %v31552_v42  ;;  %v22387_v42 = vld [vmem:[%s33598_s17 + $0x4] sm:$0x7] }
 0xbe5   : > { %25535 = vmatpush3.bf16.msra.mxu0 %v14497_v5  ;;  %25506 = vmatprep.mubr.msk.bf16.mxu0 %vm1325_vm5, %v31554_v35  ;;  %v15239_v35 = vsel %vm15237_vm10, %v22387_v42, 0  ;;  %v14438_v5 = vpack.c.bf16 %v14415_v61, %v14414_v4 }
 0xbe6   : > { %28252 = vmatprep.subr.msk.bf16.mxu0 %vm1505_vm1, %v22369_v55  ;;  %28253 = vmatprep.subr.msk.bf16.mxu1 %vm15237_vm10, %v22387_v42  ;;  %v14421_v42 = vld [vmem:[#allocation2 + $0x141] sm:$0xff] }
 0xbe7   : > { %25603 = vmatpush3.bf16.msra.mxu1 %v15239_v35  ;;  %v14422_v35 = vld [vmem:[#allocation2 + $0x151] sm:$0xff] }
 0xbec   : > { %25507 = vmatmul.mubr.msk.bf16.gmra.mrb[68].mxu0 %vm1325_vm5, %v31560_v34  ;;  %v14400_v34 = vld [vmem:[#allocation2 + $0x49] sm:$0xff] }
 0xbed   : > { %25510 = vmatprep.mubr.msk.bf16.mxu0 %vm1325_vm5, %v31562_v12  ;;  %v14401_v12 = vld [vmem:[#allocation2 + $0x51] sm:$0xff] }
 0xbf4   : > { %25511 = vmatmul.mubr.msk.bf16.gmra.mrb[72].mxu0 %vm1325_vm5, %v31568_v47  ;;  %v14402_v47 = vld [vmem:[#allocation2 + $0x61] sm:$0xff] }
 0xbf5   : > { %25514 = vmatprep.mubr.msk.bf16.mxu0 %vm1325_vm5, %v31570_v50  ;;  %v14403_v50 = vld [vmem:[#allocation2 + $0x69] sm:$0xff] }
 0xbfc   : > { %25515 = vmatmul.mubr.msk.bf16.gmra.mrb[76].mxu0 %vm1325_vm5, %v31576_v33  ;;  %v14431_v33 = vpack.c.bf16 %v14401_v12, %v14400_v34  ;;  %v14423_v34 = vld [vmem:[#allocation2 + $0x159] sm:$0xff] }
 0xbfd   : > { %25518 = vmatprep.mubr.msk.bf16.mxu0 %vm1325_vm5, %v31578_v54  ;;  %v14791_v54 = vsel %vm1505_vm1, %v22369_v55, 0  ;;  %v14416_v55 = vld [vmem:[#allocation2 + $0x109] sm:$0xff] }
 0xbfe   : > { %v14439_v20 = vpack.c.bf16 %v14417_v43, %v14416_v55 }
 0xc04   : > { %25519 = vmatmul.mubr.msk.bf16.gmra.mrb[80].mxu0 %vm1325_vm5, %v31584_v48  ;;  %v14432_v48 = vpack.c.bf16 %v14403_v50, %v14402_v47  ;;  %v14442_v47 = vpack.c.bf16 %v14423_v34, %v14422_v35  ;;  %v14424_v50 = vld [vmem:[#allocation2 + $0x169] sm:$0xff] }
 0xc05   : > { %25522 = vmatprep.mubr.msk.bf16.mxu0 %vm1325_vm5, %v31586_v58  ;;  %v14404_v58 = vld [vmem:[#allocation2 + $0x79] sm:$0xff] }
 0xc0c   : > { %25523 = vmatmul.mubr.msk.bf16.gmra.mrb[84].mxu0 %vm1325_vm5, %v31592_v27  ;;  %v14405_v27 = vld [vmem:[#allocation2 + $0x81] sm:$0xff] }
 0xc0d   : > { %25526 = vmatprep.mubr.msk.bf16.mxu0 %vm1325_vm5, %v31594_v16  ;;  %v14406_v16 = vld [vmem:[#allocation2 + $0x91] sm:$0xff]  ;;  %v14433_v18 = vpack.c.bf16 %v14405_v27, %v14404_v58  ;;  %v14429_v58 = vld [vmem:[#allocation2 + $0x1a1] sm:$0xff] }
 0xc14   : > { %25527 = vmatmul.mubr.msk.bf16.gmra.mrb[88].mxu0 %vm1325_vm5, %v31600_v17  ;;  %v14407_v17 = vld [vmem:[#allocation2 + $0x99] sm:$0xff] }
 0xc15   : > { %25530 = vmatprep.mubr.msk.bf16.mxu0 %vm1325_vm5, %v31843_v52  ;;  %v14434_v24 = vpack.c.bf16 %v14407_v17, %v14406_v16  ;;  %v14411_v52 = vld [vmem:[#allocation2 + $0xc9] sm:$0xff] }
 0xc16   : > { %v14436_v14 = vpack.c.bf16 %v14411_v52, %v14410_v29 }
 0xc1c   : > { %25531 = vmatmul.mubr.msk.bf16.gmra.mrb[92].mxu0 %vm1325_vm5, %v14151_v49  ;;  %v14419_v49 = vld [vmem:[#allocation2 + $0x129] sm:$0xff] }
 0xc1d   : > { %25536 = vmatprep.mubr.msk.bf16.mxu0 %vm1325_vm5, %v14430_v10  ;;  %v14440_v28 = vpack.c.bf16 %v14419_v49, %v14418_v60  ;;  %v14420_v10 = vld [vmem:[#allocation2 + $0x139] sm:$0xff] }
 0xc1e   : > { %v14441_v12 = vpack.c.bf16 %v14421_v42, %v14420_v10 }
 0xc24   : > { %25537 = vmatmul.mubr.msk.bf16.vlgmr.msra.gmra.mrb[64].mxu0 %vm1325_vm5, %v14431_v33  ;;  %v14425_v33 = vld [vmem:[#allocation2 + $0x171] sm:$0xff] }
 0xc25   : > { %25569 = vmatpush3.bf16.msra.mxu0 %v14791_v54  ;;  %25540 = vmatprep.mubr.msk.bf16.mxu0 %vm1325_vm5, %v14432_v48  ;;  %v14443_v54 = vpack.c.bf16 %v14425_v33, %v14424_v50  ;;  %v14428_v48 = vld [vmem:[#allocation2 + $0x199] sm:$0xff] }
 0xc26   : > { %v14445_v27 = vpack.c.bf16 %v14429_v58, %v14428_v48 }
 0xc2c   : > { %25541 = vmatmul.mubr.msk.bf16.gmra.mrb[68].mxu0 %vm1325_vm5, %v14433_v18 }
 0xc2d   : > { %25544 = vmatprep.mubr.msk.bf16.mxu0 %vm1325_vm5, %v14434_v24 }
 0xc34   : > { %25545 = vmatmul.mubr.msk.bf16.gmra.mrb[72].mxu0 %vm1325_vm5, %v14435_v59 }
 0xc35   : > { %25548 = vmatprep.mubr.msk.bf16.mxu0 %vm1325_vm5, %v14436_v14 }
 0xc3c   : > { %25549 = vmatmul.mubr.msk.bf16.gmra.mrb[76].mxu0 %vm1325_vm5, %v14437_v6 }
 0xc3d   : > { %25552 = vmatprep.mubr.msk.bf16.mxu0 %vm1325_vm5, %v14438_v5 }
 0xc44   : > { %25553 = vmatmul.mubr.msk.bf16.gmra.mrb[80].mxu0 %vm1325_vm5, %v14439_v20 }
 0xc45   : > { %25556 = vmatprep.mubr.msk.bf16.mxu0 %vm1325_vm5, %v14440_v28 }
 0xc4c   : > { %25557 = vmatmul.mubr.msk.bf16.gmra.mrb[84].mxu0 %vm1325_vm5, %v14441_v12  ;;  %v32050_v12 = vld [vmem:[%s33598_s17 + $0x8] sm:$0x7] }
 0xc4d   : > { %25560 = vmatprep.mubr.msk.bf16.mxu0 %vm1325_vm5, %v14442_v47 }
 0xc54   : > { %25561 = vmatmul.mubr.msk.bf16.gmra.mrb[88].mxu0 %vm1325_vm5, %v14443_v54 }
 0xc55   : > { %25564 = vmatprep.mubr.msk.bf16.mxu0 %vm1325_vm5, %v31882_v56 }
 0xc5c   : > { %25565 = vmatmul.mubr.msk.bf16.gmra.mrb[92].mxu0 %vm1325_vm5, %v14445_v27 }
 0xc5d   : > { %25570 = vmatprep.mubr.msk.bf16.mxu0 %vm1325_vm5, %v31609_v3 }
 0xc64   : > { %25571 = vmatmul.mubr.msk.bf16.vlgmr.msra.gmra.mrb[64].mxu0 %vm1325_vm5, %v31622_v9 }
 0xc65   : > { %25574 = vmatprep.mubr.msk.bf16.mxu0 %vm1325_vm5, %v31624_v51 }
 0xc6c   : > { %25575 = vmatmul.mubr.msk.bf16.gmra.mrb[68].mxu0 %vm1325_vm5, %v31630_v41 }
 0xc6d   : > { %25578 = vmatprep.mubr.msk.bf16.mxu0 %vm1325_vm5, %v31632_v8 }
 0xc74   : > { %25579 = vmatmul.mubr.msk.bf16.gmra.mrb[72].mxu0 %vm1325_vm5, %v31649_v7  ;;  %v15140_v7 = vld [vmem:[#allocation2 + $0x9] sm:$0xff] }
 0xc75   : > { %25582 = vmatprep.mubr.msk.bf16.mxu0 %vm1325_vm5, %v31657_v63 }
 0xc7c   : > { %25583 = vmatmul.mubr.msk.bf16.gmra.mrb[76].mxu0 %vm1325_vm5, %v31673_v21  ;;  %v14722_v21 = vld [vmem:[#allocation2 + $0x19a] sm:$0xff] }
 0xc7d   : > { %25586 = vmatprep.mubr.msk.bf16.mxu0 %vm1325_vm5, %v31681_v26  ;;  %v14723_v26 = vld [vmem:[#allocation2 + $0x1a2] sm:$0xff] }
 0xc7e   : > { %v14739_v63 = vpack.c.bf16 %v14723_v26, %v14722_v21 }
 0xc84   : > { %25587 = vmatmul.mubr.msk.bf16.gmra.mrb[80].mxu0 %vm1325_vm5, %v31697_v39  ;;  %v15139_v39 = vld [vmem:[#allocation2 + $0x1] sm:$0xff] }
 0xc85   : > { %25590 = vmatprep.mubr.msk.bf16.mxu0 %vm1325_vm5, %v31705_v57  ;;  %v15171_v57 = vpack.c.bf16 %v15140_v7, %v15139_v39 }
 0xc87   : > { %25604 = vmatprep.mubr.msk.bf16.mxu1 %vm15057_vm11, %v15171_v57 }
 0xc8c   : > { %25591 = vmatmul.mubr.msk.bf16.gmra.mrb[84].mxu0 %vm1325_vm5, %v31721_v15  ;;  %v15138_v15 = vld [vmem:[%s33598_s17] sm:$0x7] }
 0xc8d   : > { %25594 = vmatprep.mubr.msk.bf16.mxu0 %vm1325_vm5, %v31729_v40  ;;  %28254 = vmatprep.subr.msk.bf16.mxu1 %vm15237_vm10, %v15138_v15  ;;  %v32023_v40 = vld [vmem:[%s33597_s16] ss:$0 sm:$0xff]  ;;  %v15451_v28 = vsel %vm15237_vm10, %v15138_v15, 0 }
 0xc94   : > { %25595 = vmatmul.mubr.msk.bf16.gmra.mrb[88].mxu0 %vm1325_vm5, %v31745_v38 }
 0xc95   : > { %25598 = vmatprep.mubr.msk.bf16.mxu0 %vm1325_vm5, %v31921_v46 }
 0xc9c   : > { %25599 = vmatmul.mubr.msk.bf16.gmra.mrb[92].mxu0 %vm1325_vm5, %v14739_v63 }
 0xd37   : > { %v25572_v3 = vpop.f32.mrb[64].mxu0 }
 0xd38   : > { %v14995_v9 = vadd.f32 %v25572_v3, %v32023_v40  ;;  %v14827_v51 = vpop.f32.mrb[65].mxu0 }
 0xd39   : > { %v14993_v41 = vadd.f32 %v32023_v40, %v14827_v51  ;;  %v25573_v8 = vpop.f32.mrb[66].mxu0 }
 0xd3a   : > { %v15027_v38 = vmax.f32 %v14995_v9, 0.0  ;;  %v14996_v56 = vadd.f32 %v25573_v8, %v32023_v40  ;;  %v14830_v46 = vpop.f32.mrb[67].mxu0 }
 0xd3b   : > { %v15025_v16 = vmax.f32 %v14993_v41, 0.0  ;;  %v14994_v17 = vadd.f32 %v32023_v40, %v14830_v46 }
 0xd3c   : > { %v15028_v18 = vmax.f32 %v14996_v56, 0.0  ;;  %15060 = vst.msk [vmem:[#allocation2 + $0x31] sm:$0xff] %vm15057_vm11, %v15027_v38 }
 0xd3d   : > { %v15026_v24 = vmax.f32 %v14994_v17, 0.0  ;;  %15058 = vst.msk [vmem:[#allocation2 + $0x19] sm:$0xff] %vm15057_vm11, %v15025_v16 }
 0xd3e   : > { %15061 = vst.msk [vmem:[#allocation2 + $0x39] sm:$0xff] %vm15057_vm11, %v15028_v18 }
 0xd3f   : > { %v25576_v23 = vpop.f32.mrb[68].mxu0  ;;  %15059 = vst.msk [vmem:[#allocation2 + $0x21] sm:$0xff] %vm15057_vm11, %v15026_v24 }
 0xd40   : > { %v14999_v2 = vadd.f32 %v25576_v23, %v32023_v40  ;;  %v14843_v29 = vpop.f32.mrb[69].mxu0 }
 0xd41   : > { %v14997_v52 = vadd.f32 %v32023_v40, %v14843_v29  ;;  %v25577_v59 = vpop.f32.mrb[70].mxu0 }
 0xd42   : > { %v15031_v14 = vmax.f32 %v14999_v2, 0.0  ;;  %v15000_v32 = vadd.f32 %v25577_v59, %v32023_v40  ;;  %v14846_v37 = vpop.f32.mrb[71].mxu0 }
 0xd43   : > { %v15029_v4 = vmax.f32 %v14997_v52, 0.0  ;;  %v14998_v61 = vadd.f32 %v32023_v40, %v14846_v37  ;;  %v15143_v10 = vld [vmem:[#allocation2 + $0x31] sm:$0xff] }
 0xd44   : > { %v15032_v6 = vmax.f32 %v15000_v32, 0.0  ;;  %15064 = vst.msk [vmem:[#allocation2 + $0x61] sm:$0xff] %vm15057_vm11, %v15031_v14  ;;  %v15141_v43 = vld [vmem:[#allocation2 + $0x19] sm:$0xff] }
 0xd45   : > { %v15030_v5 = vmax.f32 %v14998_v61, 0.0  ;;  %15062 = vst.msk [vmem:[#allocation2 + $0x49] sm:$0xff] %vm15057_vm11, %v15029_v4  ;;  %v15144_v55 = vld [vmem:[#allocation2 + $0x39] sm:$0xff] }
 0xd46   : > { %15065 = vst.msk [vmem:[#allocation2 + $0x69] sm:$0xff] %vm15057_vm11, %v15032_v6  ;;  %v15142_v60 = vld [vmem:[#allocation2 + $0x21] sm:$0xff]  ;;  %v32045_v34 = vpack.c.bf16 %v15144_v55, %v15143_v10 }
 0xd47   : > { %v25580_v49 = vpop.f32.mrb[72].mxu0  ;;  %15063 = vst.msk [vmem:[#allocation2 + $0x51] sm:$0xff] %vm15057_vm11, %v15030_v5  ;;  %v32041_v20 = vpack.c.bf16 %v15142_v60, %v15141_v43 }
 0xd48   : > { %v15003_v42 = vadd.f32 %v25580_v49, %v32023_v40  ;;  %v14859_v35 = vpop.f32.mrb[73].mxu0 }
 0xd49   : > { %v15001_v47 = vadd.f32 %v32023_v40, %v14859_v35  ;;  %v25581_v50 = vpop.f32.mrb[74].mxu0  ;;  %25605 = vmatmul.mubr.msk.bf16.vlgmr.msra.gmra.mrb[192].mxu1 %vm15057_vm11, %v32041_v20 }
 0xd4a   : > { %v15035_v33 = vmax.f32 %v15003_v42, 0.0  ;;  %v15004_v54 = vadd.f32 %v25581_v50, %v32023_v40  ;;  %25637 = vmatpush3.bf16.msra.mxu1 %v15451_v28  ;;  %v14862_v48 = vpop.f32.mrb[75].mxu0  ;;  %25608 = vmatprep.mubr.msk.bf16.mxu1 %vm15057_vm11, %v32045_v34 }
 0xd4b   : > { %v15033_v58 = vmax.f32 %v15001_v47, 0.0  ;;  %v15002_v27 = vadd.f32 %v32023_v40, %v14862_v48  ;;  %28255 = vmatprep.subr.msk.bf16.mxu1 %vm15237_vm10, %v32050_v12  ;;  %v15147_v3 = vld [vmem:[#allocation2 + $0x61] sm:$0xff] }
 0xd4c   : > { %15068 = vst.msk [vmem:[#allocation2 + $0x91] sm:$0xff] %vm15057_vm11, %v15035_v33  ;;  %v15036_v21 = vmax.f32 %v15004_v54, 0.0  ;;  %v15145_v39 = vld [vmem:[#allocation2 + $0x49] sm:$0xff] }
 0xd4d   : > { %15066 = vst.msk [vmem:[#allocation2 + $0x79] sm:$0xff] %vm15057_vm11, %v15033_v58  ;;  %v15034_v26 = vmax.f32 %v15002_v27, 0.0  ;;  %v15148_v63 = vld [vmem:[#allocation2 + $0x69] sm:$0xff] }
 0xd4e   : > { %15069 = vst.msk [vmem:[#allocation2 + $0x99] sm:$0xff] %vm15057_vm11, %v15036_v21  ;;  %v15146_v7 = vld [vmem:[#allocation2 + $0x51] sm:$0xff]  ;;  %v32068_v41 = vpack.c.bf16 %v15148_v63, %v15147_v3 }
 0xd4f   : > { %15067 = vst.msk [vmem:[#allocation2 + $0x81] sm:$0xff] %vm15057_vm11, %v15034_v26  ;;  %v25584_v57 = vpop.f32.mrb[76].mxu0  ;;  %v32065_v15 = vpack.c.bf16 %v15146_v7, %v15145_v39 }
 0xd50   : > { %v15007_v9 = vadd.f32 %v25584_v57, %v32023_v40  ;;  %v14875_v51 = vpop.f32.mrb[77].mxu0 }
 0xd51   : > { %v15005_v8 = vadd.f32 %v32023_v40, %v14875_v51  ;;  %v25585_v38 = vpop.f32.mrb[78].mxu0  ;;  %25609 = vmatmul.mubr.msk.bf16.gmra.mrb[196].mxu1 %vm15057_vm11, %v32065_v15 }
 0xd52   : > { %v15039_v56 = vmax.f32 %v15007_v9, 0.0  ;;  %v15008_v46 = vadd.f32 %v25585_v38, %v32023_v40  ;;  %v14878_v16 = vpop.f32.mrb[79].mxu0  ;;  %25612 = vmatprep.mubr.msk.bf16.mxu1 %vm15057_vm11, %v32068_v41 }
 0xd53   : > { %v15037_v17 = vmax.f32 %v15005_v8, 0.0  ;;  %v15006_v18 = vadd.f32 %v32023_v40, %v14878_v16  ;;  %v15151_v32 = vld [vmem:[#allocation2 + $0x91] sm:$0xff] }
 0xd54   : > { %15072 = vst.msk [vmem:[#allocation2 + $0xc1] sm:$0xff] %vm15057_vm11, %v15039_v56  ;;  %v15040_v24 = vmax.f32 %v15008_v46, 0.0  ;;  %v15149_v29 = vld [vmem:[#allocation2 + $0x79] sm:$0xff] }
 0xd55   : > { %15070 = vst.msk [vmem:[#allocation2 + $0xa9] sm:$0xff] %vm15057_vm11, %v15037_v17  ;;  %v15038_v23 = vmax.f32 %v15006_v18, 0.0  ;;  %v15152_v2 = vld [vmem:[#allocation2 + $0x99] sm:$0xff] }
 0xd56   : > { %15073 = vst.msk [vmem:[#allocation2 + $0xc9] sm:$0xff] %vm15057_vm11, %v15040_v24  ;;  %v15150_v52 = vld [vmem:[#allocation2 + $0x81] sm:$0xff]  ;;  %v32084_v61 = vpack.c.bf16 %v15152_v2, %v15151_v32 }
 0xd57   : > { %15071 = vst.msk [vmem:[#allocation2 + $0xb1] sm:$0xff] %vm15057_vm11, %v15038_v23  ;;  %v25588_v59 = vpop.f32.mrb[80].mxu0  ;;  %v32081_v14 = vpack.c.bf16 %v15150_v52, %v15149_v29 }
 0xd58   : > { %v15011_v37 = vadd.f32 %v25588_v59, %v32023_v40  ;;  %v14891_v4 = vpop.f32.mrb[81].mxu0 }
 0xd59   : > { %v15009_v6 = vadd.f32 %v32023_v40, %v14891_v4  ;;  %v25589_v5 = vpop.f32.mrb[82].mxu0  ;;  %25613 = vmatmul.mubr.msk.bf16.gmra.mrb[200].mxu1 %vm15057_vm11, %v32081_v14 }
 0xd5a   : > { %v15043_v55 = vmax.f32 %v15011_v37, 0.0  ;;  %v15012_v43 = vadd.f32 %v25589_v5, %v32023_v40  ;;  %v14894_v60 = vpop.f32.mrb[83].mxu0  ;;  %25616 = vmatprep.mubr.msk.bf16.mxu1 %vm15057_vm11, %v32084_v61 }
 0xd5b   : > { %v15041_v49 = vmax.f32 %v15009_v6, 0.0  ;;  %v15010_v28 = vadd.f32 %v32023_v40, %v14894_v60  ;;  %v15155_v48 = vld [vmem:[#allocation2 + $0xc1] sm:$0xff] }
 0xd5c   : > { %15076 = vst.msk [vmem:[#allocation2 + $0xf1] sm:$0xff] %vm15057_vm11, %v15043_v55  ;;  %v15044_v10 = vmax.f32 %v15012_v43, 0.0  ;;  %v15153_v47 = vld [vmem:[#allocation2 + $0xa9] sm:$0xff] }
 0xd5d   : > { %15074 = vst.msk [vmem:[#allocation2 + $0xd9] sm:$0xff] %vm15057_vm11, %v15041_v49  ;;  %v15042_v42 = vmax.f32 %v15010_v28, 0.0  ;;  %v15156_v35 = vld [vmem:[#allocation2 + $0xc9] sm:$0xff] }
 0xd5e   : > { %15077 = vst.msk [vmem:[#allocation2 + $0xf9] sm:$0xff] %vm15057_vm11, %v15044_v10  ;;  %v15154_v50 = vld [vmem:[#allocation2 + $0xb1] sm:$0xff]  ;;  %v32100_v21 = vpack.c.bf16 %v15156_v35, %v15155_v48 }
 0xd5f   : > { %15075 = vst.msk [vmem:[#allocation2 + $0xe1] sm:$0xff] %vm15057_vm11, %v15042_v42  ;;  %v25592_v33 = vpop.f32.mrb[84].mxu0  ;;  %v32097_v54 = vpack.c.bf16 %v15154_v50, %v15153_v47 }
 0xd60   : > { %v15015_v58 = vadd.f32 %v25592_v33, %v32023_v40  ;;  %v14907_v27 = vpop.f32.mrb[85].mxu0 }
 0xd61   : > { %v15013_v26 = vadd.f32 %v32023_v40, %v14907_v27  ;;  %v25593_v63 = vpop.f32.mrb[86].mxu0  ;;  %25617 = vmatmul.mubr.msk.bf16.gmra.mrb[204].mxu1 %vm15057_vm11, %v32097_v54 }
 0xd62   : > { %v15047_v39 = vmax.f32 %v15015_v58, 0.0  ;;  %v15016_v7 = vadd.f32 %v25593_v63, %v32023_v40  ;;  %v14910_v57 = vpop.f32.mrb[87].mxu0  ;;  %25620 = vmatprep.mubr.msk.bf16.mxu1 %vm15057_vm11, %v32100_v21 }
 0xd63   : > { %v15045_v3 = vmax.f32 %v15013_v26, 0.0  ;;  %v15014_v9 = vadd.f32 %v32023_v40, %v14910_v57  ;;  %v15159_v18 = vld [vmem:[#allocation2 + $0xf1] sm:$0xff] }
 0xd64   : > { %15080 = vst.msk [vmem:[#allocation2 + $0x121] sm:$0xff] %vm15057_vm11, %v15047_v39  ;;  %v15048_v51 = vmax.f32 %v15016_v7, 0.0  ;;  %v15157_v56 = vld [vmem:[#allocation2 + $0xd9] sm:$0xff] }
 0xd65   : > { %15078 = vst.msk [vmem:[#allocation2 + $0x109] sm:$0xff] %vm15057_vm11, %v15045_v3  ;;  %v15046_v8 = vmax.f32 %v15014_v9, 0.0  ;;  %v15160_v38 = vld [vmem:[#allocation2 + $0xf9] sm:$0xff] }
 0xd66   : > { %15081 = vst.msk [vmem:[#allocation2 + $0x129] sm:$0xff] %vm15057_vm11, %v15048_v51  ;;  %v15158_v46 = vld [vmem:[#allocation2 + $0xe1] sm:$0xff]  ;;  %v32116_v2 = vpack.c.bf16 %v15160_v38, %v15159_v18 }
 0xd67   : > { %15079 = vst.msk [vmem:[#allocation2 + $0x111] sm:$0xff] %vm15057_vm11, %v15046_v8  ;;  %v25596_v16 = vpop.f32.mrb[88].mxu0  ;;  %v32113_v17 = vpack.c.bf16 %v15158_v46, %v15157_v56  ;;  %v15091_v46 = vld [vmem:[#allocation2 + $0x8] sm:$0xff] }
 0xd68   : > { %v15019_v24 = vadd.f32 %v25596_v16, %v32023_v40  ;;  %v14923_v23 = vpop.f32.mrb[89].mxu0 }
 0xd69   : > { %v15017_v29 = vadd.f32 %v32023_v40, %v14923_v23  ;;  %v25597_v52 = vpop.f32.mrb[90].mxu0  ;;  %25621 = vmatmul.mubr.msk.bf16.gmra.mrb[208].mxu1 %vm15057_vm11, %v32113_v17 }
 0xd6a   : > { %v15051_v59 = vmax.f32 %v15019_v24, 0.0  ;;  %v15020_v32 = vadd.f32 %v25597_v52, %v32023_v40  ;;  %v14926_v37 = vpop.f32.mrb[91].mxu0  ;;  %25624 = vmatprep.mubr.msk.bf16.mxu1 %vm15057_vm11, %v32116_v2  ;;  %v15095_v52 = vld [vmem:[#allocation2 + $0x38] sm:$0xff] }
 0xd6b   : > { %v15049_v4 = vmax.f32 %v15017_v29, 0.0  ;;  %v15018_v6 = vadd.f32 %v32023_v40, %v14926_v37  ;;  %v15163_v42 = vld [vmem:[#allocation2 + $0x121] sm:$0xff]  ;;  %v15713_v37 = vsel %vm15237_vm10, %v32050_v12, 0 }
 0xd6c   : > { %15084 = vst.msk [vmem:[#allocation2 + $0x151] sm:$0xff] %vm15057_vm11, %v15051_v59  ;;  %v15052_v5 = vmax.f32 %v15020_v32, 0.0  ;;  %v15161_v60 = vld [vmem:[#allocation2 + $0x109] sm:$0xff]  ;;  %v15093_v29 = vld [vmem:[#allocation2 + $0x20] sm:$0xff]  ;;  %v15092_v59 = vld [vmem:[#allocation2 + $0x18] sm:$0xff] }
 0xd6d   : > { %15082 = vst.msk [vmem:[#allocation2 + $0x139] sm:$0xff] %vm15057_vm11, %v15049_v4  ;;  %v15050_v55 = vmax.f32 %v15018_v6, 0.0  ;;  %v15164_v43 = vld [vmem:[#allocation2 + $0x129] sm:$0xff]  ;;  %v32158_v32 = vpack.c.bf16 %v15093_v29, %v15092_v59 }
 0xd6e   : > { %15085 = vst.msk [vmem:[#allocation2 + $0x159] sm:$0xff] %vm15057_vm11, %v15052_v5  ;;  %v15162_v49 = vld [vmem:[#allocation2 + $0x111] sm:$0xff]  ;;  %v32132_v50 = vpack.c.bf16 %v15164_v43, %v15163_v42  ;;  %v32167_v5 = vld [vmem:[%s33598_s17 + $0xc] sm:$0x7]  ;;  %v15101_v42 = vld [vmem:[#allocation2 + $0x80] sm:$0xff] }
 0xd6f   : > { %15083 = vst.msk [vmem:[#allocation2 + $0x141] sm:$0xff] %vm15057_vm11, %v15050_v55  ;;  %v25600_v28 = vpop.f32.mrb[92].mxu0  ;;  %v32129_v10 = vpack.c.bf16 %v15162_v49, %v15161_v60  ;;  %v15094_v4 = vld [vmem:[#allocation2 + $0x30] sm:$0xff]  ;;  %v15099_v12 = vld [vmem:[#allocation2 + $0x68] sm:$0xff]  ;;  %v15098_v49 = vld [vmem:[#allocation2 + $0x60] sm:$0xff] }
 0xd70   : > { %v15023_v35 = vadd.f32 %v25600_v28, %v32023_v40  ;;  %v14939_v47 = vpop.f32.mrb[93].mxu0  ;;  %v32162_v6 = vpack.c.bf16 %v15095_v52, %v15094_v4  ;;  %v15097_v55 = vld [vmem:[#allocation2 + $0x50] sm:$0xff]  ;;  %v15096_v43 = vld [vmem:[#allocation2 + $0x48] sm:$0xff]  ;;  %v32177_v28 = vpack.c.bf16 %v15099_v12, %v15098_v49  ;;  %v15114_v52 = vld [vmem:[#allocation2 + $0x120] sm:$0xff] }
 0xd71   : > { %v15021_v33 = vadd.f32 %v32023_v40, %v14939_v47  ;;  %v25601_v48 = vpop.f32.mrb[94].mxu0  ;;  %25625 = vmatmul.mubr.msk.bf16.gmra.mrb[212].mxu1 %vm15057_vm11, %v32129_v10  ;;  %v32175_v60 = vpack.c.bf16 %v15097_v55, %v15096_v43  ;;  %v15100_v47 = vld [vmem:[#allocation2 + $0x78] sm:$0xff] }
 0xd72   : > { %v15055_v58 = vmax.f32 %v15023_v35, 0.0  ;;  %v15024_v27 = vadd.f32 %v25601_v48, %v32023_v40  ;;  %v14942_v26 = vpop.f32.mrb[95].mxu0  ;;  %25628 = vmatprep.mubr.msk.bf16.mxu1 %vm15057_vm11, %v32132_v50  ;;  %v15103_v35 = vld [vmem:[#allocation2 + $0x98] sm:$0xff]  ;;  %v15102_v48 = vld [vmem:[#allocation2 + $0x90] sm:$0xff] }
 0xd73   : > { %v15053_v63 = vmax.f32 %v15021_v33, 0.0  ;;  %v15022_v39 = vadd.f32 %v32023_v40, %v14942_v26  ;;  %v15167_v38 = vld [vmem:[#allocation2 + $0x151] sm:$0xff]  ;;  %v15090_v40 = vld [vmem:[#allocation2] sm:$0xff]  ;;  %v32183_v33 = vpack.c.bf16 %v15101_v42, %v15100_v47  ;;  %v15107_v26 = vld [vmem:[#allocation2 + $0xc8] sm:$0xff] }
 0xd74   : > { %15088 = vst.msk [vmem:[#allocation2 + $0x181] sm:$0xff] %vm15057_vm11, %v15055_v58  ;;  %v15056_v7 = vmax.f32 %v15024_v27, 0.0  ;;  %v15165_v9 = vld [vmem:[#allocation2 + $0x139] sm:$0xff]  ;;  %v15122_v24 = vpack.c.bf16 %v15091_v46, %v15090_v40  ;;  %v32185_v58 = vpack.c.bf16 %v15103_v35, %v15102_v48  ;;  %v15105_v27 = vld [vmem:[#allocation2 + $0xb0] sm:$0xff]  ;;  %v15614_v42 = vld [vmem:[#allocation2 + $0x2] sm:$0xff] }
 0xd75   : > { %15086 = vst.msk [vmem:[#allocation2 + $0x169] sm:$0xff] %vm15057_vm11, %v15053_v63  ;;  %v15054_v57 = vmax.f32 %v15022_v39, 0.0  ;;  %v15168_v3 = vld [vmem:[#allocation2 + $0x159] sm:$0xff]  ;;  %v15104_v63 = vld [vmem:[#allocation2 + $0xa8] sm:$0xff]  ;;  %v15110_v40 = vld [vmem:[#allocation2 + $0xf0] sm:$0xff] }
 0xd76   : > { %15089 = vst.msk [vmem:[#allocation2 + $0x189] sm:$0xff] %vm15057_vm11, %v15056_v7  ;;  %v15166_v51 = vld [vmem:[#allocation2 + $0x141] sm:$0xff]  ;;  %v32147_v56 = vpack.c.bf16 %v15168_v3, %v15167_v38  ;;  %v32191_v39 = vpack.c.bf16 %v15105_v27, %v15104_v63  ;;  %v15119_v4 = vld [vmem:[#allocation2 + $0x158] sm:$0xff]  ;;  %v15118_v43 = vld [vmem:[#allocation2 + $0x150] sm:$0xff] }
 0xd77   : > { %15087 = vst.msk [vmem:[#allocation2 + $0x171] sm:$0xff] %vm15057_vm11, %v15054_v57  ;;  %v32145_v8 = vpack.c.bf16 %v15166_v51, %v15165_v9  ;;  %v15106_v7 = vld [vmem:[#allocation2 + $0xc0] sm:$0xff]  ;;  %v15111_v9 = vld [vmem:[#allocation2 + $0xf8] sm:$0xff]  ;;  %v32217_v49 = vpack.c.bf16 %v15119_v4, %v15118_v43  ;;  %v15615_v35 = vld [vmem:[#allocation2 + $0xa] sm:$0xff] }
 0xd78   : > { %v32193_v57 = vpack.c.bf16 %v15107_v26, %v15106_v7  ;;  %v15109_v3 = vld [vmem:[#allocation2 + $0xe0] sm:$0xff]  ;;  %v15108_v51 = vld [vmem:[#allocation2 + $0xd8] sm:$0xff]  ;;  %v32201_v46 = vpack.c.bf16 %v15111_v9, %v15110_v40  ;;  %v15646_v27 = vpack.c.bf16 %v15615_v35, %v15614_v42  ;;  %v16007_v40 = vsel %vm15237_vm10, %v32167_v5, 0  ;;  %v15623_v4 = vld [vmem:[#allocation2 + $0x6a] sm:$0xff] }
 0xd79   : > { %25629 = vmatmul.mubr.msk.bf16.gmra.mrb[216].mxu1 %vm15057_vm11, %v32145_v8  ;;  %v32199_v38 = vpack.c.bf16 %v15109_v3, %v15108_v51  ;;  %v15116_v55 = vld [vmem:[#allocation2 + $0x138] sm:$0xff]  ;;  %v15617_v7 = vld [vmem:[#allocation2 + $0x22] sm:$0xff] }
 0xd7a   : > { %25632 = vmatprep.mubr.msk.bf16.mxu1 %vm15057_vm11, %v32147_v56  ;;  %v15616_v63 = vld [vmem:[#allocation2 + $0x1a] sm:$0xff]  ;;  %v15618_v3 = vld [vmem:[#allocation2 + $0x32] sm:$0xff]  ;;  %v15625_v42 = vld [vmem:[#allocation2 + $0x82] sm:$0xff] }
 0xd7b   : > { %v15619_v9 = vld [vmem:[#allocation2 + $0x3a] sm:$0xff]  ;;  %v32228_v51 = vpack.c.bf16 %v15617_v7, %v15616_v63  ;;  %v15626_v35 = vld [vmem:[#allocation2 + $0x92] sm:$0xff]  ;;  %v15628_v63 = vld [vmem:[#allocation2 + $0xaa] sm:$0xff] }
 0xd7c   : > { %v15169_v16 = vld [vmem:[#allocation2 + $0x169] sm:$0xff]  ;;  %v15624_v43 = vld [vmem:[#allocation2 + $0x7a] sm:$0xff]  ;;  %v15629_v7 = vld [vmem:[#allocation2 + $0xb2] sm:$0xff] }
 0xd7d   : > { %v15120_v48 = vld [vmem:[#allocation2 + $0x168] sm:$0xff] }
 0xd7e   : > { %v15170_v18 = vld [vmem:[#allocation2 + $0x171] sm:$0xff] }
 0xd7f   : > { %v32153_v23 = vpack.c.bf16 %v15170_v18, %v15169_v16  ;;  %v15113_v16 = vld [vmem:[#allocation2 + $0x110] sm:$0xff]  ;;  %v15115_v18 = vld [vmem:[#allocation2 + $0x128] sm:$0xff] }
 0xd80   : > { %v32209_v59 = vpack.c.bf16 %v15115_v18, %v15114_v52  ;;  %v15121_v47 = vld [vmem:[#allocation2 + $0x170] sm:$0xff] }
 0xd81   : > { %25633 = vmatmul.mubr.msk.bf16.gmra.mrb[220].mxu1 %vm15057_vm11, %v32153_v23  ;;  %v32223_v26 = vpack.c.bf16 %v15121_v47, %v15120_v48  ;;  %v22454_v18 = vld [vmem:[%s33598_s17 + $0x10] sm:$0x7]  ;;  %v15627_v47 = vld [vmem:[#allocation2 + $0x9a] sm:$0xff]  ;;  %v32250_v48 = vpack.c.bf16 %v15625_v42, %v15624_v43 }
 0xd82   : > { %25638 = vmatprep.mubr.msk.bf16.mxu1 %vm15057_vm11, %v15122_v24  ;;  %v15112_v24 = vld [vmem:[#allocation2 + $0x108] sm:$0xff]  ;;  %v15621_v52 = vld [vmem:[#allocation2 + $0x52] sm:$0xff]  ;;  %v15635_v43 = vld [vmem:[#allocation2 + $0xfa] sm:$0xff] }
 0xd83   : > { %v32207_v29 = vpack.c.bf16 %v15113_v16, %v15112_v24  ;;  %v32232_v16 = vpack.c.bf16 %v15619_v9, %v15618_v3  ;;  %v15620_v24 = vld [vmem:[#allocation2 + $0x4a] sm:$0xff]  ;;  %v15630_v3 = vld [vmem:[#allocation2 + $0xc2] sm:$0xff] }
 0xd84   : > { %v15631_v9 = vld [vmem:[#allocation2 + $0xca] sm:$0xff] }
 0xd89   : > { %25639 = vmatmul.mubr.msk.bf16.vlgmr.msra.gmra.mrb[192].mxu1 %vm15057_vm11, %v32158_v32 }
 0xd8a   : > { %25671 = vmatpush3.bf16.msra.mxu1 %v15713_v37  ;;  %25642 = vmatprep.mubr.msk.bf16.mxu1 %vm15057_vm11, %v32162_v6  ;;  %v15117_v37 = vld [vmem:[#allocation2 + $0x140] sm:$0xff] }
 0xd8b   : > { %28256 = vmatprep.subr.msk.bf16.mxu1 %vm15237_vm10, %v32167_v5  ;;  %v32215_v12 = vpack.c.bf16 %v15117_v37, %v15116_v55  ;;  %v15622_v37 = vld [vmem:[#allocation2 + $0x62] sm:$0xff]  ;;  %v32242_v5 = vpack.c.bf16 %v15621_v52, %v15620_v24  ;;  %v32260_v24 = vpack.c.bf16 %v15631_v9, %v15630_v3  ;;  %v15632_v52 = vld [vmem:[#allocation2 + $0xda] sm:$0xff]  ;;  %v15639_v3 = vld [vmem:[#allocation2 + $0x12a] sm:$0xff] }
 0xd8c   : > { %v32244_v55 = vpack.c.bf16 %v15623_v4, %v15622_v37  ;;  %v15633_v37 = vld [vmem:[#allocation2 + $0xe2] sm:$0xff]  ;;  %v15634_v4 = vld [vmem:[#allocation2 + $0xf2] sm:$0xff] }
 0xd8d   : > { %v32266_v42 = vpack.c.bf16 %v15633_v37, %v15632_v52  ;;  %v15640_v52 = vld [vmem:[#allocation2 + $0x13a] sm:$0xff]  ;;  %v15641_v37 = vld [vmem:[#allocation2 + $0x142] sm:$0xff] }
 0xd8e   : > { %v32282_v1 = vpack.c.bf16 %v15641_v37, %v15640_v52  ;;  %v22471_v52 = vld [vmem:[%s33598_s17 + $0x14] sm:$0x7] }
 0xd91   : > { %25643 = vmatmul.mubr.msk.bf16.gmra.mrb[196].mxu1 %vm15057_vm11, %v32175_v60 }
 0xd92   : > { %25646 = vmatprep.mubr.msk.bf16.mxu1 %vm15057_vm11, %v32177_v28 }
 0xd99   : > { %25647 = vmatmul.mubr.msk.bf16.gmra.mrb[200].mxu1 %vm15057_vm11, %v32183_v33 }
 0xd9a   : > { %25650 = vmatprep.mubr.msk.bf16.mxu1 %vm15057_vm11, %v32185_v58 }
 0xda1   : > { %25651 = vmatmul.mubr.msk.bf16.gmra.mrb[204].mxu1 %vm15057_vm11, %v32191_v39 }
 0xda2   : > { %25654 = vmatprep.mubr.msk.bf16.mxu1 %vm15057_vm11, %v32193_v57 }
 0xda9   : > { %25655 = vmatmul.mubr.msk.bf16.gmra.mrb[208].mxu1 %vm15057_vm11, %v32199_v38 }
 0xdaa   : > { %25658 = vmatprep.mubr.msk.bf16.mxu1 %vm15057_vm11, %v32201_v46 }
 0xdb1   : > { %25659 = vmatmul.mubr.msk.bf16.gmra.mrb[212].mxu1 %vm15057_vm11, %v32207_v29 }
 0xdb2   : > { %25662 = vmatprep.mubr.msk.bf16.mxu1 %vm15057_vm11, %v32209_v59 }
 0xdb9   : > { %25663 = vmatmul.mubr.msk.bf16.gmra.mrb[216].mxu1 %vm15057_vm11, %v32215_v12 }
 0xdba   : > { %25666 = vmatprep.mubr.msk.bf16.mxu1 %vm15057_vm11, %v32217_v49 }
 0xdc1   : > { %25667 = vmatmul.mubr.msk.bf16.gmra.mrb[220].mxu1 %vm15057_vm11, %v32223_v26 }
 0xdc2   : > { %25672 = vmatprep.mubr.msk.bf16.mxu1 %vm15057_vm11, %v15646_v27  ;;  %v32252_v27 = vpack.c.bf16 %v15627_v47, %v15626_v35  ;;  %v32268_v35 = vpack.c.bf16 %v15635_v43, %v15634_v4  ;;  %v15636_v47 = vld [vmem:[#allocation2 + $0x10a] sm:$0xff]  ;;  %v15642_v4 = vld [vmem:[#allocation2 + $0x152] sm:$0xff]  ;;  %v15643_v43 = vld [vmem:[#allocation2 + $0x15a] sm:$0xff] }
 0xdc3   : > { %v32284_v45 = vpack.c.bf16 %v15643_v43, %v15642_v4  ;;  %v16595_v4 = vsel %vm15237_vm10, %v22471_v52, 0  ;;  %v22488_v43 = vld [vmem:[%s33598_s17 + $0x18] sm:$0x7] }
 0xdc9   : > { %25673 = vmatmul.mubr.msk.bf16.vlgmr.msra.gmra.mrb[192].mxu1 %vm15057_vm11, %v32228_v51 }
 0xdca   : > { %25705 = vmatpush3.bf16.msra.mxu1 %v16007_v40  ;;  %25676 = vmatprep.mubr.msk.bf16.mxu1 %vm15057_vm11, %v32232_v16  ;;  %v32258_v40 = vpack.c.bf16 %v15629_v7, %v15628_v63  ;;  %v15637_v63 = vld [vmem:[#allocation2 + $0x112] sm:$0xff]  ;;  %v15638_v7 = vld [vmem:[#allocation2 + $0x122] sm:$0xff] }
 0xdcb   : > { %28257 = vmatprep.subr.msk.bf16.mxu1 %vm15237_vm10, %v22454_v18  ;;  %v32274_v9 = vpack.c.bf16 %v15637_v63, %v15636_v47  ;;  %v32276_v11 = vpack.c.bf16 %v15639_v3, %v15638_v7  ;;  %v15644_v47 = vld [vmem:[#allocation2 + $0x16a] sm:$0xff]  ;;  %v15645_v63 = vld [vmem:[#allocation2 + $0x172] sm:$0xff]  ;;  %v16301_v3 = vsel %vm15237_vm10, %v22454_v18, 0  ;;  %v15938_v18 = vld [vmem:[#allocation2 + $0x180] sm:$0xff] }
 0xdcc   : > { %v32290_v7 = vpack.c.bf16 %v15645_v63, %v15644_v47 }
 0xdd1   : > { %25677 = vmatmul.mubr.msk.bf16.gmra.mrb[196].mxu1 %vm15057_vm11, %v32242_v5 }
 0xdd2   : > { %25680 = vmatprep.mubr.msk.bf16.mxu1 %vm15057_vm11, %v32244_v55 }
 0xdd9   : > { %25681 = vmatmul.mubr.msk.bf16.gmra.mrb[200].mxu1 %vm15057_vm11, %v32250_v48 }
 0xdda   : > { %25684 = vmatprep.mubr.msk.bf16.mxu1 %vm15057_vm11, %v32252_v27 }
 0xde1   : > { %25685 = vmatmul.mubr.msk.bf16.gmra.mrb[204].mxu1 %vm15057_vm11, %v32258_v40 }
 0xde2   : > { %25688 = vmatprep.mubr.msk.bf16.mxu1 %vm15057_vm11, %v32260_v24 }
 0xde9   : > { %25689 = vmatmul.mubr.msk.bf16.gmra.mrb[208].mxu1 %vm15057_vm11, %v32266_v42 }
 0xdea   : > { %25692 = vmatprep.mubr.msk.bf16.mxu1 %vm15057_vm11, %v32268_v35 }
 0xdf1   : > { %25693 = vmatmul.mubr.msk.bf16.gmra.mrb[212].mxu1 %vm15057_vm11, %v32274_v9 }
 0xdf2   : > { %25696 = vmatprep.mubr.msk.bf16.mxu1 %vm15057_vm11, %v32276_v11 }
 0xdf9   : > { %25697 = vmatmul.mubr.msk.bf16.gmra.mrb[216].mxu1 %vm15057_vm11, %v32282_v1 }
 0xdfa   : > { %25700 = vmatprep.mubr.msk.bf16.mxu1 %vm15057_vm11, %v32284_v45 }
 0xe01   : > { %25701 = vmatmul.mubr.msk.bf16.gmra.mrb[220].mxu1 %vm15057_vm11, %v32290_v7 }
 0xe02   : > { %25706 = vmatprep.mubr.msk.bf16.mxu1 %vm15057_vm11, %v32158_v32  ;;  %v15939_v32 = vld [vmem:[#allocation2 + $0x188] sm:$0xff] }
 0xe03   : > { %v32329_v37 = vpack.c.bf16 %v15939_v32, %v15938_v18  ;;  %v17093_v32 = vld [vmem:[#allocation2 + $0x99] sm:$0xff] }
 0xe04   : > { %v17090_v18 = vld [vmem:[#allocation2 + $0x79] sm:$0xff] }
 0xe09   : > { %25707 = vmatmul.mubr.msk.bf16.vlgmr.msra.gmra.mrb[192].mxu1 %vm15057_vm11, %v32162_v6 }
 0xe0a   : > { %25739 = vmatpush3.bf16.msra.mxu1 %v16301_v3  ;;  %25710 = vmatprep.mubr.msk.bf16.mxu1 %vm15057_vm11, %v32175_v60  ;;  %v22522_v3 = vld [vmem:[%s33598_s17 + $0x20] sm:$0x7] }
 0xe0b   : > { %28258 = vmatprep.subr.msk.bf16.mxu1 %vm15237_vm10, %v22471_v52  ;;  %v17091_v52 = vld [vmem:[#allocation2 + $0x81] sm:$0xff] }
 0xe11   : > { %25711 = vmatmul.mubr.msk.bf16.gmra.mrb[196].mxu1 %vm15057_vm11, %v32177_v28 }
 0xe12   : > { %25714 = vmatprep.mubr.msk.bf16.mxu1 %vm15057_vm11, %v32183_v33 }
 0xe19   : > { %25715 = vmatmul.mubr.msk.bf16.gmra.mrb[200].mxu1 %vm15057_vm11, %v32185_v58 }
 0xe1a   : > { %25718 = vmatprep.mubr.msk.bf16.mxu1 %vm15057_vm11, %v32191_v39 }
 0xe21   : > { %25719 = vmatmul.mubr.msk.bf16.gmra.mrb[204].mxu1 %vm15057_vm11, %v32193_v57 }
 0xe22   : > { %25722 = vmatprep.mubr.msk.bf16.mxu1 %vm15057_vm11, %v32199_v38 }
 0xe29   : > { %25723 = vmatmul.mubr.msk.bf16.gmra.mrb[208].mxu1 %vm15057_vm11, %v32201_v46 }
 0xe2a   : > { %25726 = vmatprep.mubr.msk.bf16.mxu1 %vm15057_vm11, %v32207_v29 }
 0xe31   : > { %25727 = vmatmul.mubr.msk.bf16.gmra.mrb[212].mxu1 %vm15057_vm11, %v32209_v59 }
 0xe32   : > { %25730 = vmatprep.mubr.msk.bf16.mxu1 %vm15057_vm11, %v32215_v12 }
 0xe39   : > { %25731 = vmatmul.mubr.msk.bf16.gmra.mrb[216].mxu1 %vm15057_vm11, %v32217_v49 }
 0xe3a   : > { %25734 = vmatprep.mubr.msk.bf16.mxu1 %vm15057_vm11, %v32223_v26 }
 0xe41   : > { %25735 = vmatmul.mubr.msk.bf16.gmra.mrb[220].mxu1 %vm15057_vm11, %v32329_v37 }
 0xe42   : > { %25740 = vmatprep.mubr.msk.bf16.mxu1 %vm15057_vm11, %v32041_v20  ;;  %v16233_v20 = vld [vmem:[#allocation2 + $0x189] sm:$0xff] }
 0xe49   : > { %25741 = vmatmul.mubr.msk.bf16.vlgmr.msra.gmra.mrb[192].mxu1 %vm15057_vm11, %v32045_v34  ;;  %v16232_v34 = vld [vmem:[#allocation2 + $0x181] sm:$0xff] }
 0xe4a   : > { %25773 = vmatpush3.bf16.msra.mxu1 %v16595_v4  ;;  %25744 = vmatprep.mubr.msk.bf16.mxu1 %vm15057_vm11, %v32065_v15  ;;  %v32368_v15 = vpack.c.bf16 %v16233_v20, %v16232_v34  ;;  %v17092_v4 = vld [vmem:[#allocation2 + $0x91] sm:$0xff] }
 0xe4b   : > { %28259 = vmatprep.subr.msk.bf16.mxu1 %vm15237_vm10, %v22488_v43  ;;  %v33909_v20 = vld [vmem:[#allocation73_spill] sm:$0xff] }
 0xe51   : > { %25745 = vmatmul.mubr.msk.bf16.gmra.mrb[196].mxu1 %vm15057_vm11, %v32068_v41  ;;  %v16889_v41 = vsel %vm15237_vm10, %v22488_v43, 0  ;;  %v17120_v43 = vpack.c.bf16 %v17093_v32, %v17092_v4  ;;  %v17834_v4 = vld [vmem:[#allocation5 + $0x8d] sm:$0xff] }
 0xe52   : > { %25748 = vmatprep.mubr.msk.bf16.mxu1 %vm15057_vm11, %v32081_v14  ;;  %v22505_v14 = vld [vmem:[%s33598_s17 + $0x1c] sm:$0x7] }
 0xe53   : > { %v17183_v63 = vsel %vm15237_vm10, %v22505_v14, 0 }
 0xe59   : > { %25749 = vmatmul.mubr.msk.bf16.gmra.mrb[200].mxu1 %vm15057_vm11, %v32084_v61  ;;  %v16526_v61 = vld [vmem:[#allocation2 + $0x182] sm:$0xff] }
 0xe5a   : > { %25752 = vmatprep.mubr.msk.bf16.mxu1 %vm15057_vm11, %v32097_v54 }
 0xe61   : > { %25753 = vmatmul.mubr.msk.bf16.gmra.mrb[204].mxu1 %vm15057_vm11, %v32100_v21 }
 0xe62   : > { %25756 = vmatprep.mubr.msk.bf16.mxu1 %vm15057_vm11, %v32113_v17 }
 0xe69   : > { %25757 = vmatmul.mubr.msk.bf16.gmra.mrb[208].mxu1 %vm15057_vm11, %v32116_v2 }
 0xe6a   : > { %25760 = vmatprep.mubr.msk.bf16.mxu1 %vm15057_vm11, %v32129_v10 }
 0xe71   : > { %25761 = vmatmul.mubr.msk.bf16.gmra.mrb[212].mxu1 %vm15057_vm11, %v32132_v50 }
 0xe72   : > { %25764 = vmatprep.mubr.msk.bf16.mxu1 %vm15057_vm11, %v32145_v8 }
 0xe79   : > { %25765 = vmatmul.mubr.msk.bf16.gmra.mrb[216].mxu1 %vm15057_vm11, %v32147_v56 }
 0xe7a   : > { %25768 = vmatprep.mubr.msk.bf16.mxu1 %vm15057_vm11, %v32153_v23 }
 0xe81   : > { %25769 = vmatmul.mubr.msk.bf16.gmra.mrb[220].mxu1 %vm15057_vm11, %v32368_v15 }
 0xe82   : > { %25774 = vmatprep.mubr.msk.bf16.mxu1 %vm15057_vm11, %v32228_v51  ;;  %v16527_v51 = vld [vmem:[#allocation2 + $0x18a] sm:$0xff] }
 0xe83   : > { %v32407_v47 = vpack.c.bf16 %v16527_v51, %v16526_v61  ;;  %v17826_v61 = vld [vmem:[#allocation5 + $0xd] sm:$0xff]  ;;  %v17824_v51 = vld [vmem:[%s33600_s19] sm:$0xf] }
 0xe89   : > { %25775 = vmatmul.mubr.msk.bf16.vlgmr.msra.gmra.mrb[192].mxu1 %vm15057_vm11, %v32232_v16 }
 0xe8a   : > { %25807 = vmatpush3.bf16.msra.mxu1 %v16889_v41  ;;  %25778 = vmatprep.mubr.msk.bf16.mxu1 %vm15057_vm11, %v32242_v5 }
 0xe8b   : > { %28260 = vmatprep.subr.msk.bf16.mxu1 %vm15237_vm10, %v22505_v14  ;;  %v17825_v14 = vld [vmem:[#allocation5 + $0x5] sm:$0xff] }
 0xe91   : > { %25779 = vmatmul.mubr.msk.bf16.gmra.mrb[196].mxu1 %vm15057_vm11, %v32244_v55 }
 0xe92   : > { %25782 = vmatprep.mubr.msk.bf16.mxu1 %vm15057_vm11, %v32250_v48 }
 0xe99   : > { %25783 = vmatmul.mubr.msk.bf16.gmra.mrb[200].mxu1 %vm15057_vm11, %v32252_v27 }
 0xe9a   : > { %25786 = vmatprep.mubr.msk.bf16.mxu1 %vm15057_vm11, %v32258_v40 }
 0xea1   : > { %25787 = vmatmul.mubr.msk.bf16.gmra.mrb[204].mxu1 %vm15057_vm11, %v32260_v24 }
 0xea2   : > { %25790 = vmatprep.mubr.msk.bf16.mxu1 %vm15057_vm11, %v32266_v42 }
 0xea9   : > { %25791 = vmatmul.mubr.msk.bf16.gmra.mrb[208].mxu1 %vm15057_vm11, %v32268_v35 }
 0xeaa   : > { %25794 = vmatprep.mubr.msk.bf16.mxu1 %vm15057_vm11, %v32274_v9 }
 0xeb1   : > { %25795 = vmatmul.mubr.msk.bf16.gmra.mrb[212].mxu1 %vm15057_vm11, %v32276_v11 }
 0xeb2   : > { %25798 = vmatprep.mubr.msk.bf16.mxu1 %vm15057_vm11, %v32282_v1 }
 0xeb9   : > { %25799 = vmatmul.mubr.msk.bf16.gmra.mrb[216].mxu1 %vm15057_vm11, %v32284_v45 }
 0xeba   : > { %25802 = vmatprep.mubr.msk.bf16.mxu1 %vm15057_vm11, %v32290_v7 }
 0xec1   : > { %25803 = vmatmul.mubr.msk.bf16.gmra.mrb[220].mxu1 %vm15057_vm11, %v32407_v47 }
 0xec2   : > { %25808 = vmatprep.mubr.msk.bf16.mxu1 %vm15057_vm11, %v32162_v6  ;;  %v16820_v6 = vld [vmem:[#allocation2 + $0x198] sm:$0xff] }
 0xec9   : > { %25809 = vmatmul.mubr.msk.bf16.vlgmr.msra.gmra.mrb[192].mxu1 %vm15057_vm11, %v32175_v60  ;;  %v16821_v60 = vld [vmem:[#allocation2 + $0x1a0] sm:$0xff] }
 0xeca   : > { %25841 = vmatpush3.bf16.msra.mxu1 %v17183_v63  ;;  %25812 = vmatprep.mubr.msk.bf16.mxu1 %vm15057_vm11, %v32177_v28  ;;  %v16837_v28 = vpack.c.bf16 %v16821_v60, %v16820_v6  ;;  %v17827_v63 = vld [vmem:[#allocation5 + $0x25] sm:$0xff]  ;;  %v18136_v60 = vsel %vm4192_vm6, %v17824_v51, 0 }
 0xecb   : > { %28261 = vmatprep.subr.msk.bf16.mxu1 %vm15237_vm10, %v22522_v3 }
 0xed1   : > { %25813 = vmatmul.mubr.msk.bf16.gmra.mrb[196].mxu1 %vm15057_vm11, %v32183_v33  ;;  %v17085_v33 = vld [vmem:[#allocation2 + $0x39] sm:$0xff] }
 0xed2   : > { %25816 = vmatprep.mubr.msk.bf16.mxu1 %vm15057_vm11, %v32185_v58  ;;  %v17084_v58 = vld [vmem:[#allocation2 + $0x31] sm:$0xff] }
 0xed9   : > { %25817 = vmatmul.mubr.msk.bf16.gmra.mrb[200].mxu1 %vm15057_vm11, %v32191_v39  ;;  %v17116_v39 = vpack.c.bf16 %v17085_v33, %v17084_v58  ;;  %v33916_v58 = vld [vmem:[#allocation83_spill] sm:$0xff] }
 0xeda   : > { %25820 = vmatprep.mubr.msk.bf16.mxu1 %vm15057_vm11, %v32193_v57  ;;  %v17087_v57 = vld [vmem:[#allocation2 + $0x51] sm:$0xff] }
 0xee1   : > { %25821 = vmatmul.mubr.msk.bf16.gmra.mrb[204].mxu1 %vm15057_vm11, %v32199_v38  ;;  %v17089_v38 = vld [vmem:[#allocation2 + $0x69] sm:$0xff] }
 0xee2   : > { %25824 = vmatprep.mubr.msk.bf16.mxu1 %vm15057_vm11, %v32201_v46  ;;  %v17086_v46 = vld [vmem:[#allocation2 + $0x49] sm:$0xff] }
 0xee9   : > { %25825 = vmatmul.mubr.msk.bf16.gmra.mrb[208].mxu1 %vm15057_vm11, %v32207_v29  ;;  %v17117_v29 = vpack.c.bf16 %v17087_v57, %v17086_v46  ;;  %v17830_v46 = vld [vmem:[#allocation5 + $0x4d] sm:$0xff] }
 0xeea   : > { %25828 = vmatprep.mubr.msk.bf16.mxu1 %vm15057_vm11, %v32209_v59  ;;  %v17477_v59 = vsel %vm15237_vm10, %v22522_v3, 0  ;;  %v17828_v3 = vld [vmem:[#allocation5 + $0x2d] sm:$0xff] }
 0xeeb   : > { %v17858_v6 = vpack.c.bf16 %v17828_v3, %v17827_v63  ;;  %v33963_v63 = vld [vmem:[#allocation45_spill] sm:$0xff]  ;;  %v33964_v3 = vld [vmem:[#allocation44_spill] sm:$0xff] }
 0xef1   : > { %25829 = vmatmul.mubr.msk.bf16.gmra.mrb[212].mxu1 %vm15057_vm11, %v32215_v12  ;;  %v17088_v12 = vld [vmem:[#allocation2 + $0x61] sm:$0xff] }
 0xef2   : > { %25832 = vmatprep.mubr.msk.bf16.mxu1 %vm15057_vm11, %v32217_v49  ;;  %v17118_v49 = vpack.c.bf16 %v17089_v38, %v17088_v12  ;;  %v17829_v38 = vld [vmem:[#allocation5 + $0x45] sm:$0xff]  ;;  %v17832_v12 = vld [vmem:[#allocation5 + $0x6d] sm:$0xff] }
 0xef9   : > { %25833 = vmatmul.mubr.msk.bf16.gmra.mrb[216].mxu1 %vm15057_vm11, %v32223_v26  ;;  %v22693_v26 = vld [vmem:[%s33602_s21 + $0x4] sm:$0xf] }
 0xefa   : > { %25836 = vmatprep.mubr.msk.bf16.mxu1 %vm15057_vm11, %v32329_v37  ;;  %v17119_v37 = vpack.c.bf16 %v17091_v52, %v17090_v18  ;;  %v33920_v52 = vld [vmem:[#allocation80_spill] sm:$0xff]  ;;  %v33922_v18 = vpack.c.bf16 %v31797_v19, %v31794_v22 }
 0xefb   : > { %v33924_v22 = vld [vmem:[#allocation84_spill] sm:$0xff] }
 0xefc   : > { %v33925_v19 = vpack.c.bf16 %v31791_v30, %v33924_v22 }
 0xf01   : > { %25837 = vmatmul.mubr.msk.bf16.gmra.mrb[220].mxu1 %vm15057_vm11, %v16837_v28  ;;  %v33914_v28 = vld [vmem:[#allocation77_spill] sm:$0xff] }
 0xf02   : > { %25842 = vmatprep.mubr.msk.bf16.mxu1 %vm15057_vm11, %v17116_v39  ;;  %v33917_v39 = vld [vmem:[#allocation82_spill] sm:$0xff] }
 0xf03   : > { %v33918_v57 = vpack.c.bf16 %v33916_v58, %v33917_v39  ;;  %v33970_v58 = vld [vmem:[#allocation48_spill] sm:$0xff] }
 0xf09   : > { %25843 = vmatmul.mubr.msk.bf16.vlgmr.msra.gmra.mrb[192].mxu1 %vm15057_vm11, %v17117_v29  ;;  %v17859_v29 = vpack.c.bf16 %v17830_v46, %v17829_v38  ;;  %v33973_v38 = vld [vmem:[#allocation54_spill] sm:$0xff] }
 0xf0a   : > { %25875 = vmatpush3.bf16.msra.mxu1 %v17477_v59  ;;  %25846 = vmatprep.mubr.msk.bf16.mxu1 %vm15057_vm11, %v17118_v49  ;;  %v17831_v59 = vld [vmem:[#allocation5 + $0x65] sm:$0xff] }
 0xf0b   : > { %28271 = vmatprep.subr.msk.bf16.mxu1 %vm4192_vm6, %v22693_v26  ;;  %v17860_v49 = vpack.c.bf16 %v17832_v12, %v17831_v59  ;;  %v33976_v59 = vld [vmem:[#allocation52_spill] sm:$0xff] }
 0xf11   : > { %25847 = vmatmul.mubr.msk.bf16.gmra.mrb[196].mxu1 %vm15057_vm11, %v17119_v37  ;;  %v17833_v37 = vld [vmem:[#allocation5 + $0x85] sm:$0xff] }
 0xf12   : > { %25850 = vmatprep.mubr.msk.bf16.mxu1 %vm15057_vm11, %v17120_v43  ;;  %v17861_v43 = vpack.c.bf16 %v17834_v4, %v17833_v37 }
 0xf19   : > { %25851 = vmatmul.mubr.msk.bf16.gmra.mrb[200].mxu1 %vm15057_vm11, %v32097_v54  ;;  %v17114_v54 = vld [vmem:[#allocation2 + $0x199] sm:$0xff] }
 0xf1a   : > { %25854 = vmatprep.mubr.msk.bf16.mxu1 %vm15057_vm11, %v32100_v21  ;;  %v17115_v21 = vld [vmem:[#allocation2 + $0x1a1] sm:$0xff] }
 0xf21   : > { %25855 = vmatmul.mubr.msk.bf16.gmra.mrb[204].mxu1 %vm15057_vm11, %v32113_v17  ;;  %v17131_v17 = vpack.c.bf16 %v17115_v21, %v17114_v54  ;;  %v33923_v54 = vmov 0.0   ;;  %v33926_v21 = vpack.c.bf16 %v31817_v13, %v31814_v31  ;;  %v33939_v31 = vld [vmem:[#allocation61_spill] sm:$0xff] }
 0xf22   : > { %25858 = vmatprep.mubr.msk.bf16.mxu1 %vm15057_vm11, %v32116_v2  ;;  %v20481_v2 = vsel %vm4192_vm6, %v22693_v26, 0  ;;  %v33919_v26 = vld [vmem:[#allocation81_spill] sm:$0xff]  ;;  %991 = vst.msk [vmem:[#allocation5] sm:$0x1f] %vm990_vm12, %v33923_v54  ;;  %992 = vst.msk [vmem:[#allocation5 + $0x20] sm:$0x1f] %vm990_vm12, %v33923_v54 }
 0xf23   : > { %v33921_v32 = vpack.c.bf16 %v33919_v26, %v33920_v52  ;;  %993 = vst.msk [vmem:[#allocation5 + $0x40] sm:$0x1f] %vm990_vm12, %v33923_v54  ;;  %994 = vst.msk [vmem:[#allocation5 + $0x60] sm:$0x1f] %vm990_vm12, %v33923_v54 }
 0xf24   : > { %995 = vst.msk [vmem:[#allocation5 + $0x80] sm:$0x1f] %vm990_vm12, %v33923_v54  ;;  %996 = vst.msk [vmem:[#allocation5 + $0xa0] sm:$0x1f] %vm990_vm12, %v33923_v54 }
 0xf25   : > { %997 = vst.msk [vmem:[#allocation5 + $0xc0] sm:$0x1f] %vm990_vm12, %v33923_v54  ;;  %998 = vst.msk [vmem:[#allocation5 + $0xe0] sm:$0x1f] %vm990_vm12, %v33923_v54 }
 0xf26   : > { %999 = vst.msk [vmem:[#allocation5 + $0x100] sm:$0x1f] %vm990_vm12, %v33923_v54  ;;  %1000 = vst.msk [vmem:[#allocation5 + $0x120] sm:$0x1f] %vm990_vm12, %v33923_v54 }
 0xf27   : > { %1001 = vst.msk [vmem:[#allocation5 + $0x140] sm:$0x1f] %vm990_vm12, %v33923_v54  ;;  %1002 = vst.msk [vmem:[#allocation5 + $0x160] sm:$0x1f] %vm990_vm12, %v33923_v54 }
 0xf28   : > { %1003 = vst.msk [vmem:[#allocation5 + $0x180] sm:$0x1f] %vm990_vm12, %v33923_v54  ;;  %1004 = vst.msk [vmem:[#allocation5 + $0x1a0] sm:$0x1f] %vm990_vm12, %v33923_v54 }
 0xf29   : > { %25859 = vmatmul.mubr.msk.bf16.gmra.mrb[208].mxu1 %vm15057_vm11, %v32129_v10  ;;  %v20413_v10 = vld [vmem:[%s33602_s21] sm:$0xf]  ;;  %1005 = vst.msk [vmem:[#allocation5 + $0x1c0] sm:$0x1f] %vm990_vm12, %v33923_v54  ;;  %1006 = vst.msk [vmem:[#allocation5 + $0x1e0] sm:$0x1f] %vm990_vm12, %v33923_v54 }
 0xf2a   : > { %25862 = vmatprep.mubr.msk.bf16.mxu1 %vm15057_vm11, %v32132_v50  ;;  %v22540_v50 = vld [vmem:[%s33600_s19 + $0x4] sm:$0xf]  ;;  %1007 = vst.msk [vmem:[#allocation5 + $0x200] sm:$0x1f] %vm990_vm12, %v33923_v54  ;;  %1008 = vst.msk [vmem:[#allocation5 + $0x220] sm:$0x1f] %vm990_vm12, %v33923_v54 }
 0xf2b   : > { %28262 = vmatprep.subr.msk.bf16.mxu0 %vm4192_vm6, %v22540_v50  ;;  %1009 = vst.msk [vmem:[#allocation5 + $0x240] sm:$0x1f] %vm990_vm12, %v33923_v54  ;;  %1010 = vst.msk [vmem:[#allocation5 + $0x260] sm:$0x1f] %vm990_vm12, %v33923_v54 }
 0xf2c   : > { %1011 = vst.msk [vmem:[#allocation5 + $0x280] sm:$0x1f] %vm990_vm12, %v33923_v54  ;;  %1012 = vst.msk [vmem:[#allocation5 + $0x2a0] sm:$0x1f] %vm990_vm12, %v33923_v54 }
 0xf2d   : > { %1013 = vst.msk [vmem:[#allocation5 + $0x2c0] sm:$0x1f] %vm990_vm12, %v33923_v54  ;;  %1014 = vst.msk [vmem:[#allocation5 + $0x2e0] sm:$0x1f] %vm990_vm12, %v33923_v54 }
 0xf2e   : > { %1015 = vst.msk [vmem:[#allocation5 + $0x300] sm:$0x1f] %vm990_vm12, %v33923_v54  ;;  %1016 = vst.msk [vmem:[#allocation5 + $0x320] sm:$0x1f] %vm990_vm12, %v33923_v54 }
 0xf2f   : > { %1017 = vst.msk [vmem:[#allocation5 + $0x15] sm:$0x1f] %vm990_vm12, %v33923_v54  ;;  %1018 = vst.msk [vmem:[#allocation5 + $0x35] sm:$0x1f] %vm990_vm12, %v33923_v54 }
 0xf30   : > { %1019 = vst.msk [vmem:[#allocation5 + $0x55] sm:$0x1f] %vm990_vm12, %v33923_v54  ;;  %1020 = vst.msk [vmem:[#allocation5 + $0x75] sm:$0x1f] %vm990_vm12, %v33923_v54 }
 0xf31   : > { %25863 = vmatmul.mubr.msk.bf16.gmra.mrb[212].mxu1 %vm15057_vm11, %v32145_v8  ;;  %v17924_v8 = vsel %vm4192_vm6, %v22540_v50, 0  ;;  %1021 = vst.msk [vmem:[#allocation5 + $0x95] sm:$0x1f] %vm990_vm12, %v33923_v54  ;;  %1022 = vst.msk [vmem:[#allocation5 + $0xb5] sm:$0x1f] %vm990_vm12, %v33923_v54  ;;  %v33930_v50 = vld [vmem:[#allocation59_spill] sm:$0xff] }
 0xf32   : > { %25866 = vmatprep.mubr.msk.bf16.mxu1 %vm15057_vm11, %v32147_v56  ;;  %25909 = vmatpush3.bf16.msra.mxu0 %v17924_v8  ;;  %v17408_v56 = vld [vmem:[#allocation2 + $0x19a] sm:$0xff]  ;;  %1023 = vst.msk [vmem:[#allocation5 + $0xd5] sm:$0x1f] %vm990_vm12, %v33923_v54  ;;  %1024 = vst.msk [vmem:[#allocation5 + $0xf5] sm:$0x1f] %vm990_vm12, %v33923_v54 }
 0xf33   : > { %28263 = vmatprep.subr.msk.bf16.mxu0 %vm4192_vm6, %v17824_v51  ;;  %1025 = vst.msk [vmem:[#allocation5 + $0x115] sm:$0x1f] %vm990_vm12, %v33923_v54  ;;  %1026 = vst.msk [vmem:[#allocation5 + $0x135] sm:$0x1f] %vm990_vm12, %v33923_v54  ;;  %v33931_v8 = vld [vmem:[#allocation58_spill] sm:$0xff] }
 0xf34   : > { %1027 = vst.msk [vmem:[#allocation5 + $0x155] sm:$0x1f] %vm990_vm12, %v33923_v54  ;;  %1028 = vst.msk [vmem:[#allocation5 + $0x175] sm:$0x1f] %vm990_vm12, %v33923_v54  ;;  %v33961_v51 = vld [vmem:[#allocation46_spill] sm:$0xff] }
 0xf35   : > { %1029 = vst.msk [vmem:[#allocation5 + $0x195] sm:$0x1f] %vm990_vm12, %v33923_v54  ;;  %1030 = vst.msk [vmem:[#allocation5 + $0x1b5] sm:$0x1f] %vm990_vm12, %v33923_v54 }
 0xf36   : > { %1031 = vst.msk [vmem:[#allocation5 + $0x1d5] sm:$0x1f] %vm990_vm12, %v33923_v54  ;;  %1032 = vst.msk [vmem:[#allocation5 + $0x1f5] sm:$0x1f] %vm990_vm12, %v33923_v54 }
 0xf37   : > { %1033 = vst.msk [vmem:[#allocation5 + $0x215] sm:$0x1f] %vm990_vm12, %v33923_v54  ;;  %1034 = vst.msk [vmem:[#allocation5 + $0x235] sm:$0x1f] %vm990_vm12, %v33923_v54 }
 0xf38   : > { %1035 = vst.msk [vmem:[#allocation5 + $0x255] sm:$0x1f] %vm990_vm12, %v33923_v54  ;;  %1036 = vst.msk [vmem:[#allocation5 + $0x275] sm:$0x1f] %vm990_vm12, %v33923_v54 }
 0xf39   : > { %25867 = vmatmul.mubr.msk.bf16.gmra.mrb[216].mxu1 %vm15057_vm11, %v32153_v23  ;;  %v17409_v23 = vld [vmem:[#allocation2 + $0x1a2] sm:$0xff]  ;;  %1037 = vst.msk [vmem:[#allocation5 + $0x295] sm:$0x1f] %vm990_vm12, %v33923_v54  ;;  %1038 = vst.msk [vmem:[#allocation5 + $0x2b5] sm:$0x1f] %vm990_vm12, %v33923_v54 }
 0xf3a   : > { %25870 = vmatprep.mubr.msk.bf16.mxu1 %vm15057_vm11, %v32368_v15  ;;  %v33911_v15 = vld [vmem:[#allocation79_spill] sm:$0xff]  ;;  %1039 = vst.msk [vmem:[#allocation5 + $0x2d5] sm:$0x1f] %vm990_vm12, %v33923_v54  ;;  %1040 = vst.msk [vmem:[#allocation5 + $0x2f5] sm:$0x1f] %vm990_vm12, %v33923_v54 }
 0xf3b   : > { %v33912_v41 = vpack.c.bf16 %v31751_v62, %v33911_v15  ;;  %v33913_v62 = vld [vmem:[#allocation78_spill] sm:$0xff]  ;;  %1041 = vst.msk [vmem:[#allocation5 + $0x315] sm:$0x1f] %vm990_vm12, %v33923_v54  ;;  %1042 = vst.msk [vmem:[#allocation5 + $0x335] sm:$0x1f] %vm990_vm12, %v33923_v54  ;;  %v33957_v15 = vld [vmem:[#allocation41_spill] sm:$0xff] }
 0xf3c   : > { %v33915_v33 = vpack.c.bf16 %v33913_v62, %v33914_v28  ;;  %v33967_v62 = vld [vmem:[#allocation50_spill] sm:$0xff] }
 0xf41   : > { %25871 = vmatmul.mubr.msk.bf16.gmra.mrb[220].mxu1 %vm15057_vm11, %v17131_v17  ;;  %v33927_v17 = vld [vmem:[#allocation86_spill] sm:$0xff] }
 0xf42   : > { %25876 = vmatprep.mubr.msk.bf16.mxu1 %vm15057_vm11, %v32232_v16  ;;  %v17425_v16 = vpack.c.bf16 %v17409_v23, %v17408_v56  ;;  %v33932_v56 = vpack.c.bf16 %v33930_v50, %v33931_v8  ;;  %v33933_v23 = vld [vmem:[#allocation57_spill] sm:$0xff] }
 0xf49   : > { %25877 = vmatmul.mubr.msk.bf16.vlgmr.msra.gmra.mrb[192].mxu1 %vm15057_vm11, %v32242_v5  ;;  %v33894_v5 = vld [vmem:[#allocation68_spill] sm:$0xff] }
 0xf4a   : > { %25880 = vmatprep.mubr.msk.bf16.mxu1 %vm15057_vm11, %v32244_v55  ;;  %26215 = vmatpush3.bf16.msra.mxu1 %v20481_v2  ;;  %v33895_v55 = vpack.c.bf16 %v31679_v0, %v33894_v5  ;;  %v33906_v0 = vld [vmem:[#allocation75_spill] sm:$0xff]  ;;  %v33928_v2 = vld [vmem:[#allocation85_spill] sm:$0xff] }
 0xf4b   : > { %28272 = vmatprep.subr.msk.bf16.mxu1 %vm4192_vm6, %v20413_v10 }
 0xf51   : > { %25881 = vmatmul.mubr.msk.bf16.gmra.mrb[196].mxu1 %vm15057_vm11, %v32250_v48  ;;  %v33896_v48 = vld [vmem:[#allocation67_spill] sm:$0xff] }
 0xf52   : > { %25884 = vmatprep.mubr.msk.bf16.mxu1 %vm15057_vm11, %v32252_v27  ;;  %v33897_v27 = vld [vmem:[#allocation66_spill] sm:$0xff] }
 0xf59   : > { %25885 = vmatmul.mubr.msk.bf16.gmra.mrb[200].mxu1 %vm15057_vm11, %v32258_v40  ;;  %v33898_v40 = vpack.c.bf16 %v33896_v48, %v33897_v27  ;;  %v33943_v48 = vld [vmem:[#allocation64_spill] sm:$0xff] }
 0xf5a   : > { %25888 = vmatprep.mubr.msk.bf16.mxu1 %vm15057_vm11, %v32260_v24 }
 0xf61   : > { %25889 = vmatmul.mubr.msk.bf16.gmra.mrb[204].mxu1 %vm15057_vm11, %v32266_v42  ;;  %v33902_v42 = vld [vmem:[#allocation70_spill] sm:$0xff] }
 0xf62   : > { %25892 = vmatprep.mubr.msk.bf16.mxu1 %vm15057_vm11, %v32268_v35  ;;  %v33905_v35 = vld [vmem:[#allocation76_spill] sm:$0xff] }
 0xf69   : > { %25893 = vmatmul.mubr.msk.bf16.gmra.mrb[208].mxu1 %vm15057_vm11, %v32274_v9  ;;  %v33907_v9 = vpack.c.bf16 %v33905_v35, %v33906_v0  ;;  %v33951_v35 = vld [vmem:[#allocation37_spill] sm:$0xff]  ;;  %v33952_v0 = vld [vmem:[#allocation36_spill] sm:$0xff] }
 0xf6a   : > { %25896 = vmatprep.mubr.msk.bf16.mxu1 %vm15057_vm11, %v32276_v11  ;;  %v33892_v11 = vpack.c.bf16 %v31655_v36, %v31652_v53  ;;  %v33899_v53 = vld [vmem:[#allocation72_spill] sm:$0xff]  ;;  %v33900_v36 = vld [vmem:[#allocation71_spill] sm:$0xff] }
 0xf6b   : > { %v33901_v24 = vpack.c.bf16 %v33899_v53, %v33900_v36  ;;  %v33946_v53 = vld [vmem:[#allocation34_spill] sm:$0xff] }
 0xf71   : > { %25897 = vmatmul.mubr.msk.bf16.gmra.mrb[212].mxu1 %vm15057_vm11, %v32282_v1  ;;  %v20693_v1 = vsel %vm4192_vm6, %v20413_v10, 0  ;;  %v33929_v10 = vpack.c.bf16 %v33927_v17, %v33928_v2 }
 0xf72   : > { %25900 = vmatprep.mubr.msk.bf16.mxu1 %vm15057_vm11, %v32284_v45  ;;  %v33893_v45 = vpack.c.bf16 %v31647_v25, %v31644_v44  ;;  %v33903_v44 = vld [vmem:[#allocation69_spill] sm:$0xff] }
 0xf73   : > { %v33904_v25 = vpack.c.bf16 %v33902_v42, %v33903_v44  ;;  %v33949_v42 = vld [vmem:[#allocation38_spill] sm:$0xff] }
 0xf79   : > { %25901 = vmatmul.mubr.msk.bf16.gmra.mrb[216].mxu1 %vm15057_vm11, %v32290_v7  ;;  %v33908_v7 = vld [vmem:[#allocation74_spill] sm:$0xff] }
 0xf7a   : > { %25904 = vmatprep.mubr.msk.bf16.mxu1 %vm15057_vm11, %v32407_v47  ;;  %v33910_v34 = vpack.c.bf16 %v33908_v7, %v33909_v20  ;;  %v17857_v47 = vpack.c.bf16 %v17826_v61, %v17825_v14  ;;  %v33954_v7 = vld [vmem:[#allocation43_spill] sm:$0xff]  ;;  %v33955_v20 = vld [vmem:[#allocation42_spill] sm:$0xff] }
 0xf7b   : > { %v33960_v61 = vld [vmem:[#allocation47_spill] sm:$0xff] }
 0xf7c   : > { %25910 = vmatprep.mubr.msk.bf16.mxu0 %vm784_vm3, %v17857_v47  ;;  %v33962_v47 = vpack.c.bf16 %v33960_v61, %v33961_v51 }
 0xf7d   : > { %25911 = vmatmul.mubr.msk.bf16.vlgmr.msra.gmra.mrb[96].mxu0 %vm784_vm3, %v17858_v6  ;;  %v33965_v6 = vpack.c.bf16 %v33963_v63, %v33964_v3 }
 0xf7e   : > { %25943 = vmatpush3.bf16.msra.mxu0 %v18136_v60  ;;  %25914 = vmatprep.mubr.msk.bf16.mxu0 %vm784_vm3, %v17859_v29  ;;  %v33966_v60 = vld [vmem:[#allocation51_spill] sm:$0xff]  ;;  %v33975_v29 = vld [vmem:[#allocation53_spill] sm:$0xff] }
 0xf7f   : > { %v33968_v28 = vpack.c.bf16 %v33966_v60, %v33967_v62  ;;  %v33977_v12 = vpack.c.bf16 %v33975_v29, %v33976_v59 }
 0xf81   : > { %25905 = vmatmul.mubr.msk.bf16.gmra.mrb[220].mxu1 %vm15057_vm11, %v17425_v16  ;;  %v33934_v16 = vld [vmem:[#allocation56_spill] sm:$0xff] }
 0xf82   : > { %26216 = vmatprep.mubr.msk.bf16.mxu1 %vm784_vm3, %v33892_v11  ;;  %v33935_v30 = vpack.c.bf16 %v33933_v23, %v33934_v16  ;;  %v33936_v11 = vld [vmem:[#allocation63_spill] sm:$0xff] }
 0xf85   : > { %25915 = vmatmul.mubr.msk.bf16.gmra.mrb[100].mxu0 %vm784_vm3, %v17860_v49  ;;  %v32772_v49 = vld [vmem:[%s33599_s18] ss:$0 sm:$0xff] }
 0xf86   : > { %25918 = vmatprep.mubr.msk.bf16.mxu0 %vm784_vm3, %v17861_v43 }
 0xf89   : > { %26217 = vmatmul.mubr.msk.bf16.vlgmr.msra.gmra.mrb[224].mxu1 %vm784_vm3, %v33893_v45  ;;  %v33940_v45 = vld [vmem:[#allocation60_spill] sm:$0xff] }
 0xf8a   : > { %26220 = vmatprep.mubr.msk.bf16.mxu1 %vm784_vm3, %v33895_v55  ;;  %26249 = vmatpush3.bf16.msra.mxu1 %v20693_v1  ;;  %v33937_v1 = vld [vmem:[#allocation62_spill] sm:$0xff]  ;;  %v33941_v5 = vpack.c.bf16 %v33939_v31, %v33940_v45  ;;  %v33942_v55 = vld [vmem:[#allocation65_spill] sm:$0xff] }
 0xf8b   : > { %v33938_v13 = vpack.c.bf16 %v33936_v11, %v33937_v1  ;;  %v33944_v27 = vpack.c.bf16 %v33942_v55, %v33943_v48 }
 0xf91   : > { %26221 = vmatmul.mubr.msk.bf16.gmra.mrb[228].mxu1 %vm784_vm3, %v33898_v40  ;;  %v33945_v40 = vld [vmem:[#allocation35_spill] sm:$0xff] }
 0xf92   : > { %26224 = vmatprep.mubr.msk.bf16.mxu1 %vm784_vm3, %v33901_v24  ;;  %v33947_v36 = vpack.c.bf16 %v33945_v40, %v33946_v53  ;;  %v33948_v24 = vld [vmem:[#allocation39_spill] sm:$0xff] }
 0xf93   : > { %v33950_v44 = vpack.c.bf16 %v33948_v24, %v33949_v42 }
 0xf99   : > { %26225 = vmatmul.mubr.msk.bf16.gmra.mrb[232].mxu1 %vm784_vm3, %v33904_v25  ;;  %v32729_v25 = vld [vmem:[%s33600_s19 + $0x8] sm:$0xf] }
 0xf9a   : > { %26228 = vmatprep.mubr.msk.bf16.mxu1 %vm784_vm3, %v33907_v9  ;;  %28264 = vmatprep.subr.msk.bf16.mxu0 %vm4192_vm6, %v32729_v25  ;;  %v33953_v9 = vpack.c.bf16 %v33951_v35, %v33952_v0 }
 0xfa1   : > { %26229 = vmatmul.mubr.msk.bf16.gmra.mrb[236].mxu1 %vm784_vm3, %v33910_v34  ;;  %v33956_v34 = vpack.c.bf16 %v33954_v7, %v33955_v20 }
 0xfa2   : > { %26232 = vmatprep.mubr.msk.bf16.mxu1 %vm784_vm3, %v33912_v41  ;;  %v33958_v41 = vld [vmem:[#allocation40_spill] sm:$0xff] }
 0xfa3   : > { %v33959_v14 = vpack.c.bf16 %v33957_v15, %v33958_v41 }
 0xfa9   : > { %26233 = vmatmul.mubr.msk.bf16.gmra.mrb[240].mxu1 %vm784_vm3, %v33915_v33  ;;  %v33969_v33 = vld [vmem:[#allocation49_spill] sm:$0xff] }
 0xfaa   : > { %26236 = vmatprep.mubr.msk.bf16.mxu1 %vm784_vm3, %v33918_v57  ;;  %v33971_v39 = vpack.c.bf16 %v33969_v33, %v33970_v58  ;;  %v33972_v57 = vld [vmem:[#allocation55_spill] sm:$0xff] }
 0xfab   : > { %v33974_v46 = vpack.c.bf16 %v33972_v57, %v33973_v38 }
 0xfb1   : > { %26237 = vmatmul.mubr.msk.bf16.gmra.mrb[244].mxu1 %vm784_vm3, %v33921_v32 }
 0xfb2   : > { %26240 = vmatprep.mubr.msk.bf16.mxu1 %vm784_vm3, %v33922_v18 }
 0xfb9   : > { %26241 = vmatmul.mubr.msk.bf16.gmra.mrb[248].mxu1 %vm784_vm3, %v33925_v19 }
 0xfba   : > { %26244 = vmatprep.mubr.msk.bf16.mxu1 %vm784_vm3, %v33926_v21 }
 0xfc1   : > { %26245 = vmatmul.mubr.msk.bf16.gmra.mrb[252].mxu1 %vm784_vm3, %v33929_v10 }
 0xfc2   : > { %26250 = vmatprep.mubr.msk.bf16.mxu1 %vm784_vm3, %v33932_v56 }
 0xfc9   : > { %26251 = vmatmul.mubr.msk.bf16.vlgmr.msra.gmra.mrb[224].mxu1 %vm784_vm3, %v33935_v30 }
 0xfca   : > { %26254 = vmatprep.mubr.msk.bf16.mxu1 %vm784_vm3, %v33938_v13 }
 0xfd1   : > { %26255 = vmatmul.mubr.msk.bf16.gmra.mrb[228].mxu1 %vm784_vm3, %v33941_v5 }
 0xfd2   : > { %26258 = vmatprep.mubr.msk.bf16.mxu1 %vm784_vm3, %v33944_v27 }
 0xfd9   : > { %26259 = vmatmul.mubr.msk.bf16.gmra.mrb[232].mxu1 %vm784_vm3, %v33947_v36 }
 0xfda   : > { %26262 = vmatprep.mubr.msk.bf16.mxu1 %vm784_vm3, %v33950_v44 }
 0xfe1   : > { %26263 = vmatmul.mubr.msk.bf16.gmra.mrb[236].mxu1 %vm784_vm3, %v33953_v9 }
 0xfe2   : > { %26266 = vmatprep.mubr.msk.bf16.mxu1 %vm784_vm3, %v33956_v34 }
 0xfe9   : > { %26267 = vmatmul.mubr.msk.bf16.gmra.mrb[240].mxu1 %vm784_vm3, %v33959_v14 }
 0xfea   : > { %26270 = vmatprep.mubr.msk.bf16.mxu1 %vm784_vm3, %v33962_v47 }
 0xff1   : > { %26271 = vmatmul.mubr.msk.bf16.gmra.mrb[244].mxu1 %vm784_vm3, %v33965_v6 }
 0xff2   : > { %26274 = vmatprep.mubr.msk.bf16.mxu1 %vm784_vm3, %v33968_v28 }
 0xff9   : > { %26275 = vmatmul.mubr.msk.bf16.gmra.mrb[248].mxu1 %vm784_vm3, %v33971_v39 }
 0xffa   : > { %26278 = vmatprep.mubr.msk.bf16.mxu1 %vm784_vm3, %v33974_v46 }
0x1001   : > { %26279 = vmatmul.mubr.msk.bf16.gmra.mrb[252].mxu1 %vm784_vm3, %v33977_v12 }
0x101c   : > { %v25878_v26 = vpop.f32.mrb[192].mxu1 }
0x101d   : > { %v17681_v52 = vadd.f32 %v25878_v26, %v32772_v49  ;;  %v17513_v32 = vpop.f32.mrb[193].mxu1 }
0x101e   : > { %v17679_v18 = vadd.f32 %v32772_v49, %v17513_v32  ;;  %v25879_v37 = vpop.f32.mrb[194].mxu1 }
0x101f   : > { %v17713_v4 = vmax.f32 %v17681_v52, 0.0  ;;  %v17682_v43 = vadd.f32 %v25879_v37, %v32772_v49  ;;  %v17516_v54 = vpop.f32.mrb[195].mxu1 }
0x1020   : > { %v17711_v22 = vmax.f32 %v17679_v18, 0.0  ;;  %v17680_v19 = vadd.f32 %v32772_v49, %v17516_v54 }
0x1021   : > { %17746 = vst.msk [vmem:[#allocation5 + $0xc5] sm:$0xff] %vm784_vm3, %v17713_v4  ;;  %v17714_v21 = vmax.f32 %v17682_v43, 0.0 }
0x1022   : > { %17744 = vst.msk [vmem:[#allocation5 + $0xa5] sm:$0xff] %vm784_vm3, %v17711_v22  ;;  %v17712_v17 = vmax.f32 %v17680_v19, 0.0 }
0x1023   : > { %17747 = vst.msk [vmem:[#allocation5 + $0xcd] sm:$0xff] %vm784_vm3, %v17714_v21 }
0x1024   : > { %17745 = vst.msk [vmem:[#allocation5 + $0xad] sm:$0xff] %vm784_vm3, %v17712_v17  ;;  %v25882_v2 = vpop.f32.mrb[196].mxu1 }
0x1025   : > { %v17685_v10 = vadd.f32 %v25882_v2, %v32772_v49  ;;  %v17529_v50 = vpop.f32.mrb[197].mxu1 }
0x1026   : > { %v17683_v8 = vadd.f32 %v32772_v49, %v17529_v50  ;;  %v25883_v56 = vpop.f32.mrb[198].mxu1 }
0x1027   : > { %v17717_v23 = vmax.f32 %v17685_v10, 0.0  ;;  %v17686_v16 = vadd.f32 %v25883_v56, %v32772_v49  ;;  %v17532_v30 = vpop.f32.mrb[199].mxu1 }
0x1028   : > { %v17715_v11 = vmax.f32 %v17683_v8, 0.0  ;;  %v17684_v1 = vadd.f32 %v32772_v49, %v17532_v30  ;;  %v17837_v40 = vld [vmem:[#allocation5 + $0xc5] sm:$0xff] }
0x1029   : > { %17750 = vst.msk [vmem:[#allocation5 + $0x105] sm:$0xff] %vm784_vm3, %v17717_v23  ;;  %v17718_v13 = vmax.f32 %v17686_v16, 0.0  ;;  %v17835_v5 = vld [vmem:[#allocation5 + $0xa5] sm:$0xff] }
0x102a   : > { %17748 = vst.msk [vmem:[#allocation5 + $0xe5] sm:$0xff] %vm784_vm3, %v17715_v11  ;;  %v17716_v31 = vmax.f32 %v17684_v1, 0.0  ;;  %v17838_v45 = vld [vmem:[#allocation5 + $0xcd] sm:$0xff] }
0x102b   : > { %17751 = vst.msk [vmem:[#allocation5 + $0x10d] sm:$0xff] %vm784_vm3, %v17718_v13  ;;  %v17836_v55 = vld [vmem:[#allocation5 + $0xad] sm:$0xff]  ;;  %v32793_v24 = vpack.c.bf16 %v17838_v45, %v17837_v40 }
0x102c   : > { %17749 = vst.msk [vmem:[#allocation5 + $0xed] sm:$0xff] %vm784_vm3, %v17716_v31  ;;  %v25886_v48 = vpop.f32.mrb[200].mxu1  ;;  %v32790_v27 = vpack.c.bf16 %v17836_v55, %v17835_v5 }
0x102d   : > { %v17689_v53 = vadd.f32 %v25886_v48, %v32772_v49  ;;  %v17545_v36 = vpop.f32.mrb[201].mxu1 }
0x102e   : > { %v17687_v42 = vadd.f32 %v32772_v49, %v17545_v36  ;;  %v25887_v44 = vpop.f32.mrb[202].mxu1  ;;  %25919 = vmatmul.mubr.msk.bf16.gmra.mrb[104].mxu0 %vm784_vm3, %v32790_v27 }
0x102f   : > { %v17721_v35 = vmax.f32 %v17689_v53, 0.0  ;;  %v17690_v0 = vadd.f32 %v25887_v44, %v32772_v49  ;;  %v17548_v9 = vpop.f32.mrb[203].mxu1  ;;  %25922 = vmatprep.mubr.msk.bf16.mxu0 %vm784_vm3, %v32793_v24 }
0x1030   : > { %v17719_v7 = vmax.f32 %v17687_v42, 0.0  ;;  %v17688_v20 = vadd.f32 %v32772_v49, %v17548_v9  ;;  %v17841_v63 = vld [vmem:[#allocation5 + $0x105] sm:$0xff] }
0x1031   : > { %17754 = vst.msk [vmem:[#allocation5 + $0x145] sm:$0xff] %vm784_vm3, %v17721_v35  ;;  %v17722_v34 = vmax.f32 %v17690_v0, 0.0  ;;  %v17839_v14 = vld [vmem:[#allocation5 + $0xe5] sm:$0xff] }
0x1032   : > { %17752 = vst.msk [vmem:[#allocation5 + $0x125] sm:$0xff] %vm784_vm3, %v17719_v7  ;;  %v17720_v15 = vmax.f32 %v17688_v20, 0.0  ;;  %v17842_v41 = vld [vmem:[#allocation5 + $0x10d] sm:$0xff] }
0x1033   : > { %17755 = vst.msk [vmem:[#allocation5 + $0x14d] sm:$0xff] %vm784_vm3, %v17722_v34  ;;  %v17840_v61 = vld [vmem:[#allocation5 + $0xed] sm:$0xff]  ;;  %v32809_v60 = vpack.c.bf16 %v17842_v41, %v17841_v63 }
0x1034   : > { %17753 = vst.msk [vmem:[#allocation5 + $0x12d] sm:$0xff] %vm784_vm3, %v17720_v15  ;;  %v25890_v51 = vpop.f32.mrb[204].mxu1  ;;  %v32806_v47 = vpack.c.bf16 %v17840_v61, %v17839_v14 }
0x1035   : > { %v17693_v3 = vadd.f32 %v25890_v51, %v32772_v49  ;;  %v17561_v6 = vpop.f32.mrb[205].mxu1 }
0x1036   : > { %v17691_v62 = vadd.f32 %v32772_v49, %v17561_v6  ;;  %v25891_v28 = vpop.f32.mrb[206].mxu1  ;;  %25923 = vmatmul.mubr.msk.bf16.gmra.mrb[108].mxu0 %vm784_vm3, %v32806_v47 }
0x1037   : > { %v17725_v33 = vmax.f32 %v17693_v3, 0.0  ;;  %v17694_v58 = vadd.f32 %v25891_v28, %v32772_v49  ;;  %v17564_v39 = vpop.f32.mrb[207].mxu1  ;;  %25926 = vmatprep.mubr.msk.bf16.mxu0 %vm784_vm3, %v32809_v60 }
0x1038   : > { %v17723_v57 = vmax.f32 %v17691_v62, 0.0  ;;  %v17692_v38 = vadd.f32 %v32772_v49, %v17564_v39  ;;  %v17845_v18 = vld [vmem:[#allocation5 + $0x145] sm:$0xff] }
0x1039   : > { %17758 = vst.msk [vmem:[#allocation5 + $0x185] sm:$0xff] %vm784_vm3, %v17725_v33  ;;  %v17726_v46 = vmax.f32 %v17694_v58, 0.0  ;;  %v17843_v12 = vld [vmem:[#allocation5 + $0x125] sm:$0xff] }
0x103a   : > { %17756 = vst.msk [vmem:[#allocation5 + $0x165] sm:$0xff] %vm784_vm3, %v17723_v57  ;;  %v17724_v29 = vmax.f32 %v17692_v38, 0.0  ;;  %v17846_v59 = vld [vmem:[#allocation5 + $0x14d] sm:$0xff]  ;;  %v17776_v58 = vld [vmem:[#allocation5] sm:$0xff] }
0x103b   : > { %17759 = vst.msk [vmem:[#allocation5 + $0x18d] sm:$0xff] %vm784_vm3, %v17726_v46  ;;  %v17844_v26 = vld [vmem:[#allocation5 + $0x12d] sm:$0xff]  ;;  %v32825_v43 = vpack.c.bf16 %v17846_v59, %v17845_v18 }
0x103c   : > { %17757 = vst.msk [vmem:[#allocation5 + $0x16d] sm:$0xff] %vm784_vm3, %v17724_v29  ;;  %v25894_v52 = vpop.f32.mrb[208].mxu1  ;;  %v32822_v32 = vpack.c.bf16 %v17844_v26, %v17843_v12  ;;  %v17777_v39 = vld [vmem:[#allocation5 + $0x8] sm:$0xff] }
0x103d   : > { %v17697_v37 = vadd.f32 %v25894_v52, %v32772_v49  ;;  %v17577_v4 = vpop.f32.mrb[209].mxu1  ;;  %v17808_v59 = vpack.c.bf16 %v17777_v39, %v17776_v58 }
0x103e   : > { %v17695_v54 = vadd.f32 %v32772_v49, %v17577_v4  ;;  %v25895_v22 = vpop.f32.mrb[210].mxu1  ;;  %25927 = vmatmul.mubr.msk.bf16.gmra.mrb[112].mxu0 %vm784_vm3, %v32822_v32 }
0x103f   : > { %v17729_v19 = vmax.f32 %v17697_v37, 0.0  ;;  %v17698_v21 = vadd.f32 %v25895_v22, %v32772_v49  ;;  %v17580_v17 = vpop.f32.mrb[211].mxu1  ;;  %25930 = vmatprep.mubr.msk.bf16.mxu0 %vm784_vm3, %v32825_v43 }
0x1040   : > { %v17727_v2 = vmax.f32 %v17695_v54, 0.0  ;;  %v17696_v10 = vadd.f32 %v32772_v49, %v17580_v17  ;;  %v17849_v1 = vld [vmem:[#allocation5 + $0x185] sm:$0xff] }
0x1041   : > { %17762 = vst.msk [vmem:[#allocation5 + $0x1c5] sm:$0xff] %vm784_vm3, %v17729_v19  ;;  %v17730_v50 = vmax.f32 %v17698_v21, 0.0  ;;  %v17847_v23 = vld [vmem:[#allocation5 + $0x165] sm:$0xff] }
0x1042   : > { %17760 = vst.msk [vmem:[#allocation5 + $0x1a5] sm:$0xff] %vm784_vm3, %v17727_v2  ;;  %v17728_v8 = vmax.f32 %v17696_v10, 0.0  ;;  %v17850_v56 = vld [vmem:[#allocation5 + $0x18d] sm:$0xff]  ;;  %v17778_v21 = vld [vmem:[#allocation5 + $0x20] sm:$0xff] }
0x1043   : > { %17763 = vst.msk [vmem:[#allocation5 + $0x1cd] sm:$0xff] %vm784_vm3, %v17730_v50  ;;  %v17848_v16 = vld [vmem:[#allocation5 + $0x16d] sm:$0xff]  ;;  %v32841_v45 = vpack.c.bf16 %v17850_v56, %v17849_v1  ;;  %v17780_v50 = vld [vmem:[#allocation5 + $0x40] sm:$0xff]  ;;  %v18398_v1 = vsel %vm4192_vm6, %v32729_v25, 0 }
0x1044   : > { %17761 = vst.msk [vmem:[#allocation5 + $0x1ad] sm:$0xff] %vm784_vm3, %v17728_v8  ;;  %v25898_v30 = vpop.f32.mrb[212].mxu1  ;;  %v32838_v11 = vpack.c.bf16 %v17848_v16, %v17847_v23  ;;  %v17779_v17 = vld [vmem:[#allocation5 + $0x28] sm:$0xff]  ;;  %v17798_v58 = vld [vmem:[#allocation5 + $0x160] sm:$0xff] }
0x1045   : > { %v17701_v13 = vadd.f32 %v25898_v30, %v32772_v49  ;;  %v17593_v31 = vpop.f32.mrb[213].mxu1  ;;  %v17781_v8 = vld [vmem:[#allocation5 + $0x48] sm:$0xff]  ;;  %v17809_v16 = vpack.c.bf16 %v17779_v17, %v17778_v21 }
0x1046   : > { %v17699_v5 = vadd.f32 %v32772_v49, %v17593_v31  ;;  %v25899_v55 = vpop.f32.mrb[214].mxu1  ;;  %25931 = vmatmul.mubr.msk.bf16.gmra.mrb[116].mxu0 %vm784_vm3, %v32838_v11  ;;  %v17810_v30 = vpack.c.bf16 %v17781_v8, %v17780_v50  ;;  %v17783_v31 = vld [vmem:[#allocation5 + $0x68] sm:$0xff]  ;;  %v18304_v50 = vld [vmem:[#allocation5 + $0x52] sm:$0xff] }
0x1047   : > { %v17733_v48 = vmax.f32 %v17701_v13, 0.0  ;;  %v17702_v40 = vadd.f32 %v25899_v55, %v32772_v49  ;;  %v17596_v53 = vpop.f32.mrb[215].mxu1  ;;  %25934 = vmatprep.mubr.msk.bf16.mxu0 %vm784_vm3, %v32841_v45  ;;  %v17782_v13 = vld [vmem:[#allocation5 + $0x60] sm:$0xff]  ;;  %v17785_v55 = vld [vmem:[#allocation5 + $0x88] sm:$0xff] }
0x1048   : > { %v17731_v36 = vmax.f32 %v17699_v5, 0.0  ;;  %v17700_v42 = vadd.f32 %v32772_v49, %v17596_v53  ;;  %v17853_v15 = vld [vmem:[#allocation5 + $0x1c5] sm:$0xff] }
0x1049   : > { %17766 = vst.msk [vmem:[#allocation5 + $0x205] sm:$0xff] %vm784_vm3, %v17733_v48  ;;  %v17734_v44 = vmax.f32 %v17702_v40, 0.0  ;;  %v17851_v9 = vld [vmem:[#allocation5 + $0x1a5] sm:$0xff]  ;;  %v17811_v48 = vpack.c.bf16 %v17783_v31, %v17782_v13  ;;  %v18308_v31 = vld [vmem:[#allocation5 + $0x92] sm:$0xff] }
0x104a   : > { %17764 = vst.msk [vmem:[#allocation5 + $0x1e5] sm:$0xff] %vm784_vm3, %v17731_v36  ;;  %v17732_v35 = vmax.f32 %v17700_v42, 0.0  ;;  %v17854_v0 = vld [vmem:[#allocation5 + $0x1cd] sm:$0xff]  ;;  %v17784_v5 = vld [vmem:[#allocation5 + $0x80] sm:$0xff] }
0x104b   : > { %17767 = vst.msk [vmem:[#allocation5 + $0x20d] sm:$0xff] %vm784_vm3, %v17734_v44  ;;  %v17852_v7 = vld [vmem:[#allocation5 + $0x1ad] sm:$0xff]  ;;  %v32857_v61 = vpack.c.bf16 %v17854_v0, %v17853_v15  ;;  %v17812_v40 = vpack.c.bf16 %v17785_v55, %v17784_v5  ;;  %v17786_v36 = vld [vmem:[#allocation5 + $0xa0] sm:$0xff] }
0x104c   : > { %17765 = vst.msk [vmem:[#allocation5 + $0x1ed] sm:$0xff] %vm784_vm3, %v17732_v35  ;;  %v25902_v20 = vpop.f32.mrb[216].mxu1  ;;  %v32854_v34 = vpack.c.bf16 %v17852_v7, %v17851_v9  ;;  %v17787_v25 = vld [vmem:[#allocation5 + $0xa8] sm:$0xff]  ;;  %v17788_v44 = vld [vmem:[#allocation5 + $0xc0] sm:$0xff] }
0x104d   : > { %v17705_v41 = vadd.f32 %v25902_v20, %v32772_v49  ;;  %v17609_v14 = vpop.f32.mrb[217].mxu1  ;;  %v17789_v53 = vld [vmem:[#allocation5 + $0xc8] sm:$0xff]  ;;  %v32896_v42 = vpack.c.bf16 %v17787_v25, %v17786_v36  ;;  %v17790_v7 = vld [vmem:[#allocation5 + $0xe0] sm:$0xff]  ;;  %v18312_v25 = vld [vmem:[#allocation5 + $0xd2] sm:$0xff] }
0x104e   : > { %v17703_v51 = vadd.f32 %v32772_v49, %v17609_v14  ;;  %v25903_v63 = vpop.f32.mrb[218].mxu1  ;;  %25935 = vmatmul.mubr.msk.bf16.gmra.mrb[120].mxu0 %vm784_vm3, %v32854_v34  ;;  %v32898_v35 = vpack.c.bf16 %v17789_v53, %v17788_v44  ;;  %v17791_v0 = vld [vmem:[#allocation5 + $0xe8] sm:$0xff]  ;;  %v17792_v15 = vld [vmem:[#allocation5 + $0x100] sm:$0xff] }
0x104f   : > { %v17737_v3 = vmax.f32 %v17705_v41, 0.0  ;;  %v17706_v6 = vadd.f32 %v25903_v63, %v32772_v49  ;;  %v17612_v62 = vpop.f32.mrb[219].mxu1  ;;  %25938 = vmatprep.mubr.msk.bf16.mxu0 %vm784_vm3, %v32857_v61  ;;  %v17793_v9 = vld [vmem:[#allocation5 + $0x108] sm:$0xff]  ;;  %v32904_v20 = vpack.c.bf16 %v17791_v0, %v17790_v7  ;;  %v17794_v63 = vld [vmem:[#allocation5 + $0x120] sm:$0xff]  ;;  %v18314_v0 = vld [vmem:[#allocation5 + $0xf2] sm:$0xff] }
0x1050   : > { %v17735_v28 = vmax.f32 %v17703_v51, 0.0  ;;  %v17704_v33 = vadd.f32 %v32772_v49, %v17612_v62  ;;  %v32906_v41 = vpack.c.bf16 %v17793_v9, %v17792_v15  ;;  %v17795_v14 = vld [vmem:[#allocation5 + $0x128] sm:$0xff]  ;;  %v18316_v7 = vld [vmem:[#allocation5 + $0x112] sm:$0xff] }
0x1051   : > { %17770 = vst.msk [vmem:[#allocation5 + $0x245] sm:$0xff] %vm784_vm3, %v17737_v3  ;;  %v17738_v57 = vmax.f32 %v17706_v6, 0.0  ;;  %v17855_v46 = vld [vmem:[#allocation5 + $0x1e5] sm:$0xff]  ;;  %v32912_v3 = vpack.c.bf16 %v17795_v14, %v17794_v63  ;;  %v18318_v63 = vld [vmem:[#allocation5 + $0x132] sm:$0xff] }
0x1052   : > { %17768 = vst.msk [vmem:[#allocation5 + $0x225] sm:$0xff] %vm784_vm3, %v17735_v28  ;;  %v17736_v38 = vmax.f32 %v17704_v33, 0.0  ;;  %v17797_v51 = vld [vmem:[#allocation5 + $0x148] sm:$0xff]  ;;  %v17796_v6 = vld [vmem:[#allocation5 + $0x140] sm:$0xff] }
0x1053   : > { %17771 = vst.msk [vmem:[#allocation5 + $0x24d] sm:$0xff] %vm784_vm3, %v17738_v57  ;;  %v17856_v29 = vld [vmem:[#allocation5 + $0x1ed] sm:$0xff]  ;;  %v32914_v62 = vpack.c.bf16 %v17797_v51, %v17796_v6  ;;  %v17800_v57 = vld [vmem:[#allocation5 + $0x180] sm:$0xff] }
0x1054   : > { %17769 = vst.msk [vmem:[#allocation5 + $0x22d] sm:$0xff] %vm784_vm3, %v17736_v38  ;;  %v25906_v12 = vpop.f32.mrb[220].mxu1  ;;  %v32870_v26 = vpack.c.bf16 %v17856_v29, %v17855_v46  ;;  %v17799_v28 = vld [vmem:[#allocation5 + $0x168] sm:$0xff] }
0x1055   : > { %v17709_v52 = vadd.f32 %v25906_v12, %v32772_v49  ;;  %v17625_v18 = vpop.f32.mrb[221].mxu1  ;;  %v17801_v33 = vld [vmem:[#allocation5 + $0x188] sm:$0xff]  ;;  %v32920_v39 = vpack.c.bf16 %v17799_v28, %v17798_v58  ;;  %v18320_v28 = vld [vmem:[#allocation5 + $0x152] sm:$0xff] }
0x1056   : > { %v17707_v37 = vadd.f32 %v32772_v49, %v17625_v18  ;;  %v25907_v4 = vpop.f32.mrb[222].mxu1  ;;  %25939 = vmatmul.mubr.msk.bf16.gmra.mrb[124].mxu0 %vm784_vm3, %v32870_v26  ;;  %v32922_v38 = vpack.c.bf16 %v17801_v33, %v17800_v57  ;;  %v17803_v46 = vld [vmem:[#allocation5 + $0x1a8] sm:$0xff] }
0x1057   : > { %v17741_v54 = vmax.f32 %v17709_v52, 0.0  ;;  %v17710_v22 = vadd.f32 %v25907_v4, %v32772_v49  ;;  %v17628_v19 = vpop.f32.mrb[223].mxu1  ;;  %25944 = vmatprep.mubr.msk.bf16.mxu0 %vm784_vm3, %v17808_v59  ;;  %v17805_v29 = vld [vmem:[#allocation5 + $0x1c8] sm:$0xff]  ;;  %v17802_v59 = vld [vmem:[#allocation5 + $0x1a0] sm:$0xff]  ;;  %v18300_v4 = vld [vmem:[#allocation5 + $0x12] sm:$0xff] }
0x1058   : > { %v17739_v2 = vmax.f32 %v17707_v37, 0.0  ;;  %v17708_v10 = vadd.f32 %v32772_v49, %v17628_v19  ;;  %v32888_v49 = vld [vmem:[%s33600_s19 + $0xc] sm:$0xf]  ;;  %v32928_v12 = vpack.c.bf16 %v17803_v46, %v17802_v59  ;;  %v17804_v52 = vld [vmem:[#allocation5 + $0x1c0] sm:$0xff]  ;;  %v18322_v46 = vld [vmem:[#allocation5 + $0x172] sm:$0xff] }
0x1059   : > { %17774 = vst.msk [vmem:[#allocation5 + $0x285] sm:$0xff] %vm784_vm3, %v17741_v54  ;;  %v17742_v56 = vmax.f32 %v17710_v22, 0.0  ;;  %v32930_v18 = vpack.c.bf16 %v17805_v29, %v17804_v52  ;;  %v18299_v37 = vld [vmem:[#allocation5 + $0xa] sm:$0xff]  ;;  %v17806_v22 = vld [vmem:[#allocation5 + $0x1e0] sm:$0xff]  ;;  %v18324_v59 = vld [vmem:[#allocation5 + $0x192] sm:$0xff] }
0x105a   : > { %17772 = vst.msk [vmem:[#allocation5 + $0x265] sm:$0xff] %vm784_vm3, %v17739_v2  ;;  %v17740_v23 = vmax.f32 %v17708_v10, 0.0  ;;  %v17807_v54 = vld [vmem:[#allocation5 + $0x1e8] sm:$0xff]  ;;  %v18331_v19 = vpack.c.bf16 %v18300_v4, %v18299_v37  ;;  %v18302_v2 = vld [vmem:[#allocation5 + $0x32] sm:$0xff] }
0x105b   : > { %17775 = vst.msk [vmem:[#allocation5 + $0x28d] sm:$0xff] %vm784_vm3, %v17742_v56  ;;  %v32936_v21 = vpack.c.bf16 %v17807_v54, %v17806_v22  ;;  %v18301_v17 = vld [vmem:[#allocation5 + $0x2a] sm:$0xff]  ;;  %v18326_v54 = vld [vmem:[#allocation5 + $0x1b2] sm:$0xff] }
0x105c   : > { %17773 = vst.msk [vmem:[#allocation5 + $0x26d] sm:$0xff] %vm784_vm3, %v17740_v23  ;;  %v18303_v10 = vld [vmem:[#allocation5 + $0x4a] sm:$0xff]  ;;  %v18332_v8 = vpack.c.bf16 %v18302_v2, %v18301_v17  ;;  %v18692_v23 = vsel %vm4192_vm6, %v32888_v49, 0 }
0x105d   : > { %v18333_v56 = vpack.c.bf16 %v18304_v50, %v18303_v10  ;;  %v18307_v13 = vld [vmem:[#allocation5 + $0x8a] sm:$0xff]  ;;  %v18330_v50 = vld [vmem:[#allocation5 + $0x1f2] sm:$0xff] }
0x105e   : > { %25945 = vmatmul.mubr.msk.bf16.vlgmr.msra.gmra.mrb[96].mxu0 %vm784_vm3, %v17809_v16  ;;  %v22607_v16 = vld [vmem:[%s33600_s19 + $0x10] sm:$0xf]  ;;  %v18335_v55 = vpack.c.bf16 %v18308_v31, %v18307_v13  ;;  %v18619_v13 = vld [vmem:[#allocation5 + $0x240] sm:$0xff] }
0x105f   : > { %25977 = vmatpush3.bf16.msra.mxu0 %v18398_v1  ;;  %25948 = vmatprep.mubr.msk.bf16.mxu0 %vm784_vm3, %v17810_v30  ;;  %v18305_v30 = vld [vmem:[#allocation5 + $0x6a] sm:$0xff]  ;;  %v18306_v1 = vld [vmem:[#allocation5 + $0x72] sm:$0xff] }
0x1060   : > { %28265 = vmatprep.subr.msk.bf16.mxu0 %vm4192_vm6, %v32888_v49  ;;  %v18334_v5 = vpack.c.bf16 %v18306_v1, %v18305_v30  ;;  %v18309_v49 = vld [vmem:[#allocation5 + $0xaa] sm:$0xff] }
0x1061   : > { %v18313_v44 = vld [vmem:[#allocation5 + $0xea] sm:$0xff] }
0x1062   : > { %v18315_v9 = vld [vmem:[#allocation5 + $0x10a] sm:$0xff]  ;;  %v32959_v15 = vpack.c.bf16 %v18314_v0, %v18313_v44  ;;  %v22641_v44 = vld [vmem:[%s33600_s19 + $0x18] sm:$0xf] }
0x1063   : > { %v32961_v14 = vpack.c.bf16 %v18316_v7, %v18315_v9  ;;  %v18317_v51 = vld [vmem:[#allocation5 + $0x12a] sm:$0xff] }
0x1064   : > { %v18319_v6 = vld [vmem:[#allocation5 + $0x14a] sm:$0xff]  ;;  %v32967_v33 = vpack.c.bf16 %v18318_v63, %v18317_v51 }
0x1065   : > { %v32969_v58 = vpack.c.bf16 %v18320_v28, %v18319_v6  ;;  %v18321_v57 = vld [vmem:[#allocation5 + $0x16a] sm:$0xff] }
0x1066   : > { %25949 = vmatmul.mubr.msk.bf16.gmra.mrb[100].mxu0 %vm784_vm3, %v17811_v48  ;;  %v18310_v48 = vld [vmem:[#allocation5 + $0xb2] sm:$0xff]  ;;  %v18323_v29 = vld [vmem:[#allocation5 + $0x18a] sm:$0xff]  ;;  %v32975_v52 = vpack.c.bf16 %v18322_v46, %v18321_v57  ;;  %v19575_v57 = vsel %vm4192_vm6, %v22641_v44, 0  ;;  %v22658_v46 = vld [vmem:[%s33600_s19 + $0x1c] sm:$0xf] }
0x1067   : > { %25952 = vmatprep.mubr.msk.bf16.mxu0 %vm784_vm3, %v17812_v40  ;;  %v18311_v40 = vld [vmem:[#allocation5 + $0xca] sm:$0xff]  ;;  %v32951_v53 = vpack.c.bf16 %v18310_v48, %v18309_v49  ;;  %v32977_v37 = vpack.c.bf16 %v18324_v59, %v18323_v29  ;;  %v18623_v48 = vld [vmem:[#allocation5 + $0x280] sm:$0xff] }
0x1068   : > { %v32953_v36 = vpack.c.bf16 %v18312_v25, %v18311_v40  ;;  %v18325_v4 = vld [vmem:[#allocation5 + $0x1aa] sm:$0xff] }
0x1069   : > { %v18327_v22 = vld [vmem:[#allocation5 + $0x1ca] sm:$0xff]  ;;  %v32983_v17 = vpack.c.bf16 %v18326_v54, %v18325_v4  ;;  %v19208_v4 = vld [vmem:[#allocation5 + $0x252] sm:$0xff] }
0x106a   : > { %v18329_v10 = vld [vmem:[#allocation5 + $0x1ea] sm:$0xff] }
0x106b   : > { %v18620_v30 = vld [vmem:[#allocation5 + $0x248] sm:$0xff] }
0x106c   : > { %v18622_v1 = vld [vmem:[#allocation5 + $0x268] sm:$0xff]  ;;  %v33030_v31 = vpack.c.bf16 %v18620_v30, %v18619_v13  ;;  %v19506_v13 = vld [vmem:[#allocation5 + $0x320] sm:$0xff] }
0x106d   : > { %v18624_v49 = vld [vmem:[#allocation5 + $0x288] sm:$0xff] }
0x106e   : > { %25953 = vmatmul.mubr.msk.bf16.gmra.mrb[104].mxu0 %vm784_vm3, %v32896_v42  ;;  %v33038_v40 = vpack.c.bf16 %v18624_v49, %v18623_v48  ;;  %v18913_v0 = vld [vmem:[#allocation5 + $0x245] sm:$0xff]  ;;  %v18918_v63 = vld [vmem:[#allocation5 + $0x28d] sm:$0xff] }
0x106f   : > { %25956 = vmatprep.mubr.msk.bf16.mxu0 %vm784_vm3, %v32898_v35  ;;  %v18915_v7 = vld [vmem:[#allocation5 + $0x265] sm:$0xff] }
0x1070   : > { %v18917_v6 = vld [vmem:[#allocation5 + $0x285] sm:$0xff] }
0x1071   : > { %v33085_v28 = vpack.c.bf16 %v18918_v63, %v18917_v6  ;;  %v19207_v59 = vld [vmem:[#allocation5 + $0x24a] sm:$0xff] }
0x1072   : > { %v19209_v54 = vld [vmem:[#allocation5 + $0x26a] sm:$0xff] }
0x1073   : > { %v19770_v49 = vld [vmem:[#allocation5 + $0x145] sm:$0xff] }
0x1074   : > { %v19798_v6 = vld [vmem:[#allocation5 + $0x305] sm:$0xff] }
0x1076   : > { %25957 = vmatmul.mubr.msk.bf16.gmra.mrb[108].mxu0 %vm784_vm3, %v32904_v20 }
0x1077   : > { %25960 = vmatprep.mubr.msk.bf16.mxu0 %vm784_vm3, %v32906_v41 }
0x107e   : > { %25961 = vmatmul.mubr.msk.bf16.gmra.mrb[112].mxu0 %vm784_vm3, %v32912_v3 }
0x107f   : > { %25964 = vmatprep.mubr.msk.bf16.mxu0 %vm784_vm3, %v32914_v62 }
0x1086   : > { %25965 = vmatmul.mubr.msk.bf16.gmra.mrb[116].mxu0 %vm784_vm3, %v32920_v39 }
0x1087   : > { %25968 = vmatprep.mubr.msk.bf16.mxu0 %vm784_vm3, %v32922_v38 }
0x108e   : > { %25969 = vmatmul.mubr.msk.bf16.gmra.mrb[120].mxu0 %vm784_vm3, %v32928_v12 }
0x108f   : > { %25972 = vmatprep.mubr.msk.bf16.mxu0 %vm784_vm3, %v32930_v18 }
0x1096   : > { %25973 = vmatmul.mubr.msk.bf16.gmra.mrb[124].mxu0 %vm784_vm3, %v32936_v21 }
0x1097   : > { %25978 = vmatprep.mubr.msk.bf16.mxu0 %vm784_vm3, %v18331_v19  ;;  %v18328_v19 = vld [vmem:[#allocation5 + $0x1d2] sm:$0xff] }
0x1098   : > { %v32985_v2 = vpack.c.bf16 %v18328_v19, %v18327_v22  ;;  %v19210_v22 = vld [vmem:[#allocation5 + $0x272] sm:$0xff]  ;;  %v33124_v19 = vpack.c.bf16 %v19208_v4, %v19207_v59  ;;  %v20094_v4 = vld [vmem:[#allocation5 + $0x32a] sm:$0xff] }
0x109e   : > { %25979 = vmatmul.mubr.msk.bf16.vlgmr.msra.gmra.mrb[96].mxu0 %vm784_vm3, %v18332_v8  ;;  %v32991_v8 = vpack.c.bf16 %v18330_v50, %v18329_v10  ;;  %v33126_v10 = vpack.c.bf16 %v19210_v22, %v19209_v54  ;;  %v19211_v50 = vld [vmem:[#allocation5 + $0x28a] sm:$0xff]  ;;  %v20095_v54 = vld [vmem:[#allocation5 + $0x332] sm:$0xff] }
0x109f   : > { %26011 = vmatpush3.bf16.msra.mxu0 %v18692_v23  ;;  %25982 = vmatprep.mubr.msk.bf16.mxu0 %vm784_vm3, %v18333_v56  ;;  %v18986_v56 = vsel %vm4192_vm6, %v22607_v16, 0  ;;  %v22624_v23 = vld [vmem:[%s33600_s19 + $0x14] sm:$0xf]  ;;  %v20111_v22 = vpack.c.bf16 %v20095_v54, %v20094_v4 }
0x10a0   : > { %28266 = vmatprep.subr.msk.bf16.mxu0 %vm4192_vm6, %v22607_v16  ;;  %v19280_v25 = vsel %vm4192_vm6, %v22624_v23, 0 }
0x10a6   : > { %25983 = vmatmul.mubr.msk.bf16.gmra.mrb[100].mxu0 %vm784_vm3, %v18334_v5  ;;  %v18621_v5 = vld [vmem:[#allocation5 + $0x260] sm:$0xff] }
0x10a7   : > { %25986 = vmatprep.mubr.msk.bf16.mxu0 %vm784_vm3, %v18335_v55  ;;  %v33032_v55 = vpack.c.bf16 %v18622_v1, %v18621_v5 }
0x10ae   : > { %25987 = vmatmul.mubr.msk.bf16.gmra.mrb[104].mxu0 %vm784_vm3, %v32951_v53 }
0x10af   : > { %25990 = vmatprep.mubr.msk.bf16.mxu0 %vm784_vm3, %v32953_v36 }
0x10b6   : > { %25991 = vmatmul.mubr.msk.bf16.gmra.mrb[108].mxu0 %vm784_vm3, %v32959_v15 }
0x10b7   : > { %25994 = vmatprep.mubr.msk.bf16.mxu0 %vm784_vm3, %v32961_v14 }
0x10be   : > { %25995 = vmatmul.mubr.msk.bf16.gmra.mrb[112].mxu0 %vm784_vm3, %v32967_v33 }
0x10bf   : > { %25998 = vmatprep.mubr.msk.bf16.mxu0 %vm784_vm3, %v32969_v58 }
0x10c6   : > { %25999 = vmatmul.mubr.msk.bf16.gmra.mrb[116].mxu0 %vm784_vm3, %v32975_v52 }
0x10c7   : > { %26002 = vmatprep.mubr.msk.bf16.mxu0 %vm784_vm3, %v32977_v37 }
0x10ce   : > { %26003 = vmatmul.mubr.msk.bf16.gmra.mrb[120].mxu0 %vm784_vm3, %v32983_v17 }
0x10cf   : > { %26006 = vmatprep.mubr.msk.bf16.mxu0 %vm784_vm3, %v32985_v2 }
0x10d6   : > { %26007 = vmatmul.mubr.msk.bf16.gmra.mrb[124].mxu0 %vm784_vm3, %v32991_v8 }
0x10d7   : > { %26012 = vmatprep.mubr.msk.bf16.mxu0 %vm784_vm3, %v32896_v42  ;;  %v18616_v42 = vld [vmem:[#allocation5 + $0x208] sm:$0xff] }
0x10de   : > { %26013 = vmatmul.mubr.msk.bf16.vlgmr.msra.gmra.mrb[96].mxu0 %vm784_vm3, %v32898_v35  ;;  %v18618_v35 = vld [vmem:[#allocation5 + $0x228] sm:$0xff] }
0x10df   : > { %26045 = vmatpush3.bf16.msra.mxu0 %v18986_v56  ;;  %26016 = vmatprep.mubr.msk.bf16.mxu0 %vm784_vm3, %v32904_v20  ;;  %v18615_v20 = vld [vmem:[#allocation5 + $0x200] sm:$0xff]  ;;  %v19212_v56 = vld [vmem:[#allocation5 + $0x292] sm:$0xff] }
0x10e0   : > { %28267 = vmatprep.subr.msk.bf16.mxu0 %vm4192_vm6, %v22624_v23  ;;  %v33132_v23 = vpack.c.bf16 %v19212_v56, %v19211_v50  ;;  %v33231_v50 = vld [vmem:[%s33601_s20] ss:$0 sm:$0xff] }
0x10e6   : > { %26017 = vmatmul.mubr.msk.bf16.gmra.mrb[100].mxu0 %vm784_vm3, %v32906_v41  ;;  %v33022_v41 = vpack.c.bf16 %v18616_v42, %v18615_v20  ;;  %v19869_v42 = vsel %vm4192_vm6, %v22658_v46, 0  ;;  %v19502_v20 = vld [vmem:[#allocation5 + $0x2e0] sm:$0xff] }
0x10e7   : > { %26020 = vmatprep.mubr.msk.bf16.mxu0 %vm784_vm3, %v32912_v3  ;;  %v18617_v3 = vld [vmem:[#allocation5 + $0x220] sm:$0xff] }
0x10e8   : > { %v33024_v16 = vpack.c.bf16 %v18618_v35, %v18617_v3  ;;  %v22675_v35 = vld [vmem:[%s33600_s19 + $0x20] sm:$0xf] }
0x10e9   : > { %v19504_v3 = vld [vmem:[#allocation5 + $0x300] sm:$0xff] }
0x10ee   : > { %26021 = vmatmul.mubr.msk.bf16.gmra.mrb[104].mxu0 %vm784_vm3, %v32914_v62 }
0x10ef   : > { %26024 = vmatprep.mubr.msk.bf16.mxu0 %vm784_vm3, %v32920_v39 }
0x10f6   : > { %26025 = vmatmul.mubr.msk.bf16.gmra.mrb[108].mxu0 %vm784_vm3, %v32922_v38 }
0x10f7   : > { %26028 = vmatprep.mubr.msk.bf16.mxu0 %vm784_vm3, %v32928_v12 }
0x10fe   : > { %26029 = vmatmul.mubr.msk.bf16.gmra.mrb[112].mxu0 %vm784_vm3, %v32930_v18 }
0x10ff   : > { %26032 = vmatprep.mubr.msk.bf16.mxu0 %vm784_vm3, %v32936_v21 }
0x1106   : > { %26033 = vmatmul.mubr.msk.bf16.gmra.mrb[116].mxu0 %vm784_vm3, %v33022_v41 }
0x1107   : > { %26036 = vmatprep.mubr.msk.bf16.mxu0 %vm784_vm3, %v33024_v16 }
0x110e   : > { %26037 = vmatmul.mubr.msk.bf16.gmra.mrb[120].mxu0 %vm784_vm3, %v33030_v31 }
0x110f   : > { %26040 = vmatprep.mubr.msk.bf16.mxu0 %vm784_vm3, %v33032_v55 }
0x1116   : > { %26041 = vmatmul.mubr.msk.bf16.gmra.mrb[124].mxu0 %vm784_vm3, %v33038_v40 }
0x1117   : > { %26046 = vmatprep.mubr.msk.bf16.mxu0 %vm784_vm3, %v32790_v27  ;;  %v18910_v27 = vld [vmem:[#allocation5 + $0x20d] sm:$0xff] }
0x111e   : > { %26047 = vmatmul.mubr.msk.bf16.vlgmr.msra.gmra.mrb[96].mxu0 %vm784_vm3, %v32793_v24  ;;  %v18912_v24 = vld [vmem:[#allocation5 + $0x22d] sm:$0xff] }
0x111f   : > { %26079 = vmatpush3.bf16.msra.mxu0 %v19280_v25  ;;  %26050 = vmatprep.mubr.msk.bf16.mxu0 %vm784_vm3, %v32806_v47  ;;  %v18909_v47 = vld [vmem:[#allocation5 + $0x205] sm:$0xff] }
0x1120   : > { %28268 = vmatprep.subr.msk.bf16.mxu0 %vm4192_vm6, %v22641_v44  ;;  %v19773_v44 = vld [vmem:[#allocation5 + $0x16d] sm:$0xff] }
0x1126   : > { %26051 = vmatmul.mubr.msk.bf16.gmra.mrb[100].mxu0 %vm784_vm3, %v32809_v60  ;;  %v33069_v60 = vpack.c.bf16 %v18910_v27, %v18909_v47  ;;  %v19775_v27 = vld [vmem:[#allocation5 + $0x18d] sm:$0xff] }
0x1127   : > { %26054 = vmatprep.mubr.msk.bf16.mxu0 %vm784_vm3, %v32822_v32  ;;  %v18911_v32 = vld [vmem:[#allocation5 + $0x225] sm:$0xff] }
0x112e   : > { %26055 = vmatmul.mubr.msk.bf16.gmra.mrb[104].mxu0 %vm784_vm3, %v32825_v43  ;;  %v33071_v43 = vpack.c.bf16 %v18912_v24, %v18911_v32  ;;  %v19772_v24 = vld [vmem:[#allocation5 + $0x165] sm:$0xff]  ;;  %v20163_v32 = vsel %vm4192_vm6, %v22675_v35, 0 }
0x112f   : > { %26058 = vmatprep.mubr.msk.bf16.mxu0 %vm784_vm3, %v32838_v11  ;;  %v18914_v11 = vld [vmem:[#allocation5 + $0x24d] sm:$0xff]  ;;  %v19803_v47 = vpack.c.bf16 %v19773_v44, %v19772_v24 }
0x1130   : > { %v33077_v9 = vpack.c.bf16 %v18914_v11, %v18913_v0  ;;  %v19774_v11 = vld [vmem:[#allocation5 + $0x185] sm:$0xff] }
0x1131   : > { %v19794_v0 = vld [vmem:[#allocation5 + $0x2c5] sm:$0xff] }
0x1136   : > { %26059 = vmatmul.mubr.msk.bf16.gmra.mrb[108].mxu0 %vm784_vm3, %v32841_v45  ;;  %v18916_v45 = vld [vmem:[#allocation5 + $0x26d] sm:$0xff] }
0x1137   : > { %26062 = vmatprep.mubr.msk.bf16.mxu0 %vm784_vm3, %v32854_v34  ;;  %v33079_v51 = vpack.c.bf16 %v18916_v45, %v18915_v7  ;;  %v19804_v45 = vpack.c.bf16 %v19775_v27, %v19774_v11  ;;  %v19795_v7 = vld [vmem:[#allocation5 + $0x2cd] sm:$0xff] }
0x1138   : > { %v19814_v63 = vpack.c.bf16 %v19795_v7, %v19794_v0 }
0x113e   : > { %26063 = vmatmul.mubr.msk.bf16.gmra.mrb[112].mxu0 %vm784_vm3, %v32857_v61 }
0x113f   : > { %26066 = vmatprep.mubr.msk.bf16.mxu0 %vm784_vm3, %v32870_v26 }
0x1146   : > { %26067 = vmatmul.mubr.msk.bf16.gmra.mrb[116].mxu0 %vm784_vm3, %v33069_v60 }
0x1147   : > { %26070 = vmatprep.mubr.msk.bf16.mxu0 %vm784_vm3, %v33071_v43 }
0x114e   : > { %26071 = vmatmul.mubr.msk.bf16.gmra.mrb[120].mxu0 %vm784_vm3, %v33077_v9 }
0x114f   : > { %26074 = vmatprep.mubr.msk.bf16.mxu0 %vm784_vm3, %v33079_v51 }
0x1156   : > { %26075 = vmatmul.mubr.msk.bf16.gmra.mrb[124].mxu0 %vm784_vm3, %v33085_v28 }
0x1157   : > { %26080 = vmatprep.mubr.msk.bf16.mxu0 %vm784_vm3, %v32951_v53  ;;  %v19203_v53 = vld [vmem:[#allocation5 + $0x20a] sm:$0xff] }
0x115e   : > { %26081 = vmatmul.mubr.msk.bf16.vlgmr.msra.gmra.mrb[96].mxu0 %vm784_vm3, %v32953_v36  ;;  %v19204_v36 = vld [vmem:[#allocation5 + $0x212] sm:$0xff] }
0x115f   : > { %26113 = vmatpush3.bf16.msra.mxu0 %v19575_v57  ;;  %26084 = vmatprep.mubr.msk.bf16.mxu0 %vm784_vm3, %v32959_v15  ;;  %v19205_v15 = vld [vmem:[#allocation5 + $0x22a] sm:$0xff] }
0x1160   : > { %28269 = vmatprep.subr.msk.bf16.mxu0 %vm4192_vm6, %v22658_v46 }
0x1166   : > { %26085 = vmatmul.mubr.msk.bf16.gmra.mrb[100].mxu0 %vm784_vm3, %v32961_v14  ;;  %v19206_v14 = vld [vmem:[#allocation5 + $0x232] sm:$0xff] }
0x1167   : > { %26088 = vmatprep.mubr.msk.bf16.mxu0 %vm784_vm3, %v32967_v33  ;;  %v33116_v33 = vpack.c.bf16 %v19204_v36, %v19203_v53  ;;  %v33118_v29 = vpack.c.bf16 %v19206_v14, %v19205_v15  ;;  %v20090_v36 = vld [vmem:[#allocation5 + $0x2ea] sm:$0xff]  ;;  %v20091_v15 = vld [vmem:[#allocation5 + $0x2f2] sm:$0xff] }
0x1168   : > { %v20092_v14 = vld [vmem:[#allocation5 + $0x30a] sm:$0xff] }
0x116e   : > { %26089 = vmatmul.mubr.msk.bf16.gmra.mrb[104].mxu0 %vm784_vm3, %v32969_v58 }
0x116f   : > { %26092 = vmatprep.mubr.msk.bf16.mxu0 %vm784_vm3, %v32975_v52 }
0x1176   : > { %26093 = vmatmul.mubr.msk.bf16.gmra.mrb[108].mxu0 %vm784_vm3, %v32977_v37 }
0x1177   : > { %26096 = vmatprep.mubr.msk.bf16.mxu0 %vm784_vm3, %v32983_v17 }
0x117e   : > { %26097 = vmatmul.mubr.msk.bf16.gmra.mrb[112].mxu0 %vm784_vm3, %v32985_v2 }
0x117f   : > { %26100 = vmatprep.mubr.msk.bf16.mxu0 %vm784_vm3, %v32991_v8 }
0x1186   : > { %26101 = vmatmul.mubr.msk.bf16.gmra.mrb[116].mxu0 %vm784_vm3, %v33116_v33 }
0x1187   : > { %26104 = vmatprep.mubr.msk.bf16.mxu0 %vm784_vm3, %v33118_v29 }
0x118e   : > { %26105 = vmatmul.mubr.msk.bf16.gmra.mrb[120].mxu0 %vm784_vm3, %v33124_v19 }
0x118f   : > { %26108 = vmatprep.mubr.msk.bf16.mxu0 %vm784_vm3, %v33126_v10 }
0x1196   : > { %26109 = vmatmul.mubr.msk.bf16.gmra.mrb[124].mxu0 %vm784_vm3, %v33132_v23 }
0x1197   : > { %26114 = vmatprep.mubr.msk.bf16.mxu0 %vm784_vm3, %v32914_v62  ;;  %v19498_v62 = vld [vmem:[#allocation5 + $0x2a0] sm:$0xff] }
0x119e   : > { %26115 = vmatmul.mubr.msk.bf16.vlgmr.msra.gmra.mrb[96].mxu0 %vm784_vm3, %v32920_v39  ;;  %v19499_v39 = vld [vmem:[#allocation5 + $0x2a8] sm:$0xff] }
0x119f   : > { %26147 = vmatpush3.bf16.msra.mxu0 %v19869_v42  ;;  %26118 = vmatprep.mubr.msk.bf16.mxu0 %vm784_vm3, %v32922_v38  ;;  %v19500_v38 = vld [vmem:[#allocation5 + $0x2c0] sm:$0xff] }
0x11a0   : > { %28270 = vmatprep.subr.msk.bf16.mxu0 %vm4192_vm6, %v22675_v35 }
0x11a6   : > { %26119 = vmatmul.mubr.msk.bf16.gmra.mrb[100].mxu0 %vm784_vm3, %v32928_v12  ;;  %v19501_v12 = vld [vmem:[#allocation5 + $0x2c8] sm:$0xff] }
0x11a7   : > { %26122 = vmatprep.mubr.msk.bf16.mxu0 %vm784_vm3, %v32930_v18  ;;  %v19519_v18 = vpack.c.bf16 %v19499_v39, %v19498_v62 }
0x11ae   : > { %26123 = vmatmul.mubr.msk.bf16.gmra.mrb[104].mxu0 %vm784_vm3, %v32936_v21  ;;  %v19520_v21 = vpack.c.bf16 %v19501_v12, %v19500_v38 }
0x11af   : > { %26126 = vmatprep.mubr.msk.bf16.mxu0 %vm784_vm3, %v33022_v41  ;;  %v19503_v41 = vld [vmem:[#allocation5 + $0x2e8] sm:$0xff] }
0x11b0   : > { %v19521_v30 = vpack.c.bf16 %v19503_v41, %v19502_v20 }
0x11b6   : > { %26127 = vmatmul.mubr.msk.bf16.gmra.mrb[108].mxu0 %vm784_vm3, %v33024_v16  ;;  %v19505_v16 = vld [vmem:[#allocation5 + $0x308] sm:$0xff] }
0x11b7   : > { %26130 = vmatprep.mubr.msk.bf16.mxu0 %vm784_vm3, %v33030_v31  ;;  %v19522_v1 = vpack.c.bf16 %v19505_v16, %v19504_v3  ;;  %v19507_v31 = vld [vmem:[#allocation5 + $0x328] sm:$0xff] }
0x11b8   : > { %v19523_v5 = vpack.c.bf16 %v19507_v31, %v19506_v13 }
0x11be   : > { %26131 = vmatmul.mubr.msk.bf16.gmra.mrb[112].mxu0 %vm784_vm3, %v33032_v55  ;;  %v19771_v55 = vld [vmem:[#allocation5 + $0x14d] sm:$0xff] }
0x11bf   : > { %26134 = vmatprep.mubr.msk.bf16.mxu0 %vm784_vm3, %v33038_v40  ;;  %v19802_v48 = vpack.c.bf16 %v19771_v55, %v19770_v49  ;;  %v22726_v40 = vld [vmem:[%s33602_s21 + $0x8] sm:$0xf] }
0x11c0   : > { %28273 = vmatprep.subr.msk.bf16.mxu1 %vm4192_vm6, %v22726_v40  ;;  %v20923_v25 = vsel %vm4192_vm6, %v22726_v40, 0 }
0x11c1   : > { %26283 = vmatpush3.bf16.msra.mxu1 %v20923_v25 }
0x11c6   : > { %26135 = vmatmul.mubr.msk.bf16.gmra.mrb[116].mxu0 %vm784_vm3, %v19519_v18 }
0x11c7   : > { %26138 = vmatprep.mubr.msk.bf16.mxu0 %vm784_vm3, %v19520_v21  ;;  %v28332_v21 = vld [vmem:[%s33604_s23 + $0x8] sm:$0xff]  }
0x11ce   : > { %26139 = vmatmul.mubr.msk.bf16.gmra.mrb[120].mxu0 %vm784_vm3, %v19521_v30 }
0x11cf   : > { %26142 = vmatprep.mubr.msk.bf16.mxu0 %vm784_vm3, %v19522_v1 }
0x11d6   : > { %26143 = vmatmul.mubr.msk.bf16.gmra.mrb[124].mxu0 %vm784_vm3, %v19523_v5 }
0x11d7   : > { %26148 = vmatprep.mubr.msk.bf16.mxu0 %vm784_vm3, %v19802_v48 }
0x11de   : > { %26149 = vmatmul.mubr.msk.bf16.vlgmr.msra.gmra.mrb[96].mxu0 %vm784_vm3, %v19803_v47 }
0x11df   : > { %26181 = vmatpush3.bf16.msra.mxu0 %v20163_v32  ;;  %26152 = vmatprep.mubr.msk.bf16.mxu0 %vm784_vm3, %v19804_v45 }
0x11e6   : > { %26153 = vmatmul.mubr.msk.bf16.gmra.mrb[100].mxu0 %vm784_vm3, %v32854_v34  ;;  %v19792_v34 = vld [vmem:[#allocation5 + $0x2a5] sm:$0xff] }
0x11e7   : > { %26156 = vmatprep.mubr.msk.bf16.mxu0 %vm784_vm3, %v32857_v61  ;;  %v19793_v61 = vld [vmem:[#allocation5 + $0x2ad] sm:$0xff] }
0x11ee   : > { %26157 = vmatmul.mubr.msk.bf16.gmra.mrb[104].mxu0 %vm784_vm3, %v32870_v26  ;;  %v19813_v26 = vpack.c.bf16 %v19793_v61, %v19792_v34 }
0x11ef   : > { %26160 = vmatprep.mubr.msk.bf16.mxu0 %vm784_vm3, %v33069_v60  ;;  %v19796_v60 = vld [vmem:[#allocation5 + $0x2e5] sm:$0xff] }
0x11f6   : > { %26161 = vmatmul.mubr.msk.bf16.gmra.mrb[108].mxu0 %vm784_vm3, %v33071_v43  ;;  %v19797_v43 = vld [vmem:[#allocation5 + $0x2ed] sm:$0xff] }
0x11f7   : > { %26164 = vmatprep.mubr.msk.bf16.mxu0 %vm784_vm3, %v33077_v9  ;;  %v19799_v9 = vld [vmem:[#allocation5 + $0x30d] sm:$0xff]  ;;  %v19815_v57 = vpack.c.bf16 %v19797_v43, %v19796_v60 }
0x11f8   : > { %v19816_v46 = vpack.c.bf16 %v19799_v9, %v19798_v6 }
0x11fe   : > { %26165 = vmatmul.mubr.msk.bf16.gmra.mrb[112].mxu0 %vm784_vm3, %v33079_v51  ;;  %v19800_v51 = vld [vmem:[#allocation5 + $0x325] sm:$0xff] }
0x11ff   : > { %26168 = vmatprep.mubr.msk.bf16.mxu0 %vm784_vm3, %v33085_v28  ;;  %v19801_v28 = vld [vmem:[#allocation5 + $0x32d] sm:$0xff] }
0x1200   : > { %v19817_v53 = vpack.c.bf16 %v19801_v28, %v19800_v51 }
0x1206   : > { %26169 = vmatmul.mubr.msk.bf16.gmra.mrb[116].mxu0 %vm784_vm3, %v19813_v26 }
0x1207   : > { %26172 = vmatprep.mubr.msk.bf16.mxu0 %vm784_vm3, %v19814_v63 }
0x120e   : > { %26173 = vmatmul.mubr.msk.bf16.gmra.mrb[120].mxu0 %vm784_vm3, %v19815_v57 }
0x120f   : > { %26176 = vmatprep.mubr.msk.bf16.mxu0 %vm784_vm3, %v19816_v46 }
0x1216   : > { %26177 = vmatmul.mubr.msk.bf16.gmra.mrb[124].mxu0 %vm784_vm3, %v19817_v53 }
0x1217   : > { %26182 = vmatprep.mubr.msk.bf16.mxu0 %vm784_vm3, %v32969_v58  ;;  %v20086_v58 = vld [vmem:[#allocation5 + $0x2aa] sm:$0xff] }
0x121e   : > { %26183 = vmatmul.mubr.msk.bf16.vlgmr.msra.gmra.mrb[96].mxu0 %vm784_vm3, %v32975_v52  ;;  %v20087_v52 = vld [vmem:[#allocation5 + $0x2b2] sm:$0xff] }
0x121f   : > { %26186 = vmatprep.mubr.msk.bf16.mxu0 %vm784_vm3, %v32977_v37  ;;  %v20088_v37 = vld [vmem:[#allocation5 + $0x2ca] sm:$0xff] }
0x1226   : > { %26187 = vmatmul.mubr.msk.bf16.gmra.mrb[100].mxu0 %vm784_vm3, %v32983_v17  ;;  %v20089_v17 = vld [vmem:[#allocation5 + $0x2d2] sm:$0xff] }
0x1227   : > { %26190 = vmatprep.mubr.msk.bf16.mxu0 %vm784_vm3, %v32985_v2  ;;  %v20107_v2 = vpack.c.bf16 %v20087_v52, %v20086_v58 }
0x122e   : > { %26191 = vmatmul.mubr.msk.bf16.gmra.mrb[104].mxu0 %vm784_vm3, %v32991_v8  ;;  %v20108_v8 = vpack.c.bf16 %v20089_v17, %v20088_v37 }
0x122f   : > { %26194 = vmatprep.mubr.msk.bf16.mxu0 %vm784_vm3, %v33116_v33  ;;  %v20093_v33 = vld [vmem:[#allocation5 + $0x312] sm:$0xff] }
0x1230   : > { %v20110_v59 = vpack.c.bf16 %v20093_v33, %v20092_v14 }
0x1236   : > { %26195 = vmatmul.mubr.msk.bf16.gmra.mrb[108].mxu0 %vm784_vm3, %v33118_v29  ;;  %v20109_v29 = vpack.c.bf16 %v20091_v15, %v20090_v36 }
0x1237   : > { %26198 = vmatprep.mubr.msk.bf16.mxu0 %vm784_vm3, %v33124_v19  ;;  %v28331_v19 = vld [vmem:[%s33604_s23] sm:$0xff]  }
0x1238   : > { %26316 = vmatprep.subr.bf16.mxu1 %v28331_v19 }
0x123e   : > { %26199 = vmatmul.mubr.msk.bf16.gmra.mrb[112].mxu0 %vm784_vm3, %v33126_v10 }
0x123f   : > { %26202 = vmatprep.mubr.msk.bf16.mxu0 %vm784_vm3, %v33132_v23 }
0x1246   : > { %26203 = vmatmul.mubr.msk.bf16.gmra.mrb[116].mxu0 %vm784_vm3, %v20107_v2 }
0x1247   : > { %26206 = vmatprep.mubr.msk.bf16.mxu0 %vm784_vm3, %v20108_v8 }
0x124e   : > { %26207 = vmatmul.mubr.msk.bf16.gmra.mrb[120].mxu0 %vm784_vm3, %v20109_v29 }
0x124f   : > { %26210 = vmatprep.mubr.msk.bf16.mxu0 %vm784_vm3, %v20110_v59 }
0x1256   : > { %26211 = vmatmul.mubr.msk.bf16.gmra.mrb[124].mxu0 %vm784_vm3, %v20111_v22 }
0x12f1   : > { %v26184_v10 = vpop.f32.mrb[96].mxu0 }
0x12f2   : > { %v20199_v56 = vpop.f32.mrb[97].mxu0  ;;  %v20367_v42 = vadd.f32 %v26184_v10, %v33231_v50 }
0x12f3   : > { %v26185_v23 = vpop.f32.mrb[98].mxu0  ;;  %v20365_v39 = vadd.f32 %v33231_v50, %v20199_v56 }
0x12f4   : > { %v20368_v35 = vadd.f32 %v26185_v23, %v33231_v50  ;;  %v20202_v62 = vpop.f32.mrb[99].mxu0 }
0x12f5   : > { %v20366_v38 = vadd.f32 %v33231_v50, %v20202_v62 }
0x12f6   : > { %v20857_v12 = vpack.c.bf16 %v20368_v35, %v20367_v42 }
0x12f7   : > { %v20856_v18 = vpack.c.bf16 %v20366_v38, %v20365_v39 }
0x12f9   : > { %v26188_v20 = vpop.f32.mrb[100].mxu0  ;;  %26284 = vmatprep.mubr.msk.bf16.mxu1 %vm784_vm3, %v20856_v18 }
0x12fa   : > { %v20215_v41 = vpop.f32.mrb[101].mxu0  ;;  %26285 = vmatmul.mubr.msk.bf16.vlgmr.msra.gmra.mrb[224].mxu1 %vm784_vm3, %v20857_v12  ;;  %v20371_v16 = vadd.f32 %v26188_v20, %v33231_v50 }
0x12fb   : > { %26317 = vmatpush3.bf16.msra.mxu1 %v28331_v19  ;;  %v26189_v3 = vpop.f32.mrb[102].mxu0  ;;  %v20369_v13 = vadd.f32 %v33231_v50, %v20215_v41 }
0x12fc   : > { %v20372_v30 = vadd.f32 %v26189_v3, %v33231_v50  ;;  %v20218_v1 = vpop.f32.mrb[103].mxu0  ;;  %26318 = vmatprep.subr.bf16.mxu1 %v28332_v21 }
0x12fd   : > { %v20370_v31 = vadd.f32 %v33231_v50, %v20218_v1 }
0x12fe   : > { %v20859_v5 = vpack.c.bf16 %v20372_v30, %v20371_v16 }
0x12ff   : > { %v20858_v55 = vpack.c.bf16 %v20370_v31, %v20369_v13  ;;  %26319 = vmatpush3.bf16.msra.mxu1 %v28332_v21  ;;  %v33978_v31 = vld [vmem:[#allocation18_spill] sm:$0xff] }
0x1301   : > { %v26192_v49 = vpop.f32.mrb[104].mxu0  ;;  %26288 = vmatprep.mubr.msk.bf16.mxu1 %vm784_vm3, %v20858_v55  ;;  %v33980_v55 = vld [vmem:[#allocation20_spill] sm:$0xff] }
0x1302   : > { %v20231_v48 = vpop.f32.mrb[105].mxu0  ;;  %26289 = vmatmul.mubr.msk.bf16.gmra.mrb[228].mxu1 %vm784_vm3, %v20859_v5  ;;  %v20375_v25 = vadd.f32 %v26192_v49, %v33231_v50  ;;  %v33979_v5 = vld [vmem:[#allocation19_spill] sm:$0xff]  ;;  %v33981_v49 = vld [vmem:[#allocation21_spill] sm:$0xff] }
0x1303   : > { %v26193_v40 = vpop.f32.mrb[106].mxu0  ;;  %v20373_v24 = vadd.f32 %v33231_v50, %v20231_v48  ;;  %v33982_v48 = vld [vmem:[#allocation22_spill] sm:$0xff] }
0x1304   : > { %v20376_v44 = vadd.f32 %v26193_v40, %v33231_v50  ;;  %v20234_v27 = vpop.f32.mrb[107].mxu0  ;;  %v33984_v40 = vld [vmem:[#allocation24_spill] sm:$0xff] }
0x1305   : > { %v20374_v47 = vadd.f32 %v33231_v50, %v20234_v27  ;;  %v33987_v27 = vld [vmem:[#allocation27_spill] sm:$0xff] }
0x1306   : > { %v20861_v32 = vpack.c.bf16 %v20376_v44, %v20375_v25  ;;  %v33985_v25 = vld [vmem:[#allocation25_spill] sm:$0xff]  ;;  %v33986_v44 = vld [vmem:[#allocation26_spill] sm:$0xff] }
0x1307   : > { %v20860_v11 = vpack.c.bf16 %v20374_v47, %v20373_v24  ;;  %v33988_v24 = vld [vmem:[#allocation28_spill] sm:$0xff]  ;;  %v33989_v47 = vld [vmem:[#allocation29_spill] sm:$0xff] }
0x1309   : > { %v26196_v45 = vpop.f32.mrb[108].mxu0  ;;  %26292 = vmatprep.mubr.msk.bf16.mxu1 %vm784_vm3, %v20860_v11  ;;  %v33991_v11 = vld [vmem:[#allocation31_spill] sm:$0xff] }
0x130a   : > { %v20247_v34 = vpop.f32.mrb[109].mxu0  ;;  %26293 = vmatmul.mubr.msk.bf16.gmra.mrb[232].mxu1 %vm784_vm3, %v20861_v32  ;;  %v20379_v0 = vadd.f32 %v26196_v45, %v33231_v50  ;;  %v33990_v32 = vld [vmem:[#allocation30_spill] sm:$0xff]  ;;  %v33992_v45 = vld [vmem:[#allocation32_spill] sm:$0xff] }
0x130b   : > { %v26197_v61 = vpop.f32.mrb[110].mxu0  ;;  %v20377_v63 = vadd.f32 %v33231_v50, %v20247_v34  ;;  %v33993_v34 = vld [vmem:[#allocation33_spill] sm:$0xff] }
0x130c   : > { %v20380_v7 = vadd.f32 %v26197_v61, %v33231_v50  ;;  %v20250_v26 = vpop.f32.mrb[111].mxu0 }
0x130d   : > { %v20378_v60 = vadd.f32 %v33231_v50, %v20250_v26 }
0x130e   : > { %v20863_v43 = vpack.c.bf16 %v20380_v7, %v20379_v0 }
0x130f   : > { %v20862_v6 = vpack.c.bf16 %v20378_v60, %v20377_v63 }
0x1311   : > { %v26200_v9 = vpop.f32.mrb[112].mxu0  ;;  %26296 = vmatprep.mubr.msk.bf16.mxu1 %vm784_vm3, %v20862_v6 }
0x1312   : > { %v20263_v57 = vpop.f32.mrb[113].mxu0  ;;  %26297 = vmatmul.mubr.msk.bf16.gmra.mrb[236].mxu1 %vm784_vm3, %v20863_v43  ;;  %v20383_v51 = vadd.f32 %v26200_v9, %v33231_v50 }
0x1313   : > { %v26201_v46 = vpop.f32.mrb[114].mxu0  ;;  %v20381_v58 = vadd.f32 %v33231_v50, %v20263_v57 }
0x1314   : > { %v20384_v28 = vadd.f32 %v26201_v46, %v33231_v50  ;;  %v20266_v53 = vpop.f32.mrb[115].mxu0 }
0x1315   : > { %v20382_v52 = vadd.f32 %v33231_v50, %v20266_v53 }
0x1316   : > { %v20865_v37 = vpack.c.bf16 %v20384_v28, %v20383_v51 }
0x1317   : > { %v20864_v17 = vpack.c.bf16 %v20382_v52, %v20381_v58 }
0x1319   : > { %v26204_v2 = vpop.f32.mrb[116].mxu0  ;;  %26300 = vmatprep.mubr.msk.bf16.mxu1 %vm784_vm3, %v20864_v17 }
0x131a   : > { %v20279_v8 = vpop.f32.mrb[117].mxu0  ;;  %26301 = vmatmul.mubr.msk.bf16.gmra.mrb[240].mxu1 %vm784_vm3, %v20865_v37  ;;  %v20387_v15 = vadd.f32 %v26204_v2, %v33231_v50 }
0x131b   : > { %v26205_v36 = vpop.f32.mrb[118].mxu0  ;;  %v20385_v29 = vadd.f32 %v33231_v50, %v20279_v8 }
0x131c   : > { %v20388_v14 = vadd.f32 %v26205_v36, %v33231_v50  ;;  %v20282_v33 = vpop.f32.mrb[119].mxu0 }
0x131d   : > { %v20386_v59 = vadd.f32 %v33231_v50, %v20282_v33 }
0x131e   : > { %v20867_v4 = vpack.c.bf16 %v20388_v14, %v20387_v15 }
0x131f   : > { %v20866_v54 = vpack.c.bf16 %v20386_v59, %v20385_v29 }
0x1321   : > { %v26208_v22 = vpop.f32.mrb[120].mxu0  ;;  %26304 = vmatprep.mubr.msk.bf16.mxu1 %vm784_vm3, %v20866_v54 }
0x1322   : > { %v20295_v19 = vpop.f32.mrb[121].mxu0  ;;  %26305 = vmatmul.mubr.msk.bf16.gmra.mrb[244].mxu1 %vm784_vm3, %v20867_v4  ;;  %v20391_v56 = vadd.f32 %v26208_v22, %v33231_v50 }
0x1323   : > { %v26209_v10 = vpop.f32.mrb[122].mxu0  ;;  %v20389_v35 = vadd.f32 %v33231_v50, %v20295_v19 }
0x1324   : > { %v20392_v23 = vadd.f32 %v26209_v10, %v33231_v50  ;;  %v20298_v42 = vpop.f32.mrb[123].mxu0  ;;  %v33363_v10 = vld [vmem:[%s33603_s22] ss:$0 sm:$0xff] }
0x1325   : > { %v20390_v62 = vadd.f32 %v33231_v50, %v20298_v42 }
0x1326   : > { %v20869_v39 = vpack.c.bf16 %v20392_v23, %v20391_v56 }
0x1327   : > { %v20868_v38 = vpack.c.bf16 %v20390_v62, %v20389_v35  ;;  %v33374_v62 = vld [vmem:[%s33994_s4] ss:$0 sm:$0xff]  ;;  %s28369_s4 = scalar_lea.vmem %s28368_s29, 8192 }
0x1328   : > { %p28371_p10 = scmp.lt.s32.totalorder %s28369_s4, %s28363_s11 }
0x1329   : > { %v26212_v12 = vpop.f32.mrb[124].mxu0  ;;  %26308 = vmatprep.mubr.msk.bf16.mxu1 %vm784_vm3, %v20868_v38 }
0x132a   : > { %v20311_v18 = vpop.f32.mrb[125].mxu0  ;;  %26309 = vmatmul.mubr.msk.bf16.gmra.mrb[248].mxu1 %vm784_vm3, %v20869_v39  ;;  %v20395_v20 = vadd.f32 %v26212_v12, %v33231_v50  ;;  %p28372_p0 = por %p28371_p10, %p28370_p8 }
0x132b   : > { %v26213_v21 = vpop.f32.mrb[126].mxu0  ;;  %v20393_v16 = vadd.f32 %v33231_v50, %v20311_v18 }
0x132c   : > { %v20396_v41 = vadd.f32 %v26213_v21, %v33231_v50  ;;  %v20314_v3 = vpop.f32.mrb[127].mxu0  ;;  %p28373_p2 = pnand %p28372_p0, %p28366_p13 }
0x132d   : > { %v20394_v30 = vadd.f32 %v33231_v50, %v20314_v3  ;;  %v33983_v50 = vld [vmem:[#allocation23_spill] sm:$0xff] }
0x132e   : > { %v20871_v1 = vpack.c.bf16 %v20396_v41, %v20395_v20 }
0x132f   : > { %v20870_v13 = vpack.c.bf16 %v20394_v30, %v20393_v16 }
0x1331   : > { %26312 = vmatprep.mubr.msk.bf16.mxu1 %vm784_vm3, %v20870_v13 }
0x1332   : > { %26313 = vmatmul.mubr.msk.bf16.gmra.mrb[252].mxu1 %vm784_vm3, %v20871_v1 }
0x1333   : > { %26320 = vmatprep.mubr.msk.bf16.mxu1 %vm1114_vm0, %v33978_v31 }
0x133a   : > { %26321 = vmatmul.mubr.msk.bf16.vlgmr.msra.gmra.mrb[0].mxu1 %vm1114_vm0, %v33979_v5 }
0x133b   : > { %26324 = vmatprep.mubr.msk.bf16.mxu1 %vm1114_vm0, %v33980_v55 }
0x1342   : > { %26325 = vmatmul.mubr.msk.bf16.gmra.mrb[4].mxu1 %vm1114_vm0, %v33981_v49 }
0x1343   : > { %26328 = vmatprep.mubr.msk.bf16.mxu1 %vm1114_vm0, %v33982_v48 }
0x134a   : > { %26329 = vmatmul.mubr.msk.bf16.gmra.mrb[8].mxu1 %vm1114_vm0, %v33983_v50 }
0x134b   : > { %26332 = vmatprep.mubr.msk.bf16.mxu1 %vm1114_vm0, %v33984_v40 }
0x1352   : > { %26333 = vmatmul.mubr.msk.bf16.gmra.mrb[12].mxu1 %vm1114_vm0, %v33985_v25 }
0x1353   : > { %26336 = vmatprep.mubr.msk.bf16.mxu1 %vm1114_vm0, %v33986_v44 }
0x135a   : > { %26337 = vmatmul.mubr.msk.bf16.gmra.mrb[16].mxu1 %vm1114_vm0, %v33987_v27 }
0x135b   : > { %26340 = vmatprep.mubr.msk.bf16.mxu1 %vm1114_vm0, %v33988_v24 }
0x1362   : > { %26341 = vmatmul.mubr.msk.bf16.gmra.mrb[20].mxu1 %vm1114_vm0, %v33989_v47 }
0x1363   : > { %26344 = vmatprep.mubr.msk.bf16.mxu1 %vm1114_vm0, %v33990_v32 }
0x136a   : > { %26345 = vmatmul.mubr.msk.bf16.gmra.mrb[24].mxu1 %vm1114_vm0, %v33991_v11 }
0x136b   : > { %26348 = vmatprep.mubr.msk.bf16.mxu1 %vm1114_vm0, %v33992_v45 }
0x1372   : > { %26349 = vmatmul.mubr.msk.bf16.gmra.mrb[28].mxu1 %vm1114_vm0, %v33993_v34 }
0x13cd   : > { %v26286_v61 = vpop.f32.mrb[224].mxu1 }
0x13ce   : > { %v20959_v0 = vpop.f32.mrb[225].mxu1  ;;  %v21127_v42 = vadd.f32 %v26286_v61, %v33363_v10 }
0x13cf   : > { %v26287_v7 = vpop.f32.mrb[226].mxu1  ;;  %v21125_v35 = vadd.f32 %v33363_v10, %v20959_v0 }
0x13d0   : > { %v20962_v26 = vpop.f32.mrb[227].mxu1  ;;  %v21128_v39 = vadd.f32 %v26287_v7, %v33363_v10  ;;  %v21343_v18 = vmul.f32 0.1, %v21127_v42 }
0x13d1   : > { %v21126_v38 = vadd.f32 %v33363_v10, %v20962_v26  ;;  %v21341_v41 = vmul.f32 0.1, %v21125_v35 }
0x13d2   : > { %v21344_v30 = vmul.f32 0.1, %v21128_v39 }
0x13d3   : > { %v21342_v5 = vmul.f32 0.1, %v21126_v38 }
0x13d5   : > { %v26290_v63 = vpop.f32.mrb[228].mxu1 }
0x13d6   : > { %v20975_v60 = vpop.f32.mrb[229].mxu1  ;;  %v21131_v48 = vadd.f32 %v26290_v63, %v33363_v10 }
0x13d7   : > { %v26291_v43 = vpop.f32.mrb[230].mxu1  ;;  %v21129_v25 = vadd.f32 %v33363_v10, %v20975_v60 }
0x13d8   : > { %v20978_v6 = vpop.f32.mrb[231].mxu1  ;;  %v21132_v24 = vadd.f32 %v26291_v43, %v33363_v10  ;;  %v21347_v34 = vmul.f32 0.1, %v21131_v48 }
0x13d9   : > { %v21130_v32 = vadd.f32 %v33363_v10, %v20978_v6  ;;  %v21345_v7 = vmul.f32 0.1, %v21129_v25 }
0x13da   : > { %v21348_v60 = vmul.f32 0.1, %v21132_v24 }
0x13db   : > { %v21346_v35 = vmul.f32 0.1, %v21130_v32 }
0x13dd   : > { %v33316_v9 = vpop.f32.mrb[232].mxu1 }
0x13de   : > { %v33318_v57 = vpop.f32.mrb[233].mxu1 }
0x13df   : > { %v33320_v46 = vpop.f32.mrb[234].mxu1 }
0x13e0   : > { %v33322_v51 = vpop.f32.mrb[235].mxu1 }
0x13e5   : > { %v33324_v28 = vpop.f32.mrb[236].mxu1 }
0x13e6   : > { %v33326_v53 = vpop.f32.mrb[237].mxu1  ;;  %v21139_v24 = vadd.f32 %v33324_v28, %v33363_v10 }
0x13e7   : > { %v33328_v58 = vpop.f32.mrb[238].mxu1 }
0x13e8   : > { %v33330_v52 = vpop.f32.mrb[239].mxu1 }
0x13ed   : > { %v33332_v37 = vpop.f32.mrb[240].mxu1 }
0x13ee   : > { %v33334_v17 = vpop.f32.mrb[241].mxu1 }
0x13ef   : > { %v33336_v2 = vpop.f32.mrb[242].mxu1 }
0x13f0   : > { %v33338_v8 = vpop.f32.mrb[243].mxu1 }
0x13f5   : > { %v33340_v36 = vpop.f32.mrb[244].mxu1 }
0x13f6   : > { %v33342_v15 = vpop.f32.mrb[245].mxu1 }
0x13f7   : > { %v33344_v14 = vpop.f32.mrb[246].mxu1 }
0x13f8   : > { %v33346_v33 = vpop.f32.mrb[247].mxu1 }
0x13fd   : > { %v33348_v29 = vpop.f32.mrb[248].mxu1 }
0x13fe   : > { %v33350_v59 = vpop.f32.mrb[249].mxu1 }
0x13ff   : > { %v33352_v4 = vpop.f32.mrb[250].mxu1 }
0x1400   : > { %v33354_v54 = vpop.f32.mrb[251].mxu1 }
0x1405   : > { %v33356_v22 = vpop.f32.mrb[252].mxu1 }
0x1406   : > { %v33358_v19 = vpop.f32.mrb[253].mxu1 }
0x1407   : > { %v33365_v56 = vpop.f32.mrb[254].mxu1 }
0x1408   : > { %v33367_v23 = vpop.f32.mrb[255].mxu1 }
0x140d   : > { %v26322_v12 = vpop.f32.mrb[0].mxu1 }
0x140e   : > { %v21223_v21 = vadd.f32 %v26322_v12, %v33374_v62  ;;  %v21214_v20 = vpop.f32.mrb[1].mxu1  ;;  %v21135_v12 = vadd.f32 %v33316_v9, %v33363_v10 }
0x140f   : > { %v21215_v3 = vadd.f32 %v33374_v62, %v21214_v20  ;;  %v26323_v16 = vpop.f32.mrb[2].mxu1  ;;  %v21133_v20 = vadd.f32 %v33363_v10, %v33318_v57 }
0x1410   : > { %v21375_v1 = vadd.f32 %v21343_v18, %v21223_v21  ;;  %v21226_v13 = vadd.f32 %v26323_v16, %v33374_v62  ;;  %v21217_v31 = vpop.f32.mrb[3].mxu1  ;;  %v21136_v16 = vadd.f32 %v33320_v46, %v33363_v10 }
0x1411   : > { %v21373_v55 = vadd.f32 %v21341_v41, %v21215_v3  ;;  %v21218_v49 = vadd.f32 %v33374_v62, %v21217_v31  ;;  %v21351_v31 = vmul.f32 0.1, %v21135_v12 }
0x1412   : > { %v21407_v50 = vmax.f32 %v21375_v1, 0.0  ;;  %v21376_v40 = vadd.f32 %v21344_v30, %v21226_v13  ;;  %v21134_v1 = vadd.f32 %v33363_v10, %v33322_v51  ;;  %v21352_v48 = vmul.f32 0.1, %v21136_v16 }
0x1413   : > { %v21405_v44 = vmax.f32 %v21373_v55, 0.0  ;;  %v21374_v27 = vadd.f32 %v21342_v5, %v21218_v49  ;;  %v21349_v55 = vmul.f32 0.1, %v21133_v20 }
0x1414   : > { %21439 = vst.msk [vmem:[%s33387_s0 + $0x10] sm:$0xff] %vm1114_vm0, %v21407_v50  ;;  %v21408_v47 = vmax.f32 %v21376_v40, 0.0  ;;  %v21350_v25 = vmul.f32 0.1, %v21134_v1  ;;  %v21144_v1 = vadd.f32 %v33336_v2, %v33363_v10 }
0x1415   : > { %21437 = vst.msk [vmem:[%s33387_s0] sm:$0xff] %vm1114_vm0, %v21405_v44  ;;  %v21406_v11 = vmax.f32 %v21374_v27, 0.0  ;;  %v26326_v45 = vpop.f32.mrb[4].mxu1 }
0x1416   : > { %21440 = vst.msk [vmem:[%s33387_s0 + $0x18] sm:$0xff] %vm1114_vm0, %v21408_v47  ;;  %v21239_v61 = vadd.f32 %v26326_v45, %v33374_v62  ;;  %v21230_v0 = vpop.f32.mrb[5].mxu1 }
0x1417   : > { %21438 = vst.msk [vmem:[%s33387_s0 + $0x8] sm:$0xff] %vm1114_vm0, %v21406_v11  ;;  %v21231_v26 = vadd.f32 %v33374_v62, %v21230_v0  ;;  %v26327_v63 = vpop.f32.mrb[6].mxu1  ;;  %v21137_v11 = vadd.f32 %v33363_v10, %v33326_v53 }
0x1418   : > { %v21379_v43 = vadd.f32 %v21347_v34, %v21239_v61  ;;  %v21242_v6 = vadd.f32 %v26327_v63, %v33374_v62  ;;  %v21233_v42 = vpop.f32.mrb[7].mxu1  ;;  %v21140_v61 = vadd.f32 %v33328_v58, %v33363_v10  ;;  %v21355_v63 = vmul.f32 0.1, %v21139_v24 }
0x1419   : > { %v21377_v39 = vadd.f32 %v21345_v7, %v21231_v26  ;;  %v21234_v38 = vadd.f32 %v33374_v62, %v21233_v42  ;;  %v21138_v7 = vadd.f32 %v33363_v10, %v33330_v52 }
0x141a   : > { %v21411_v18 = vmax.f32 %v21379_v43, 0.0  ;;  %v21380_v21 = vadd.f32 %v21348_v60, %v21242_v6  ;;  %v21353_v43 = vmul.f32 0.1, %v21137_v11  ;;  %v21356_v42 = vmul.f32 0.1, %v21140_v61 }
0x141b   : > { %v21409_v41 = vmax.f32 %v21377_v39, 0.0  ;;  %v21378_v3 = vadd.f32 %v21346_v35, %v21234_v38  ;;  %v21354_v38 = vmul.f32 0.1, %v21138_v7  ;;  %v21146_v61 = vadd.f32 %v33363_v10, %v33346_v33 }
0x141c   : > { %21443 = vst.msk [vmem:[%s33387_s0 + $0x30] sm:$0xff] %vm1114_vm0, %v21411_v18  ;;  %v21412_v30 = vmax.f32 %v21380_v21, 0.0  ;;  %v21143_v21 = vadd.f32 %v33332_v37, %v33363_v10 }
0x141d   : > { %21441 = vst.msk [vmem:[%s33387_s0 + $0x20] sm:$0xff] %vm1114_vm0, %v21409_v41  ;;  %v21410_v9 = vmax.f32 %v21378_v3, 0.0  ;;  %v26330_v13 = vpop.f32.mrb[8].mxu1  ;;  %v21141_v3 = vadd.f32 %v33363_v10, %v33334_v17 }
0x141e   : > { %21444 = vst.msk [vmem:[%s33387_s0 + $0x38] sm:$0xff] %vm1114_vm0, %v21412_v30  ;;  %v21255_v57 = vadd.f32 %v26330_v13, %v33374_v62  ;;  %v21246_v5 = vpop.f32.mrb[9].mxu1  ;;  %v21142_v13 = vadd.f32 %v33363_v10, %v33338_v8 }
0x141f   : > { %21442 = vst.msk [vmem:[%s33387_s0 + $0x28] sm:$0xff] %vm1114_vm0, %v21410_v9  ;;  %v21247_v46 = vadd.f32 %v33374_v62, %v21246_v5  ;;  %v26331_v49 = vpop.f32.mrb[10].mxu1 }
0x1420   : > { %v21383_v50 = vadd.f32 %v21351_v31, %v21255_v57  ;;  %v21258_v51 = vadd.f32 %v26331_v49, %v33374_v62  ;;  %v21249_v40 = vpop.f32.mrb[11].mxu1  ;;  %v21359_v57 = vmul.f32 0.1, %v21143_v21  ;;  %v21360_v49 = vmul.f32 0.1, %v21144_v1 }
0x1421   : > { %v21381_v44 = vadd.f32 %v21349_v55, %v21247_v46  ;;  %v21250_v27 = vadd.f32 %v33374_v62, %v21249_v40  ;;  %v21357_v55 = vmul.f32 0.1, %v21141_v3  ;;  %v21152_v21 = vadd.f32 %v33352_v4, %v33363_v10 }
0x1422   : > { %v21415_v47 = vmax.f32 %v21383_v50, 0.0  ;;  %v21384_v32 = vadd.f32 %v21352_v48, %v21258_v51  ;;  %v21358_v51 = vmul.f32 0.1, %v21142_v13 }
0x1423   : > { %v21413_v45 = vmax.f32 %v21381_v44, 0.0  ;;  %v21382_v34 = vadd.f32 %v21350_v25, %v21250_v27  ;;  %v21147_v44 = vadd.f32 %v33340_v36, %v33363_v10  ;;  %v21368_v13 = vmul.f32 0.1, %v21152_v21 }
0x1424   : > { %21447 = vst.msk [vmem:[%s33387_s0 + $0x50] sm:$0xff] %vm1114_vm0, %v21415_v47  ;;  %v21416_v0 = vmax.f32 %v21384_v32, 0.0  ;;  %v21145_v47 = vadd.f32 %v33363_v10, %v33342_v15 }
0x1425   : > { %21445 = vst.msk [vmem:[%s33387_s0 + $0x40] sm:$0xff] %vm1114_vm0, %v21413_v45  ;;  %v21414_v28 = vmax.f32 %v21382_v34, 0.0  ;;  %v26334_v26 = vpop.f32.mrb[12].mxu1  ;;  %v21148_v45 = vadd.f32 %v33344_v14, %v33363_v10  ;;  %v21363_v7 = vmul.f32 0.1, %v21147_v44 }
0x1426   : > { %21448 = vst.msk [vmem:[%s33387_s0 + $0x58] sm:$0xff] %vm1114_vm0, %v21416_v0  ;;  %v21271_v53 = vadd.f32 %v26334_v26, %v33374_v62  ;;  %v21262_v60 = vpop.f32.mrb[13].mxu1  ;;  %v21361_v26 = vmul.f32 0.1, %v21145_v47 }
0x1427   : > { %21446 = vst.msk [vmem:[%s33387_s0 + $0x48] sm:$0xff] %vm1114_vm0, %v21414_v28  ;;  %v21263_v58 = vadd.f32 %v33374_v62, %v21262_v60  ;;  %v26335_v6 = vpop.f32.mrb[14].mxu1 }
0x1428   : > { %v21387_v35 = vadd.f32 %v21355_v63, %v21271_v53  ;;  %v21274_v52 = vadd.f32 %v26335_v6, %v33374_v62  ;;  %v21265_v39 = vpop.f32.mrb[15].mxu1  ;;  %v21364_v53 = vmul.f32 0.1, %v21148_v45 }
0x1429   : > { %v21385_v12 = vadd.f32 %v21353_v43, %v21263_v58  ;;  %v21266_v18 = vadd.f32 %v33374_v62, %v21265_v39  ;;  %v21362_v58 = vmul.f32 0.1, %v21146_v61 }
0x142a   : > { %v21419_v20 = vmax.f32 %v21387_v35, 0.0  ;;  %v21388_v41 = vadd.f32 %v21356_v42, %v21274_v52  ;;  %v21151_v35 = vadd.f32 %v33348_v29, %v33363_v10 }
0x142b   : > { %v21417_v16 = vmax.f32 %v21385_v12, 0.0  ;;  %v21386_v30 = vadd.f32 %v21354_v38, %v21266_v18  ;;  %v21149_v38 = vadd.f32 %v33363_v10, %v33350_v59 }
0x142c   : > { %21451 = vst.msk [vmem:[%s33387_s0 + $0x70] sm:$0xff] %vm1114_vm0, %v21419_v20  ;;  %v21420_v9 = vmax.f32 %v21388_v41, 0.0  ;;  %v21150_v41 = vadd.f32 %v33363_v10, %v33354_v54 }
0x142d   : > { %21449 = vst.msk [vmem:[%s33387_s0 + $0x60] sm:$0xff] %vm1114_vm0, %v21417_v16  ;;  %v21418_v37 = vmax.f32 %v21386_v30, 0.0  ;;  %v26338_v31 = vpop.f32.mrb[16].mxu1  ;;  %v21367_v16 = vmul.f32 0.1, %v21151_v35 }
0x142e   : > { %21452 = vst.msk [vmem:[%s33387_s0 + $0x78] sm:$0xff] %vm1114_vm0, %v21420_v9  ;;  %v21287_v17 = vadd.f32 %v26338_v31, %v33374_v62  ;;  %v21278_v5 = vpop.f32.mrb[17].mxu1  ;;  %v21365_v1 = vmul.f32 0.1, %v21149_v38 }
0x142f   : > { %21450 = vst.msk [vmem:[%s33387_s0 + $0x68] sm:$0xff] %vm1114_vm0, %v21418_v37  ;;  %v21279_v2 = vadd.f32 %v33374_v62, %v21278_v5  ;;  %v26339_v46 = vpop.f32.mrb[18].mxu1 }
0x1430   : > { %v21391_v48 = vadd.f32 %v21359_v57, %v21287_v17  ;;  %v21290_v8 = vadd.f32 %v26339_v46, %v33374_v62  ;;  %v21281_v50 = vpop.f32.mrb[19].mxu1  ;;  %v21366_v57 = vmul.f32 0.1, %v21150_v41 }
0x1431   : > { %v21389_v40 = vadd.f32 %v21357_v55, %v21279_v2  ;;  %v21282_v25 = vadd.f32 %v33374_v62, %v21281_v50  ;;  %v21155_v55 = vadd.f32 %v33356_v22, %v33363_v10  ;;  %v21156_v50 = vadd.f32 %v33365_v56, %v33363_v10 }
0x1432   : > { %v21423_v27 = vmax.f32 %v21391_v48, 0.0  ;;  %v21392_v24 = vadd.f32 %v21360_v49, %v21290_v8  ;;  %v21153_v49 = vadd.f32 %v33363_v10, %v33358_v19 }
0x1433   : > { %v21421_v32 = vmax.f32 %v21389_v40, 0.0  ;;  %v21390_v11 = vadd.f32 %v21358_v51, %v21282_v25  ;;  %v21154_v40 = vadd.f32 %v33363_v10, %v33367_v23  ;;  %v21371_v44 = vmul.f32 0.1, %v21155_v55 }
0x1434   : > { %21455 = vst.msk [vmem:[%s33387_s0 + $0x90] sm:$0xff] %vm1114_vm0, %v21423_v27  ;;  %v21424_v34 = vmax.f32 %v21392_v24, 0.0  ;;  %v21369_v24 = vmul.f32 0.1, %v21153_v49  ;;  %v21372_v10 = vmul.f32 0.1, %v21156_v50 }
0x1435   : > { %21453 = vst.msk [vmem:[%s33387_s0 + $0x80] sm:$0xff] %vm1114_vm0, %v21421_v32  ;;  %v21422_v36 = vmax.f32 %v21390_v11, 0.0  ;;  %v26342_v0 = vpop.f32.mrb[20].mxu1  ;;  %v21370_v45 = vmul.f32 0.1, %v21154_v40 }
0x1436   : > { %21456 = vst.msk [vmem:[%s33387_s0 + $0x98] sm:$0xff] %vm1114_vm0, %v21424_v34  ;;  %v21303_v15 = vadd.f32 %v26342_v0, %v33374_v62  ;;  %v21294_v28 = vpop.f32.mrb[21].mxu1 }
0x1437   : > { %21454 = vst.msk [vmem:[%s33387_s0 + $0x88] sm:$0xff] %vm1114_vm0, %v21422_v36  ;;  %v21295_v14 = vadd.f32 %v33374_v62, %v21294_v28  ;;  %v26343_v63 = vpop.f32.mrb[22].mxu1 }
0x1438   : > { %v21395_v60 = vadd.f32 %v21363_v7, %v21303_v15  ;;  %v21306_v33 = vadd.f32 %v26343_v63, %v33374_v62  ;;  %v21297_v43 = vpop.f32.mrb[23].mxu1 }
0x1439   : > { %v21393_v6 = vadd.f32 %v21361_v26, %v21295_v14  ;;  %v21298_v42 = vadd.f32 %v33374_v62, %v21297_v43 }
0x143a   : > { %v21427_v52 = vmax.f32 %v21395_v60, 0.0  ;;  %v21396_v39 = vadd.f32 %v21364_v53, %v21306_v33 }
0x143b   : > { %v21425_v12 = vmax.f32 %v21393_v6, 0.0  ;;  %v21394_v18 = vadd.f32 %v21362_v58, %v21298_v42 }
0x143c   : > { %21459 = vst.msk [vmem:[%s33387_s0 + $0xb0] sm:$0xff] %vm1114_vm0, %v21427_v52  ;;  %v21428_v20 = vmax.f32 %v21396_v39, 0.0 }
0x143d   : > { %21457 = vst.msk [vmem:[%s33387_s0 + $0xa0] sm:$0xff] %vm1114_vm0, %v21425_v12  ;;  %v21426_v29 = vmax.f32 %v21394_v18, 0.0  ;;  %v26346_v3 = vpop.f32.mrb[24].mxu1 }
0x143e   : > { %21460 = vst.msk [vmem:[%s33387_s0 + $0xb8] sm:$0xff] %vm1114_vm0, %v21428_v20  ;;  %v21319_v59 = vadd.f32 %v26346_v3, %v33374_v62  ;;  %v21310_v30 = vpop.f32.mrb[25].mxu1 }
0x143f   : > { %21458 = vst.msk [vmem:[%s33387_s0 + $0xa8] sm:$0xff] %vm1114_vm0, %v21426_v29  ;;  %v21311_v4 = vadd.f32 %v33374_v62, %v21310_v30  ;;  %v26347_v9 = vpop.f32.mrb[26].mxu1 }
0x1440   : > { %v21399_v37 = vadd.f32 %v21367_v16, %v21319_v59  ;;  %v21322_v54 = vadd.f32 %v26347_v9, %v33374_v62  ;;  %v21313_v31 = vpop.f32.mrb[27].mxu1 }
0x1441   : > { %v21397_v17 = vadd.f32 %v21365_v1, %v21311_v4  ;;  %v21314_v5 = vadd.f32 %v33374_v62, %v21313_v31 }
0x1442   : > { %v21431_v2 = vmax.f32 %v21399_v37, 0.0  ;;  %v21400_v46 = vadd.f32 %v21368_v13, %v21322_v54 }
0x1443   : > { %v21429_v48 = vmax.f32 %v21397_v17, 0.0  ;;  %v21398_v8 = vadd.f32 %v21366_v57, %v21314_v5 }
0x1444   : > { %21463 = vst.msk [vmem:[%s33387_s0 + $0xd0] sm:$0xff] %vm1114_vm0, %v21431_v2  ;;  %v21432_v51 = vmax.f32 %v21400_v46, 0.0 }
0x1445   : > { %21461 = vst.msk [vmem:[%s33387_s0 + $0xc0] sm:$0xff] %vm1114_vm0, %v21429_v48  ;;  %v21430_v22 = vmax.f32 %v21398_v8, 0.0  ;;  %v26350_v25 = vpop.f32.mrb[28].mxu1 }
0x1446   : > { %21464 = vst.msk [vmem:[%s33387_s0 + $0xd8] sm:$0xff] %vm1114_vm0, %v21432_v51  ;;  %v21335_v19 = vadd.f32 %v26350_v25, %v33374_v62  ;;  %v21326_v27 = vpop.f32.mrb[29].mxu1 }
0x1447   : > { %21462 = vst.msk [vmem:[%s33387_s0 + $0xc8] sm:$0xff] %vm1114_vm0, %v21430_v22  ;;  %v21327_v56 = vadd.f32 %v33374_v62, %v21326_v27  ;;  %v26351_v47 = vpop.f32.mrb[30].mxu1 }
0x1448   : > { %v21403_v23 = vadd.f32 %v21371_v44, %v21335_v19  ;;  %v21338_v32 = vadd.f32 %v26351_v47, %v33374_v62  ;;  %v21329_v11 = vpop.f32.mrb[31].mxu1 }
0x1449   : > { %v21401_v34 = vadd.f32 %v21369_v24, %v21327_v56  ;;  %v21330_v61 = vadd.f32 %v33374_v62, %v21329_v11 }
0x144a   : > { %v21435_v36 = vmax.f32 %v21403_v23, 0.0  ;;  %v21404_v0 = vadd.f32 %v21372_v10, %v21338_v32 }
0x144b   : > { %v21433_v7 = vmax.f32 %v21401_v34, 0.0  ;;  %v21402_v15 = vadd.f32 %v21370_v45, %v21330_v61 }
0x144c   : > { %21467 = vst.msk [vmem:[%s33387_s0 + $0xf0] sm:$0xff] %vm1114_vm0, %v21435_v36  ;;  %v21436_v28 = vmax.f32 %v21404_v0, 0.0 }
0x144d   : > { %21465 = vst.msk [vmem:[%s33387_s0 + $0xe0] sm:$0xff] %vm1114_vm0, %v21433_v7  ;;  %v21434_v62 = vmax.f32 %v21402_v15, 0.0 }
0x144e   : > { %21468 = vst.msk [vmem:[%s33387_s0 + $0xf8] sm:$0xff] %vm1114_vm0, %v21436_v28 }
0x144f   : > { %21466 = vst.msk [vmem:[%s33387_s0 + $0xe8] sm:$0xff] %vm1114_vm0, %v21434_v62 }
0x1450   : > { %28376 = shalt.err (!%p28373_p2)
}
0x1451   : > { %s28377_s0 = scalar_lea.hbm %s33529_s10, 4096  ;;  %s28381_s3 = scalar_lea.hbm %s33997_s7, 8192 }
0x1452   : > { %p28378_p4 = scmp.ne.s32.totalorder %s33529_s10, %s28377_s0  ;;  %p28382_p9 = scmp.lt.u32.totalorder %s33529_s10, %s33997_s7 }
0x1453   : > { %p28383_p1 = scmp.lt.u32.totalorder %s28381_s3, %s28377_s0  ;;  %p28385_p6 = scmp.lt.u32.totalorder %s28377_s0, %s33529_s10 }
0x1454   : > { %p28379_p5 = pnand %p28378_p4, %p33998_p11 }
0x1455   : > { %p28384_p3 = por %p28383_p1, %p28382_p9 }
0x1456   : > { %p28380_p7 = pneg %p28379_p5 }
0x1457   : > { %p28386_p12 = por %p28385_p6, %p28384_p3 }
0x1459   : > { %p28387_p13 = pnand %p28386_p12, %p28380_p7 }
0x145b   : > { %28390 = shalt.err (!%p28387_p13)
}
0x145c   : > { %s28436_s11 = smov 128   ;;  %s28437_s4 = smov 8  }
0x145d   : > { %s33999_s14 = scalar_lea.sflag [#allocation8], %s28672_s1 }
0x145e   : > { %28276 = dma.vmem_to_hbm [thread:$0]  (%p33998_p11), %s33531_s6, 4096, %s33529_s10, %s33999_s14, %s28436_s11, %s28436_s11, %s28437_s4  }
0x145f PF: > { %s34000_s12 = sld [smem:[#allocation12_spill]]  ;;  %p34001_p8 = scmp.ne.s32.totalorder %s33738_s5, 0 }
0x1460   : > { %p34002_p10 = scmp.ge.s32.totalorder %s28429_s30, 2 }
0x1462   : > { %p28283_p0 = pnand %p34002_p10, %p34001_p8 }
0x1465   : > { %s21498_s13 = sand.u32 1, %s34000_s12  }
0x1466   : > { %s21499_s8 = scalar_lea.sflag [#allocation8], %s21498_s13 }
0x1467   : > { %28412 = dma.done.wait (!%p28283_p0), %s21499_s8, 4096  }
0x1468   : > { %28414 = vsyncadd (!%p28283_p0), %s21499_s8, 4294963200  ;;  %s34003_s30 = sld [smem:[#allocation15_spill]]  ;;  %s34004_s0 = sld [smem:[#allocation13_spill]] }
0x1469   : > { %s34005_s6 = sld [smem:[#allocation16_spill]]  ;;  %s34006_s29 = smov %s28421_s2 }
0x146e   : > { %p38_p2 = scmp.ge.s32.totalorder %s34003_s30, 4   ;;  %s34007_s2 = smov %s34004_s0 }
0x1470   :  { %40 = sbr.rel (!%p38_p2) target bundleno = 23 (0x17), region = 235 }
0x1477   :  { %21504 = vsyncpa [#allocation7], 1 }
0x1478   :  { %21506 = vsyncpa [#allocation7 + $0x1], 1 }
0x1479   :  { %21507 = vsyncpa [#allocation8], 1 }
0x147a   :  { %21509 = vsyncpa [#allocation8 + $0x1], 1 }

</bundles_post_ra>
